<compile_context>
chip_gen: v7x
topology: tpu7x:2x2x1
jax: 0.10.0
libtpu: 0.0.40
codegen_flags: <defaults>
</compile_context>

<pallas_src>
import math

import jax
import jax.numpy as jnp
import numpy as np
from jax.experimental import pallas as pl
from jax.experimental.pallas import tpu as pltpu

EPS = 1e-5

# Static network geometry implied by head = Linear(448, 2): input 3x40x80.
#   conv1: 3 ->16, 40x80 -> 18x38
#   conv2: 16->32, 18x38 ->  7x17
#   conv3: 32->32,  7x17 ->  2x 7   (32*2*7 = 448)
L1 = dict(cin=3, cout=16, hin=40, win=80, hout=18, wout=38)
L2 = dict(cin=16, cout=32, hin=18, win=38, hout=7, wout=17)
L3 = dict(cin=32, cout=32, hin=7, win=17, hout=2, wout=7)
HEAD_N = 128  # head output padded to one lane tile (real outputs = first 2 lanes)


# ----------------------------- Pallas kernel ------------------------------- #
def _sel(ho, h, i, dtype):
    # S[r, c] = 1 iff c == 2*r + i : left-multiplying by S picks input rows 2*r+i.
    r = jax.lax.broadcasted_iota(jnp.int32, (ho, h), 0)
    c = jax.lax.broadcasted_iota(jnp.int32, (ho, h), 1)
    return (c == 2 * r + i).astype(dtype)


def _dqn_kernel(x_ref, w1_ref, w2_ref, w3_ref, wh_ref,
                s1_ref, s2_ref, s3_ref, bh_ref, o_ref):
    cdt = jnp.bfloat16

    # ---- layer 1: per input channel, tap-row select then Toeplitz matmul ----
    n1 = L1["wout"] * L1["cout"]                       # 608
    sel1 = [_sel(L1["hout"], L1["hin"], i, cdt) for i in range(5)]
    acc = jnp.zeros((L1["hout"], n1), jnp.float32)
    for c in range(L1["cin"]):
        a_c = x_ref[0, c].astype(cdt)                  # (40, 80)
        for i in range(5):
            rows = jnp.dot(sel1[i], a_c,
                           preferred_element_type=jnp.float32).astype(cdt)  # (18, 80)
            acc = acc + jnp.dot(rows, w1_ref[i * L1["cin"] + c],
                                preferred_element_type=jnp.float32)
    a = jnp.maximum(acc + s1_ref[...], 0.0).astype(cdt)      # (18, 608)  cols = w*16+c

    # ---- layer 2 ----
    n2 = L2["wout"] * L2["cout"]                       # 544
    acc = jnp.zeros((L2["hout"], n2), jnp.float32)
    for i in range(5):
        rows = jnp.dot(_sel(L2["hout"], L2["hin"], i, cdt), a,
                       preferred_element_type=jnp.float32).astype(cdt)      # (7, 608)
        acc = acc + jnp.dot(rows, w2_ref[i], preferred_element_type=jnp.float32)
    a = jnp.maximum(acc + s2_ref[...], 0.0).astype(cdt)      # (7, 544)

    # ---- layer 3 ----
    n3 = L3["wout"] * L3["cout"]                       # 224
    acc = jnp.zeros((L3["hout"], n3), jnp.float32)
    for i in range(5):
        rows = jnp.dot(_sel(L3["hout"], L3["hin"], i, cdt), a,
                       preferred_element_type=jnp.float32).astype(cdt)      # (2, 544)
        acc = acc + jnp.dot(rows, w3_ref[i], preferred_element_type=jnp.float32)
    a = jnp.maximum(acc + s3_ref[...], 0.0).astype(cdt)      # (2, 224)

    # ---- head (PyTorch NCHW flatten order folded into wh host-side) ----
    q = bh_ref[...].astype(jnp.float32)                # (1, 128)
    for h in range(L3["hout"]):
        q = q + jnp.dot(a[h:h + 1, :], wh_ref[h], preferred_element_type=jnp.float32)
    o_ref[...] = q.reshape(1, 1, HEAD_N)


# ------------------------ one-time host-side prep --------------------------- #
def prepare_params(params):
    """Fold BN (eval) + conv bias, build per-tap-row block-Toeplitz matrices,
    permute/pad the head for the NHWC row layout.  Done once, outside the forward."""
    prep = {}
    for li, dims in enumerate((L1, L2, L3), start=1):
        cin, cout = dims["cin"], dims["cout"]
        win, wo = dims["win"], dims["wout"]
        w = np.asarray(params[f"conv{li}_w"], np.float32)       # (cout, cin, 5, 5)
        b = np.asarray(params[f"conv{li}_b"], np.float32)
        gamma = np.asarray(params[f"bn{li}_gamma"], np.float32)
        beta = np.asarray(params[f"bn{li}_beta"], np.float32)
        mean = np.asarray(params[f"bn{li}_mean"], np.float32)
        var = np.asarray(params[f"bn{li}_var"], np.float32)
        scale = gamma / np.sqrt(var + EPS)
        shift = beta + (b - mean) * scale                       # bias folded into BN shift
        w_eff = w * scale[:, None, None, None]                  # BN scale folded into weights
        # big[i, ci, wi, o, co] = w_eff[co, ci, i, wi - 2*o]  (0 outside the 5-tap window)
        big = np.zeros((5, cin, win, wo, cout), np.float32)
        for i in range(5):
            for j in range(5):
                for o in range(wo):
                    big[i, :, 2 * o + j, o, :] = w_eff[:, :, i, j].T
        if li == 1:
            wmat = big.reshape(5 * cin, win, wo * cout)                    # (15, 80, 608)
        else:
            wmat = big.transpose(0, 2, 1, 3, 4).reshape(5, win * cin, wo * cout)
        prep[f"w{li}"] = jnp.asarray(wmat, jnp.bfloat16)
        prep[f"s{li}"] = jnp.asarray(np.tile(shift, wo).reshape(1, wo * cout), jnp.float32)
    # head: PyTorch flattens NCHW (c, h, w); our rows are h with columns (w, c), c fastest.
    hw = np.asarray(params["head_w"], np.float32)               # (2, 448)
    hb = np.asarray(params["head_b"], np.float32)
    whp = hw.reshape(2, L3["cout"], L3["hout"], L3["wout"]) \
            .transpose(2, 3, 1, 0) \
            .reshape(L3["hout"], L3["wout"] * L3["cout"], 2)    # (2, 224, 2)
    wh = np.zeros((L3["hout"], L3["wout"] * L3["cout"], HEAD_N), np.float32)
    wh[:, :, :2] = whp
    bh = np.zeros((1, HEAD_N), np.float32)
    bh[0, :2] = hb
    prep["wh"] = jnp.asarray(wh, jnp.bfloat16)
    prep["bh"] = jnp.asarray(bh, jnp.float32)
    return prep


# ------------------------------ forward ------------------------------------ #
@jax.jit
def dqn_forward(prep, x_nchw):
    B = x_nchw.shape[0]
    n1 = L1["wout"] * L1["cout"]
    n2 = L2["wout"] * L2["cout"]
    n3 = L3["wout"] * L3["cout"]
    flops = 2 * B * (
        15 * (L1["hout"] * L1["hin"] * L1["win"] + L1["hout"] * L1["win"] * n1)
        + 5 * (L2["hout"] * L2["hin"] * n1 + L2["hout"] * n1 * n2)
        + 5 * (L3["hout"] * L3["hin"] * n2 + L3["hout"] * n2 * n3)
        + L3["hout"] * n3 * HEAD_N)
    bytes_accessed = int(
        x_nchw.size * 4 + B * HEAD_N * 4
        + sum(int(v.size) * v.dtype.itemsize for v in prep.values()))

    out = pl.pallas_call(
        _dqn_kernel,
        out_shape=jax.ShapeDtypeStruct((B, 1, HEAD_N), jnp.float32),
        grid=(B,),
        in_specs=[
            pl.BlockSpec((1, 3, L1["hin"], L1["win"]), lambda b: (b, 0, 0, 0)),
            pl.BlockSpec((15, L1["win"], n1), lambda b: (0, 0, 0)),
            pl.BlockSpec((5, L2["win"] * L2["cin"], n2), lambda b: (0, 0, 0)),
            pl.BlockSpec((5, L3["win"] * L3["cin"], n3), lambda b: (0, 0, 0)),
            pl.BlockSpec((L3["hout"], n3, HEAD_N), lambda b: (0, 0, 0)),
            pl.BlockSpec((1, n1), lambda b: (0, 0)),
            pl.BlockSpec((1, n2), lambda b: (0, 0)),
            pl.BlockSpec((1, n3), lambda b: (0, 0)),
            pl.BlockSpec((1, HEAD_N), lambda b: (0, 0)),
        ],
        out_specs=pl.BlockSpec((1, 1, HEAD_N), lambda b: (b, 0, 0)),
        compiler_params=pltpu.CompilerParams(
            dimension_semantics=("parallel",),
            vmem_limit_bytes=32 * 1024 * 1024),
        cost_estimate=pl.CostEstimate(
            flops=flops, transcendentals=0, bytes_accessed=bytes_accessed),
    )(x_nchw, prep["w1"], prep["w2"], prep["w3"], prep["wh"],
      prep["s1"], prep["s2"], prep["s3"], prep["bh"])
    return out[:, 0, :2]


# ------------------------- reference (plain JAX) ---------------------------- #
def dqn_reference(params, x_nchw):
    x = x_nchw
    for li in (1, 2, 3):
        w, b = params[f"conv{li}_w"], params[f"conv{li}_b"]
        x = jax.lax.conv_general_dilated(
            x, w, window_strides=(2, 2), padding="VALID",
            dimension_numbers=("NCHW", "OIHW", "NCHW"))
        x = x + b[None, :, None, None]
        scale = params[f"bn{li}_gamma"] * jax.lax.rsqrt(params[f"bn{li}_var"] + EPS)
        x = (x - params[f"bn{li}_mean"][None, :, None, None]) * scale[None, :, None, None] \
            + params[f"bn{li}_beta"][None, :, None, None]
        x = jnp.maximum(x, 0.0)
    feat = x.reshape(x.shape[0], -1)
    return feat @ params["head_w"].T + params["head_b"]


# ------------------------------ init ---------------------------------------- #
def init_params(key):
    ks = jax.random.split(key, 20)

    def u(k, shape, bound):
        return jax.random.uniform(k, shape, jnp.float32, -bound, bound)

    params = {}
    idx = 0
    for li, (co, ci) in enumerate([(16, 3), (32, 16), (32, 32)], start=1):
        bound = 1.0 / math.sqrt(ci * 25)
        params[f"conv{li}_w"] = u(ks[idx], (co, ci, 5, 5), bound); idx += 1
        params[f"conv{li}_b"] = u(ks[idx], (co,), bound); idx += 1
        params[f"bn{li}_gamma"] = jax.random.uniform(ks[idx], (co,), jnp.float32, 0.5, 1.5); idx += 1
        params[f"bn{li}_beta"] = u(ks[idx], (co,), 0.1); idx += 1
        params[f"bn{li}_mean"] = u(ks[idx], (co,), 0.1); idx += 1
        params[f"bn{li}_var"] = jax.random.uniform(ks[idx], (co,), jnp.float32, 0.5, 1.5); idx += 1
    bound = 1.0 / math.sqrt(448)
    params["head_w"] = u(ks[idx], (2, 448), bound); idx += 1
    params["head_b"] = u(ks[idx], (2,), bound)
    return params


if __name__ == "__main__":
    key = jax.random.PRNGKey(0)
    pkey, xkey = jax.random.split(key)
    params = init_params(pkey)
    prep = prepare_params(params)           # one-time host-side weight prep
    # Smallest input consistent with head = Linear(448, 2): 3x40x80 -> 32*2*7 = 448.
    x = jax.random.normal(xkey, (2, 3, 40, 80), jnp.float32)

    out = jax.block_until_ready(dqn_forward(prep, x))
    ref = jax.block_until_ready(dqn_reference(params, x))

    assert out.shape == (2, 2), out.shape
    np.testing.assert_allclose(np.asarray(out), np.asarray(ref), rtol=2e-2, atol=2e-2)
    print("KERNEL_OK")
</pallas_src>

<mosaic_0001>
module attributes {stable_mosaic.version = 11 : i64} {
  func.func @_dqn_kernel(%arg0: i32, %arg1: memref<1x3x40x80xf32, #tpu.memory_space<vmem>>, %arg2: memref<15x80x608xbf16, #tpu.memory_space<vmem>>, %arg3: memref<5x608x544xbf16, #tpu.memory_space<vmem>>, %arg4: memref<5x544x224xbf16, #tpu.memory_space<vmem>>, %arg5: memref<2x224x128xbf16, #tpu.memory_space<vmem>>, %arg6: memref<1x608xf32, #tpu.memory_space<vmem>>, %arg7: memref<1x544xf32, #tpu.memory_space<vmem>>, %arg8: memref<1x224xf32, #tpu.memory_space<vmem>>, %arg9: memref<1x128xf32, #tpu.memory_space<vmem>>, %arg10: memref<1x1x128xf32, #tpu.memory_space<vmem>>) attributes {dimension_semantics = [#tpu.dimension_semantics<parallel>], iteration_bounds = array<i64: 2>, scalar_prefetch = 0 : i64, scratch_operands = 0 : i64, tpu.core_type = #tpu.core_type<tc>, window_params = [{transform_indices = @transform_0, window_bounds = array<i64: 1, 3, 40, 80>}, {pipeline_mode = #tpu.pipeline_mode<synchronous>, transform_indices = @transform_1, window_bounds = array<i64: 15, 80, 608>}, {pipeline_mode = #tpu.pipeline_mode<synchronous>, transform_indices = @transform_2, window_bounds = array<i64: 5, 608, 544>}, {pipeline_mode = #tpu.pipeline_mode<synchronous>, transform_indices = @transform_3, window_bounds = array<i64: 5, 544, 224>}, {pipeline_mode = #tpu.pipeline_mode<synchronous>, transform_indices = @transform_4, window_bounds = array<i64: 2, 224, 128>}, {pipeline_mode = #tpu.pipeline_mode<synchronous>, transform_indices = @transform_5, window_bounds = array<i64: 1, 608>}, {pipeline_mode = #tpu.pipeline_mode<synchronous>, transform_indices = @transform_6, window_bounds = array<i64: 1, 544>}, {pipeline_mode = #tpu.pipeline_mode<synchronous>, transform_indices = @transform_7, window_bounds = array<i64: 1, 224>}, {pipeline_mode = #tpu.pipeline_mode<synchronous>, transform_indices = @transform_8, window_bounds = array<i64: 1, 128>}, {transform_indices = @transform_9, window_bounds = array<i64: 1, 1, 128>}]} {
    %0 = tpu.iota {dimensions = array<i32: 0>} : vector<18x40xi32>
    %1 = tpu.iota {dimensions = array<i32: 1>} : vector<18x40xi32>
    %c2_i32 = arith.constant 2 : i32
    %2 = vector.broadcast %c2_i32 : i32 to vector<18x40xi32>
    %3 = arith.muli %2, %0 : vector<18x40xi32>
    %c0_i32 = arith.constant 0 : i32
    %4 = vector.broadcast %c0_i32 : i32 to vector<18x40xi32>
    %5 = arith.addi %3, %4 : vector<18x40xi32>
    %6 = arith.cmpi eq, %1, %5 : vector<18x40xi32>
    %7 = arith.extui %6 : vector<18x40xi1> to vector<18x40xi32>
    %8 = arith.sitofp %7 : vector<18x40xi32> to vector<18x40xf32>
    %9 = arith.truncf %8 : vector<18x40xf32> to vector<18x40xbf16>
    %10 = tpu.iota {dimensions = array<i32: 0>} : vector<18x40xi32>
    %11 = tpu.iota {dimensions = array<i32: 1>} : vector<18x40xi32>
    %c2_i32_0 = arith.constant 2 : i32
    %12 = vector.broadcast %c2_i32_0 : i32 to vector<18x40xi32>
    %13 = arith.muli %12, %10 : vector<18x40xi32>
    %c1_i32 = arith.constant 1 : i32
    %14 = vector.broadcast %c1_i32 : i32 to vector<18x40xi32>
    %15 = arith.addi %13, %14 : vector<18x40xi32>
    %16 = arith.cmpi eq, %11, %15 : vector<18x40xi32>
    %17 = arith.extui %16 : vector<18x40xi1> to vector<18x40xi32>
    %18 = arith.sitofp %17 : vector<18x40xi32> to vector<18x40xf32>
    %19 = arith.truncf %18 : vector<18x40xf32> to vector<18x40xbf16>
    %20 = tpu.iota {dimensions = array<i32: 0>} : vector<18x40xi32>
    %21 = tpu.iota {dimensions = array<i32: 1>} : vector<18x40xi32>
    %c2_i32_1 = arith.constant 2 : i32
    %22 = vector.broadcast %c2_i32_1 : i32 to vector<18x40xi32>
    %23 = arith.muli %22, %20 : vector<18x40xi32>
    %c2_i32_2 = arith.constant 2 : i32
    %24 = vector.broadcast %c2_i32_2 : i32 to vector<18x40xi32>
    %25 = arith.addi %23, %24 : vector<18x40xi32>
    %26 = arith.cmpi eq, %21, %25 : vector<18x40xi32>
    %27 = arith.extui %26 : vector<18x40xi1> to vector<18x40xi32>
    %28 = arith.sitofp %27 : vector<18x40xi32> to vector<18x40xf32>
    %29 = arith.truncf %28 : vector<18x40xf32> to vector<18x40xbf16>
    %30 = tpu.iota {dimensions = array<i32: 0>} : vector<18x40xi32>
    %31 = tpu.iota {dimensions = array<i32: 1>} : vector<18x40xi32>
    %c2_i32_3 = arith.constant 2 : i32
    %32 = vector.broadcast %c2_i32_3 : i32 to vector<18x40xi32>
    %33 = arith.muli %32, %30 : vector<18x40xi32>
    %c3_i32 = arith.constant 3 : i32
    %34 = vector.broadcast %c3_i32 : i32 to vector<18x40xi32>
    %35 = arith.addi %33, %34 : vector<18x40xi32>
    %36 = arith.cmpi eq, %31, %35 : vector<18x40xi32>
    %37 = arith.extui %36 : vector<18x40xi1> to vector<18x40xi32>
    %38 = arith.sitofp %37 : vector<18x40xi32> to vector<18x40xf32>
    %39 = arith.truncf %38 : vector<18x40xf32> to vector<18x40xbf16>
    %40 = tpu.iota {dimensions = array<i32: 0>} : vector<18x40xi32>
    %41 = tpu.iota {dimensions = array<i32: 1>} : vector<18x40xi32>
    %c2_i32_4 = arith.constant 2 : i32
    %42 = vector.broadcast %c2_i32_4 : i32 to vector<18x40xi32>
    %43 = arith.muli %42, %40 : vector<18x40xi32>
    %c4_i32 = arith.constant 4 : i32
    %44 = vector.broadcast %c4_i32 : i32 to vector<18x40xi32>
    %45 = arith.addi %43, %44 : vector<18x40xi32>
    %46 = arith.cmpi eq, %41, %45 : vector<18x40xi32>
    %47 = arith.extui %46 : vector<18x40xi1> to vector<18x40xi32>
    %48 = arith.sitofp %47 : vector<18x40xi32> to vector<18x40xf32>
    %49 = arith.truncf %48 : vector<18x40xf32> to vector<18x40xbf16>
    %cst = arith.constant 0.000000e+00 : f32
    %50 = vector.broadcast %cst : f32 to vector<18x608xf32>
    %c0 = arith.constant 0 : index
    %c0_5 = arith.constant 0 : index
    %c0_6 = arith.constant 0 : index
    %c0_7 = arith.constant 0 : index
    %51 = vector.load %arg1[%c0, %c0_5, %c0_6, %c0_7] : memref<1x3x40x80xf32, #tpu.memory_space<vmem>>, vector<1x1x40x80xf32>
    %52 = vector.shape_cast %51 : vector<1x1x40x80xf32> to vector<40x80xf32>
    %53 = arith.truncf %52 : vector<40x80xf32> to vector<40x80xbf16>
    %cst_8 = arith.constant dense<0.000000e+00> : vector<18x80xf32>
    %54 = tpu.matmul %9, %53, %cst_8 {dimension_numbers = #tpu.dot_dimension_numbers<[1], [0], [0], [1], [0, 0, 1, 1], [], []>} : vector<18x40xbf16>, vector<40x80xbf16>, vector<18x80xf32> -> vector<18x80xf32>
    %55 = arith.truncf %54 : vector<18x80xf32> to vector<18x80xbf16>
    %c0_9 = arith.constant 0 : index
    %c0_10 = arith.constant 0 : index
    %c0_11 = arith.constant 0 : index
    %56 = vector.load %arg2[%c0_9, %c0_10, %c0_11] : memref<15x80x608xbf16, #tpu.memory_space<vmem>>, vector<1x80x608xbf16>
    %57 = vector.shape_cast %56 : vector<1x80x608xbf16> to vector<80x608xbf16>
    %cst_12 = arith.constant dense<0.000000e+00> : vector<18x608xf32>
    %58 = tpu.matmul %55, %57, %cst_12 {dimension_numbers = #tpu.dot_dimension_numbers<[1], [0], [0], [1], [0, 0, 1, 1], [], []>} : vector<18x80xbf16>, vector<80x608xbf16>, vector<18x608xf32> -> vector<18x608xf32>
    %59 = arith.addf %50, %58 : vector<18x608xf32>
    %cst_13 = arith.constant dense<0.000000e+00> : vector<18x80xf32>
    %60 = tpu.matmul %19, %53, %cst_13 {dimension_numbers = #tpu.dot_dimension_numbers<[1], [0], [0], [1], [0, 0, 1, 1], [], []>} : vector<18x40xbf16>, vector<40x80xbf16>, vector<18x80xf32> -> vector<18x80xf32>
    %61 = arith.truncf %60 : vector<18x80xf32> to vector<18x80xbf16>
    %c3 = arith.constant 3 : index
    %c0_14 = arith.constant 0 : index
    %c0_15 = arith.constant 0 : index
    %62 = vector.load %arg2[%c3, %c0_14, %c0_15] : memref<15x80x608xbf16, #tpu.memory_space<vmem>>, vector<1x80x608xbf16>
    %63 = vector.shape_cast %62 : vector<1x80x608xbf16> to vector<80x608xbf16>
    %cst_16 = arith.constant dense<0.000000e+00> : vector<18x608xf32>
    %64 = tpu.matmul %61, %63, %cst_16 {dimension_numbers = #tpu.dot_dimension_numbers<[1], [0], [0], [1], [0, 0, 1, 1], [], []>} : vector<18x80xbf16>, vector<80x608xbf16>, vector<18x608xf32> -> vector<18x608xf32>
    %65 = arith.addf %59, %64 : vector<18x608xf32>
    %cst_17 = arith.constant dense<0.000000e+00> : vector<18x80xf32>
    %66 = tpu.matmul %29, %53, %cst_17 {dimension_numbers = #tpu.dot_dimension_numbers<[1], [0], [0], [1], [0, 0, 1, 1], [], []>} : vector<18x40xbf16>, vector<40x80xbf16>, vector<18x80xf32> -> vector<18x80xf32>
    %67 = arith.truncf %66 : vector<18x80xf32> to vector<18x80xbf16>
    %c6 = arith.constant 6 : index
    %c0_18 = arith.constant 0 : index
    %c0_19 = arith.constant 0 : index
    %68 = vector.load %arg2[%c6, %c0_18, %c0_19] : memref<15x80x608xbf16, #tpu.memory_space<vmem>>, vector<1x80x608xbf16>
    %69 = vector.shape_cast %68 : vector<1x80x608xbf16> to vector<80x608xbf16>
    %cst_20 = arith.constant dense<0.000000e+00> : vector<18x608xf32>
    %70 = tpu.matmul %67, %69, %cst_20 {dimension_numbers = #tpu.dot_dimension_numbers<[1], [0], [0], [1], [0, 0, 1, 1], [], []>} : vector<18x80xbf16>, vector<80x608xbf16>, vector<18x608xf32> -> vector<18x608xf32>
    %71 = arith.addf %65, %70 : vector<18x608xf32>
    %cst_21 = arith.constant dense<0.000000e+00> : vector<18x80xf32>
    %72 = tpu.matmul %39, %53, %cst_21 {dimension_numbers = #tpu.dot_dimension_numbers<[1], [0], [0], [1], [0, 0, 1, 1], [], []>} : vector<18x40xbf16>, vector<40x80xbf16>, vector<18x80xf32> -> vector<18x80xf32>
    %73 = arith.truncf %72 : vector<18x80xf32> to vector<18x80xbf16>
    %c9 = arith.constant 9 : index
    %c0_22 = arith.constant 0 : index
    %c0_23 = arith.constant 0 : index
    %74 = vector.load %arg2[%c9, %c0_22, %c0_23] : memref<15x80x608xbf16, #tpu.memory_space<vmem>>, vector<1x80x608xbf16>
    %75 = vector.shape_cast %74 : vector<1x80x608xbf16> to vector<80x608xbf16>
    %cst_24 = arith.constant dense<0.000000e+00> : vector<18x608xf32>
    %76 = tpu.matmul %73, %75, %cst_24 {dimension_numbers = #tpu.dot_dimension_numbers<[1], [0], [0], [1], [0, 0, 1, 1], [], []>} : vector<18x80xbf16>, vector<80x608xbf16>, vector<18x608xf32> -> vector<18x608xf32>
    %77 = arith.addf %71, %76 : vector<18x608xf32>
    %cst_25 = arith.constant dense<0.000000e+00> : vector<18x80xf32>
    %78 = tpu.matmul %49, %53, %cst_25 {dimension_numbers = #tpu.dot_dimension_numbers<[1], [0], [0], [1], [0, 0, 1, 1], [], []>} : vector<18x40xbf16>, vector<40x80xbf16>, vector<18x80xf32> -> vector<18x80xf32>
    %79 = arith.truncf %78 : vector<18x80xf32> to vector<18x80xbf16>
    %c12 = arith.constant 12 : index
    %c0_26 = arith.constant 0 : index
    %c0_27 = arith.constant 0 : index
    %80 = vector.load %arg2[%c12, %c0_26, %c0_27] : memref<15x80x608xbf16, #tpu.memory_space<vmem>>, vector<1x80x608xbf16>
    %81 = vector.shape_cast %80 : vector<1x80x608xbf16> to vector<80x608xbf16>
    %cst_28 = arith.constant dense<0.000000e+00> : vector<18x608xf32>
    %82 = tpu.matmul %79, %81, %cst_28 {dimension_numbers = #tpu.dot_dimension_numbers<[1], [0], [0], [1], [0, 0, 1, 1], [], []>} : vector<18x80xbf16>, vector<80x608xbf16>, vector<18x608xf32> -> vector<18x608xf32>
    %83 = arith.addf %77, %82 : vector<18x608xf32>
    %c0_29 = arith.constant 0 : index
    %c1 = arith.constant 1 : index
    %c0_30 = arith.constant 0 : index
    %c0_31 = arith.constant 0 : index
    %84 = vector.load %arg1[%c0_29, %c1, %c0_30, %c0_31] : memref<1x3x40x80xf32, #tpu.memory_space<vmem>>, vector<1x1x40x80xf32>
    %85 = vector.shape_cast %84 : vector<1x1x40x80xf32> to vector<40x80xf32>
    %86 = arith.truncf %85 : vector<40x80xf32> to vector<40x80xbf16>
    %cst_32 = arith.constant dense<0.000000e+00> : vector<18x80xf32>
    %87 = tpu.matmul %9, %86, %cst_32 {dimension_numbers = #tpu.dot_dimension_numbers<[1], [0], [0], [1], [0, 0, 1, 1], [], []>} : vector<18x40xbf16>, vector<40x80xbf16>, vector<18x80xf32> -> vector<18x80xf32>
    %88 = arith.truncf %87 : vector<18x80xf32> to vector<18x80xbf16>
    %c1_33 = arith.constant 1 : index
    %c0_34 = arith.constant 0 : index
    %c0_35 = arith.constant 0 : index
    %89 = vector.load %arg2[%c1_33, %c0_34, %c0_35] : memref<15x80x608xbf16, #tpu.memory_space<vmem>>, vector<1x80x608xbf16>
    %90 = vector.shape_cast %89 : vector<1x80x608xbf16> to vector<80x608xbf16>
    %cst_36 = arith.constant dense<0.000000e+00> : vector<18x608xf32>
    %91 = tpu.matmul %88, %90, %cst_36 {dimension_numbers = #tpu.dot_dimension_numbers<[1], [0], [0], [1], [0, 0, 1, 1], [], []>} : vector<18x80xbf16>, vector<80x608xbf16>, vector<18x608xf32> -> vector<18x608xf32>
    %92 = arith.addf %83, %91 : vector<18x608xf32>
    %cst_37 = arith.constant dense<0.000000e+00> : vector<18x80xf32>
    %93 = tpu.matmul %19, %86, %cst_37 {dimension_numbers = #tpu.dot_dimension_numbers<[1], [0], [0], [1], [0, 0, 1, 1], [], []>} : vector<18x40xbf16>, vector<40x80xbf16>, vector<18x80xf32> -> vector<18x80xf32>
    %94 = arith.truncf %93 : vector<18x80xf32> to vector<18x80xbf16>
    %c4 = arith.constant 4 : index
    %c0_38 = arith.constant 0 : index
    %c0_39 = arith.constant 0 : index
    %95 = vector.load %arg2[%c4, %c0_38, %c0_39] : memref<15x80x608xbf16, #tpu.memory_space<vmem>>, vector<1x80x608xbf16>
    %96 = vector.shape_cast %95 : vector<1x80x608xbf16> to vector<80x608xbf16>
    %cst_40 = arith.constant dense<0.000000e+00> : vector<18x608xf32>
    %97 = tpu.matmul %94, %96, %cst_40 {dimension_numbers = #tpu.dot_dimension_numbers<[1], [0], [0], [1], [0, 0, 1, 1], [], []>} : vector<18x80xbf16>, vector<80x608xbf16>, vector<18x608xf32> -> vector<18x608xf32>
    %98 = arith.addf %92, %97 : vector<18x608xf32>
    %cst_41 = arith.constant dense<0.000000e+00> : vector<18x80xf32>
    %99 = tpu.matmul %29, %86, %cst_41 {dimension_numbers = #tpu.dot_dimension_numbers<[1], [0], [0], [1], [0, 0, 1, 1], [], []>} : vector<18x40xbf16>, vector<40x80xbf16>, vector<18x80xf32> -> vector<18x80xf32>
    %100 = arith.truncf %99 : vector<18x80xf32> to vector<18x80xbf16>
    %c7 = arith.constant 7 : index
    %c0_42 = arith.constant 0 : index
    %c0_43 = arith.constant 0 : index
    %101 = vector.load %arg2[%c7, %c0_42, %c0_43] : memref<15x80x608xbf16, #tpu.memory_space<vmem>>, vector<1x80x608xbf16>
    %102 = vector.shape_cast %101 : vector<1x80x608xbf16> to vector<80x608xbf16>
    %cst_44 = arith.constant dense<0.000000e+00> : vector<18x608xf32>
    %103 = tpu.matmul %100, %102, %cst_44 {dimension_numbers = #tpu.dot_dimension_numbers<[1], [0], [0], [1], [0, 0, 1, 1], [], []>} : vector<18x80xbf16>, vector<80x608xbf16>, vector<18x608xf32> -> vector<18x608xf32>
    %104 = arith.addf %98, %103 : vector<18x608xf32>
    %cst_45 = arith.constant dense<0.000000e+00> : vector<18x80xf32>
    %105 = tpu.matmul %39, %86, %cst_45 {dimension_numbers = #tpu.dot_dimension_numbers<[1], [0], [0], [1], [0, 0, 1, 1], [], []>} : vector<18x40xbf16>, vector<40x80xbf16>, vector<18x80xf32> -> vector<18x80xf32>
    %106 = arith.truncf %105 : vector<18x80xf32> to vector<18x80xbf16>
    %c10 = arith.constant 10 : index
    %c0_46 = arith.constant 0 : index
    %c0_47 = arith.constant 0 : index
    %107 = vector.load %arg2[%c10, %c0_46, %c0_47] : memref<15x80x608xbf16, #tpu.memory_space<vmem>>, vector<1x80x608xbf16>
    %108 = vector.shape_cast %107 : vector<1x80x608xbf16> to vector<80x608xbf16>
    %cst_48 = arith.constant dense<0.000000e+00> : vector<18x608xf32>
    %109 = tpu.matmul %106, %108, %cst_48 {dimension_numbers = #tpu.dot_dimension_numbers<[1], [0], [0], [1], [0, 0, 1, 1], [], []>} : vector<18x80xbf16>, vector<80x608xbf16>, vector<18x608xf32> -> vector<18x608xf32>
    %110 = arith.addf %104, %109 : vector<18x608xf32>
    %cst_49 = arith.constant dense<0.000000e+00> : vector<18x80xf32>
    %111 = tpu.matmul %49, %86, %cst_49 {dimension_numbers = #tpu.dot_dimension_numbers<[1], [0], [0], [1], [0, 0, 1, 1], [], []>} : vector<18x40xbf16>, vector<40x80xbf16>, vector<18x80xf32> -> vector<18x80xf32>
    %112 = arith.truncf %111 : vector<18x80xf32> to vector<18x80xbf16>
    %c13 = arith.constant 13 : index
    %c0_50 = arith.constant 0 : index
    %c0_51 = arith.constant 0 : index
    %113 = vector.load %arg2[%c13, %c0_50, %c0_51] : memref<15x80x608xbf16, #tpu.memory_space<vmem>>, vector<1x80x608xbf16>
    %114 = vector.shape_cast %113 : vector<1x80x608xbf16> to vector<80x608xbf16>
    %cst_52 = arith.constant dense<0.000000e+00> : vector<18x608xf32>
    %115 = tpu.matmul %112, %114, %cst_52 {dimension_numbers = #tpu.dot_dimension_numbers<[1], [0], [0], [1], [0, 0, 1, 1], [], []>} : vector<18x80xbf16>, vector<80x608xbf16>, vector<18x608xf32> -> vector<18x608xf32>
    %116 = arith.addf %110, %115 : vector<18x608xf32>
    %c0_53 = arith.constant 0 : index
    %c2 = arith.constant 2 : index
    %c0_54 = arith.constant 0 : index
    %c0_55 = arith.constant 0 : index
    %117 = vector.load %arg1[%c0_53, %c2, %c0_54, %c0_55] : memref<1x3x40x80xf32, #tpu.memory_space<vmem>>, vector<1x1x40x80xf32>
    %118 = vector.shape_cast %117 : vector<1x1x40x80xf32> to vector<40x80xf32>
    %119 = arith.truncf %118 : vector<40x80xf32> to vector<40x80xbf16>
    %cst_56 = arith.constant dense<0.000000e+00> : vector<18x80xf32>
    %120 = tpu.matmul %9, %119, %cst_56 {dimension_numbers = #tpu.dot_dimension_numbers<[1], [0], [0], [1], [0, 0, 1, 1], [], []>} : vector<18x40xbf16>, vector<40x80xbf16>, vector<18x80xf32> -> vector<18x80xf32>
    %121 = arith.truncf %120 : vector<18x80xf32> to vector<18x80xbf16>
    %c2_57 = arith.constant 2 : index
    %c0_58 = arith.constant 0 : index
    %c0_59 = arith.constant 0 : index
    %122 = vector.load %arg2[%c2_57, %c0_58, %c0_59] : memref<15x80x608xbf16, #tpu.memory_space<vmem>>, vector<1x80x608xbf16>
    %123 = vector.shape_cast %122 : vector<1x80x608xbf16> to vector<80x608xbf16>
    %cst_60 = arith.constant dense<0.000000e+00> : vector<18x608xf32>
    %124 = tpu.matmul %121, %123, %cst_60 {dimension_numbers = #tpu.dot_dimension_numbers<[1], [0], [0], [1], [0, 0, 1, 1], [], []>} : vector<18x80xbf16>, vector<80x608xbf16>, vector<18x608xf32> -> vector<18x608xf32>
    %125 = arith.addf %116, %124 : vector<18x608xf32>
    %cst_61 = arith.constant dense<0.000000e+00> : vector<18x80xf32>
    %126 = tpu.matmul %19, %119, %cst_61 {dimension_numbers = #tpu.dot_dimension_numbers<[1], [0], [0], [1], [0, 0, 1, 1], [], []>} : vector<18x40xbf16>, vector<40x80xbf16>, vector<18x80xf32> -> vector<18x80xf32>
    %127 = arith.truncf %126 : vector<18x80xf32> to vector<18x80xbf16>
    %c5 = arith.constant 5 : index
    %c0_62 = arith.constant 0 : index
    %c0_63 = arith.constant 0 : index
    %128 = vector.load %arg2[%c5, %c0_62, %c0_63] : memref<15x80x608xbf16, #tpu.memory_space<vmem>>, vector<1x80x608xbf16>
    %129 = vector.shape_cast %128 : vector<1x80x608xbf16> to vector<80x608xbf16>
    %cst_64 = arith.constant dense<0.000000e+00> : vector<18x608xf32>
    %130 = tpu.matmul %127, %129, %cst_64 {dimension_numbers = #tpu.dot_dimension_numbers<[1], [0], [0], [1], [0, 0, 1, 1], [], []>} : vector<18x80xbf16>, vector<80x608xbf16>, vector<18x608xf32> -> vector<18x608xf32>
    %131 = arith.addf %125, %130 : vector<18x608xf32>
    %cst_65 = arith.constant dense<0.000000e+00> : vector<18x80xf32>
    %132 = tpu.matmul %29, %119, %cst_65 {dimension_numbers = #tpu.dot_dimension_numbers<[1], [0], [0], [1], [0, 0, 1, 1], [], []>} : vector<18x40xbf16>, vector<40x80xbf16>, vector<18x80xf32> -> vector<18x80xf32>
    %133 = arith.truncf %132 : vector<18x80xf32> to vector<18x80xbf16>
    %c8 = arith.constant 8 : index
    %c0_66 = arith.constant 0 : index
    %c0_67 = arith.constant 0 : index
    %134 = vector.load %arg2[%c8, %c0_66, %c0_67] : memref<15x80x608xbf16, #tpu.memory_space<vmem>>, vector<1x80x608xbf16>
    %135 = vector.shape_cast %134 : vector<1x80x608xbf16> to vector<80x608xbf16>
    %cst_68 = arith.constant dense<0.000000e+00> : vector<18x608xf32>
    %136 = tpu.matmul %133, %135, %cst_68 {dimension_numbers = #tpu.dot_dimension_numbers<[1], [0], [0], [1], [0, 0, 1, 1], [], []>} : vector<18x80xbf16>, vector<80x608xbf16>, vector<18x608xf32> -> vector<18x608xf32>
    %137 = arith.addf %131, %136 : vector<18x608xf32>
    %cst_69 = arith.constant dense<0.000000e+00> : vector<18x80xf32>
    %138 = tpu.matmul %39, %119, %cst_69 {dimension_numbers = #tpu.dot_dimension_numbers<[1], [0], [0], [1], [0, 0, 1, 1], [], []>} : vector<18x40xbf16>, vector<40x80xbf16>, vector<18x80xf32> -> vector<18x80xf32>
    %139 = arith.truncf %138 : vector<18x80xf32> to vector<18x80xbf16>
    %c11 = arith.constant 11 : index
    %c0_70 = arith.constant 0 : index
    %c0_71 = arith.constant 0 : index
    %140 = vector.load %arg2[%c11, %c0_70, %c0_71] : memref<15x80x608xbf16, #tpu.memory_space<vmem>>, vector<1x80x608xbf16>
    %141 = vector.shape_cast %140 : vector<1x80x608xbf16> to vector<80x608xbf16>
    %cst_72 = arith.constant dense<0.000000e+00> : vector<18x608xf32>
    %142 = tpu.matmul %139, %141, %cst_72 {dimension_numbers = #tpu.dot_dimension_numbers<[1], [0], [0], [1], [0, 0, 1, 1], [], []>} : vector<18x80xbf16>, vector<80x608xbf16>, vector<18x608xf32> -> vector<18x608xf32>
    %143 = arith.addf %137, %142 : vector<18x608xf32>
    %cst_73 = arith.constant dense<0.000000e+00> : vector<18x80xf32>
    %144 = tpu.matmul %49, %119, %cst_73 {dimension_numbers = #tpu.dot_dimension_numbers<[1], [0], [0], [1], [0, 0, 1, 1], [], []>} : vector<18x40xbf16>, vector<40x80xbf16>, vector<18x80xf32> -> vector<18x80xf32>
    %145 = arith.truncf %144 : vector<18x80xf32> to vector<18x80xbf16>
    %c14 = arith.constant 14 : index
    %c0_74 = arith.constant 0 : index
    %c0_75 = arith.constant 0 : index
    %146 = vector.load %arg2[%c14, %c0_74, %c0_75] : memref<15x80x608xbf16, #tpu.memory_space<vmem>>, vector<1x80x608xbf16>
    %147 = vector.shape_cast %146 : vector<1x80x608xbf16> to vector<80x608xbf16>
    %cst_76 = arith.constant dense<0.000000e+00> : vector<18x608xf32>
    %148 = tpu.matmul %145, %147, %cst_76 {dimension_numbers = #tpu.dot_dimension_numbers<[1], [0], [0], [1], [0, 0, 1, 1], [], []>} : vector<18x80xbf16>, vector<80x608xbf16>, vector<18x608xf32> -> vector<18x608xf32>
    %149 = arith.addf %143, %148 : vector<18x608xf32>
    %c0_77 = arith.constant 0 : index
    %c0_78 = arith.constant 0 : index
    %150 = vector.load %arg6[%c0_77, %c0_78] : memref<1x608xf32, #tpu.memory_space<vmem>>, vector<1x608xf32>
    %151 = vector.broadcast %150 : vector<1x608xf32> to vector<18x608xf32>
    %152 = arith.addf %149, %151 : vector<18x608xf32>
    %cst_79 = arith.constant 0.000000e+00 : f32
    %153 = vector.broadcast %cst_79 : f32 to vector<18x608xf32>
    %154 = arith.maximumf %152, %153 : vector<18x608xf32>
    %155 = arith.truncf %154 : vector<18x608xf32> to vector<18x608xbf16>
    %cst_80 = arith.constant 0.000000e+00 : f32
    %156 = vector.broadcast %cst_80 : f32 to vector<7x544xf32>
    %157 = tpu.iota {dimensions = array<i32: 0>} : vector<7x18xi32>
    %158 = tpu.iota {dimensions = array<i32: 1>} : vector<7x18xi32>
    %c2_i32_81 = arith.constant 2 : i32
    %159 = vector.broadcast %c2_i32_81 : i32 to vector<7x18xi32>
    %160 = arith.muli %159, %157 : vector<7x18xi32>
    %c0_i32_82 = arith.constant 0 : i32
    %161 = vector.broadcast %c0_i32_82 : i32 to vector<7x18xi32>
    %162 = arith.addi %160, %161 : vector<7x18xi32>
    %163 = arith.cmpi eq, %158, %162 : vector<7x18xi32>
    %164 = arith.extui %163 : vector<7x18xi1> to vector<7x18xi32>
    %165 = arith.sitofp %164 : vector<7x18xi32> to vector<7x18xf32>
    %166 = arith.truncf %165 : vector<7x18xf32> to vector<7x18xbf16>
    %cst_83 = arith.constant dense<0.000000e+00> : vector<7x608xf32>
    %167 = tpu.matmul %166, %155, %cst_83 {dimension_numbers = #tpu.dot_dimension_numbers<[1], [0], [0], [1], [0, 0, 1, 1], [], []>} : vector<7x18xbf16>, vector<18x608xbf16>, vector<7x608xf32> -> vector<7x608xf32>
    %168 = arith.truncf %167 : vector<7x608xf32> to vector<7x608xbf16>
    %c0_84 = arith.constant 0 : index
    %c0_85 = arith.constant 0 : index
    %c0_86 = arith.constant 0 : index
    %169 = vector.load %arg3[%c0_84, %c0_85, %c0_86] : memref<5x608x544xbf16, #tpu.memory_space<vmem>>, vector<1x608x544xbf16>
    %170 = vector.shape_cast %169 : vector<1x608x544xbf16> to vector<608x544xbf16>
    %cst_87 = arith.constant dense<0.000000e+00> : vector<7x544xf32>
    %171 = tpu.matmul %168, %170, %cst_87 {dimension_numbers = #tpu.dot_dimension_numbers<[1], [0], [0], [1], [0, 0, 1, 1], [], []>} : vector<7x608xbf16>, vector<608x544xbf16>, vector<7x544xf32> -> vector<7x544xf32>
    %172 = arith.addf %156, %171 : vector<7x544xf32>
    %173 = tpu.iota {dimensions = array<i32: 0>} : vector<7x18xi32>
    %174 = tpu.iota {dimensions = array<i32: 1>} : vector<7x18xi32>
    %c2_i32_88 = arith.constant 2 : i32
    %175 = vector.broadcast %c2_i32_88 : i32 to vector<7x18xi32>
    %176 = arith.muli %175, %173 : vector<7x18xi32>
    %c1_i32_89 = arith.constant 1 : i32
    %177 = vector.broadcast %c1_i32_89 : i32 to vector<7x18xi32>
    %178 = arith.addi %176, %177 : vector<7x18xi32>
    %179 = arith.cmpi eq, %174, %178 : vector<7x18xi32>
    %180 = arith.extui %179 : vector<7x18xi1> to vector<7x18xi32>
    %181 = arith.sitofp %180 : vector<7x18xi32> to vector<7x18xf32>
    %182 = arith.truncf %181 : vector<7x18xf32> to vector<7x18xbf16>
    %cst_90 = arith.constant dense<0.000000e+00> : vector<7x608xf32>
    %183 = tpu.matmul %182, %155, %cst_90 {dimension_numbers = #tpu.dot_dimension_numbers<[1], [0], [0], [1], [0, 0, 1, 1], [], []>} : vector<7x18xbf16>, vector<18x608xbf16>, vector<7x608xf32> -> vector<7x608xf32>
    %184 = arith.truncf %183 : vector<7x608xf32> to vector<7x608xbf16>
    %c1_91 = arith.constant 1 : index
    %c0_92 = arith.constant 0 : index
    %c0_93 = arith.constant 0 : index
    %185 = vector.load %arg3[%c1_91, %c0_92, %c0_93] : memref<5x608x544xbf16, #tpu.memory_space<vmem>>, vector<1x608x544xbf16>
    %186 = vector.shape_cast %185 : vector<1x608x544xbf16> to vector<608x544xbf16>
    %cst_94 = arith.constant dense<0.000000e+00> : vector<7x544xf32>
    %187 = tpu.matmul %184, %186, %cst_94 {dimension_numbers = #tpu.dot_dimension_numbers<[1], [0], [0], [1], [0, 0, 1, 1], [], []>} : vector<7x608xbf16>, vector<608x544xbf16>, vector<7x544xf32> -> vector<7x544xf32>
    %188 = arith.addf %172, %187 : vector<7x544xf32>
    %189 = tpu.iota {dimensions = array<i32: 0>} : vector<7x18xi32>
    %190 = tpu.iota {dimensions = array<i32: 1>} : vector<7x18xi32>
    %c2_i32_95 = arith.constant 2 : i32
    %191 = vector.broadcast %c2_i32_95 : i32 to vector<7x18xi32>
    %192 = arith.muli %191, %189 : vector<7x18xi32>
    %c2_i32_96 = arith.constant 2 : i32
    %193 = vector.broadcast %c2_i32_96 : i32 to vector<7x18xi32>
    %194 = arith.addi %192, %193 : vector<7x18xi32>
    %195 = arith.cmpi eq, %190, %194 : vector<7x18xi32>
    %196 = arith.extui %195 : vector<7x18xi1> to vector<7x18xi32>
    %197 = arith.sitofp %196 : vector<7x18xi32> to vector<7x18xf32>
    %198 = arith.truncf %197 : vector<7x18xf32> to vector<7x18xbf16>
    %cst_97 = arith.constant dense<0.000000e+00> : vector<7x608xf32>
    %199 = tpu.matmul %198, %155, %cst_97 {dimension_numbers = #tpu.dot_dimension_numbers<[1], [0], [0], [1], [0, 0, 1, 1], [], []>} : vector<7x18xbf16>, vector<18x608xbf16>, vector<7x608xf32> -> vector<7x608xf32>
    %200 = arith.truncf %199 : vector<7x608xf32> to vector<7x608xbf16>
    %c2_98 = arith.constant 2 : index
    %c0_99 = arith.constant 0 : index
    %c0_100 = arith.constant 0 : index
    %201 = vector.load %arg3[%c2_98, %c0_99, %c0_100] : memref<5x608x544xbf16, #tpu.memory_space<vmem>>, vector<1x608x544xbf16>
    %202 = vector.shape_cast %201 : vector<1x608x544xbf16> to vector<608x544xbf16>
    %cst_101 = arith.constant dense<0.000000e+00> : vector<7x544xf32>
    %203 = tpu.matmul %200, %202, %cst_101 {dimension_numbers = #tpu.dot_dimension_numbers<[1], [0], [0], [1], [0, 0, 1, 1], [], []>} : vector<7x608xbf16>, vector<608x544xbf16>, vector<7x544xf32> -> vector<7x544xf32>
    %204 = arith.addf %188, %203 : vector<7x544xf32>
    %205 = tpu.iota {dimensions = array<i32: 0>} : vector<7x18xi32>
    %206 = tpu.iota {dimensions = array<i32: 1>} : vector<7x18xi32>
    %c2_i32_102 = arith.constant 2 : i32
    %207 = vector.broadcast %c2_i32_102 : i32 to vector<7x18xi32>
    %208 = arith.muli %207, %205 : vector<7x18xi32>
    %c3_i32_103 = arith.constant 3 : i32
    %209 = vector.broadcast %c3_i32_103 : i32 to vector<7x18xi32>
    %210 = arith.addi %208, %209 : vector<7x18xi32>
    %211 = arith.cmpi eq, %206, %210 : vector<7x18xi32>
    %212 = arith.extui %211 : vector<7x18xi1> to vector<7x18xi32>
    %213 = arith.sitofp %212 : vector<7x18xi32> to vector<7x18xf32>
    %214 = arith.truncf %213 : vector<7x18xf32> to vector<7x18xbf16>
    %cst_104 = arith.constant dense<0.000000e+00> : vector<7x608xf32>
    %215 = tpu.matmul %214, %155, %cst_104 {dimension_numbers = #tpu.dot_dimension_numbers<[1], [0], [0], [1], [0, 0, 1, 1], [], []>} : vector<7x18xbf16>, vector<18x608xbf16>, vector<7x608xf32> -> vector<7x608xf32>
    %216 = arith.truncf %215 : vector<7x608xf32> to vector<7x608xbf16>
    %c3_105 = arith.constant 3 : index
    %c0_106 = arith.constant 0 : index
    %c0_107 = arith.constant 0 : index
    %217 = vector.load %arg3[%c3_105, %c0_106, %c0_107] : memref<5x608x544xbf16, #tpu.memory_space<vmem>>, vector<1x608x544xbf16>
    %218 = vector.shape_cast %217 : vector<1x608x544xbf16> to vector<608x544xbf16>
    %cst_108 = arith.constant dense<0.000000e+00> : vector<7x544xf32>
    %219 = tpu.matmul %216, %218, %cst_108 {dimension_numbers = #tpu.dot_dimension_numbers<[1], [0], [0], [1], [0, 0, 1, 1], [], []>} : vector<7x608xbf16>, vector<608x544xbf16>, vector<7x544xf32> -> vector<7x544xf32>
    %220 = arith.addf %204, %219 : vector<7x544xf32>
    %221 = tpu.iota {dimensions = array<i32: 0>} : vector<7x18xi32>
    %222 = tpu.iota {dimensions = array<i32: 1>} : vector<7x18xi32>
    %c2_i32_109 = arith.constant 2 : i32
    %223 = vector.broadcast %c2_i32_109 : i32 to vector<7x18xi32>
    %224 = arith.muli %223, %221 : vector<7x18xi32>
    %c4_i32_110 = arith.constant 4 : i32
    %225 = vector.broadcast %c4_i32_110 : i32 to vector<7x18xi32>
    %226 = arith.addi %224, %225 : vector<7x18xi32>
    %227 = arith.cmpi eq, %222, %226 : vector<7x18xi32>
    %228 = arith.extui %227 : vector<7x18xi1> to vector<7x18xi32>
    %229 = arith.sitofp %228 : vector<7x18xi32> to vector<7x18xf32>
    %230 = arith.truncf %229 : vector<7x18xf32> to vector<7x18xbf16>
    %cst_111 = arith.constant dense<0.000000e+00> : vector<7x608xf32>
    %231 = tpu.matmul %230, %155, %cst_111 {dimension_numbers = #tpu.dot_dimension_numbers<[1], [0], [0], [1], [0, 0, 1, 1], [], []>} : vector<7x18xbf16>, vector<18x608xbf16>, vector<7x608xf32> -> vector<7x608xf32>
    %232 = arith.truncf %231 : vector<7x608xf32> to vector<7x608xbf16>
    %c4_112 = arith.constant 4 : index
    %c0_113 = arith.constant 0 : index
    %c0_114 = arith.constant 0 : index
    %233 = vector.load %arg3[%c4_112, %c0_113, %c0_114] : memref<5x608x544xbf16, #tpu.memory_space<vmem>>, vector<1x608x544xbf16>
    %234 = vector.shape_cast %233 : vector<1x608x544xbf16> to vector<608x544xbf16>
    %cst_115 = arith.constant dense<0.000000e+00> : vector<7x544xf32>
    %235 = tpu.matmul %232, %234, %cst_115 {dimension_numbers = #tpu.dot_dimension_numbers<[1], [0], [0], [1], [0, 0, 1, 1], [], []>} : vector<7x608xbf16>, vector<608x544xbf16>, vector<7x544xf32> -> vector<7x544xf32>
    %236 = arith.addf %220, %235 : vector<7x544xf32>
    %c0_116 = arith.constant 0 : index
    %c0_117 = arith.constant 0 : index
    %237 = vector.load %arg7[%c0_116, %c0_117] : memref<1x544xf32, #tpu.memory_space<vmem>>, vector<1x544xf32>
    %238 = vector.broadcast %237 : vector<1x544xf32> to vector<7x544xf32>
    %239 = arith.addf %236, %238 : vector<7x544xf32>
    %cst_118 = arith.constant 0.000000e+00 : f32
    %240 = vector.broadcast %cst_118 : f32 to vector<7x544xf32>
    %241 = arith.maximumf %239, %240 : vector<7x544xf32>
    %242 = arith.truncf %241 : vector<7x544xf32> to vector<7x544xbf16>
    %cst_119 = arith.constant 0.000000e+00 : f32
    %243 = vector.broadcast %cst_119 : f32 to vector<2x224xf32>
    %244 = tpu.iota {dimensions = array<i32: 0>} : vector<2x7xi32>
    %245 = tpu.iota {dimensions = array<i32: 1>} : vector<2x7xi32>
    %c2_i32_120 = arith.constant 2 : i32
    %246 = vector.broadcast %c2_i32_120 : i32 to vector<2x7xi32>
    %247 = arith.muli %246, %244 : vector<2x7xi32>
    %c0_i32_121 = arith.constant 0 : i32
    %248 = vector.broadcast %c0_i32_121 : i32 to vector<2x7xi32>
    %249 = arith.addi %247, %248 : vector<2x7xi32>
    %250 = arith.cmpi eq, %245, %249 : vector<2x7xi32>
    %251 = arith.extui %250 : vector<2x7xi1> to vector<2x7xi32>
    %252 = arith.sitofp %251 : vector<2x7xi32> to vector<2x7xf32>
    %253 = arith.truncf %252 : vector<2x7xf32> to vector<2x7xbf16>
    %cst_122 = arith.constant dense<0.000000e+00> : vector<2x544xf32>
    %254 = tpu.matmul %253, %242, %cst_122 {dimension_numbers = #tpu.dot_dimension_numbers<[1], [0], [0], [1], [0, 0, 1, 1], [], []>} : vector<2x7xbf16>, vector<7x544xbf16>, vector<2x544xf32> -> vector<2x544xf32>
    %255 = arith.truncf %254 : vector<2x544xf32> to vector<2x544xbf16>
    %c0_123 = arith.constant 0 : index
    %c0_124 = arith.constant 0 : index
    %c0_125 = arith.constant 0 : index
    %256 = vector.load %arg4[%c0_123, %c0_124, %c0_125] : memref<5x544x224xbf16, #tpu.memory_space<vmem>>, vector<1x544x224xbf16>
    %257 = vector.shape_cast %256 : vector<1x544x224xbf16> to vector<544x224xbf16>
    %cst_126 = arith.constant dense<0.000000e+00> : vector<2x224xf32>
    %258 = tpu.matmul %255, %257, %cst_126 {dimension_numbers = #tpu.dot_dimension_numbers<[1], [0], [0], [1], [0, 0, 1, 1], [], []>} : vector<2x544xbf16>, vector<544x224xbf16>, vector<2x224xf32> -> vector<2x224xf32>
    %259 = arith.addf %243, %258 : vector<2x224xf32>
    %260 = tpu.iota {dimensions = array<i32: 0>} : vector<2x7xi32>
    %261 = tpu.iota {dimensions = array<i32: 1>} : vector<2x7xi32>
    %c2_i32_127 = arith.constant 2 : i32
    %262 = vector.broadcast %c2_i32_127 : i32 to vector<2x7xi32>
    %263 = arith.muli %262, %260 : vector<2x7xi32>
    %c1_i32_128 = arith.constant 1 : i32
    %264 = vector.broadcast %c1_i32_128 : i32 to vector<2x7xi32>
    %265 = arith.addi %263, %264 : vector<2x7xi32>
    %266 = arith.cmpi eq, %261, %265 : vector<2x7xi32>
    %267 = arith.extui %266 : vector<2x7xi1> to vector<2x7xi32>
    %268 = arith.sitofp %267 : vector<2x7xi32> to vector<2x7xf32>
    %269 = arith.truncf %268 : vector<2x7xf32> to vector<2x7xbf16>
    %cst_129 = arith.constant dense<0.000000e+00> : vector<2x544xf32>
    %270 = tpu.matmul %269, %242, %cst_129 {dimension_numbers = #tpu.dot_dimension_numbers<[1], [0], [0], [1], [0, 0, 1, 1], [], []>} : vector<2x7xbf16>, vector<7x544xbf16>, vector<2x544xf32> -> vector<2x544xf32>
    %271 = arith.truncf %270 : vector<2x544xf32> to vector<2x544xbf16>
    %c1_130 = arith.constant 1 : index
    %c0_131 = arith.constant 0 : index
    %c0_132 = arith.constant 0 : index
    %272 = vector.load %arg4[%c1_130, %c0_131, %c0_132] : memref<5x544x224xbf16, #tpu.memory_space<vmem>>, vector<1x544x224xbf16>
    %273 = vector.shape_cast %272 : vector<1x544x224xbf16> to vector<544x224xbf16>
    %cst_133 = arith.constant dense<0.000000e+00> : vector<2x224xf32>
    %274 = tpu.matmul %271, %273, %cst_133 {dimension_numbers = #tpu.dot_dimension_numbers<[1], [0], [0], [1], [0, 0, 1, 1], [], []>} : vector<2x544xbf16>, vector<544x224xbf16>, vector<2x224xf32> -> vector<2x224xf32>
    %275 = arith.addf %259, %274 : vector<2x224xf32>
    %276 = tpu.iota {dimensions = array<i32: 0>} : vector<2x7xi32>
    %277 = tpu.iota {dimensions = array<i32: 1>} : vector<2x7xi32>
    %c2_i32_134 = arith.constant 2 : i32
    %278 = vector.broadcast %c2_i32_134 : i32 to vector<2x7xi32>
    %279 = arith.muli %278, %276 : vector<2x7xi32>
    %c2_i32_135 = arith.constant 2 : i32
    %280 = vector.broadcast %c2_i32_135 : i32 to vector<2x7xi32>
    %281 = arith.addi %279, %280 : vector<2x7xi32>
    %282 = arith.cmpi eq, %277, %281 : vector<2x7xi32>
    %283 = arith.extui %282 : vector<2x7xi1> to vector<2x7xi32>
    %284 = arith.sitofp %283 : vector<2x7xi32> to vector<2x7xf32>
    %285 = arith.truncf %284 : vector<2x7xf32> to vector<2x7xbf16>
    %cst_136 = arith.constant dense<0.000000e+00> : vector<2x544xf32>
    %286 = tpu.matmul %285, %242, %cst_136 {dimension_numbers = #tpu.dot_dimension_numbers<[1], [0], [0], [1], [0, 0, 1, 1], [], []>} : vector<2x7xbf16>, vector<7x544xbf16>, vector<2x544xf32> -> vector<2x544xf32>
    %287 = arith.truncf %286 : vector<2x544xf32> to vector<2x544xbf16>
    %c2_137 = arith.constant 2 : index
    %c0_138 = arith.constant 0 : index
    %c0_139 = arith.constant 0 : index
    %288 = vector.load %arg4[%c2_137, %c0_138, %c0_139] : memref<5x544x224xbf16, #tpu.memory_space<vmem>>, vector<1x544x224xbf16>
    %289 = vector.shape_cast %288 : vector<1x544x224xbf16> to vector<544x224xbf16>
    %cst_140 = arith.constant dense<0.000000e+00> : vector<2x224xf32>
    %290 = tpu.matmul %287, %289, %cst_140 {dimension_numbers = #tpu.dot_dimension_numbers<[1], [0], [0], [1], [0, 0, 1, 1], [], []>} : vector<2x544xbf16>, vector<544x224xbf16>, vector<2x224xf32> -> vector<2x224xf32>
    %291 = arith.addf %275, %290 : vector<2x224xf32>
    %292 = tpu.iota {dimensions = array<i32: 0>} : vector<2x7xi32>
    %293 = tpu.iota {dimensions = array<i32: 1>} : vector<2x7xi32>
    %c2_i32_141 = arith.constant 2 : i32
    %294 = vector.broadcast %c2_i32_141 : i32 to vector<2x7xi32>
    %295 = arith.muli %294, %292 : vector<2x7xi32>
    %c3_i32_142 = arith.constant 3 : i32
    %296 = vector.broadcast %c3_i32_142 : i32 to vector<2x7xi32>
    %297 = arith.addi %295, %296 : vector<2x7xi32>
    %298 = arith.cmpi eq, %293, %297 : vector<2x7xi32>
    %299 = arith.extui %298 : vector<2x7xi1> to vector<2x7xi32>
    %300 = arith.sitofp %299 : vector<2x7xi32> to vector<2x7xf32>
    %301 = arith.truncf %300 : vector<2x7xf32> to vector<2x7xbf16>
    %cst_143 = arith.constant dense<0.000000e+00> : vector<2x544xf32>
    %302 = tpu.matmul %301, %242, %cst_143 {dimension_numbers = #tpu.dot_dimension_numbers<[1], [0], [0], [1], [0, 0, 1, 1], [], []>} : vector<2x7xbf16>, vector<7x544xbf16>, vector<2x544xf32> -> vector<2x544xf32>
    %303 = arith.truncf %302 : vector<2x544xf32> to vector<2x544xbf16>
    %c3_144 = arith.constant 3 : index
    %c0_145 = arith.constant 0 : index
    %c0_146 = arith.constant 0 : index
    %304 = vector.load %arg4[%c3_144, %c0_145, %c0_146] : memref<5x544x224xbf16, #tpu.memory_space<vmem>>, vector<1x544x224xbf16>
    %305 = vector.shape_cast %304 : vector<1x544x224xbf16> to vector<544x224xbf16>
    %cst_147 = arith.constant dense<0.000000e+00> : vector<2x224xf32>
    %306 = tpu.matmul %303, %305, %cst_147 {dimension_numbers = #tpu.dot_dimension_numbers<[1], [0], [0], [1], [0, 0, 1, 1], [], []>} : vector<2x544xbf16>, vector<544x224xbf16>, vector<2x224xf32> -> vector<2x224xf32>
    %307 = arith.addf %291, %306 : vector<2x224xf32>
    %308 = tpu.iota {dimensions = array<i32: 0>} : vector<2x7xi32>
    %309 = tpu.iota {dimensions = array<i32: 1>} : vector<2x7xi32>
    %c2_i32_148 = arith.constant 2 : i32
    %310 = vector.broadcast %c2_i32_148 : i32 to vector<2x7xi32>
    %311 = arith.muli %310, %308 : vector<2x7xi32>
    %c4_i32_149 = arith.constant 4 : i32
    %312 = vector.broadcast %c4_i32_149 : i32 to vector<2x7xi32>
    %313 = arith.addi %311, %312 : vector<2x7xi32>
    %314 = arith.cmpi eq, %309, %313 : vector<2x7xi32>
    %315 = arith.extui %314 : vector<2x7xi1> to vector<2x7xi32>
    %316 = arith.sitofp %315 : vector<2x7xi32> to vector<2x7xf32>
    %317 = arith.truncf %316 : vector<2x7xf32> to vector<2x7xbf16>
    %cst_150 = arith.constant dense<0.000000e+00> : vector<2x544xf32>
    %318 = tpu.matmul %317, %242, %cst_150 {dimension_numbers = #tpu.dot_dimension_numbers<[1], [0], [0], [1], [0, 0, 1, 1], [], []>} : vector<2x7xbf16>, vector<7x544xbf16>, vector<2x544xf32> -> vector<2x544xf32>
    %319 = arith.truncf %318 : vector<2x544xf32> to vector<2x544xbf16>
    %c4_151 = arith.constant 4 : index
    %c0_152 = arith.constant 0 : index
    %c0_153 = arith.constant 0 : index
    %320 = vector.load %arg4[%c4_151, %c0_152, %c0_153] : memref<5x544x224xbf16, #tpu.memory_space<vmem>>, vector<1x544x224xbf16>
    %321 = vector.shape_cast %320 : vector<1x544x224xbf16> to vector<544x224xbf16>
    %cst_154 = arith.constant dense<0.000000e+00> : vector<2x224xf32>
    %322 = tpu.matmul %319, %321, %cst_154 {dimension_numbers = #tpu.dot_dimension_numbers<[1], [0], [0], [1], [0, 0, 1, 1], [], []>} : vector<2x544xbf16>, vector<544x224xbf16>, vector<2x224xf32> -> vector<2x224xf32>
    %323 = arith.addf %307, %322 : vector<2x224xf32>
    %c0_155 = arith.constant 0 : index
    %c0_156 = arith.constant 0 : index
    %324 = vector.load %arg8[%c0_155, %c0_156] : memref<1x224xf32, #tpu.memory_space<vmem>>, vector<1x224xf32>
    %325 = vector.broadcast %324 : vector<1x224xf32> to vector<2x224xf32>
    %326 = arith.addf %323, %325 : vector<2x224xf32>
    %cst_157 = arith.constant 0.000000e+00 : f32
    %327 = vector.broadcast %cst_157 : f32 to vector<2x224xf32>
    %328 = arith.maximumf %326, %327 : vector<2x224xf32>
    %329 = arith.truncf %328 : vector<2x224xf32> to vector<2x224xbf16>
    %c0_158 = arith.constant 0 : index
    %c0_159 = arith.constant 0 : index
    %330 = vector.load %arg9[%c0_158, %c0_159] : memref<1x128xf32, #tpu.memory_space<vmem>>, vector<1x128xf32>
    %331 = vector.extract_strided_slice %329 {offsets = [0, 0], sizes = [1, 224], strides = [1, 1]} : vector<2x224xbf16> to vector<1x224xbf16>
    %c0_160 = arith.constant 0 : index
    %c0_161 = arith.constant 0 : index
    %c0_162 = arith.constant 0 : index
    %332 = vector.load %arg5[%c0_160, %c0_161, %c0_162] : memref<2x224x128xbf16, #tpu.memory_space<vmem>>, vector<1x224x128xbf16>
    %333 = vector.shape_cast %332 : vector<1x224x128xbf16> to vector<224x128xbf16>
    %cst_163 = arith.constant dense<0.000000e+00> : vector<1x128xf32>
    %334 = tpu.matmul %331, %333, %cst_163 {dimension_numbers = #tpu.dot_dimension_numbers<[1], [0], [0], [1], [0, 0, 1, 1], [], []>} : vector<1x224xbf16>, vector<224x128xbf16>, vector<1x128xf32> -> vector<1x128xf32>
    %335 = arith.addf %330, %334 : vector<1x128xf32>
    %336 = vector.extract_strided_slice %329 {offsets = [1, 0], sizes = [1, 224], strides = [1, 1]} : vector<2x224xbf16> to vector<1x224xbf16>
    %c1_164 = arith.constant 1 : index
    %c0_165 = arith.constant 0 : index
    %c0_166 = arith.constant 0 : index
    %337 = vector.load %arg5[%c1_164, %c0_165, %c0_166] : memref<2x224x128xbf16, #tpu.memory_space<vmem>>, vector<1x224x128xbf16>
    %338 = vector.shape_cast %337 : vector<1x224x128xbf16> to vector<224x128xbf16>
    %cst_167 = arith.constant dense<0.000000e+00> : vector<1x128xf32>
    %339 = tpu.matmul %336, %338, %cst_167 {dimension_numbers = #tpu.dot_dimension_numbers<[1], [0], [0], [1], [0, 0, 1, 1], [], []>} : vector<1x224xbf16>, vector<224x128xbf16>, vector<1x128xf32> -> vector<1x128xf32>
    %340 = arith.addf %335, %339 : vector<1x128xf32>
    %341 = vector.shape_cast %340 : vector<1x128xf32> to vector<1x1x128xf32>
    %c0_168 = arith.constant 0 : index
    %c0_169 = arith.constant 0 : index
    %c0_170 = arith.constant 0 : index
    %342 = vector.load %arg10[%c0_168, %c0_169, %c0_170] : memref<1x1x128xf32, #tpu.memory_space<vmem>>, vector<1x1x128xf32>
    tpu.vector_store %arg10[%c0_168, %c0_169, %c0_170], %341 {strides = array<i32>} : memref<1x1x128xf32, #tpu.memory_space<vmem>>, vector<1x1x128xf32>,
    return
  }
  func.func @transform_0(%arg0: i32) -> (i32, i32, i32, i32) {
    %c0_i32 = arith.constant 0 : i32
    %c0_i32_0 = arith.constant 0 : i32
    %c0_i32_1 = arith.constant 0 : i32
    %c0_i32_2 = arith.constant 0 : i32
    return %arg0, %c0_i32, %c0_i32_0, %c0_i32_1 : i32, i32, i32, i32
  }
  func.func @transform_1(%arg0: i32) -> (i32, i32, i32) {
    %c0_i32 = arith.constant 0 : i32
    %c0_i32_0 = arith.constant 0 : i32
    %c0_i32_1 = arith.constant 0 : i32
    %c0_i32_2 = arith.constant 0 : i32
    return %c0_i32, %c0_i32_0, %c0_i32_1 : i32, i32, i32
  }
  func.func @transform_2(%arg0: i32) -> (i32, i32, i32) {
    %c0_i32 = arith.constant 0 : i32
    %c0_i32_0 = arith.constant 0 : i32
    %c0_i32_1 = arith.constant 0 : i32
    %c0_i32_2 = arith.constant 0 : i32
    return %c0_i32, %c0_i32_0, %c0_i32_1 : i32, i32, i32
  }
  func.func @transform_3(%arg0: i32) -> (i32, i32, i32) {
    %c0_i32 = arith.constant 0 : i32
    %c0_i32_0 = arith.constant 0 : i32
    %c0_i32_1 = arith.constant 0 : i32
    %c0_i32_2 = arith.constant 0 : i32
    return %c0_i32, %c0_i32_0, %c0_i32_1 : i32, i32, i32
  }
  func.func @transform_4(%arg0: i32) -> (i32, i32, i32) {
    %c0_i32 = arith.constant 0 : i32
    %c0_i32_0 = arith.constant 0 : i32
    %c0_i32_1 = arith.constant 0 : i32
    %c0_i32_2 = arith.constant 0 : i32
    return %c0_i32, %c0_i32_0, %c0_i32_1 : i32, i32, i32
  }
  func.func @transform_5(%arg0: i32) -> (i32, i32) {
    %c0_i32 = arith.constant 0 : i32
    %c0_i32_0 = arith.constant 0 : i32
    %c0_i32_1 = arith.constant 0 : i32
    return %c0_i32, %c0_i32_0 : i32, i32
  }
  func.func @transform_6(%arg0: i32) -> (i32, i32) {
    %c0_i32 = arith.constant 0 : i32
    %c0_i32_0 = arith.constant 0 : i32
    %c0_i32_1 = arith.constant 0 : i32
    return %c0_i32, %c0_i32_0 : i32, i32
  }
  func.func @transform_7(%arg0: i32) -> (i32, i32) {
    %c0_i32 = arith.constant 0 : i32
    %c0_i32_0 = arith.constant 0 : i32
    %c0_i32_1 = arith.constant 0 : i32
    return %c0_i32, %c0_i32_0 : i32, i32
  }
  func.func @transform_8(%arg0: i32) -> (i32, i32) {
    %c0_i32 = arith.constant 0 : i32
    %c0_i32_0 = arith.constant 0 : i32
    %c0_i32_1 = arith.constant 0 : i32
    return %c0_i32, %c0_i32_0 : i32, i32
  }
  func.func @transform_9(%arg0: i32) -> (i32, i32, i32) {
    %c0_i32 = arith.constant 0 : i32
    %c0_i32_0 = arith.constant 0 : i32
    %c0_i32_1 = arith.constant 0 : i32
    return %arg0, %c0_i32, %c0_i32_0 : i32, i32, i32
  }
}

</mosaic_0001>

<bundles_post_ra>
// kernel: dqn_forward.1
= control target key start
LH: loop header
LB: loop body
LE: loop exit
PB: predicated region body
PF: predicated region fallthrough
CT: control target
= control target key end

     0   :  { %14 = vsyncpa [#allocation3], 0  ;;  %s32427_s0 = inlined_call_operand.vmem [shape: f32[2,3,40,80], index: 0, kind: input, shape index: {}]   ;;  %s32428_s1 = inlined_call_operand.vmem [shape: bf16[15,80,608], index: 1, kind: input, shape index: {}]   ;;  %s32429_s2 = inlined_call_operand.vmem [shape: bf16[5,608,544], index: 2, kind: input, shape index: {}]   ;;  %s32430_s3 = inlined_call_operand.vmem [shape: bf16[5,544,224], index: 3, kind: input, shape index: {}]   ;;  %s32431_s4 = inlined_call_operand.vmem [shape: bf16[2,224,128], index: 4, kind: input, shape index: {}]   ;;  %s32432_s5 = inlined_call_operand.vmem [shape: f32[1,608], index: 5, kind: input, shape index: {}]   ;;  %s32433_s6 = inlined_call_operand.vmem [shape: f32[1,544], index: 6, kind: input, shape index: {}]   ;;  %s32434_s7 = inlined_call_operand.vmem [shape: f32[1,224], index: 7, kind: input, shape index: {}]   ;;  %s32435_s8 = inlined_call_operand.vmem [shape: f32[1,128], index: 8, kind: input, shape index: {}]   ;;  %s32436_s9 = inlined_call_operand.hbm [shape: f32[2,1,128], index: 9, kind: output, shape index: {}]  }
   0x1   :  { %16 = vsyncpa [#allocation3 + $0x1], 0  ;;  %s25847_s30 = smov 0   ;;  %s25849_s10 = smov 0  }
   0x2   :  { %s25851_s11 = smov 0   ;;  %s25853_s12 = smov 0  }
   0x3 LB: > { %s25868_s13 = sadd.s32 4294967295, %s25790_s12   ;;  %s18652_s14 = sadd.s32 4294967294, %s25790_s12   ;;  %s25790_s12 = sphi %s25853_s12, %s32442_s12   ;;  %s25786_s11 = sphi %s25851_s11, %s32441_s11   ;;  %s25782_s10 = sphi %s25849_s10, %s32440_s10   ;;  %s25778_s30 = sphi %s25847_s30, %s32439_s30  }
   0x4   : > { %s25872_s15 = sadd.s32 1, %s25790_s12   ;;  %s223_s16 = sadd.s32 1, %s25786_s11 }
   0x5   : > { %s220_s17 = ssub.s32 %s25790_s12, %s25872_s15  ;;  %p233_p0 = scmp.ne.s32.totalorder %s25786_s11, %s25782_s10 }
   0x6   : > { %p221_p1 = scmp.eq.s32.totalorder %s220_s17, 0  ;;  %p234_p2 = scmp.eq.s32.totalorder %s25868_s13, 1 }
   0x7   : > { %p239_p3 = scmp.ne.s32.totalorder %s25782_s10, %s25778_s30  ;;  %p240_p4 = scmp.eq.s32.totalorder %s18652_s14, 1 }
   0x8   : > { %s25883_s18 = scalar_select %p221_p1, %s25786_s11, %s223_s16  }
   0x9   : > { %p25885_p5 = por %p234_p2, %p233_p0  ;;  %p25889_p6 = por %p240_p4, %p239_p3 }
   0xa   : > { %p18655_p7 = scmp.ge.s32.totalorder %s25790_s12, 1  ;;  %p290_p8 = scmp.lt.s32.totalorder %s25790_s12, 3 }
   0xc   : > { %p291_p9 = pnand %p18655_p7, %p290_p8 }
   0xd   : > { %p325_p10 = scmp.lt.s32.totalorder (!%p291_p9), %s25868_s13, 1  ;;  %v331_v0 = vlaneseq (!%p291_p9)  ;;  %v25792_v12 = vmov (!%p291_p9), 0.0   ;;  %vm415_vm4 = vcmask (!%p291_p9), 326656   ;;  %vm422_vm6 = vcmask (!%p291_p9), 1043456   ;;  %v23337_v26 = vld [vmem:[%s32428_s1 + $0x25c] ss:$20 sps:$4 sm:$0xff] (!%p291_p9)  }
   0xe   : > { %294 = sbr.rel (%p291_p9) target bundleno = 6848 (0x1ac0), region = 56  ;;  %v23340_v27 = vld [vmem:[%s32428_s1 + $0x264] ss:$20 sps:$4 sm:$0xff] (!%p291_p9)   ;;  %v23338_v32 = vld [vmem:[%s32428_s1 + $0x260] ss:$20 sps:$4 sm:$0xff] (!%p291_p9)   ;;  %v25793_v53 = vmov (!%p291_p9), 0  }
   0xf   : > { %v25897_v1 = vshrl.u32 (!%p291_p9), %v331_v0, 7  ;;  %v25900_v3 = vand.u32 (!%p291_p9), 127, %v331_v0  ;;  %v23335_v31 = vld [vmem:[%s32428_s1 + $0x258] ss:$20 sps:$4 sm:$0xff] (!%p291_p9)   ;;  %v23341_v37 = vld [vmem:[%s32428_s1 + $0x280] ss:$20 sps:$4 sm:$0xff] (!%p291_p9)  }
  0x10   : > { %v23343_v35 = vld [vmem:[%s32428_s1 + $0x284] ss:$20 sps:$4 sm:$0xff] (!%p291_p9)   ;;  %v23346_v36 = vld [vmem:[%s32428_s1 + $0x28c] ss:$20 sps:$4 sm:$0xff] (!%p291_p9)   ;;  %v23344_v38 = vld [vmem:[%s32428_s1 + $0x288] ss:$20 sps:$4 sm:$0xff] (!%p291_p9)  }
  0x11   : > { %v333_v2 = vadd.s32 (!%p291_p9), 8, %v25897_v1  ;;  %v25903_v4 = vmul.u32 (!%p291_p9), 2, %v25897_v1  ;;  %v334_v5 = vadd.s32 (!%p291_p9), 16, %v25897_v1  ;;  %v23349_v39 = vld [vmem:[%s32428_s1 + $0x2ac] ss:$20 sps:$4 sm:$0xff] (!%p291_p9)   ;;  %vm723_vm8 = vcmask (!%p291_p9), 654336  }
  0x12   : > { %v23352_v40 = vld [vmem:[%s32428_s1 + $0x2b4] ss:$20 sps:$4 sm:$0xff] (!%p291_p9)   ;;  %v23350_v42 = vld [vmem:[%s32428_s1 + $0x2b0] ss:$20 sps:$4 sm:$0xff] (!%p291_p9)   ;;  %v23356_v46 = vld [vmem:[%s32428_s1 + $0x2d8] ss:$20 sps:$4 sm:$0xff] (!%p291_p9)  }
  0x13   : > { %v25911_v6 = vmul.u32 (!%p291_p9), 2, %v333_v2  ;;  %v351_v7 = vadd.s32 (!%p291_p9), 1, %v25903_v4  ;;  %v25914_v8 = vmul.u32 (!%p291_p9), 2, %v334_v5  ;;  %vm340_vm0 = vcmp.eq.s32.totalorder (!%p291_p9), %v25900_v3, %v25903_v4  ;;  %v23347_v41 = vld [vmem:[%s32428_s1 + $0x2a8] ss:$20 sps:$4 sm:$0xff] (!%p291_p9)   ;;  %s323_s14 = sand.u32 (!%p291_p9), 1, %s25782_s10  }
  0x14   : > { %v25922_v13 = vsel (!%p291_p9), %vm340_vm0, 1.0, %v25792_v12  ;;  %v23355_v43 = vld [vmem:[%s32428_s1 + $0x2d4] ss:$20 sps:$4 sm:$0xff] (!%p291_p9)   ;;  %v23358_v44 = vld [vmem:[%s32428_s1 + $0x2dc] ss:$20 sps:$4 sm:$0xff] (!%p291_p9)   ;;  %s25796_s28 = smov (!%p291_p9), [#allocation2]  }
  0x15   : > { %s326_s21 = scalar_select %p325_p10, %s25868_s13, 1  ;;  %v352_v16 = vadd.s32 1, %v25911_v6  ;;  %vm354_vm1 = vcmp.eq.s32.totalorder %v25900_v3, %v351_v7  ;;  %v353_v17 = vadd.s32 1, %v25914_v8  ;;  %vm341_vm2 = vcmp.eq.s32.totalorder %v25900_v3, %v25911_v6  ;;  %v23353_v45 = vld [vmem:[%s32428_s1 + $0x2d0] ss:$20 sps:$4 sm:$0xff]  }
  0x16   : > { %v25934_v20 = vsel %vm354_vm1, 1.0, %v25792_v12  ;;  %v18658_v21 = vsel %vm341_vm2, 1.0, %v25792_v12  ;;  %vm342_vm7 = vcmp.eq.s32.totalorder %v25900_v3, %v25914_v8  ;;  %v23361_v47 = vld [vmem:[%s32428_s1 + $0x2fc] ss:$20 sps:$4 sm:$0xff]   ;;  %v23364_v48 = vld [vmem:[%s32428_s1 + $0x304] ss:$20 sps:$4 sm:$0xff]  }
  0x17   : > { %s23291_s22 = smul.u32 120, %s326_s21  ;;  %vm355_vm3 = vcmp.eq.s32.totalorder %v25900_v3, %v352_v16  ;;  %v25946_v23 = vpack.c.bf16 %v18658_v21, %v25922_v13  ;;  %vm356_vm5 = vcmp.eq.s32.totalorder %v25900_v3, %v353_v17  ;;  %v18659_v29 = vsel %vm342_vm7, 1.0, %v25792_v12  ;;  %v23359_v49 = vld [vmem:[%s32428_s1 + $0x2f8] ss:$20 sps:$4 sm:$0xff]   ;;  %v23362_v50 = vld [vmem:[%s32428_s1 + $0x300] ss:$20 sps:$4 sm:$0xff]  }
  0x18   : > { %v18661_v22 = vsel %vm355_vm3, 1.0, %v25792_v12  ;;  %v18662_v28 = vsel %vm356_vm5, 1.0, %v25792_v12  ;;  %v25988_v34 = vpack.c.bf16 %v18659_v29, %v18659_v29  ;;  %v23365_v51 = vld [vmem:[%s32428_s1 + $0x268] ss:$20 sps:$4 sm:$0xff]   ;;  %v23368_v52 = vld [vmem:[%s32428_s1 + $0xc] ss:$20 sps:$4 sm:$0xff]  }
  0x19   : > { %s25909_s25 = scalar_lea.vmem %s32427_s0, %s23291_s22  ;;  %v25952_v25 = vpack.c.bf16 %v18661_v22, %v25934_v20  ;;  %22658 = vmatprep.mubr.msk.bf16.mxu0 %vm415_vm4, %v25946_v23  ;;  %v25986_v33 = vpack.c.bf16 %v18662_v28, %v18662_v28  ;;  %v23366_v57 = vld [vmem:[%s32428_s1 + $0x8] ss:$20 sps:$4 sm:$0xff]   ;;  %v23369_v60 = vld [vmem:[%s32428_s1 + $0x290] ss:$20 sps:$4 sm:$0xff]   ;;  %v23384_v22 = vld [vmem:[%s32428_s1 + $0xac] ss:$20 sps:$4 sm:$0xff]  }
  0x1a   : > { %v407_v9 = vld [vmem:[%s25909_s25] sm:$0xff]  ;;  %v408_v10 = vld [vmem:[%s25909_s25 + $0x8] sm:$0xff]  ;;  %v409_v11 = vld [vmem:[%s25909_s25 + $0x10] sm:$0xff]  ;;  %vm25794_vm2 = vmmov 0   ;;  %vm6246_vm3 = vcmask 1040384   ;;  %vm7965_vm5 = vcmask 785408  }
  0x1b   : > { %v25924_v14 = vpack.c.bf16 %v408_v10, %v407_v9  ;;  %v410_v15 = vld [vmem:[%s25909_s25 + $0x18] sm:$0xff]  ;;  %v411_v19 = vld [vmem:[%s25909_s25 + $0x20] sm:$0xff]  ;;  %22668 = vmatprep.mubr.msk.bf16.mxu1 %vm415_vm4, %v25952_v25  ;;  %v23372_v61 = vld [vmem:[%s32428_s1 + $0x34] ss:$20 sps:$4 sm:$0xff]   ;;  %vm14903_vm7 = vcmask 1042432   ;;  %s22189_s21 = sshll.u32 %s25868_s13, 4 }
  0x1c   : > { %v25930_v18 = vpack.c.bf16 %v410_v15, %v409_v11  ;;  %v25949_v24 = vpack.c.bf16 %v411_v19, %v411_v19  ;;  %v23370_v7 = vld [vmem:[%s32428_s1 + $0x30] ss:$20 sps:$4 sm:$0xff]   ;;  %v23373_v9 = vld [vmem:[%s32428_s1 + $0x2b8] ss:$20 sps:$4 sm:$0xff]   ;;  %v23377_v15 = vld [vmem:[%s32428_s1 + $0x2e0] ss:$20 sps:$4 sm:$0xff]   ;;  %s32385_s26 = scalar_lea.hbm %s32436_s9, %s22189_s21 }
  0x1d   : > { %22662 = vmatprep.subr.bf16.mxu1 %v25924_v14  ;;  %22652 = vmatprep.subr.bf16.mxu0 %v25924_v14  ;;  %v23376_v10 = vld [vmem:[%s32428_s1 + $0x5c] ss:$20 sps:$4 sm:$0xff]   ;;  %v23374_v11 = vld [vmem:[%s32428_s1 + $0x58] ss:$20 sps:$4 sm:$0xff]   ;;  %v23378_v19 = vld [vmem:[%s32428_s1 + $0x80] ss:$20 sps:$4 sm:$0xff]  }
  0x1e   : > { %22663 = vmatpush3.bf16.msra.mxu1 %v25924_v14  ;;  %22653 = vmatpush3.bf16.msra.mxu0 %v25924_v14  ;;  %v25976_v30 = vsel %vm422_vm6, %v25949_v24, 0  ;;  %v23380_v16 = vld [vmem:[%s32428_s1 + $0x84] ss:$20 sps:$4 sm:$0xff]   ;;  %v23381_v21 = vld [vmem:[%s32428_s1 + $0x308] ss:$20 sps:$4 sm:$0xff]   ;;  %s324_s22 = scalar_lea.vmem [#allocation2], %s323_s14 }
  0x1f   : > { %22664 = vmatprep.subr.bf16.mxu1 %v25930_v18  ;;  %22654 = vmatprep.subr.bf16.mxu0 %v25930_v18  ;;  %v23388_v28 = vld [vmem:[%s32428_s1 + $0x10] ss:$20 sps:$4 sm:$0xff]   ;;  %v23385_v29 = vld [vmem:[%s32428_s1] ss:$20 sps:$4 sm:$0xff]   ;;  %s18597_s23 = sshll.u32 %s324_s22, 4  ;;  %s18585_s13 = scalar_lea.sflag [#allocation3], %s323_s14  ;;  %s32387_s23 = int_to_ptr.vmem [resolvable:$true] %s18597_s23 }
  0x20   : > { %s25728_s27 = scalar_lea.vmem %s32387_s23, 16  ;;  %s25732_s29 = sshll.u32 %s25796_s28, 4  ;;  %s25733_s29 = int_to_ptr.vmem [resolvable:$false] %s25732_s29 }
  0x21   : > { %p25729_p11 = scmp.ne.s32.totalorder %s32387_s23, %s25728_s27  ;;  %s25734_s16 = scalar_lea.vmem %s25733_s29, 32 }
  0x22   : > { %22665 = vmatpush3.bf16.msra.mxu1 %v25930_v18  ;;  %22655 = vmatpush3.bf16.msra.mxu0 %v25930_v18  ;;  %p25735_p0 = scmp.lt.s32.totalorder %s32387_s23, %s25733_s29  ;;  %p25736_p1 = scmp.lt.s32.totalorder %s25734_s16, %s25728_s27 }
  0x23   : > { %23277 = vmatprep.subr.msk.bf16.mxu1 %vm422_vm6, %v25949_v24  ;;  %23276 = vmatprep.subr.msk.bf16.mxu0 %vm422_vm6, %v25949_v24  ;;  %p25730_p12 = pnand %p25729_p11, %p25885_p5 }
  0x24   : > { %p25737_p2 = por %p25736_p1, %p25735_p0 }
  0x25   : > { %p25731_p13 = pneg %p25730_p12 }
  0x26   : > { %22667 = vmatpush3.bf16.msra.mxu1 %v25976_v30  ;;  %22657 = vmatpush3.bf16.msra.mxu0 %v25976_v30 }
  0x27   : > { %730 = vmatprep.subr.bf16.mxu0 %v23337_v26  ;;  %781 = vmatprep.subr.bf16.mxu1 %v23340_v27  ;;  %v23382_v26 = vld [vmem:[%s32428_s1 + $0xa8] ss:$20 sps:$4 sm:$0xff]   ;;  %v23387_v27 = vld [vmem:[%s32428_s1 + $0x4] ss:$20 sps:$4 sm:$0xff]   ;;  %p25738_p3 = pnand %p25737_p2, %p25731_p13 }
  0x29   : > { %22669 = vmatmul.mubr.msk.bf16.vlgmr.msra.gmra.mrb[0].mxu1 %vm415_vm4, %v25986_v33  ;;  %22659 = vmatmul.mubr.msk.bf16.vlgmr.msra.gmra.mrb[0].mxu0 %vm415_vm4, %v25988_v34 }
  0x2a   : > { %731 = vmatpush1.bf16.msra.mxu0 %v23335_v31  ;;  %782 = vmatpush1.bf16.msra.mxu1 %v23338_v32  ;;  %v23391_v31 = vld [vmem:[%s32428_s1 + $0x2c] ss:$20 sps:$4 sm:$0xff]  }
  0x2b   : > { %732 = vmatprep.subr.bf16.mxu0 %v23343_v35  ;;  %783 = vmatprep.subr.bf16.mxu1 %v23346_v36  ;;  %v23392_v32 = vld [vmem:[%s32428_s1 + $0x38] ss:$20 sps:$4 sm:$0xff]   ;;  %v23389_v35 = vld [vmem:[%s32428_s1 + $0x28] ss:$20 sps:$4 sm:$0xff]  }
  0x2c   : > { %762 = vmatprep.mubr.bf16.mxu0 %v25793_v53  ;;  %813 = vmatprep.mubr.bf16.mxu1 %v25793_v53  ;;  %v23395_v36 = vld [vmem:[%s32428_s1 + $0x54] ss:$20 sps:$4 sm:$0xff]  }
  0x2e   : > { %733 = vmatpush1.bf16.msra.mxu0 %v23341_v37  ;;  %784 = vmatpush1.bf16.msra.mxu1 %v23344_v38  ;;  %v23396_v37 = vld [vmem:[%s32428_s1 + $0x60] ss:$20 sps:$4 sm:$0xff]   ;;  %v23393_v38 = vld [vmem:[%s32428_s1 + $0x50] ss:$20 sps:$4 sm:$0xff]  }
  0x2f   : > { %734 = vmatprep.subr.bf16.mxu0 %v23349_v39  ;;  %785 = vmatprep.subr.bf16.mxu1 %v23352_v40  ;;  %v23399_v39 = vld [vmem:[%s32428_s1 + $0x7c] ss:$20 sps:$4 sm:$0xff]  }
  0x30   : > { %v23400_v40 = vld [vmem:[%s32428_s1 + $0x88] ss:$20 sps:$4 sm:$0xff]  }
  0x32   : > { %735 = vmatpush1.bf16.msra.mxu0 %v23347_v41  ;;  %786 = vmatpush1.bf16.msra.mxu1 %v23350_v42  ;;  %v23397_v42 = vld [vmem:[%s32428_s1 + $0x78] ss:$20 sps:$4 sm:$0xff]  }
  0x33   : > { %736 = vmatprep.subr.bf16.mxu0 %v23355_v43  ;;  %787 = vmatprep.subr.bf16.mxu1 %v23358_v44  ;;  %v23403_v43 = vld [vmem:[%s32428_s1 + $0xa4] ss:$20 sps:$4 sm:$0xff]  }
  0x34   : > { %v23404_v44 = vld [vmem:[%s32428_s1 + $0xb0] ss:$20 sps:$4 sm:$0xff]  }
  0x36   : > { %737 = vmatpush1.bf16.msra.mxu0 %v23353_v45  ;;  %788 = vmatpush1.bf16.msra.mxu1 %v23356_v46  ;;  %v365_v45 = vadd.s32 2, %v25903_v4  ;;  %v366_v46 = vadd.s32 2, %v25911_v6 }
  0x37   : > { %738 = vmatprep.subr.bf16.mxu0 %v23361_v47  ;;  %789 = vmatprep.subr.bf16.mxu1 %v23364_v48  ;;  %v23401_v47 = vld [vmem:[%s32428_s1 + $0xa0] ss:$20 sps:$4 sm:$0xff]  }
  0x38   : > { %vm368_vm9 = vcmp.eq.s32.totalorder %v25900_v3, %v365_v45  ;;  %vm369_vm10 = vcmp.eq.s32.totalorder %v25900_v3, %v366_v46 }
  0x39   : > { %v26163_v48 = vsel %vm368_vm9, 1.0, %v25792_v12 }
  0x3a   : > { %739 = vmatpush1.bf16.msra.mxu0 %v23359_v49  ;;  %790 = vmatpush1.bf16.msra.mxu1 %v23362_v50  ;;  %v18664_v49 = vsel %vm369_vm10, 1.0, %v25792_v12 }
  0x3b   : > { %22672 = vmatprep.subr.bf16.mxu0 %v23365_v51  ;;  %1067 = vmatprep.subr.bf16.mxu1 %v23368_v52  ;;  %v26168_v50 = vpack.c.bf16 %v18664_v49, %v26163_v48 }
  0xfc   : > { %v22670_v54 = vpop.f32.mrb[0].mxu1  ;;  %v26052_v55 = vpop.f32.mrb[0].mxu0 }
  0xfd   : > { %v546_v56 = vpop.f32.mrb[1].mxu1  ;;  %v460_v58 = vpop.f32.mrb[1].mxu0  ;;  %v561_v17 = vpack.c.bf16 %v22670_v54, %v22670_v54  ;;  %v475_v41 = vpack.c.bf16 %v26052_v55, %v26052_v55  ;;  %v23405_v55 = vld [vmem:[%s32428_s1 + $0x4b0] ss:$20 sps:$4 sm:$0xff]  }
  0xfe   : > { %v22671_v59 = vpop.f32.mrb[2].mxu1  ;;  %v22661_v62 = vpop.f32.mrb[2].mxu0 }
  0xff   : > { %v549_v63 = vpop.f32.mrb[3].mxu1  ;;  %v463_v0 = vpop.f32.mrb[3].mxu0  ;;  %v23413_v59 = vld [vmem:[%s32428_s1 + $0x4dc] ss:$20 sps:$4 sm:$0xff]   ;;  %v23414_v62 = vld [vmem:[%s32428_s1 + $0x4e0] ss:$20 sps:$4 sm:$0xff]  }
 0x100   : > { %v560_v2 = vpack.c.bf16 %v549_v63, %v546_v56  ;;  %v26063_v5 = vpack.c.bf16 %v463_v0, %v460_v58  ;;  %v23407_v56 = vld [vmem:[%s32428_s1 + $0x4b4] ss:$20 sps:$4 sm:$0xff]   ;;  %v23410_v58 = vld [vmem:[%s32428_s1 + $0x4bc] ss:$20 sps:$4 sm:$0xff]   ;;  %v23419_v0 = vld [vmem:[%s32428_s1 + $0x504] ss:$20 sps:$4 sm:$0xff]  }
 0x101   : > { %v23417_v63 = vld [vmem:[%s32428_s1 + $0x500] ss:$20 sps:$4 sm:$0xff]  }
 0x102   : > { %18731 = vmatmul.mubr.msk.bf16.vlgmr.msra.gmra.mrb[4].mxu0 %vm723_vm8, %v560_v2  ;;  %18733 = vmatmul.mubr.msk.bf16.vlgmr.msra.gmra.mrb[4].mxu1 %vm723_vm8, %v560_v2 }
 0x103   : > { %22673 = vmatpush3.bf16.msra.mxu0 %v23365_v51  ;;  %1068 = vmatpush1.bf16.msra.mxu1 %v23366_v57  ;;  %v367_v51 = vadd.s32 2, %v25914_v8  ;;  %v23408_v57 = vld [vmem:[%s32428_s1 + $0x4b8] ss:$20 sps:$4 sm:$0xff]  }
 0x104   : > { %22674 = vmatprep.subr.bf16.mxu0 %v23369_v60  ;;  %1069 = vmatprep.subr.bf16.mxu1 %v23372_v61  ;;  %v23416_v61 = vld [vmem:[%s32428_s1 + $0x4e4] ss:$20 sps:$4 sm:$0xff]  }
 0x105   : > { %772 = vmatprep.mubr.bf16.mxu0 %v25793_v53  ;;  %823 = vmatprep.mubr.bf16.mxu1 %v25793_v53  ;;  %vm370_vm11 = vcmp.eq.s32.totalorder %v25900_v3, %v367_v51 }
 0x106   : > { %v18665_v52 = vsel %vm370_vm11, 1.0, %v25792_v12 }
 0x107   : > { %22675 = vmatpush3.bf16.msra.mxu0 %v23369_v60  ;;  %1070 = vmatpush1.bf16.msra.mxu1 %v23370_v7  ;;  %v26185_v54 = vpack.c.bf16 %v18665_v52, %v18665_v52  ;;  %v23411_v60 = vld [vmem:[%s32428_s1 + $0x4d8] ss:$20 sps:$4 sm:$0xff]  }
 0x108   : > { %22676 = vmatprep.subr.bf16.mxu0 %v23373_v9  ;;  %1071 = vmatprep.subr.bf16.mxu1 %v23376_v10  ;;  %v23425_v7 = vld [vmem:[%s32428_s1 + $0x52c] ss:$20 sps:$4 sm:$0xff]   ;;  %v23428_v10 = vld [vmem:[%s32428_s1 + $0x534] ss:$20 sps:$4 sm:$0xff]  }
 0x10a   : > { %18732 = vmatmul.mubr.msk.bf16.gmra.mrb[8].mxu0 %vm723_vm8, %v561_v17  ;;  %18734 = vmatmul.mubr.msk.bf16.gmra.mrb[8].mxu1 %vm723_vm8, %v561_v17 }
 0x10b   : > { %22677 = vmatpush3.bf16.msra.mxu0 %v23373_v9  ;;  %1072 = vmatpush1.bf16.msra.mxu1 %v23374_v11  ;;  %v23423_v9 = vld [vmem:[%s32428_s1 + $0x528] ss:$20 sps:$4 sm:$0xff]   ;;  %v23426_v11 = vld [vmem:[%s32428_s1 + $0x530] ss:$20 sps:$4 sm:$0xff]  }
 0x10c   : > { %22682 = vmatprep.mubr.msk.bf16.mxu0 %vm723_vm8, %v560_v2  ;;  %22678 = vmatprep.subr.bf16.mxu0 %v23377_v15  ;;  %v23420_v2 = vld [vmem:[%s32428_s1 + $0x508] ss:$20 sps:$4 sm:$0xff]  }
 0x10d   : > { %1073 = vmatprep.subr.bf16.mxu1 %v23380_v16  ;;  %1099 = vmatprep.mubr.bf16.mxu1 %v25793_v53  ;;  %v23429_v16 = vld [vmem:[%s32428_s1 + $0x550] ss:$20 sps:$4 sm:$0xff]  }
 0x10f   : > { %22679 = vmatpush3.bf16.msra.mxu0 %v23377_v15  ;;  %1074 = vmatpush1.bf16.msra.mxu1 %v23378_v19  ;;  %v23431_v15 = vld [vmem:[%s32428_s1 + $0x554] ss:$20 sps:$4 sm:$0xff]   ;;  %v23432_v19 = vld [vmem:[%s32428_s1 + $0x558] ss:$20 sps:$4 sm:$0xff]  }
 0x110   : > { %22680 = vmatprep.subr.bf16.mxu0 %v23381_v21  ;;  %1075 = vmatprep.subr.bf16.mxu1 %v23384_v22 }
 0x113   : > { %22681 = vmatpush3.bf16.msra.mxu0 %v23381_v21  ;;  %1076 = vmatpush1.bf16.msra.mxu1 %v23382_v26  ;;  %v23435_v21 = vld [vmem:[%s32428_s1 + $0x4c0] ss:$20 sps:$4 sm:$0xff]  }
 0x114   : > { %1016 = vmatprep.subr.bf16.mxu0 %v23387_v27  ;;  %22686 = vmatprep.subr.bf16.mxu1 %v23388_v28 }
 0x116   : > { %22683 = vmatmul.mubr.msk.bf16.vlgmr.msra.gmra.mrb[12].mxu0 %vm723_vm8, %v561_v17  ;;  %18764 = vmatmul.mubr.msk.bf16.vlgmr.msra.gmra.mrb[4].mxu1 %vm723_vm8, %v26063_v5  ;;  %v23434_v17 = vld [vmem:[%s32428_s1 + $0x55c] ss:$20 sps:$4 sm:$0xff]  }
 0x117   : > { %1017 = vmatpush1.bf16.msra.mxu0 %v23385_v29  ;;  %22687 = vmatpush3.bf16.msra.mxu1 %v23388_v28 }
 0x118   : > { %1018 = vmatprep.subr.bf16.mxu0 %v23391_v31  ;;  %22688 = vmatprep.subr.bf16.mxu1 %v23392_v32 }
 0x119   : > { %1109 = vmatprep.mubr.bf16.mxu1 %v25793_v53  ;;  %1048 = vmatprep.mubr.bf16.mxu0 %v25793_v53 }
 0x11b   : > { %1019 = vmatpush1.bf16.msra.mxu0 %v23389_v35  ;;  %22689 = vmatpush3.bf16.msra.mxu1 %v23392_v32 }
 0x11c   : > { %1020 = vmatprep.subr.bf16.mxu0 %v23395_v36  ;;  %22690 = vmatprep.subr.bf16.mxu1 %v23396_v37 }
 0x11e   : > { %18765 = vmatmul.mubr.msk.bf16.gmra.mrb[12].mxu1 %vm723_vm8, %v475_v41 }
 0x11f   : > { %1021 = vmatpush1.bf16.msra.mxu0 %v23393_v38  ;;  %22691 = vmatpush3.bf16.msra.mxu1 %v23396_v37 }
 0x120   : > { %22696 = vmatprep.mubr.msk.bf16.mxu1 %vm723_vm8, %v26063_v5  ;;  %1022 = vmatprep.subr.bf16.mxu0 %v23399_v39 }
 0x121   : > { %22692 = vmatprep.subr.bf16.mxu1 %v23400_v40 }
 0x123   : > { %1023 = vmatpush1.bf16.msra.mxu0 %v23397_v42  ;;  %22693 = vmatpush3.bf16.msra.mxu1 %v23400_v40 }
 0x124   : > { %1024 = vmatprep.subr.bf16.mxu0 %v23403_v43  ;;  %22694 = vmatprep.subr.bf16.mxu1 %v23404_v44 }
 0x127   : > { %1025 = vmatpush1.bf16.msra.mxu0 %v23401_v47  ;;  %22695 = vmatpush3.bf16.msra.mxu1 %v23404_v44 }
 0x128   : > { %22700 = vmatprep.subr.bf16.mxu1 %v25924_v14  ;;  %1389 = vmatprep.subr.bf16.mxu0 %v23407_v56 }
 0x12a   : > { %18762 = vmatmul.mubr.msk.bf16.vlgmr.msra.gmra.mrb[4].mxu0 %vm723_vm8, %v26063_v5  ;;  %22697 = vmatmul.mubr.msk.bf16.vlgmr.msra.gmra.mrb[16].mxu1 %vm723_vm8, %v475_v41  ;;  %v23422_v5 = vld [vmem:[%s32428_s1 + $0x50c] ss:$20 sps:$4 sm:$0xff]  }
 0x12b   : > { %22701 = vmatpush3.bf16.msra.mxu1 %v25924_v14  ;;  %1058 = vmatprep.mubr.bf16.mxu0 %v25793_v53 }
 0x12c   : > { %22702 = vmatprep.subr.bf16.mxu1 %v25930_v18  ;;  %22706 = vmatprep.mubr.msk.bf16.mxu1 %vm415_vm4, %v26168_v50 }
 0x12d   : > { %1390 = vmatpush1.bf16.msra.mxu0 %v23405_v55 }
 0x12e   : > { %1391 = vmatprep.subr.bf16.mxu0 %v23413_v59 }
 0x12f   : > { %22703 = vmatpush3.bf16.msra.mxu1 %v25930_v18 }
 0x130   : > { %23278 = vmatprep.subr.msk.bf16.mxu1 %vm422_vm6, %v25949_v24 }
 0x131   : > { %1392 = vmatpush1.bf16.msra.mxu0 %v23411_v60 }
 0x132   : > { %18763 = vmatmul.mubr.msk.bf16.gmra.mrb[16].mxu0 %vm723_vm8, %v475_v41  ;;  %1393 = vmatprep.subr.bf16.mxu0 %v23419_v0 }
 0x133   : > { %22705 = vmatpush3.bf16.msra.mxu1 %v25976_v30  ;;  %1421 = vmatprep.mubr.bf16.mxu0 %v25793_v53 }
 0x134   : > { %1440 = vmatprep.subr.bf16.mxu1 %v23410_v58 }
 0x135   : > { %1394 = vmatpush1.bf16.msra.mxu0 %v23417_v63 }
 0x136   : > { %22707 = vmatmul.mubr.msk.bf16.vlgmr.msra.gmra.mrb[20].mxu1 %vm415_vm4, %v26185_v54  ;;  %1395 = vmatprep.subr.bf16.mxu0 %v23425_v7 }
 0x137   : > { %1472 = vmatprep.mubr.bf16.mxu1 %v25793_v53  ;;  %1441 = vmatpush1.bf16.msra.mxu1 %v23408_v57 }
 0x138   : > { %1442 = vmatprep.subr.bf16.mxu1 %v23416_v61 }
 0x139   : > { %1396 = vmatpush1.bf16.msra.mxu0 %v23423_v9  ;;  %v379_v9 = vadd.s32 3, %v25903_v4 }
 0x13a   : > { %1397 = vmatprep.subr.bf16.mxu0 %v23431_v15  ;;  %v23437_v15 = vld [vmem:[%s32428_s1 + $0x510] ss:$20 sps:$4 sm:$0xff]  }
 0x13b   : > { %1443 = vmatpush1.bf16.msra.mxu1 %v23414_v62  ;;  %vm382_vm12 = vcmp.eq.s32.totalorder %v25900_v3, %v379_v9 }
 0x13c   : > { %1444 = vmatprep.subr.bf16.mxu1 %v23422_v5  ;;  %v23436_v5 = vld [vmem:[%s32428_s1 + $0x4e8] ss:$20 sps:$4 sm:$0xff]  }
 0x13d   : > { %1398 = vmatpush1.bf16.msra.mxu0 %v23429_v16  ;;  %v381_v16 = vadd.s32 3, %v25914_v8 }
 0x13e   : > { %22710 = vmatprep.subr.bf16.mxu0 %v23435_v21 }
 0x13f   : > { %1445 = vmatpush1.bf16.msra.mxu1 %v23420_v2  ;;  %vm384_vm14 = vcmp.eq.s32.totalorder %v25900_v3, %v381_v16 }
 0x140   : > { %1446 = vmatprep.subr.bf16.mxu1 %v23428_v10  ;;  %v380_v10 = vadd.s32 3, %v25911_v6 }
 0x142   : > { %vm383_vm13 = vcmp.eq.s32.totalorder %v25900_v3, %v380_v10 }
 0x143   : > { %1447 = vmatpush1.bf16.msra.mxu1 %v23426_v11 }
 0x144   : > { %1448 = vmatprep.subr.bf16.mxu1 %v23434_v17  ;;  %v23438_v17 = vld [vmem:[%s32428_s1 + $0x538] ss:$20 sps:$4 sm:$0xff]  }
 0x147   : > { %1449 = vmatpush1.bf16.msra.mxu1 %v23432_v19  ;;  %v26291_v19 = vsel %vm382_vm12, 1.0, %v25792_v12 }
 0x148   : > { %22724 = vmatprep.subr.bf16.mxu1 %v25924_v14 }
 0x1dd   : > { %v774_v22 = vpop.f32.mrb[8].mxu0  ;;  %v825_v26 = vpop.f32.mrb[8].mxu1 }
 0x1de   : > { %v776_v27 = vpop.f32.mrb[9].mxu0  ;;  %v827_v28 = vpop.f32.mrb[9].mxu1 }
 0x1df   : > { %v778_v29 = vpop.f32.mrb[10].mxu0  ;;  %v829_v31 = vpop.f32.mrb[10].mxu1 }
 0x1e0   : > { %v779_v32 = vpop.f32.mrb[11].mxu0  ;;  %v830_v35 = vpop.f32.mrb[11].mxu1  ;;  %v18668_v29 = vsel %vm384_vm14, 1.0, %v25792_v12  ;;  %v23443_v31 = vld [vmem:[%s32428_s1 + $0x710] ss:$20 sps:$4 sm:$0xff]  }
 0x1e1   : > { %v26317_v32 = vpack.c.bf16 %v18668_v29, %v18668_v29  ;;  %v23442_v35 = vld [vmem:[%s32428_s1 + $0x70c] ss:$20 sps:$4 sm:$0xff]  }
 0x1e9   : > { %v22684_v36 = vpop.f32.mrb[12].mxu0 }
 0x1ea   : > { %v866_v37 = vpop.f32.mrb[13].mxu0 }
 0x1eb   : > { %v22685_v38 = vpop.f32.mrb[14].mxu0 }
 0x1ec   : > { %v869_v39 = vpop.f32.mrb[15].mxu0  ;;  %v23449_v38 = vld [vmem:[%s32428_s1 + $0x738] ss:$20 sps:$4 sm:$0xff]  }
 0x1f1   : > { %v1111_v40 = vpop.f32.mrb[12].mxu1 }
 0x1f2   : > { %v26256_v41 = vadd.f32 %v1111_v40, %v825_v26  ;;  %v1113_v42 = vpop.f32.mrb[13].mxu1  ;;  %v23446_v40 = vld [vmem:[%s32428_s1 + $0x730] ss:$20 sps:$4 sm:$0xff]  }
 0x1f3   : > { %v26258_v43 = vadd.f32 %v1113_v42, %v827_v28  ;;  %v1115_v44 = vpop.f32.mrb[14].mxu1  ;;  %v23439_v28 = vld [vmem:[%s32428_s1 + $0x560] ss:$20 sps:$4 sm:$0xff]   ;;  %v23454_v42 = vld [vmem:[%s32428_s1 + $0x75c] ss:$20 sps:$4 sm:$0xff]  }
 0x1f4   : > { %v1116_v45 = vpop.f32.mrb[15].mxu1  ;;  %v23452_v44 = vld [vmem:[%s32428_s1 + $0x758] ss:$20 sps:$4 sm:$0xff]  }
 0x1f5   : > { %v23457_v45 = vld [vmem:[%s32428_s1 + $0x764] ss:$20 sps:$4 sm:$0xff]  }
 0x1fd   : > { %v22698_v46 = vpop.f32.mrb[16].mxu1 }
 0x1fe   : > { %v26260_v47 = vadd.f32 %v22698_v46, %v22684_v36  ;;  %v1152_v49 = vpop.f32.mrb[17].mxu1  ;;  %v23451_v36 = vld [vmem:[%s32428_s1 + $0x73c] ss:$20 sps:$4 sm:$0xff]   ;;  %v23455_v46 = vld [vmem:[%s32428_s1 + $0x760] ss:$20 sps:$4 sm:$0xff]  }
 0x1ff   : > { %v26262_v51 = vadd.f32 %v1152_v49, %v866_v37  ;;  %v22699_v52 = vpop.f32.mrb[18].mxu1  ;;  %v23440_v37 = vld [vmem:[%s32428_s1 + $0x708] ss:$20 sps:$4 sm:$0xff]   ;;  %v23458_v49 = vld [vmem:[%s32428_s1 + $0x780] ss:$20 sps:$4 sm:$0xff]  }
 0x200   : > { %v1155_v55 = vpop.f32.mrb[19].mxu1  ;;  %v23460_v52 = vld [vmem:[%s32428_s1 + $0x784] ss:$20 sps:$4 sm:$0xff]  }
 0x201   : > { %v26264_v56 = vadd.f32 %v1155_v55, %v869_v39  ;;  %v23448_v39 = vld [vmem:[%s32428_s1 + $0x734] ss:$20 sps:$4 sm:$0xff]  }
 0x202   : > { %v23461_v55 = vld [vmem:[%s32428_s1 + $0x788] ss:$20 sps:$4 sm:$0xff]  }
 0x205   : > { %v1060_v57 = vpop.f32.mrb[16].mxu0 }
 0x206   : > { %v26266_v58 = vadd.f32 %v1060_v57, %v774_v22  ;;  %v1062_v59 = vpop.f32.mrb[17].mxu0  ;;  %v23445_v22 = vld [vmem:[%s32428_s1 + $0x714] ss:$20 sps:$4 sm:$0xff]   ;;  %v23463_v57 = vld [vmem:[%s32428_s1 + $0x78c] ss:$20 sps:$4 sm:$0xff]  }
 0x207   : > { %v26268_v60 = vadd.f32 %v1062_v59, %v776_v27  ;;  %v1064_v61 = vpop.f32.mrb[18].mxu0  ;;  %v23466_v59 = vld [vmem:[%s32428_s1 + $0x7ac] ss:$20 sps:$4 sm:$0xff]  }
 0x208   : > { %v1065_v62 = vpop.f32.mrb[19].mxu0  ;;  %v23464_v61 = vld [vmem:[%s32428_s1 + $0x7a8] ss:$20 sps:$4 sm:$0xff]  }
 0x209   : > { %v22708_v63 = vpop.f32.mrb[20].mxu1  ;;  %v23469_v62 = vld [vmem:[%s32428_s1 + $0x7b4] ss:$20 sps:$4 sm:$0xff]  }
 0x20a   : > { %v1206_v0 = vpop.f32.mrb[21].mxu1  ;;  %v1221_v26 = vpack.c.bf16 %v22708_v63, %v22708_v63  ;;  %v23467_v63 = vld [vmem:[%s32428_s1 + $0x7b0] ss:$20 sps:$4 sm:$0xff]  }
 0x20b   : > { %v22709_v2 = vpop.f32.mrb[22].mxu1 }
 0x20c   : > { %v1209_v7 = vpop.f32.mrb[23].mxu1 }
 0x20d   : > { %v1220_v11 = vpack.c.bf16 %v1209_v7, %v1206_v0  ;;  %v23470_v0 = vld [vmem:[%s32428_s1 + $0x718] ss:$20 sps:$4 sm:$0xff]  }
 0x20f   : > { %18825 = vmatmul.mubr.msk.bf16.vlgmr.msra.gmra.mrb[4].mxu0 %vm723_vm8, %v1220_v11  ;;  %18827 = vmatmul.mubr.msk.bf16.vlgmr.msra.gmra.mrb[4].mxu1 %vm723_vm8, %v1220_v11 }
 0x210   : > { %22711 = vmatpush3.bf16.msra.mxu0 %v23435_v21  ;;  %22725 = vmatpush3.bf16.msra.mxu1 %v25924_v14  ;;  %v18667_v21 = vsel %vm383_vm13, 1.0, %v25792_v12 }
 0x211   : > { %22712 = vmatprep.subr.bf16.mxu0 %v23436_v5  ;;  %1431 = vmatprep.mubr.bf16.mxu0 %v25793_v53  ;;  %v26302_v27 = vpack.c.bf16 %v18667_v21, %v26291_v19 }
 0x212   : > { %1482 = vmatprep.mubr.bf16.mxu1 %v25793_v53  ;;  %22726 = vmatprep.subr.bf16.mxu1 %v25930_v18 }
 0x214   : > { %22713 = vmatpush3.bf16.msra.mxu0 %v23436_v5  ;;  %22727 = vmatpush3.bf16.msra.mxu1 %v25930_v18 }
 0x215   : > { %22714 = vmatprep.subr.bf16.mxu0 %v23437_v15  ;;  %23279 = vmatprep.subr.msk.bf16.mxu1 %vm422_vm6, %v25949_v24 }
 0x217   : > { %18826 = vmatmul.mubr.msk.bf16.gmra.mrb[20].mxu0 %vm723_vm8, %v1221_v26  ;;  %18828 = vmatmul.mubr.msk.bf16.gmra.mrb[24].mxu1 %vm723_vm8, %v1221_v26 }
 0x218   : > { %22715 = vmatpush3.bf16.msra.mxu0 %v23437_v15  ;;  %22720 = vmatprep.mubr.msk.bf16.mxu0 %vm723_vm8, %v1220_v11 }
 0x219   : > { %22716 = vmatprep.subr.bf16.mxu0 %v23438_v17  ;;  %22729 = vmatpush3.bf16.msra.mxu1 %v25976_v30 }
 0x21a   : > { %22730 = vmatprep.mubr.msk.bf16.mxu1 %vm415_vm4, %v26302_v27  ;;  %1828 = vmatprep.subr.bf16.mxu1 %v23445_v22 }
 0x21c   : > { %22717 = vmatpush3.bf16.msra.mxu0 %v23438_v17 }
 0x21d   : > { %22718 = vmatprep.subr.bf16.mxu0 %v23439_v28 }
 0x21f   : > { %22731 = vmatmul.mubr.msk.bf16.vlgmr.msra.gmra.mrb[28].mxu1 %vm415_vm4, %v26317_v32 }
 0x220   : > { %22719 = vmatpush3.bf16.msra.mxu0 %v23439_v28  ;;  %1829 = vmatpush1.bf16.msra.mxu1 %v23443_v31 }
 0x221   : > { %1777 = vmatprep.subr.bf16.mxu0 %v23442_v35  ;;  %1830 = vmatprep.subr.bf16.mxu1 %v23451_v36  ;;  %v393_v35 = vadd.s32 4, %v25903_v4 }
 0x222   : > { %1860 = vmatprep.mubr.bf16.mxu1 %v25793_v53 }
 0x223   : > { %22721 = vmatmul.mubr.msk.bf16.vlgmr.msra.gmra.mrb[24].mxu0 %vm723_vm8, %v1221_v26  ;;  %vm396_vm15 = vcmp.eq.s32.totalorder %v25900_v3, %v393_v35 }
 0x224   : > { %1778 = vmatpush1.bf16.msra.mxu0 %v23440_v37  ;;  %1831 = vmatpush1.bf16.msra.mxu1 %v23449_v38 }
 0x225   : > { %1779 = vmatprep.subr.bf16.mxu0 %v23448_v39  ;;  %1809 = vmatprep.mubr.bf16.mxu0 %v25793_v53 }
 0x226   : > { %1832 = vmatprep.subr.bf16.mxu1 %v23457_v45  ;;  %v23480_v45 = vld [vmem:[%s32428_s1 + $0x96c] ss:$20 sps:$4 sm:$0xff]  }
 0x228   : > { %1780 = vmatpush1.bf16.msra.mxu0 %v23446_v40  ;;  %1833 = vmatpush1.bf16.msra.mxu1 %v23455_v46  ;;  %v23478_v46 = vld [vmem:[%s32428_s1 + $0x968] ss:$20 sps:$4 sm:$0xff]  }
 0x229   : > { %1781 = vmatprep.subr.bf16.mxu0 %v23454_v42  ;;  %1834 = vmatprep.subr.bf16.mxu1 %v23463_v57  ;;  %v23483_v57 = vld [vmem:[%s32428_s1 + $0x98c] ss:$20 sps:$4 sm:$0xff]  }
 0x22c   : > { %1782 = vmatpush1.bf16.msra.mxu0 %v23452_v44  ;;  %1835 = vmatpush1.bf16.msra.mxu1 %v23461_v55  ;;  %v23473_v44 = vld [vmem:[%s32428_s1 + $0x790] ss:$20 sps:$4 sm:$0xff]  }
 0x22d   : > { %1783 = vmatprep.subr.bf16.mxu0 %v23460_v52  ;;  %1836 = vmatprep.subr.bf16.mxu1 %v23469_v62  ;;  %v23475_v52 = vld [vmem:[%s32428_s1 + $0x960] ss:$20 sps:$4 sm:$0xff]   ;;  %v23484_v55 = vld [vmem:[%s32428_s1 + $0x990] ss:$20 sps:$4 sm:$0xff]  }
 0x22e   : > { %v23487_v62 = vld [vmem:[%s32428_s1 + $0x9b0] ss:$20 sps:$4 sm:$0xff]  }
 0x230   : > { %1784 = vmatpush1.bf16.msra.mxu0 %v23458_v49  ;;  %1837 = vmatpush1.bf16.msra.mxu1 %v23467_v63  ;;  %v23486_v49 = vld [vmem:[%s32428_s1 + $0x994] ss:$20 sps:$4 sm:$0xff]   ;;  %v23492_v63 = vld [vmem:[%s32428_s1 + $0x9bc] ss:$20 sps:$4 sm:$0xff]  }
 0x231   : > { %1785 = vmatprep.subr.bf16.mxu0 %v23466_v59  ;;  %22748 = vmatprep.subr.bf16.mxu1 %v25924_v14  ;;  %v23481_v59 = vld [vmem:[%s32428_s1 + $0x988] ss:$20 sps:$4 sm:$0xff]  }
 0x234   : > { %1786 = vmatpush1.bf16.msra.mxu0 %v23464_v61  ;;  %v23489_v61 = vld [vmem:[%s32428_s1 + $0x9b4] ss:$20 sps:$4 sm:$0xff]  }
 0x235   : > { %22734 = vmatprep.subr.bf16.mxu0 %v23470_v0 }
 0x2ea   : > { %v1433_v2 = vpop.f32.mrb[20].mxu0  ;;  %v1484_v5 = vpop.f32.mrb[24].mxu1 }
 0x2eb   : > { %v26383_v7 = vadd.f32 %v1433_v2, %v26266_v58  ;;  %v26386_v9 = vadd.f32 %v1484_v5, %v26256_v41  ;;  %v1435_v10 = vpop.f32.mrb[21].mxu0  ;;  %v1486_v11 = vpop.f32.mrb[25].mxu1  ;;  %v394_v41 = vadd.s32 4, %v25911_v6  ;;  %v23493_v2 = vld [vmem:[%s32428_s1 + $0x9d8] ss:$20 sps:$4 sm:$0xff]  }
 0x2ec   : > { %v26389_v15 = vadd.f32 %v1435_v10, %v26268_v60  ;;  %v26392_v16 = vadd.f32 %v1486_v11, %v26258_v43  ;;  %v1437_v17 = vpop.f32.mrb[22].mxu0  ;;  %v1488_v21 = vpop.f32.mrb[26].mxu1  ;;  %v23471_v60 = vld [vmem:[%s32428_s1 + $0x740] ss:$20 sps:$4 sm:$0xff]   ;;  %v23495_v5 = vld [vmem:[%s32428_s1 + $0x9dc] ss:$20 sps:$4 sm:$0xff]  }
 0x2ed   : > { %v1438_v22 = vpop.f32.mrb[23].mxu0  ;;  %v1489_v26 = vpop.f32.mrb[27].mxu1  ;;  %vm397_vm0 = vcmp.eq.s32.totalorder %v25900_v3, %v394_v41  ;;  %v23496_v10 = vld [vmem:[%s32428_s1 + $0x9e0] ss:$20 sps:$4 sm:$0xff]   ;;  %v23498_v11 = vld [vmem:[%s32428_s1 + $0x9e4] ss:$20 sps:$4 sm:$0xff]  }
 0x2ee   : > { %v18670_v42 = vsel %vm397_vm0, 1.0, %v25792_v12  ;;  %v23501_v17 = vld [vmem:[%s32428_s1 + $0xa04] ss:$20 sps:$4 sm:$0xff]   ;;  %v23499_v21 = vld [vmem:[%s32428_s1 + $0xa00] ss:$20 sps:$4 sm:$0xff]  }
 0x2ef   : > { %v23504_v22 = vld [vmem:[%s32428_s1 + $0xa0c] ss:$20 sps:$4 sm:$0xff]   ;;  %v23502_v26 = vld [vmem:[%s32428_s1 + $0xa08] ss:$20 sps:$4 sm:$0xff]  }
 0x2f2   : > { %v22732_v28 = vpop.f32.mrb[28].mxu1 }
 0x2f3   : > { %v1594_v29 = vpop.f32.mrb[29].mxu1 }
 0x2f4   : > { %v22733_v31 = vpop.f32.mrb[30].mxu1 }
 0x2f5   : > { %v1597_v58 = vpop.f32.mrb[31].mxu1  ;;  %v18958_v31 = vld [vmem:[%s25909_s25 + $0x30] sm:$0xff] }
 0x2f6   : > { %v22722_v36 = vpop.f32.mrb[24].mxu0  ;;  %v1608_v37 = vpack.c.bf16 %v1597_v58, %v1594_v29  ;;  %v18957_v29 = vld [vmem:[%s25909_s25 + $0x28] sm:$0xff] }
 0x2f7   : > { %v26400_v43 = vadd.f32 %v22722_v36, %v26260_v47  ;;  %v1525_v38 = vpop.f32.mrb[25].mxu0  ;;  %v23472_v47 = vld [vmem:[%s32428_s1 + $0x768] ss:$20 sps:$4 sm:$0xff]   ;;  %v26516_v58 = vpack.c.bf16 %v18958_v31, %v18957_v29  ;;  %v23522_v31 = vld [vmem:[%s32428_s1 + $0x118] ss:$20 sps:$4 sm:$0xff]  }
 0x2f8   : > { %v26403_v39 = vadd.f32 %v1525_v38, %v26262_v51  ;;  %v22723_v40 = vpop.f32.mrb[26].mxu0  ;;  %18888 = vmatmul.mubr.msk.bf16.vlgmr.msra.gmra.mrb[4].mxu0 %vm723_vm8, %v1608_v37  ;;  %18890 = vmatmul.mubr.msk.bf16.vlgmr.msra.gmra.mrb[4].mxu1 %vm723_vm8, %v1608_v37  ;;  %v395_v51 = vadd.s32 4, %v25914_v8  ;;  %v23524_v29 = vld [vmem:[%s32428_s1 + $0x11c] ss:$20 sps:$4 sm:$0xff]  }
 0x2f9   : > { %v1528_v4 = vpop.f32.mrb[27].mxu0  ;;  %22735 = vmatpush3.bf16.msra.mxu0 %v23470_v0  ;;  %22749 = vmatpush3.bf16.msra.mxu1 %v25924_v14  ;;  %v26421_v14 = vsel %vm396_vm15, 1.0, %v25792_v12  ;;  %v23490_v0 = vld [vmem:[%s32428_s1 + $0x9b8] ss:$20 sps:$4 sm:$0xff]  }
 0x2fa   : > { %v26411_v6 = vadd.f32 %v1528_v4, %v26264_v56  ;;  %22736 = vmatprep.subr.bf16.mxu0 %v23471_v60  ;;  %1819 = vmatprep.mubr.bf16.mxu0 %v25793_v53  ;;  %v1609_v56 = vpack.c.bf16 %v22732_v28, %v22732_v28  ;;  %vm398_vm1 = vcmp.eq.s32.totalorder %v25900_v3, %v395_v51  ;;  %v23474_v3 = vld [vmem:[%s32428_s1 + $0x7b8] ss:$20 sps:$4 sm:$0xff]   ;;  %v23505_v28 = vld [vmem:[%s32428_s1 + $0x970] ss:$20 sps:$4 sm:$0xff]  }
 0x2fb   : > { %1870 = vmatprep.mubr.bf16.mxu1 %v25793_v53  ;;  %22750 = vmatprep.subr.bf16.mxu1 %v25930_v18  ;;  %v26432_v8 = vpack.c.bf16 %v18670_v42, %v26421_v14 }
 0x2fd   : > { %22737 = vmatpush3.bf16.msra.mxu0 %v23471_v60  ;;  %22751 = vmatpush3.bf16.msra.mxu1 %v25930_v18  ;;  %v18671_v18 = vsel %vm398_vm1, 1.0, %v25792_v12 }
 0x2fe   : > { %22738 = vmatprep.subr.bf16.mxu0 %v23472_v47  ;;  %23280 = vmatprep.subr.msk.bf16.mxu1 %vm422_vm6, %v25949_v24  ;;  %v26447_v24 = vpack.c.bf16 %v18671_v18, %v18671_v18  ;;  %v18959_v18 = vld [vmem:[%s25909_s25 + $0x38] sm:$0xff] }
 0x300   : > { %18889 = vmatmul.mubr.msk.bf16.gmra.mrb[28].mxu0 %vm723_vm8, %v1609_v56  ;;  %18891 = vmatmul.mubr.msk.bf16.gmra.mrb[32].mxu1 %vm723_vm8, %v1609_v56 }
 0x301   : > { %22739 = vmatpush3.bf16.msra.mxu0 %v23472_v47  ;;  %22744 = vmatprep.mubr.msk.bf16.mxu0 %vm723_vm8, %v1608_v37 }
 0x302   : > { %22740 = vmatprep.subr.bf16.mxu0 %v23473_v44  ;;  %22753 = vmatpush3.bf16.msra.mxu1 %v25976_v30  ;;  %v23477_v30 = vld [vmem:[%s32428_s1 + $0x964] ss:$20 sps:$4 sm:$0xff]  }
 0x303   : > { %22754 = vmatprep.mubr.msk.bf16.mxu1 %vm415_vm4, %v26432_v8  ;;  %2216 = vmatprep.subr.bf16.mxu1 %v23480_v45 }
 0x305   : > { %22741 = vmatpush3.bf16.msra.mxu0 %v23473_v44 }
 0x306   : > { %22742 = vmatprep.subr.bf16.mxu0 %v23474_v3 }
 0x308   : > { %22755 = vmatmul.mubr.msk.bf16.vlgmr.msra.gmra.mrb[36].mxu1 %vm415_vm4, %v26447_v24 }
 0x309   : > { %22743 = vmatpush3.bf16.msra.mxu0 %v23474_v3  ;;  %2217 = vmatpush1.bf16.msra.mxu1 %v23478_v46  ;;  %v18960_v3 = vld [vmem:[%s25909_s25 + $0x40] sm:$0xff] }
 0x30a   : > { %2165 = vmatprep.subr.bf16.mxu0 %v23477_v30  ;;  %2218 = vmatprep.subr.bf16.mxu1 %v23486_v49 }
 0x30b   : > { %2248 = vmatprep.mubr.bf16.mxu1 %v25793_v53 }
 0x30c   : > { %22745 = vmatmul.mubr.msk.bf16.vlgmr.msra.gmra.mrb[32].mxu0 %vm723_vm8, %v1609_v56 }
 0x30d   : > { %2166 = vmatpush1.bf16.msra.mxu0 %v23475_v52  ;;  %2219 = vmatpush1.bf16.msra.mxu1 %v23484_v55  ;;  %v26539_v52 = vpack.c.bf16 %v18960_v3, %v18959_v18  ;;  %v18961_v55 = vld [vmem:[%s25909_s25 + $0x48] sm:$0xff] }
 0x30e   : > { %2167 = vmatprep.subr.bf16.mxu0 %v23483_v57  ;;  %2197 = vmatprep.mubr.bf16.mxu0 %v25793_v53 }
 0x30f   : > { %2220 = vmatprep.subr.bf16.mxu1 %v23492_v63 }
 0x311   : > { %2168 = vmatpush1.bf16.msra.mxu0 %v23481_v59  ;;  %2221 = vmatpush1.bf16.msra.mxu1 %v23490_v0 }
 0x312   : > { %2169 = vmatprep.subr.bf16.mxu0 %v23489_v61  ;;  %2222 = vmatprep.subr.bf16.mxu1 %v23498_v11  ;;  %v23512_v11 = vld [vmem:[%s32428_s1 + $0xcc] ss:$20 sps:$4 sm:$0xff]  }
 0x315   : > { %2170 = vmatpush1.bf16.msra.mxu0 %v23487_v62  ;;  %2223 = vmatpush1.bf16.msra.mxu1 %v23496_v10  ;;  %v23513_v10 = vld [vmem:[%s32428_s1 + $0xd0] ss:$20 sps:$4 sm:$0xff]  }
 0x316   : > { %2171 = vmatprep.subr.bf16.mxu0 %v23495_v5  ;;  %2224 = vmatprep.subr.bf16.mxu1 %v23504_v22  ;;  %v23509_v5 = vld [vmem:[%s32428_s1 + $0xa10] ss:$20 sps:$4 sm:$0xff]   ;;  %v23519_v22 = vld [vmem:[%s32428_s1 + $0xf8] ss:$20 sps:$4 sm:$0xff]  }
 0x319   : > { %2172 = vmatpush1.bf16.msra.mxu0 %v23493_v2  ;;  %2225 = vmatpush1.bf16.msra.mxu1 %v23502_v26  ;;  %v23515_v2 = vld [vmem:[%s32428_s1 + $0xd4] ss:$20 sps:$4 sm:$0xff]  }
 0x31a   : > { %2173 = vmatprep.subr.bf16.mxu0 %v23501_v17  ;;  %22772 = vmatprep.subr.bf16.mxu1 %v26516_v58  ;;  %v23521_v17 = vld [vmem:[%s32428_s1 + $0xfc] ss:$20 sps:$4 sm:$0xff]   ;;  %v23518_v26 = vld [vmem:[%s32428_s1 + $0xf4] ss:$20 sps:$4 sm:$0xff]  }
 0x31d   : > { %2174 = vmatpush1.bf16.msra.mxu0 %v23499_v21  ;;  %v23510_v21 = vld [vmem:[%s32428_s1 + $0xc8] ss:$20 sps:$4 sm:$0xff]  }
 0x31e   : > { %22758 = vmatprep.subr.bf16.mxu0 %v23505_v28 }
 0x3d3   : > { %v1821_v35 = vpop.f32.mrb[28].mxu0  ;;  %v1872_v41 = vpop.f32.mrb[32].mxu1 }
 0x3d4   : > { %v26520_v36 = vadd.f32 %v1821_v35, %v26383_v7  ;;  %v26523_v37 = vadd.f32 %v1872_v41, %v26386_v9  ;;  %v1823_v60 = vpop.f32.mrb[29].mxu0  ;;  %v1874_v38 = vpop.f32.mrb[33].mxu1  ;;  %v23527_v35 = vld [vmem:[%s32428_s1 + $0x124] ss:$20 sps:$4 sm:$0xff]   ;;  %v23525_v41 = vld [vmem:[%s32428_s1 + $0x120] ss:$20 sps:$4 sm:$0xff]  }
 0x3d5   : > { %v26526_v40 = vadd.f32 %v1823_v60, %v26389_v15  ;;  %v26529_v4 = vadd.f32 %v1874_v38, %v26392_v16  ;;  %v1825_v47 = vpop.f32.mrb[30].mxu0  ;;  %v1876_v51 = vpop.f32.mrb[34].mxu1  ;;  %v23506_v15 = vld [vmem:[%s32428_s1 + $0x998] ss:$20 sps:$4 sm:$0xff]   ;;  %v23528_v60 = vld [vmem:[%s32428_s1 + $0x140] ss:$20 sps:$4 sm:$0xff]  }
 0x3d6   : > { %v1826_v42 = vpop.f32.mrb[31].mxu0  ;;  %v1877_v56 = vpop.f32.mrb[35].mxu1  ;;  %v23530_v38 = vld [vmem:[%s32428_s1 + $0x144] ss:$20 sps:$4 sm:$0xff]   ;;  %v23531_v47 = vld [vmem:[%s32428_s1 + $0x148] ss:$20 sps:$4 sm:$0xff]  }
 0x3d7   : > { %v23533_v51 = vld [vmem:[%s32428_s1 + $0x14c] ss:$20 sps:$4 sm:$0xff]   ;;  %v23534_v56 = vld [vmem:[%s32428_s1 + $0x168] ss:$20 sps:$4 sm:$0xff]  }
 0x3d8   : > { %v23536_v42 = vld [vmem:[%s32428_s1 + $0x16c] ss:$20 sps:$4 sm:$0xff]  }
 0x3db   : > { %v22756_v44 = vpop.f32.mrb[36].mxu1 }
 0x3dc   : > { %v1982_v45 = vpop.f32.mrb[37].mxu1  ;;  %v1997_v63 = vpack.c.bf16 %v22756_v44, %v22756_v44  ;;  %v23539_v44 = vld [vmem:[%s32428_s1 + $0x174] ss:$20 sps:$4 sm:$0xff]  }
 0x3dd   : > { %v22757_v7 = vpop.f32.mrb[38].mxu1 }
 0x3de   : > { %v1985_v9 = vpop.f32.mrb[39].mxu1  ;;  %v23540_v7 = vld [vmem:[%s32428_s1 + $0xd8] ss:$20 sps:$4 sm:$0xff]  }
 0x3df   : > { %v22746_v46 = vpop.f32.mrb[32].mxu0  ;;  %v1996_v30 = vpack.c.bf16 %v1985_v9, %v1982_v45  ;;  %v23537_v45 = vld [vmem:[%s32428_s1 + $0x170] ss:$20 sps:$4 sm:$0xff]  }
 0x3e0   : > { %v26537_v16 = vadd.f32 %v22746_v46, %v26400_v43  ;;  %v1913_v49 = vpop.f32.mrb[33].mxu0  ;;  %v23507_v43 = vld [vmem:[%s32428_s1 + $0x9c0] ss:$20 sps:$4 sm:$0xff]  }
 0x3e1   : > { %v26543_v57 = vadd.f32 %v1913_v49, %v26403_v39  ;;  %v22747_v59 = vpop.f32.mrb[34].mxu0  ;;  %18951 = vmatmul.mubr.msk.bf16.vlgmr.msra.gmra.mrb[4].mxu0 %vm723_vm8, %v1996_v30  ;;  %18953 = vmatmul.mubr.msk.bf16.vlgmr.msra.gmra.mrb[4].mxu1 %vm723_vm8, %v1996_v30  ;;  %v26555_v39 = vpack.c.bf16 %v18961_v55, %v18961_v55 }
 0x3e2   : > { %v1916_v61 = vpop.f32.mrb[35].mxu0  ;;  %22759 = vmatpush3.bf16.msra.mxu0 %v23505_v28  ;;  %22773 = vmatpush3.bf16.msra.mxu1 %v26516_v58  ;;  %v23516_v28 = vld [vmem:[%s32428_s1 + $0xf0] ss:$20 sps:$4 sm:$0xff]  }
 0x3e3   : > { %v26549_v62 = vadd.f32 %v1916_v61, %v26411_v6  ;;  %22760 = vmatprep.subr.bf16.mxu0 %v23506_v15  ;;  %2207 = vmatprep.mubr.bf16.mxu0 %v25793_v53  ;;  %v23508_v6 = vld [vmem:[%s32428_s1 + $0x9e8] ss:$20 sps:$4 sm:$0xff]   ;;  %v26567_v0 = vsel %vm422_vm6, %v26555_v39, 0 }
 0x3e4   : > { %2258 = vmatprep.mubr.bf16.mxu1 %v25793_v53  ;;  %22774 = vmatprep.subr.bf16.mxu1 %v26539_v52 }
 0x3e6   : > { %22761 = vmatpush3.bf16.msra.mxu0 %v23506_v15  ;;  %22775 = vmatpush3.bf16.msra.mxu1 %v26539_v52 }
 0x3e7   : > { %22762 = vmatprep.subr.bf16.mxu0 %v23507_v43  ;;  %23281 = vmatprep.subr.msk.bf16.mxu1 %vm422_vm6, %v26555_v39 }
 0x3e9   : > { %18952 = vmatmul.mubr.msk.bf16.gmra.mrb[36].mxu0 %vm723_vm8, %v1997_v63  ;;  %18954 = vmatmul.mubr.msk.bf16.gmra.mrb[40].mxu1 %vm723_vm8, %v1997_v63 }
 0x3ea   : > { %22763 = vmatpush3.bf16.msra.mxu0 %v23507_v43  ;;  %22768 = vmatprep.mubr.msk.bf16.mxu0 %vm723_vm8, %v1996_v30 }
 0x3eb   : > { %22764 = vmatprep.subr.bf16.mxu0 %v23508_v6  ;;  %22777 = vmatpush3.bf16.msra.mxu1 %v26567_v0 }
 0x3ec   : > { %22778 = vmatprep.mubr.msk.bf16.mxu1 %vm415_vm4, %v25946_v23  ;;  %2610 = vmatprep.subr.bf16.mxu1 %v23515_v2 }
 0x3ee   : > { %22765 = vmatpush3.bf16.msra.mxu0 %v23508_v6 }
 0x3ef   : > { %22766 = vmatprep.subr.bf16.mxu0 %v23509_v5 }
 0x3f1   : > { %22779 = vmatmul.mubr.msk.bf16.vlgmr.msra.gmra.mrb[44].mxu1 %vm415_vm4, %v25988_v34 }
 0x3f2   : > { %22767 = vmatpush3.bf16.msra.mxu0 %v23509_v5  ;;  %2611 = vmatpush1.bf16.msra.mxu1 %v23513_v10 }
 0x3f3   : > { %2559 = vmatprep.subr.bf16.mxu0 %v23512_v11  ;;  %2612 = vmatprep.subr.bf16.mxu1 %v23521_v17 }
 0x3f4   : > { %2642 = vmatprep.mubr.bf16.mxu1 %v25793_v53 }
 0x3f5   : > { %22769 = vmatmul.mubr.msk.bf16.vlgmr.msra.gmra.mrb[40].mxu0 %vm723_vm8, %v1997_v63 }
 0x3f6   : > { %2560 = vmatpush1.bf16.msra.mxu0 %v23510_v21  ;;  %2613 = vmatpush1.bf16.msra.mxu1 %v23519_v22 }
 0x3f7   : > { %2561 = vmatprep.subr.bf16.mxu0 %v23518_v26  ;;  %2591 = vmatprep.mubr.bf16.mxu0 %v25793_v53 }
 0x3f8   : > { %2614 = vmatprep.subr.bf16.mxu1 %v23527_v35  ;;  %v23550_v35 = vld [vmem:[%s32428_s1 + $0x324] ss:$20 sps:$4 sm:$0xff]  }
 0x3fa   : > { %2562 = vmatpush1.bf16.msra.mxu0 %v23516_v28  ;;  %2615 = vmatpush1.bf16.msra.mxu1 %v23525_v41  ;;  %v23543_v28 = vld [vmem:[%s32428_s1 + $0x150] ss:$20 sps:$4 sm:$0xff]   ;;  %v23553_v41 = vld [vmem:[%s32428_s1 + $0x354] ss:$20 sps:$4 sm:$0xff]  }
 0x3fb   : > { %2563 = vmatprep.subr.bf16.mxu0 %v23524_v29  ;;  %2616 = vmatprep.subr.bf16.mxu1 %v23533_v51  ;;  %v23544_v29 = vld [vmem:[%s32428_s1 + $0x178] ss:$20 sps:$4 sm:$0xff]   ;;  %v23554_v51 = vld [vmem:[%s32428_s1 + $0x348] ss:$20 sps:$4 sm:$0xff]  }
 0x3fe   : > { %2564 = vmatpush1.bf16.msra.mxu0 %v23522_v31  ;;  %2617 = vmatpush1.bf16.msra.mxu1 %v23531_v47  ;;  %v23545_v31 = vld [vmem:[%s32428_s1 + $0x328] ss:$20 sps:$4 sm:$0xff]   ;;  %v23556_v47 = vld [vmem:[%s32428_s1 + $0x34c] ss:$20 sps:$4 sm:$0xff]  }
 0x3ff   : > { %2565 = vmatprep.subr.bf16.mxu0 %v23530_v38  ;;  %2618 = vmatprep.subr.bf16.mxu1 %v23539_v44  ;;  %v23551_v38 = vld [vmem:[%s32428_s1 + $0x350] ss:$20 sps:$4 sm:$0xff]   ;;  %v23562_v44 = vld [vmem:[%s32428_s1 + $0x374] ss:$20 sps:$4 sm:$0xff]  }
 0x402   : > { %2566 = vmatpush1.bf16.msra.mxu0 %v23528_v60  ;;  %2619 = vmatpush1.bf16.msra.mxu1 %v23537_v45  ;;  %v23548_v60 = vld [vmem:[%s32428_s1 + $0x320] ss:$20 sps:$4 sm:$0xff]   ;;  %v23560_v45 = vld [vmem:[%s32428_s1 + $0x370] ss:$20 sps:$4 sm:$0xff]  }
 0x403   : > { %2567 = vmatprep.subr.bf16.mxu0 %v23536_v42  ;;  %22796 = vmatprep.subr.bf16.mxu1 %v26516_v58  ;;  %v23559_v42 = vld [vmem:[%s32428_s1 + $0x37c] ss:$20 sps:$4 sm:$0xff]  }
 0x406   : > { %2568 = vmatpush1.bf16.msra.mxu0 %v23534_v56  ;;  %v23557_v56 = vld [vmem:[%s32428_s1 + $0x378] ss:$20 sps:$4 sm:$0xff]  }
 0x407   : > { %22782 = vmatprep.subr.bf16.mxu0 %v23540_v7 }
 0x4bc   : > { %v2209_v18 = vpop.f32.mrb[36].mxu0  ;;  %v2260_v3 = vpop.f32.mrb[40].mxu1 }
 0x4bd   : > { %v26648_v9 = vadd.f32 %v2260_v3, %v26523_v37  ;;  %v2211_v46 = vpop.f32.mrb[37].mxu0  ;;  %v2262_v30 = vpop.f32.mrb[41].mxu1  ;;  %v26651_v15 = vadd.f32 %v2209_v18, %v26520_v36  ;;  %v23541_v36 = vld [vmem:[%s32428_s1 + $0x100] ss:$20 sps:$4 sm:$0xff]   ;;  %v23565_v18 = vld [vmem:[%s32428_s1 + $0x3a4] ss:$20 sps:$4 sm:$0xff]  }
 0x4be   : > { %v26654_v49 = vadd.f32 %v2262_v30, %v26529_v4  ;;  %v2213_v55 = vpop.f32.mrb[38].mxu0  ;;  %v2264_v59 = vpop.f32.mrb[42].mxu1  ;;  %v26657_v61 = vadd.f32 %v2211_v46, %v26526_v40  ;;  %v23566_v3 = vld [vmem:[%s32428_s1 + $0x398] ss:$20 sps:$4 sm:$0xff]   ;;  %v23568_v46 = vld [vmem:[%s32428_s1 + $0x39c] ss:$20 sps:$4 sm:$0xff]  }
 0x4bf   : > { %v2214_v43 = vpop.f32.mrb[39].mxu0  ;;  %v2265_v63 = vpop.f32.mrb[43].mxu1  ;;  %v23571_v30 = vld [vmem:[%s32428_s1 + $0x3cc] ss:$20 sps:$4 sm:$0xff]   ;;  %v23569_v55 = vld [vmem:[%s32428_s1 + $0x3c8] ss:$20 sps:$4 sm:$0xff]  }
 0x4c0   : > { %v23574_v59 = vld [vmem:[%s32428_s1 + $0x3c4] ss:$20 sps:$4 sm:$0xff]   ;;  %v23572_v43 = vld [vmem:[%s32428_s1 + $0x3c0] ss:$20 sps:$4 sm:$0xff]  }
 0x4c1   : > { %v23575_v63 = vld [vmem:[%s32428_s1 + $0x330] ss:$20 sps:$4 sm:$0xff]  }
 0x4c4   : > { %v22780_v6 = vpop.f32.mrb[44].mxu1 }
 0x4c5   : > { %v2376_v2 = vpop.f32.mrb[45].mxu1 }
 0x4c6   : > { %v22781_v5 = vpop.f32.mrb[46].mxu1 }
 0x4c7   : > { %v2379_v37 = vpop.f32.mrb[47].mxu1 }
 0x4c8   : > { %v22770_v10 = vpop.f32.mrb[40].mxu0  ;;  %v2390_v11 = vpack.c.bf16 %v2379_v37, %v2376_v2 }
 0x4c9   : > { %v2301_v17 = vpop.f32.mrb[41].mxu0  ;;  %v26663_v4 = vadd.f32 %v22770_v10, %v26537_v16  ;;  %v23542_v16 = vld [vmem:[%s32428_s1 + $0x128] ss:$20 sps:$4 sm:$0xff]  }
 0x4ca   : > { %v22771_v21 = vpop.f32.mrb[42].mxu0  ;;  %19019 = vmatmul.mubr.msk.bf16.vlgmr.msra.gmra.mrb[4].mxu0 %vm723_vm8, %v2390_v11  ;;  %19021 = vmatmul.mubr.msk.bf16.vlgmr.msra.gmra.mrb[4].mxu1 %vm723_vm8, %v2390_v11  ;;  %v26668_v40 = vadd.f32 %v2301_v17, %v26543_v57  ;;  %v2391_v57 = vpack.c.bf16 %v22780_v6, %v22780_v6 }
 0x4cb   : > { %v2304_v22 = vpop.f32.mrb[43].mxu0  ;;  %22783 = vmatpush3.bf16.msra.mxu0 %v23540_v7  ;;  %22797 = vmatpush3.bf16.msra.mxu1 %v26516_v58  ;;  %v23563_v7 = vld [vmem:[%s32428_s1 + $0x3a0] ss:$20 sps:$4 sm:$0xff]  }
 0x4cc   : > { %22784 = vmatprep.subr.bf16.mxu0 %v23541_v36  ;;  %2601 = vmatprep.mubr.bf16.mxu0 %v25793_v53  ;;  %v26676_v26 = vadd.f32 %v2304_v22, %v26549_v62  ;;  %v23547_v62 = vld [vmem:[%s32428_s1 + $0x32c] ss:$20 sps:$4 sm:$0xff]  }
 0x4cd   : > { %2652 = vmatprep.mubr.bf16.mxu1 %v25793_v53  ;;  %22798 = vmatprep.subr.bf16.mxu1 %v26539_v52 }
 0x4cf   : > { %22785 = vmatpush3.bf16.msra.mxu0 %v23541_v36  ;;  %22799 = vmatpush3.bf16.msra.mxu1 %v26539_v52 }
 0x4d0   : > { %22786 = vmatprep.subr.bf16.mxu0 %v23542_v16  ;;  %23282 = vmatprep.subr.msk.bf16.mxu1 %vm422_vm6, %v26555_v39 }
 0x4d2   : > { %19020 = vmatmul.mubr.msk.bf16.gmra.mrb[44].mxu0 %vm723_vm8, %v2391_v57  ;;  %19022 = vmatmul.mubr.msk.bf16.gmra.mrb[48].mxu1 %vm723_vm8, %v2391_v57 }
 0x4d3   : > { %22787 = vmatpush3.bf16.msra.mxu0 %v23542_v16  ;;  %22792 = vmatprep.mubr.msk.bf16.mxu0 %vm723_vm8, %v2390_v11 }
 0x4d4   : > { %22788 = vmatprep.subr.bf16.mxu0 %v23543_v28  ;;  %22801 = vmatpush3.bf16.msra.mxu1 %v26567_v0 }
 0x4d5   : > { %22802 = vmatprep.mubr.msk.bf16.mxu1 %vm415_vm4, %v25952_v25  ;;  %2992 = vmatprep.subr.bf16.mxu1 %v23547_v62 }
 0x4d7   : > { %22789 = vmatpush3.bf16.msra.mxu0 %v23543_v28 }
 0x4d8   : > { %22790 = vmatprep.subr.bf16.mxu0 %v23544_v29 }
 0x4da   : > { %22803 = vmatmul.mubr.msk.bf16.vlgmr.msra.gmra.mrb[52].mxu1 %vm415_vm4, %v25986_v33 }
 0x4db   : > { %22791 = vmatpush3.bf16.msra.mxu0 %v23544_v29  ;;  %2993 = vmatpush1.bf16.msra.mxu1 %v23545_v31 }
 0x4dc   : > { %2941 = vmatprep.subr.bf16.mxu0 %v23550_v35  ;;  %2994 = vmatprep.subr.bf16.mxu1 %v23553_v41 }
 0x4dd   : > { %3024 = vmatprep.mubr.bf16.mxu1 %v25793_v53 }
 0x4de   : > { %22793 = vmatmul.mubr.msk.bf16.vlgmr.msra.gmra.mrb[48].mxu0 %vm723_vm8, %v2391_v57 }
 0x4df   : > { %2942 = vmatpush1.bf16.msra.mxu0 %v23548_v60  ;;  %2995 = vmatpush1.bf16.msra.mxu1 %v23551_v38 }
 0x4e0   : > { %2943 = vmatprep.subr.bf16.mxu0 %v23556_v47  ;;  %2973 = vmatprep.mubr.bf16.mxu0 %v25793_v53 }
 0x4e1   : > { %2996 = vmatprep.subr.bf16.mxu1 %v23559_v42  ;;  %v23579_v42 = vld [vmem:[%s32428_s1 + $0x3d0] ss:$20 sps:$4 sm:$0xff]  }
 0x4e3   : > { %2944 = vmatpush1.bf16.msra.mxu0 %v23554_v51  ;;  %2997 = vmatpush1.bf16.msra.mxu1 %v23557_v56  ;;  %v23582_v51 = vld [vmem:[%s32428_s1 + $0x57c] ss:$20 sps:$4 sm:$0xff]   ;;  %v23580_v56 = vld [vmem:[%s32428_s1 + $0x578] ss:$20 sps:$4 sm:$0xff]  }
 0x4e4   : > { %2945 = vmatprep.subr.bf16.mxu0 %v23562_v44  ;;  %2998 = vmatprep.subr.bf16.mxu1 %v23565_v18  ;;  %v23585_v44 = vld [vmem:[%s32428_s1 + $0x584] ss:$20 sps:$4 sm:$0xff]   ;;  %v23586_v18 = vld [vmem:[%s32428_s1 + $0x5a0] ss:$20 sps:$4 sm:$0xff]  }
 0x4e7   : > { %2946 = vmatpush1.bf16.msra.mxu0 %v23560_v45  ;;  %2999 = vmatpush1.bf16.msra.mxu1 %v23563_v7  ;;  %v23588_v45 = vld [vmem:[%s32428_s1 + $0x5a4] ss:$20 sps:$4 sm:$0xff]   ;;  %v23583_v7 = vld [vmem:[%s32428_s1 + $0x580] ss:$20 sps:$4 sm:$0xff]  }
 0x4e8   : > { %2947 = vmatprep.subr.bf16.mxu0 %v23568_v46  ;;  %3000 = vmatprep.subr.bf16.mxu1 %v23571_v30  ;;  %v23589_v46 = vld [vmem:[%s32428_s1 + $0x5a8] ss:$20 sps:$4 sm:$0xff]   ;;  %v23594_v30 = vld [vmem:[%s32428_s1 + $0x5cc] ss:$20 sps:$4 sm:$0xff]  }
 0x4eb   : > { %2948 = vmatpush1.bf16.msra.mxu0 %v23566_v3  ;;  %3001 = vmatpush1.bf16.msra.mxu1 %v23569_v55  ;;  %v23591_v3 = vld [vmem:[%s32428_s1 + $0x5ac] ss:$20 sps:$4 sm:$0xff]   ;;  %v23592_v55 = vld [vmem:[%s32428_s1 + $0x5c8] ss:$20 sps:$4 sm:$0xff]  }
 0x4ec   : > { %2949 = vmatprep.subr.bf16.mxu0 %v23574_v59  ;;  %22806 = vmatprep.subr.bf16.mxu1 %v23575_v63  ;;  %v23597_v59 = vld [vmem:[%s32428_s1 + $0x5d4] ss:$20 sps:$4 sm:$0xff]  }
 0x4ef   : > { %2950 = vmatpush1.bf16.msra.mxu0 %v23572_v43  ;;  %v23595_v43 = vld [vmem:[%s32428_s1 + $0x5d0] ss:$20 sps:$4 sm:$0xff]  }
 0x4f0   : > { %22820 = vmatprep.subr.bf16.mxu0 %v26516_v58 }
 0x5a5   : > { %v2603_v6 = vpop.f32.mrb[44].mxu0  ;;  %v2654_v2 = vpop.f32.mrb[48].mxu1 }
 0x5a6   : > { %v26765_v5 = vadd.f32 %v2603_v6, %v26651_v15  ;;  %v26768_v37 = vadd.f32 %v2654_v2, %v26648_v9  ;;  %v2605_v10 = vpop.f32.mrb[45].mxu0  ;;  %v2656_v11 = vpop.f32.mrb[49].mxu1  ;;  %v23576_v9 = vld [vmem:[%s32428_s1 + $0x358] ss:$20 sps:$4 sm:$0xff]   ;;  %v23600_v6 = vld [vmem:[%s32428_s1 + $0x5f4] ss:$20 sps:$4 sm:$0xff]  }
 0x5a7   : > { %v26771_v36 = vadd.f32 %v2605_v10, %v26657_v61  ;;  %v26774_v17 = vadd.f32 %v2656_v11, %v26654_v49  ;;  %v2607_v21 = vpop.f32.mrb[46].mxu0  ;;  %v2658_v22 = vpop.f32.mrb[50].mxu1  ;;  %v23601_v2 = vld [vmem:[%s32428_s1 + $0x5f8] ss:$20 sps:$4 sm:$0xff]   ;;  %v23603_v10 = vld [vmem:[%s32428_s1 + $0x5fc] ss:$20 sps:$4 sm:$0xff]  }
 0x5a8   : > { %v2608_v16 = vpop.f32.mrb[47].mxu0  ;;  %v2659_v57 = vpop.f32.mrb[51].mxu1  ;;  %v23606_v11 = vld [vmem:[%s32428_s1 + $0x61c] ss:$20 sps:$4 sm:$0xff]   ;;  %v23604_v21 = vld [vmem:[%s32428_s1 + $0x618] ss:$20 sps:$4 sm:$0xff]  }
 0x5a9   : > { %v23609_v22 = vld [vmem:[%s32428_s1 + $0x624] ss:$20 sps:$4 sm:$0xff]   ;;  %v23607_v16 = vld [vmem:[%s32428_s1 + $0x620] ss:$20 sps:$4 sm:$0xff]   ;;  %v23610_v57 = vld [vmem:[%s32428_s1 + $0x588] ss:$20 sps:$4 sm:$0xff]  }
 0x5ad   : > { %v22804_v28 = vpop.f32.mrb[52].mxu1 }
 0x5ae   : > { %v2758_v62 = vpop.f32.mrb[53].mxu1 }
 0x5af   : > { %v22805_v29 = vpop.f32.mrb[54].mxu1 }
 0x5b0   : > { %v2761_v15 = vpop.f32.mrb[55].mxu1 }
 0x5b1   : > { %v22794_v31 = vpop.f32.mrb[48].mxu0  ;;  %v2772_v35 = vpack.c.bf16 %v2761_v15, %v2758_v62 }
 0x5b2   : > { %v26780_v61 = vadd.f32 %v22794_v31, %v26663_v4  ;;  %v2695_v41 = vpop.f32.mrb[49].mxu0  ;;  %v23577_v4 = vld [vmem:[%s32428_s1 + $0x380] ss:$20 sps:$4 sm:$0xff]  }
 0x5b3   : > { %v26783_v49 = vadd.f32 %v2695_v41, %v26668_v40  ;;  %v22795_v60 = vpop.f32.mrb[50].mxu0  ;;  %19082 = vmatmul.mubr.msk.bf16.vlgmr.msra.gmra.mrb[4].mxu0 %vm723_vm8, %v2772_v35  ;;  %19084 = vmatmul.mubr.msk.bf16.vlgmr.msra.gmra.mrb[4].mxu1 %vm723_vm8, %v2772_v35  ;;  %v2773_v40 = vpack.c.bf16 %v22804_v28, %v22804_v28 }
 0x5b4   : > { %v2698_v38 = vpop.f32.mrb[51].mxu0  ;;  %22807 = vmatpush3.bf16.msra.mxu1 %v23575_v63  ;;  %22821 = vmatpush3.bf16.msra.mxu0 %v26516_v58  ;;  %v23598_v63 = vld [vmem:[%s32428_s1 + $0x5f0] ss:$20 sps:$4 sm:$0xff]  }
 0x5b5   : > { %v26789_v47 = vadd.f32 %v2698_v38, %v26676_v26  ;;  %22808 = vmatprep.subr.bf16.mxu1 %v23576_v9  ;;  %2983 = vmatprep.mubr.bf16.mxu0 %v25793_v53  ;;  %v23578_v26 = vld [vmem:[%s32428_s1 + $0x3a8] ss:$20 sps:$4 sm:$0xff]  }
 0x5b6   : > { %3034 = vmatprep.mubr.bf16.mxu1 %v25793_v53  ;;  %22822 = vmatprep.subr.bf16.mxu0 %v26539_v52 }
 0x5b8   : > { %22809 = vmatpush3.bf16.msra.mxu1 %v23576_v9  ;;  %22823 = vmatpush3.bf16.msra.mxu0 %v26539_v52 }
 0x5b9   : > { %22810 = vmatprep.subr.bf16.mxu1 %v23577_v4  ;;  %23283 = vmatprep.subr.msk.bf16.mxu0 %vm422_vm6, %v26555_v39 }
 0x5bb   : > { %19083 = vmatmul.mubr.msk.bf16.gmra.mrb[52].mxu0 %vm723_vm8, %v2773_v40  ;;  %19085 = vmatmul.mubr.msk.bf16.gmra.mrb[56].mxu1 %vm723_vm8, %v2773_v40 }
 0x5bc   : > { %22811 = vmatpush3.bf16.msra.mxu1 %v23577_v4  ;;  %22816 = vmatprep.mubr.msk.bf16.mxu1 %vm723_vm8, %v2772_v35 }
 0x5bd   : > { %22812 = vmatprep.subr.bf16.mxu1 %v23578_v26  ;;  %22825 = vmatpush3.bf16.msra.mxu0 %v26567_v0 }
 0x5be   : > { %22826 = vmatprep.mubr.msk.bf16.mxu0 %vm415_vm4, %v26168_v50  ;;  %3323 = vmatprep.subr.bf16.mxu0 %v23582_v51 }
 0x5c0   : > { %22813 = vmatpush3.bf16.msra.mxu1 %v23578_v26 }
 0x5c1   : > { %22814 = vmatprep.subr.bf16.mxu1 %v23579_v42 }
 0x5c3   : > { %22827 = vmatmul.mubr.msk.bf16.vlgmr.msra.gmra.mrb[56].mxu0 %vm415_vm4, %v26185_v54 }
 0x5c4   : > { %22815 = vmatpush3.bf16.msra.mxu1 %v23579_v42  ;;  %3324 = vmatpush1.bf16.msra.mxu0 %v23580_v56 }
 0x5c5   : > { %3374 = vmatprep.subr.bf16.mxu1 %v23585_v44  ;;  %3325 = vmatprep.subr.bf16.mxu0 %v23588_v45 }
 0x5c6   : > { %3355 = vmatprep.mubr.bf16.mxu0 %v25793_v53 }
 0x5c7   : > { %22817 = vmatmul.mubr.msk.bf16.vlgmr.msra.gmra.mrb[60].mxu1 %vm723_vm8, %v2773_v40 }
 0x5c8   : > { %3375 = vmatpush1.bf16.msra.mxu1 %v23583_v7  ;;  %3326 = vmatpush1.bf16.msra.mxu0 %v23586_v18 }
 0x5c9   : > { %3376 = vmatprep.subr.bf16.mxu1 %v23591_v3  ;;  %3406 = vmatprep.mubr.bf16.mxu1 %v25793_v53 }
 0x5ca   : > { %3327 = vmatprep.subr.bf16.mxu0 %v23594_v30  ;;  %v23614_v30 = vld [vmem:[%s32428_s1 + $0x628] ss:$20 sps:$4 sm:$0xff]  }
 0x5cc   : > { %3377 = vmatpush1.bf16.msra.mxu1 %v23589_v46  ;;  %3328 = vmatpush1.bf16.msra.mxu0 %v23592_v55  ;;  %v23613_v46 = vld [vmem:[%s32428_s1 + $0x600] ss:$20 sps:$4 sm:$0xff]   ;;  %v23615_v55 = vld [vmem:[%s32428_s1 + $0x7d8] ss:$20 sps:$4 sm:$0xff]  }
 0x5cd   : > { %3378 = vmatprep.subr.bf16.mxu1 %v23597_v59  ;;  %3329 = vmatprep.subr.bf16.mxu0 %v23600_v6  ;;  %v23620_v59 = vld [vmem:[%s32428_s1 + $0x7d4] ss:$20 sps:$4 sm:$0xff]  }
 0x5ce   : > { %v23621_v6 = vld [vmem:[%s32428_s1 + $0x800] ss:$20 sps:$4 sm:$0xff]  }
 0x5d0   : > { %3379 = vmatpush1.bf16.msra.mxu1 %v23595_v43  ;;  %3330 = vmatpush1.bf16.msra.mxu0 %v23598_v63  ;;  %v23623_v43 = vld [vmem:[%s32428_s1 + $0x804] ss:$20 sps:$4 sm:$0xff]  }
 0x5d1   : > { %3380 = vmatprep.subr.bf16.mxu1 %v23603_v10  ;;  %3331 = vmatprep.subr.bf16.mxu0 %v23606_v11  ;;  %v23618_v63 = vld [vmem:[%s32428_s1 + $0x7d0] ss:$20 sps:$4 sm:$0xff]   ;;  %v23624_v10 = vld [vmem:[%s32428_s1 + $0x7f8] ss:$20 sps:$4 sm:$0xff]  }
 0x5d2   : > { %v23629_v11 = vld [vmem:[%s32428_s1 + $0x82c] ss:$20 sps:$4 sm:$0xff]  }
 0x5d4   : > { %3381 = vmatpush1.bf16.msra.mxu1 %v23601_v2  ;;  %3332 = vmatpush1.bf16.msra.mxu0 %v23604_v21  ;;  %v23626_v2 = vld [vmem:[%s32428_s1 + $0x7fc] ss:$20 sps:$4 sm:$0xff]  }
 0x5d5   : > { %3382 = vmatprep.subr.bf16.mxu1 %v23609_v22  ;;  %22830 = vmatprep.subr.bf16.mxu0 %v23610_v57  ;;  %v23627_v21 = vld [vmem:[%s32428_s1 + $0x828] ss:$20 sps:$4 sm:$0xff]   ;;  %v23632_v22 = vld [vmem:[%s32428_s1 + $0x824] ss:$20 sps:$4 sm:$0xff]  }
 0x5d8   : > { %3383 = vmatpush1.bf16.msra.mxu1 %v23607_v16  ;;  %v23630_v16 = vld [vmem:[%s32428_s1 + $0x820] ss:$20 sps:$4 sm:$0xff]  }
 0x5d9   : > { %22844 = vmatprep.subr.bf16.mxu1 %v26516_v58 }
 0x68e   : > { %v2985_v28 = vpop.f32.mrb[52].mxu0  ;;  %v3036_v62 = vpop.f32.mrb[56].mxu1 }
 0x68f   : > { %v26882_v29 = vadd.f32 %v2985_v28, %v26765_v5  ;;  %v26885_v15 = vadd.f32 %v3036_v62, %v26768_v37  ;;  %v2987_v31 = vpop.f32.mrb[53].mxu0  ;;  %v3038_v35 = vpop.f32.mrb[57].mxu1  ;;  %v23611_v37 = vld [vmem:[%s32428_s1 + $0x5b0] ss:$20 sps:$4 sm:$0xff]   ;;  %v23635_v28 = vld [vmem:[%s32428_s1 + $0x854] ss:$20 sps:$4 sm:$0xff]  }
 0x690   : > { %v26888_v9 = vadd.f32 %v2987_v31, %v26771_v36  ;;  %v26891_v41 = vadd.f32 %v3038_v35, %v26774_v17  ;;  %v2989_v60 = vpop.f32.mrb[54].mxu0  ;;  %v3040_v38 = vpop.f32.mrb[58].mxu1  ;;  %v23636_v62 = vld [vmem:[%s32428_s1 + $0x848] ss:$20 sps:$4 sm:$0xff]   ;;  %v23638_v31 = vld [vmem:[%s32428_s1 + $0x84c] ss:$20 sps:$4 sm:$0xff]  }
 0x691   : > { %v2990_v4 = vpop.f32.mrb[55].mxu0  ;;  %v3041_v40 = vpop.f32.mrb[59].mxu1  ;;  %v23641_v35 = vld [vmem:[%s32428_s1 + $0x87c] ss:$20 sps:$4 sm:$0xff]   ;;  %v23639_v60 = vld [vmem:[%s32428_s1 + $0x878] ss:$20 sps:$4 sm:$0xff]  }
 0x692   : > { %v23644_v38 = vld [vmem:[%s32428_s1 + $0x874] ss:$20 sps:$4 sm:$0xff]   ;;  %v23642_v4 = vld [vmem:[%s32428_s1 + $0x870] ss:$20 sps:$4 sm:$0xff]  }
 0x693   : > { %v23645_v40 = vld [vmem:[%s32428_s1 + $0x7e0] ss:$20 sps:$4 sm:$0xff]  }
 0x696   : > { %v22828_v26 = vpop.f32.mrb[56].mxu0 }
 0x697   : > { %v3140_v51 = vpop.f32.mrb[57].mxu0 }
 0x698   : > { %v22829_v42 = vpop.f32.mrb[58].mxu0 }
 0x699   : > { %v3143_v5 = vpop.f32.mrb[59].mxu0 }
 0x69a   : > { %v22818_v56 = vpop.f32.mrb[60].mxu1  ;;  %v3154_v44 = vpack.c.bf16 %v3143_v5, %v3140_v51 }
 0x69b   : > { %v3077_v45 = vpop.f32.mrb[61].mxu1  ;;  %v26897_v36 = vadd.f32 %v22818_v56, %v26780_v61  ;;  %v23612_v61 = vld [vmem:[%s32428_s1 + $0x5d8] ss:$20 sps:$4 sm:$0xff]  }
 0x69c   : > { %v22819_v17 = vpop.f32.mrb[62].mxu1  ;;  %19145 = vmatmul.mubr.msk.bf16.vlgmr.msra.gmra.mrb[4].mxu0 %vm723_vm8, %v3154_v44  ;;  %19147 = vmatmul.mubr.msk.bf16.vlgmr.msra.gmra.mrb[4].mxu1 %vm723_vm8, %v3154_v44  ;;  %v26902_v7 = vadd.f32 %v3077_v45, %v26783_v49  ;;  %v3155_v49 = vpack.c.bf16 %v22828_v26, %v22828_v26 }
 0x69d   : > { %v3080_v18 = vpop.f32.mrb[63].mxu1  ;;  %22831 = vmatpush3.bf16.msra.mxu0 %v23610_v57  ;;  %22845 = vmatpush3.bf16.msra.mxu1 %v26516_v58  ;;  %v23633_v57 = vld [vmem:[%s32428_s1 + $0x850] ss:$20 sps:$4 sm:$0xff]  }
 0x69e   : > { %22832 = vmatprep.subr.bf16.mxu0 %v23611_v37  ;;  %3365 = vmatprep.mubr.bf16.mxu0 %v25793_v53  ;;  %v26910_v3 = vadd.f32 %v3080_v18, %v26789_v47  ;;  %v23617_v47 = vld [vmem:[%s32428_s1 + $0x7dc] ss:$20 sps:$4 sm:$0xff]  }
 0x69f   : > { %3416 = vmatprep.mubr.bf16.mxu1 %v25793_v53  ;;  %22846 = vmatprep.subr.bf16.mxu1 %v26539_v52 }
 0x6a1   : > { %22833 = vmatpush3.bf16.msra.mxu0 %v23611_v37  ;;  %22847 = vmatpush3.bf16.msra.mxu1 %v26539_v52 }
 0x6a2   : > { %22834 = vmatprep.subr.bf16.mxu0 %v23612_v61  ;;  %23284 = vmatprep.subr.msk.bf16.mxu1 %vm422_vm6, %v26555_v39 }
 0x6a4   : > { %19146 = vmatmul.mubr.msk.bf16.gmra.mrb[60].mxu0 %vm723_vm8, %v3155_v49  ;;  %19148 = vmatmul.mubr.msk.bf16.gmra.mrb[64].mxu1 %vm723_vm8, %v3155_v49 }
 0x6a5   : > { %22835 = vmatpush3.bf16.msra.mxu0 %v23612_v61  ;;  %22840 = vmatprep.mubr.msk.bf16.mxu0 %vm723_vm8, %v3154_v44 }
 0x6a6   : > { %22836 = vmatprep.subr.bf16.mxu0 %v23613_v46  ;;  %22849 = vmatpush3.bf16.msra.mxu1 %v26567_v0 }
 0x6a7   : > { %22850 = vmatprep.mubr.msk.bf16.mxu1 %vm415_vm4, %v26302_v27  ;;  %3756 = vmatprep.subr.bf16.mxu1 %v23617_v47 }
 0x6a9   : > { %22837 = vmatpush3.bf16.msra.mxu0 %v23613_v46 }
 0x6aa   : > { %22838 = vmatprep.subr.bf16.mxu0 %v23614_v30 }
 0x6ac   : > { %22851 = vmatmul.mubr.msk.bf16.vlgmr.msra.gmra.mrb[68].mxu1 %vm415_vm4, %v26317_v32 }
 0x6ad   : > { %22839 = vmatpush3.bf16.msra.mxu0 %v23614_v30  ;;  %3757 = vmatpush1.bf16.msra.mxu1 %v23615_v55 }
 0x6ae   : > { %3705 = vmatprep.subr.bf16.mxu0 %v23620_v59  ;;  %3758 = vmatprep.subr.bf16.mxu1 %v23623_v43 }
 0x6af   : > { %3788 = vmatprep.mubr.bf16.mxu1 %v25793_v53 }
 0x6b0   : > { %22841 = vmatmul.mubr.msk.bf16.vlgmr.msra.gmra.mrb[64].mxu0 %vm723_vm8, %v3155_v49 }
 0x6b1   : > { %3706 = vmatpush1.bf16.msra.mxu0 %v23618_v63  ;;  %3759 = vmatpush1.bf16.msra.mxu1 %v23621_v6 }
 0x6b2   : > { %3707 = vmatprep.subr.bf16.mxu0 %v23626_v2  ;;  %3737 = vmatprep.mubr.bf16.mxu0 %v25793_v53 }
 0x6b3   : > { %3760 = vmatprep.subr.bf16.mxu1 %v23629_v11  ;;  %v23653_v11 = vld [vmem:[%s32428_s1 + $0xa30] ss:$20 sps:$4 sm:$0xff]  }
 0x6b5   : > { %3708 = vmatpush1.bf16.msra.mxu0 %v23624_v10  ;;  %3761 = vmatpush1.bf16.msra.mxu1 %v23627_v21  ;;  %v23655_v10 = vld [vmem:[%s32428_s1 + $0xa34] ss:$20 sps:$4 sm:$0xff]   ;;  %v23656_v21 = vld [vmem:[%s32428_s1 + $0xa50] ss:$20 sps:$4 sm:$0xff]  }
 0x6b6   : > { %3709 = vmatprep.subr.bf16.mxu0 %v23632_v22  ;;  %3762 = vmatprep.subr.bf16.mxu1 %v23635_v28  ;;  %v23661_v22 = vld [vmem:[%s32428_s1 + $0xa5c] ss:$20 sps:$4 sm:$0xff]   ;;  %v23662_v28 = vld [vmem:[%s32428_s1 + $0xa78] ss:$20 sps:$4 sm:$0xff]  }
 0x6b9   : > { %3710 = vmatpush1.bf16.msra.mxu0 %v23630_v16  ;;  %3763 = vmatpush1.bf16.msra.mxu1 %v23633_v57  ;;  %v23659_v16 = vld [vmem:[%s32428_s1 + $0xa58] ss:$20 sps:$4 sm:$0xff]   ;;  %v23664_v57 = vld [vmem:[%s32428_s1 + $0xa7c] ss:$20 sps:$4 sm:$0xff]  }
 0x6ba   : > { %3711 = vmatprep.subr.bf16.mxu0 %v23638_v31  ;;  %3764 = vmatprep.subr.bf16.mxu1 %v23641_v35  ;;  %v23665_v31 = vld [vmem:[%s32428_s1 + $0xa80] ss:$20 sps:$4 sm:$0xff]  }
 0x6bb   : > { %v23668_v35 = vld [vmem:[%s32428_s1 + $0xaa0] ss:$20 sps:$4 sm:$0xff]  }
 0x6bd   : > { %3712 = vmatpush1.bf16.msra.mxu0 %v23636_v62  ;;  %3765 = vmatpush1.bf16.msra.mxu1 %v23639_v60  ;;  %v23667_v62 = vld [vmem:[%s32428_s1 + $0xa84] ss:$20 sps:$4 sm:$0xff]  }
 0x6be   : > { %3713 = vmatprep.subr.bf16.mxu0 %v23644_v38  ;;  %22854 = vmatprep.subr.bf16.mxu1 %v23645_v40  ;;  %v23670_v60 = vld [vmem:[%s32428_s1 + $0xaa4] ss:$20 sps:$4 sm:$0xff]   ;;  %v23671_v38 = vld [vmem:[%s32428_s1 + $0xaa8] ss:$20 sps:$4 sm:$0xff]  }
 0x6c1   : > { %3714 = vmatpush1.bf16.msra.mxu0 %v23642_v4  ;;  %v23673_v4 = vld [vmem:[%s32428_s1 + $0xaac] ss:$20 sps:$4 sm:$0xff]  }
 0x6c2   : > { %22868 = vmatprep.subr.bf16.mxu0 %v26516_v58 }
 0x777   : > { %v3367_v26 = vpop.f32.mrb[60].mxu0  ;;  %v3418_v51 = vpop.f32.mrb[64].mxu1 }
 0x778   : > { %v26999_v42 = vadd.f32 %v3367_v26, %v26882_v29  ;;  %v3369_v5 = vpop.f32.mrb[61].mxu0  ;;  %v3420_v56 = vpop.f32.mrb[65].mxu1  ;;  %v27002_v44 = vadd.f32 %v3418_v51, %v26885_v15  ;;  %v23646_v15 = vld [vmem:[%s32428_s1 + $0x808] ss:$20 sps:$4 sm:$0xff]  }
 0x779   : > { %v27005_v37 = vadd.f32 %v3369_v5, %v26888_v9  ;;  %v3371_v45 = vpop.f32.mrb[62].mxu0  ;;  %v3422_v17 = vpop.f32.mrb[66].mxu1  ;;  %v27008_v18 = vadd.f32 %v3420_v56, %v26891_v41  ;;  %v23674_v26 = vld [vmem:[%s32428_s1 + $0xac8] ss:$20 sps:$4 sm:$0xff]   ;;  %v23677_v5 = vld [vmem:[%s32428_s1 + $0xad0] ss:$20 sps:$4 sm:$0xff]  }
 0x77a   : > { %v3372_v61 = vpop.f32.mrb[63].mxu0  ;;  %v3423_v49 = vpop.f32.mrb[67].mxu1  ;;  %v23679_v51 = vld [vmem:[%s32428_s1 + $0xad4] ss:$20 sps:$4 sm:$0xff]   ;;  %v23680_v56 = vld [vmem:[%s32428_s1 + $0xa38] ss:$20 sps:$4 sm:$0xff]  }
 0x77b   : > { %v19277_v45 = vld [vmem:[%s25909_s25 + $0x50] sm:$0xff]  ;;  %v19278_v17 = vld [vmem:[%s25909_s25 + $0x58] sm:$0xff] }
 0x77c   : > { %v27116_v61 = vpack.c.bf16 %v19278_v17, %v19277_v45  ;;  %v23702_v45 = vld [vmem:[%s32428_s1 + $0x1e4] ss:$20 sps:$4 sm:$0xff]   ;;  %v23700_v17 = vld [vmem:[%s32428_s1 + $0x1e0] ss:$20 sps:$4 sm:$0xff]  }
 0x77f   : > { %v22852_v46 = vpop.f32.mrb[68].mxu1 }
 0x780   : > { %v3522_v47 = vpop.f32.mrb[69].mxu1 }
 0x781   : > { %v22853_v30 = vpop.f32.mrb[70].mxu1 }
 0x782   : > { %v3525_v29 = vpop.f32.mrb[71].mxu1 }
 0x783   : > { %v22842_v55 = vpop.f32.mrb[64].mxu0  ;;  %v3536_v59 = vpack.c.bf16 %v3525_v29, %v3522_v47 }
 0x784   : > { %v27014_v9 = vadd.f32 %v22842_v55, %v26897_v36  ;;  %v3459_v43 = vpop.f32.mrb[65].mxu0  ;;  %v23647_v36 = vld [vmem:[%s32428_s1 + $0x830] ss:$20 sps:$4 sm:$0xff]  }
 0x785   : > { %v27017_v63 = vadd.f32 %v3459_v43, %v26902_v7  ;;  %v22843_v41 = vpop.f32.mrb[66].mxu0  ;;  %19208 = vmatmul.mubr.msk.bf16.vlgmr.msra.gmra.mrb[4].mxu0 %vm723_vm8, %v3536_v59  ;;  %19210 = vmatmul.mubr.msk.bf16.vlgmr.msra.gmra.mrb[4].mxu1 %vm723_vm8, %v3536_v59  ;;  %v3537_v7 = vpack.c.bf16 %v22852_v46, %v22852_v46 }
 0x786   : > { %v3462_v6 = vpop.f32.mrb[67].mxu0  ;;  %22855 = vmatpush3.bf16.msra.mxu1 %v23645_v40  ;;  %22869 = vmatpush3.bf16.msra.mxu0 %v26516_v58  ;;  %v23648_v58 = vld [vmem:[%s32428_s1 + $0x858] ss:$20 sps:$4 sm:$0xff]  }
 0x787   : > { %v27023_v2 = vadd.f32 %v3462_v6, %v26910_v3  ;;  %22856 = vmatprep.subr.bf16.mxu1 %v23646_v15  ;;  %3747 = vmatprep.mubr.bf16.mxu0 %v25793_v53  ;;  %v23652_v3 = vld [vmem:[%s32428_s1 + $0xa2c] ss:$20 sps:$4 sm:$0xff]  }
 0x788   : > { %3798 = vmatprep.mubr.bf16.mxu1 %v25793_v53  ;;  %22870 = vmatprep.subr.bf16.mxu0 %v26539_v52  ;;  %v23676_v40 = vld [vmem:[%s32428_s1 + $0xacc] ss:$20 sps:$4 sm:$0xff]  }
 0x78a   : > { %22857 = vmatpush3.bf16.msra.mxu1 %v23646_v15  ;;  %22871 = vmatpush3.bf16.msra.mxu0 %v26539_v52  ;;  %v23649_v52 = vld [vmem:[%s32428_s1 + $0x880] ss:$20 sps:$4 sm:$0xff]  }
 0x78b   : > { %22858 = vmatprep.subr.bf16.mxu1 %v23647_v36  ;;  %23285 = vmatprep.subr.msk.bf16.mxu0 %vm422_vm6, %v26555_v39  ;;  %v23650_v39 = vld [vmem:[%s32428_s1 + $0xa28] ss:$20 sps:$4 sm:$0xff]  }
 0x78d   : > { %19209 = vmatmul.mubr.msk.bf16.gmra.mrb[68].mxu0 %vm723_vm8, %v3537_v7  ;;  %19211 = vmatmul.mubr.msk.bf16.gmra.mrb[72].mxu1 %vm723_vm8, %v3537_v7 }
 0x78e   : > { %22859 = vmatpush3.bf16.msra.mxu1 %v23647_v36  ;;  %22864 = vmatprep.mubr.msk.bf16.mxu1 %vm723_vm8, %v3536_v59 }
 0x78f   : > { %22860 = vmatprep.subr.bf16.mxu1 %v23648_v58  ;;  %22873 = vmatpush3.bf16.msra.mxu0 %v26567_v0  ;;  %v23658_v0 = vld [vmem:[%s32428_s1 + $0xa54] ss:$20 sps:$4 sm:$0xff]  }
 0x790   : > { %22874 = vmatprep.mubr.msk.bf16.mxu0 %vm415_vm4, %v26432_v8  ;;  %4087 = vmatprep.subr.bf16.mxu0 %v23652_v3  ;;  %v19279_v3 = vld [vmem:[%s25909_s25 + $0x60] sm:$0xff] }
 0x792   : > { %22861 = vmatpush3.bf16.msra.mxu1 %v23648_v58 }
 0x793   : > { %22862 = vmatprep.subr.bf16.mxu1 %v23649_v52 }
 0x795   : > { %22875 = vmatmul.mubr.msk.bf16.vlgmr.msra.gmra.mrb[72].mxu0 %vm415_vm4, %v26447_v24 }
 0x796   : > { %22863 = vmatpush3.bf16.msra.mxu1 %v23649_v52  ;;  %4088 = vmatpush1.bf16.msra.mxu0 %v23650_v39  ;;  %v19280_v52 = vld [vmem:[%s25909_s25 + $0x68] sm:$0xff] }
 0x797   : > { %4138 = vmatprep.subr.bf16.mxu1 %v23655_v10  ;;  %4089 = vmatprep.subr.bf16.mxu0 %v23658_v0 }
 0x798   : > { %4119 = vmatprep.mubr.bf16.mxu0 %v25793_v53 }
 0x799   : > { %22865 = vmatmul.mubr.msk.bf16.vlgmr.msra.gmra.mrb[76].mxu1 %vm723_vm8, %v3537_v7 }
 0x79a   : > { %4139 = vmatpush1.bf16.msra.mxu1 %v23653_v11  ;;  %4090 = vmatpush1.bf16.msra.mxu0 %v23656_v21  ;;  %v27139_v11 = vpack.c.bf16 %v19280_v52, %v19279_v3  ;;  %v19281_v21 = vld [vmem:[%s25909_s25 + $0x70] sm:$0xff] }
 0x79b   : > { %4140 = vmatprep.subr.bf16.mxu1 %v23661_v22  ;;  %4170 = vmatprep.mubr.bf16.mxu1 %v25793_v53 }
 0x79c   : > { %4091 = vmatprep.subr.bf16.mxu0 %v23664_v57 }
 0x79e   : > { %4141 = vmatpush1.bf16.msra.mxu1 %v23659_v16  ;;  %4092 = vmatpush1.bf16.msra.mxu0 %v23662_v28 }
 0x79f   : > { %4142 = vmatprep.subr.bf16.mxu1 %v23667_v62  ;;  %4093 = vmatprep.subr.bf16.mxu0 %v23670_v60  ;;  %v23684_v60 = vld [vmem:[%s32428_s1 + $0xad8] ss:$20 sps:$4 sm:$0xff]  }
 0x7a2   : > { %4143 = vmatpush1.bf16.msra.mxu1 %v23665_v31  ;;  %4094 = vmatpush1.bf16.msra.mxu0 %v23668_v35  ;;  %v23687_v35 = vld [vmem:[%s32428_s1 + $0x19c] ss:$20 sps:$4 sm:$0xff]  }
 0x7a3   : > { %4144 = vmatprep.subr.bf16.mxu1 %v23673_v4  ;;  %4095 = vmatprep.subr.bf16.mxu0 %v23676_v40  ;;  %v23690_v4 = vld [vmem:[%s32428_s1 + $0x194] ss:$20 sps:$4 sm:$0xff]   ;;  %v23693_v40 = vld [vmem:[%s32428_s1 + $0x1c4] ss:$20 sps:$4 sm:$0xff]  }
 0x7a6   : > { %4145 = vmatpush1.bf16.msra.mxu1 %v23671_v38  ;;  %4096 = vmatpush1.bf16.msra.mxu0 %v23674_v26  ;;  %v23685_v38 = vld [vmem:[%s32428_s1 + $0x198] ss:$20 sps:$4 sm:$0xff]   ;;  %v23691_v26 = vld [vmem:[%s32428_s1 + $0x1c0] ss:$20 sps:$4 sm:$0xff]  }
 0x7a7   : > { %4146 = vmatprep.subr.bf16.mxu1 %v23679_v51  ;;  %22878 = vmatprep.subr.bf16.mxu0 %v23680_v56  ;;  %v23696_v51 = vld [vmem:[%s32428_s1 + $0x1bc] ss:$20 sps:$4 sm:$0xff]  }
 0x7aa   : > { %4147 = vmatpush1.bf16.msra.mxu1 %v23677_v5  ;;  %v23699_v5 = vld [vmem:[%s32428_s1 + $0x1ec] ss:$20 sps:$4 sm:$0xff]  }
 0x7ab   : > { %22892 = vmatprep.subr.bf16.mxu1 %v27116_v61 }
 0x860   : > { %v3749_v49 = vpop.f32.mrb[68].mxu0  ;;  %v3800_v46 = vpop.f32.mrb[72].mxu1 }
 0x861   : > { %v27120_v47 = vadd.f32 %v3749_v49, %v26999_v42  ;;  %v27123_v30 = vadd.f32 %v3800_v46, %v27002_v44  ;;  %v3751_v29 = vpop.f32.mrb[69].mxu0  ;;  %v3802_v55 = vpop.f32.mrb[73].mxu1  ;;  %v23703_v49 = vld [vmem:[%s32428_s1 + $0x210] ss:$20 sps:$4 sm:$0xff]   ;;  %v23705_v46 = vld [vmem:[%s32428_s1 + $0x214] ss:$20 sps:$4 sm:$0xff]  }
 0x862   : > { %v27126_v59 = vadd.f32 %v3751_v29, %v27005_v37  ;;  %v27129_v15 = vadd.f32 %v3802_v55, %v27008_v18  ;;  %v3753_v43 = vpop.f32.mrb[70].mxu0  ;;  %v3804_v41 = vpop.f32.mrb[74].mxu1  ;;  %v23681_v37 = vld [vmem:[%s32428_s1 + $0xa60] ss:$20 sps:$4 sm:$0xff]   ;;  %v23706_v29 = vld [vmem:[%s32428_s1 + $0x208] ss:$20 sps:$4 sm:$0xff]  }
 0x863   : > { %v3754_v6 = vpop.f32.mrb[71].mxu0  ;;  %v3805_v36 = vpop.f32.mrb[75].mxu1  ;;  %v23708_v55 = vld [vmem:[%s32428_s1 + $0x20c] ss:$20 sps:$4 sm:$0xff]   ;;  %v23711_v43 = vld [vmem:[%s32428_s1 + $0x23c] ss:$20 sps:$4 sm:$0xff]  }
 0x864   : > { %v23709_v41 = vld [vmem:[%s32428_s1 + $0x238] ss:$20 sps:$4 sm:$0xff]   ;;  %v23714_v6 = vld [vmem:[%s32428_s1 + $0x234] ss:$20 sps:$4 sm:$0xff]   ;;  %v23712_v36 = vld [vmem:[%s32428_s1 + $0x230] ss:$20 sps:$4 sm:$0xff]  }
 0x868   : > { %v22876_v7 = vpop.f32.mrb[72].mxu0 }
 0x869   : > { %v3904_v58 = vpop.f32.mrb[73].mxu0  ;;  %v3919_v62 = vpack.c.bf16 %v22876_v7, %v22876_v7  ;;  %v23715_v7 = vld [vmem:[%s32428_s1 + $0x1a0] ss:$20 sps:$4 sm:$0xff]  }
 0x86a   : > { %v22877_v42 = vpop.f32.mrb[74].mxu0 }
 0x86b   : > { %v3907_v44 = vpop.f32.mrb[75].mxu0 }
 0x86c   : > { %v22866_v39 = vpop.f32.mrb[76].mxu1  ;;  %v3918_v10 = vpack.c.bf16 %v3907_v44, %v3904_v58 }
 0x86d   : > { %v27137_v18 = vadd.f32 %v22866_v39, %v27014_v9  ;;  %v3841_v0 = vpop.f32.mrb[77].mxu1  ;;  %v23682_v9 = vld [vmem:[%s32428_s1 + $0xa88] ss:$20 sps:$4 sm:$0xff]  }
 0x86e   : > { %v27143_v22 = vadd.f32 %v3841_v0, %v27017_v63  ;;  %v22867_v16 = vpop.f32.mrb[78].mxu1  ;;  %19271 = vmatmul.mubr.msk.bf16.vlgmr.msra.gmra.mrb[4].mxu0 %vm723_vm8, %v3918_v10  ;;  %19273 = vmatmul.mubr.msk.bf16.vlgmr.msra.gmra.mrb[4].mxu1 %vm723_vm8, %v3918_v10  ;;  %v27155_v63 = vpack.c.bf16 %v19281_v21, %v19281_v21 }
 0x86f   : > { %v3844_v57 = vpop.f32.mrb[79].mxu1  ;;  %22879 = vmatpush3.bf16.msra.mxu0 %v23680_v56  ;;  %22893 = vmatpush3.bf16.msra.mxu1 %v27116_v61  ;;  %v23697_v56 = vld [vmem:[%s32428_s1 + $0x1e8] ss:$20 sps:$4 sm:$0xff]  }
 0x870   : > { %v27149_v28 = vadd.f32 %v3844_v57, %v27023_v2  ;;  %22880 = vmatprep.subr.bf16.mxu0 %v23681_v37  ;;  %4129 = vmatprep.mubr.bf16.mxu0 %v25793_v53  ;;  %v23683_v2 = vld [vmem:[%s32428_s1 + $0xab0] ss:$20 sps:$4 sm:$0xff]   ;;  %v27167_v31 = vsel %vm422_vm6, %v27155_v63, 0 }
 0x871   : > { %4180 = vmatprep.mubr.bf16.mxu1 %v25793_v53  ;;  %22894 = vmatprep.subr.bf16.mxu1 %v27139_v11 }
 0x873   : > { %22881 = vmatpush3.bf16.msra.mxu0 %v23681_v37  ;;  %22895 = vmatpush3.bf16.msra.mxu1 %v27139_v11 }
 0x874   : > { %22882 = vmatprep.subr.bf16.mxu0 %v23682_v9  ;;  %23286 = vmatprep.subr.msk.bf16.mxu1 %vm422_vm6, %v27155_v63 }
 0x876   : > { %19272 = vmatmul.mubr.msk.bf16.gmra.mrb[76].mxu0 %vm723_vm8, %v3919_v62  ;;  %19274 = vmatmul.mubr.msk.bf16.gmra.mrb[80].mxu1 %vm723_vm8, %v3919_v62 }
 0x877   : > { %22883 = vmatpush3.bf16.msra.mxu0 %v23682_v9  ;;  %22888 = vmatprep.mubr.msk.bf16.mxu0 %vm723_vm8, %v3918_v10 }
 0x878   : > { %22884 = vmatprep.subr.bf16.mxu0 %v23683_v2  ;;  %22897 = vmatpush3.bf16.msra.mxu1 %v27167_v31 }
 0x879   : > { %22898 = vmatprep.mubr.msk.bf16.mxu1 %vm415_vm4, %v25946_v23  ;;  %4532 = vmatprep.subr.bf16.mxu1 %v23687_v35  ;;  %v23688_v23 = vld [vmem:[%s32428_s1 + $0x190] ss:$20 sps:$4 sm:$0xff]  }
 0x87b   : > { %22885 = vmatpush3.bf16.msra.mxu0 %v23683_v2 }
 0x87c   : > { %22886 = vmatprep.subr.bf16.mxu0 %v23684_v60 }
 0x87e   : > { %22899 = vmatmul.mubr.msk.bf16.vlgmr.msra.gmra.mrb[84].mxu1 %vm415_vm4, %v25988_v34  ;;  %v23694_v34 = vld [vmem:[%s32428_s1 + $0x1b8] ss:$20 sps:$4 sm:$0xff]  }
 0x87f   : > { %22887 = vmatpush3.bf16.msra.mxu0 %v23684_v60  ;;  %4533 = vmatpush1.bf16.msra.mxu1 %v23685_v38 }
 0x880   : > { %4481 = vmatprep.subr.bf16.mxu0 %v23690_v4  ;;  %4534 = vmatprep.subr.bf16.mxu1 %v23693_v40 }
 0x881   : > { %4564 = vmatprep.mubr.bf16.mxu1 %v25793_v53 }
 0x882   : > { %22889 = vmatmul.mubr.msk.bf16.vlgmr.msra.gmra.mrb[80].mxu0 %vm723_vm8, %v3919_v62 }
 0x883   : > { %4482 = vmatpush1.bf16.msra.mxu0 %v23688_v23  ;;  %4535 = vmatpush1.bf16.msra.mxu1 %v23691_v26  ;;  %v23722_v26 = vld [vmem:[%s32428_s1 + $0x3ec] ss:$20 sps:$4 sm:$0xff]  }
 0x884   : > { %4483 = vmatprep.subr.bf16.mxu0 %v23696_v51  ;;  %4513 = vmatprep.mubr.bf16.mxu0 %v25793_v53  ;;  %v23719_v51 = vld [vmem:[%s32428_s1 + $0x240] ss:$20 sps:$4 sm:$0xff]  }
 0x885   : > { %4536 = vmatprep.subr.bf16.mxu1 %v23699_v5  ;;  %v23725_v5 = vld [vmem:[%s32428_s1 + $0x3f4] ss:$20 sps:$4 sm:$0xff]  }
 0x887   : > { %4484 = vmatpush1.bf16.msra.mxu0 %v23694_v34  ;;  %4537 = vmatpush1.bf16.msra.mxu1 %v23697_v56  ;;  %v23720_v34 = vld [vmem:[%s32428_s1 + $0x3e8] ss:$20 sps:$4 sm:$0xff]  }
 0x888   : > { %4485 = vmatprep.subr.bf16.mxu0 %v23702_v45  ;;  %4538 = vmatprep.subr.bf16.mxu1 %v23705_v46  ;;  %v23728_v56 = vld [vmem:[%s32428_s1 + $0x414] ss:$20 sps:$4 sm:$0xff]   ;;  %v23726_v45 = vld [vmem:[%s32428_s1 + $0x410] ss:$20 sps:$4 sm:$0xff]   ;;  %v23732_v46 = vld [vmem:[%s32428_s1 + $0x438] ss:$20 sps:$4 sm:$0xff]  }
 0x88b   : > { %4486 = vmatpush1.bf16.msra.mxu0 %v23700_v17  ;;  %4539 = vmatpush1.bf16.msra.mxu1 %v23703_v49  ;;  %v23731_v17 = vld [vmem:[%s32428_s1 + $0x41c] ss:$20 sps:$4 sm:$0xff]  }
 0x88c   : > { %4487 = vmatprep.subr.bf16.mxu0 %v23708_v55  ;;  %4540 = vmatprep.subr.bf16.mxu1 %v23711_v43  ;;  %v23734_v49 = vld [vmem:[%s32428_s1 + $0x43c] ss:$20 sps:$4 sm:$0xff]   ;;  %v23735_v55 = vld [vmem:[%s32428_s1 + $0x440] ss:$20 sps:$4 sm:$0xff]  }
 0x88d   : > { %v23738_v43 = vld [vmem:[%s32428_s1 + $0x460] ss:$20 sps:$4 sm:$0xff]  }
 0x88f   : > { %4488 = vmatpush1.bf16.msra.mxu0 %v23706_v29  ;;  %4541 = vmatpush1.bf16.msra.mxu1 %v23709_v41  ;;  %v23737_v29 = vld [vmem:[%s32428_s1 + $0x444] ss:$20 sps:$4 sm:$0xff]  }
 0x890   : > { %4489 = vmatprep.subr.bf16.mxu0 %v23714_v6  ;;  %22902 = vmatprep.subr.bf16.mxu1 %v23715_v7  ;;  %v23740_v41 = vld [vmem:[%s32428_s1 + $0x464] ss:$20 sps:$4 sm:$0xff]   ;;  %v23741_v6 = vld [vmem:[%s32428_s1 + $0x468] ss:$20 sps:$4 sm:$0xff]  }
 0x893   : > { %4490 = vmatpush1.bf16.msra.mxu0 %v23712_v36  ;;  %v23743_v36 = vld [vmem:[%s32428_s1 + $0x46c] ss:$20 sps:$4 sm:$0xff]  }
 0x894   : > { %22916 = vmatprep.subr.bf16.mxu0 %v27116_v61 }
 0x949   : > { %v4131_v58 = vpop.f32.mrb[76].mxu0  ;;  %v4182_v42 = vpop.f32.mrb[80].mxu1 }
 0x94a   : > { %v27248_v3 = vadd.f32 %v4131_v58, %v27120_v47  ;;  %v27251_v52 = vadd.f32 %v4182_v42, %v27123_v30  ;;  %v4133_v44 = vpop.f32.mrb[77].mxu0  ;;  %v4184_v39 = vpop.f32.mrb[81].mxu1  ;;  %v23716_v30 = vld [vmem:[%s32428_s1 + $0x1c8] ss:$20 sps:$4 sm:$0xff]  }
 0x94b   : > { %v27254_v10 = vadd.f32 %v4133_v44, %v27126_v59  ;;  %v27257_v37 = vadd.f32 %v4184_v39, %v27129_v15  ;;  %v4135_v0 = vpop.f32.mrb[78].mxu0  ;;  %v4186_v21 = vpop.f32.mrb[82].mxu1  ;;  %v23744_v58 = vld [vmem:[%s32428_s1 + $0x488] ss:$20 sps:$4 sm:$0xff]   ;;  %v23747_v44 = vld [vmem:[%s32428_s1 + $0x490] ss:$20 sps:$4 sm:$0xff]  }
 0x94c   : > { %v4136_v16 = vpop.f32.mrb[79].mxu0  ;;  %v4187_v57 = vpop.f32.mrb[83].mxu1  ;;  %v23749_v42 = vld [vmem:[%s32428_s1 + $0x494] ss:$20 sps:$4 sm:$0xff]   ;;  %v23750_v39 = vld [vmem:[%s32428_s1 + $0x3f8] ss:$20 sps:$4 sm:$0xff]  }
 0x951   : > { %v22900_v9 = vpop.f32.mrb[84].mxu1 }
 0x952   : > { %v4298_v62 = vpop.f32.mrb[85].mxu1 }
 0x953   : > { %v22901_v2 = vpop.f32.mrb[86].mxu1 }
 0x954   : > { %v4301_v47 = vpop.f32.mrb[87].mxu1 }
 0x955   : > { %v22890_v35 = vpop.f32.mrb[80].mxu0  ;;  %v4312_v60 = vpack.c.bf16 %v4301_v47, %v4298_v62 }
 0x956   : > { %v27263_v59 = vadd.f32 %v22890_v35, %v27137_v18  ;;  %v4223_v38 = vpop.f32.mrb[81].mxu0  ;;  %v23717_v18 = vld [vmem:[%s32428_s1 + $0x1f0] ss:$20 sps:$4 sm:$0xff]  }
 0x957   : > { %v27266_v15 = vadd.f32 %v4223_v38, %v27143_v22  ;;  %v22891_v4 = vpop.f32.mrb[82].mxu0  ;;  %19339 = vmatmul.mubr.msk.bf16.vlgmr.msra.gmra.mrb[4].mxu0 %vm723_vm8, %v4312_v60  ;;  %19341 = vmatmul.mubr.msk.bf16.vlgmr.msra.gmra.mrb[4].mxu1 %vm723_vm8, %v4312_v60  ;;  %v4313_v22 = vpack.c.bf16 %v22900_v9, %v22900_v9 }
 0x958   : > { %v4226_v40 = vpop.f32.mrb[83].mxu0  ;;  %22903 = vmatpush3.bf16.msra.mxu1 %v23715_v7  ;;  %22917 = vmatpush3.bf16.msra.mxu0 %v27116_v61  ;;  %v23746_v7 = vld [vmem:[%s32428_s1 + $0x48c] ss:$20 sps:$4 sm:$0xff]  }
 0x959   : > { %v27272_v23 = vadd.f32 %v4226_v40, %v27149_v28  ;;  %22904 = vmatprep.subr.bf16.mxu1 %v23716_v30  ;;  %4523 = vmatprep.mubr.bf16.mxu0 %v25793_v53  ;;  %v23718_v28 = vld [vmem:[%s32428_s1 + $0x218] ss:$20 sps:$4 sm:$0xff]  }
 0x95a   : > { %4574 = vmatprep.mubr.bf16.mxu1 %v25793_v53  ;;  %22918 = vmatprep.subr.bf16.mxu0 %v27139_v11 }
 0x95c   : > { %22905 = vmatpush3.bf16.msra.mxu1 %v23716_v30  ;;  %22919 = vmatpush3.bf16.msra.mxu0 %v27139_v11 }
 0x95d   : > { %22906 = vmatprep.subr.bf16.mxu1 %v23717_v18  ;;  %23287 = vmatprep.subr.msk.bf16.mxu0 %vm422_vm6, %v27155_v63 }
 0x95f   : > { %19340 = vmatmul.mubr.msk.bf16.gmra.mrb[84].mxu0 %vm723_vm8, %v4313_v22  ;;  %19342 = vmatmul.mubr.msk.bf16.gmra.mrb[88].mxu1 %vm723_vm8, %v4313_v22 }
 0x960   : > { %22907 = vmatpush3.bf16.msra.mxu1 %v23717_v18  ;;  %22912 = vmatprep.mubr.msk.bf16.mxu1 %vm723_vm8, %v4312_v60 }
 0x961   : > { %22908 = vmatprep.subr.bf16.mxu1 %v23718_v28  ;;  %22921 = vmatpush3.bf16.msra.mxu0 %v27167_v31 }
 0x962   : > { %22922 = vmatprep.mubr.msk.bf16.mxu0 %vm415_vm4, %v25952_v25  ;;  %4863 = vmatprep.subr.bf16.mxu0 %v23722_v26  ;;  %v23723_v25 = vld [vmem:[%s32428_s1 + $0x3f0] ss:$20 sps:$4 sm:$0xff]  }
 0x964   : > { %22909 = vmatpush3.bf16.msra.mxu1 %v23718_v28 }
 0x965   : > { %22910 = vmatprep.subr.bf16.mxu1 %v23719_v51 }
 0x967   : > { %22923 = vmatmul.mubr.msk.bf16.vlgmr.msra.gmra.mrb[88].mxu0 %vm415_vm4, %v25986_v33  ;;  %v23729_v33 = vld [vmem:[%s32428_s1 + $0x418] ss:$20 sps:$4 sm:$0xff]  }
 0x968   : > { %22911 = vmatpush3.bf16.msra.mxu1 %v23719_v51  ;;  %4864 = vmatpush1.bf16.msra.mxu0 %v23720_v34 }
 0x969   : > { %4914 = vmatprep.subr.bf16.mxu1 %v23725_v5  ;;  %4865 = vmatprep.subr.bf16.mxu0 %v23728_v56  ;;  %v23757_v56 = vld [vmem:[%s32428_s1 + $0x64c] ss:$20 sps:$4 sm:$0xff]  }
 0x96a   : > { %4895 = vmatprep.mubr.bf16.mxu0 %v25793_v53 }
 0x96b   : > { %22913 = vmatmul.mubr.msk.bf16.vlgmr.msra.gmra.mrb[92].mxu1 %vm723_vm8, %v4313_v22 }
 0x96c   : > { %4915 = vmatpush1.bf16.msra.mxu1 %v23723_v25  ;;  %4866 = vmatpush1.bf16.msra.mxu0 %v23726_v45  ;;  %v23754_v25 = vld [vmem:[%s32428_s1 + $0x498] ss:$20 sps:$4 sm:$0xff]   ;;  %v23755_v45 = vld [vmem:[%s32428_s1 + $0x648] ss:$20 sps:$4 sm:$0xff]  }
 0x96d   : > { %4916 = vmatprep.subr.bf16.mxu1 %v23731_v17  ;;  %4946 = vmatprep.mubr.bf16.mxu1 %v25793_v53  ;;  %v23760_v17 = vld [vmem:[%s32428_s1 + $0x644] ss:$20 sps:$4 sm:$0xff]  }
 0x96e   : > { %4867 = vmatprep.subr.bf16.mxu0 %v23734_v49  ;;  %v23761_v49 = vld [vmem:[%s32428_s1 + $0x670] ss:$20 sps:$4 sm:$0xff]  }
 0x970   : > { %4917 = vmatpush1.bf16.msra.mxu1 %v23729_v33  ;;  %4868 = vmatpush1.bf16.msra.mxu0 %v23732_v46  ;;  %v23763_v33 = vld [vmem:[%s32428_s1 + $0x674] ss:$20 sps:$4 sm:$0xff]   ;;  %v23766_v46 = vld [vmem:[%s32428_s1 + $0x66c] ss:$20 sps:$4 sm:$0xff]  }
 0x971   : > { %4918 = vmatprep.subr.bf16.mxu1 %v23737_v29  ;;  %4869 = vmatprep.subr.bf16.mxu0 %v23740_v41  ;;  %v23769_v29 = vld [vmem:[%s32428_s1 + $0x69c] ss:$20 sps:$4 sm:$0xff]  }
 0x972   : > { %v23770_v41 = vld [vmem:[%s32428_s1 + $0x690] ss:$20 sps:$4 sm:$0xff]  }
 0x974   : > { %4919 = vmatpush1.bf16.msra.mxu1 %v23735_v55  ;;  %4870 = vmatpush1.bf16.msra.mxu0 %v23738_v43  ;;  %v23767_v55 = vld [vmem:[%s32428_s1 + $0x698] ss:$20 sps:$4 sm:$0xff]   ;;  %v23772_v43 = vld [vmem:[%s32428_s1 + $0x694] ss:$20 sps:$4 sm:$0xff]  }
 0x975   : > { %4920 = vmatprep.subr.bf16.mxu1 %v23743_v36  ;;  %4871 = vmatprep.subr.bf16.mxu0 %v23746_v7  ;;  %v23775_v36 = vld [vmem:[%s32428_s1 + $0x6c4] ss:$20 sps:$4 sm:$0xff]  }
 0x976   : > { %v23776_v7 = vld [vmem:[%s32428_s1 + $0x6b8] ss:$20 sps:$4 sm:$0xff]  }
 0x978   : > { %4921 = vmatpush1.bf16.msra.mxu1 %v23741_v6  ;;  %4872 = vmatpush1.bf16.msra.mxu0 %v23744_v58  ;;  %v23773_v6 = vld [vmem:[%s32428_s1 + $0x6c0] ss:$20 sps:$4 sm:$0xff]   ;;  %v23778_v58 = vld [vmem:[%s32428_s1 + $0x6bc] ss:$20 sps:$4 sm:$0xff]  }
 0x979   : > { %4922 = vmatprep.subr.bf16.mxu1 %v23749_v42  ;;  %22926 = vmatprep.subr.bf16.mxu0 %v23750_v39  ;;  %v23781_v42 = vld [vmem:[%s32428_s1 + $0x6ec] ss:$20 sps:$4 sm:$0xff]  }
 0x97c   : > { %4923 = vmatpush1.bf16.msra.mxu1 %v23747_v44  ;;  %v23779_v44 = vld [vmem:[%s32428_s1 + $0x6e8] ss:$20 sps:$4 sm:$0xff]  }
 0x97d   : > { %22940 = vmatprep.subr.bf16.mxu1 %v27116_v61 }
 0xa32   : > { %v4525_v0 = vpop.f32.mrb[84].mxu0  ;;  %v4576_v21 = vpop.f32.mrb[88].mxu1 }
 0xa33   : > { %v27365_v16 = vadd.f32 %v4525_v0, %v27248_v3  ;;  %v27368_v57 = vadd.f32 %v4576_v21, %v27251_v52  ;;  %v4527_v9 = vpop.f32.mrb[85].mxu0  ;;  %v4578_v62 = vpop.f32.mrb[89].mxu1  ;;  %v23751_v52 = vld [vmem:[%s32428_s1 + $0x420] ss:$20 sps:$4 sm:$0xff]   ;;  %v23785_v21 = vld [vmem:[%s32428_s1 + $0x650] ss:$20 sps:$4 sm:$0xff]  }
 0xa34   : > { %v27371_v2 = vadd.f32 %v4527_v9, %v27254_v10  ;;  %v27374_v47 = vadd.f32 %v4578_v62, %v27257_v37  ;;  %v4529_v35 = vpop.f32.mrb[86].mxu0  ;;  %v4580_v60 = vpop.f32.mrb[90].mxu1  ;;  %v23782_v0 = vld [vmem:[%s32428_s1 + $0x6e0] ss:$20 sps:$4 sm:$0xff]  }
 0xa35   : > { %v4530_v30 = vpop.f32.mrb[87].mxu0  ;;  %v4581_v38 = vpop.f32.mrb[91].mxu1 }
 0xa3a   : > { %v22924_v4 = vpop.f32.mrb[88].mxu0 }
 0xa3b   : > { %v4680_v40 = vpop.f32.mrb[89].mxu0 }
 0xa3c   : > { %v22925_v18 = vpop.f32.mrb[90].mxu0 }
 0xa3d   : > { %v4683_v3 = vpop.f32.mrb[91].mxu0 }
 0xa3e   : > { %v22914_v22 = vpop.f32.mrb[92].mxu1  ;;  %v4694_v28 = vpack.c.bf16 %v4683_v3, %v4680_v40 }
 0xa3f   : > { %v27380_v10 = vadd.f32 %v22914_v22, %v27263_v59  ;;  %v4617_v26 = vpop.f32.mrb[93].mxu1  ;;  %v23752_v59 = vld [vmem:[%s32428_s1 + $0x448] ss:$20 sps:$4 sm:$0xff]  }
 0xa40   : > { %v27383_v37 = vadd.f32 %v4617_v26, %v27266_v15  ;;  %v22915_v51 = vpop.f32.mrb[94].mxu1  ;;  %19402 = vmatmul.mubr.msk.bf16.vlgmr.msra.gmra.mrb[4].mxu0 %vm723_vm8, %v4694_v28  ;;  %19404 = vmatmul.mubr.msk.bf16.vlgmr.msra.gmra.mrb[4].mxu1 %vm723_vm8, %v4694_v28  ;;  %v4695_v15 = vpack.c.bf16 %v22924_v4, %v22924_v4 }
 0xa41   : > { %v4620_v34 = vpop.f32.mrb[95].mxu1  ;;  %22927 = vmatpush3.bf16.msra.mxu0 %v23750_v39  ;;  %22941 = vmatpush3.bf16.msra.mxu1 %v27116_v61  ;;  %v23784_v39 = vld [vmem:[%s32428_s1 + $0x6e4] ss:$20 sps:$4 sm:$0xff]  }
 0xa42   : > { %v27389_v5 = vadd.f32 %v4620_v34, %v27272_v23  ;;  %22928 = vmatprep.subr.bf16.mxu0 %v23751_v52  ;;  %4905 = vmatprep.mubr.bf16.mxu0 %v25793_v53  ;;  %v23753_v23 = vld [vmem:[%s32428_s1 + $0x470] ss:$20 sps:$4 sm:$0xff]  }
 0xa43   : > { %4956 = vmatprep.mubr.bf16.mxu1 %v25793_v53  ;;  %22942 = vmatprep.subr.bf16.mxu1 %v27139_v11 }
 0xa45   : > { %22929 = vmatpush3.bf16.msra.mxu0 %v23751_v52  ;;  %22943 = vmatpush3.bf16.msra.mxu1 %v27139_v11 }
 0xa46   : > { %22930 = vmatprep.subr.bf16.mxu0 %v23752_v59  ;;  %23288 = vmatprep.subr.msk.bf16.mxu1 %vm422_vm6, %v27155_v63 }
 0xa48   : > { %19403 = vmatmul.mubr.msk.bf16.gmra.mrb[92].mxu0 %vm723_vm8, %v4695_v15  ;;  %19405 = vmatmul.mubr.msk.bf16.gmra.mrb[96].mxu1 %vm723_vm8, %v4695_v15 }
 0xa49   : > { %22931 = vmatpush3.bf16.msra.mxu0 %v23752_v59  ;;  %22936 = vmatprep.mubr.msk.bf16.mxu0 %vm723_vm8, %v4694_v28 }
 0xa4a   : > { %22932 = vmatprep.subr.bf16.mxu0 %v23753_v23  ;;  %22945 = vmatpush3.bf16.msra.mxu1 %v27167_v31 }
 0xa4b   : > { %22946 = vmatprep.mubr.msk.bf16.mxu1 %vm415_vm4, %v26168_v50  ;;  %5296 = vmatprep.subr.bf16.mxu1 %v23757_v56  ;;  %v23758_v50 = vld [vmem:[%s32428_s1 + $0x640] ss:$20 sps:$4 sm:$0xff]  }
 0xa4d   : > { %22933 = vmatpush3.bf16.msra.mxu0 %v23753_v23 }
 0xa4e   : > { %22934 = vmatprep.subr.bf16.mxu0 %v23754_v25 }
 0xa50   : > { %22947 = vmatmul.mubr.msk.bf16.vlgmr.msra.gmra.mrb[100].mxu1 %vm415_vm4, %v26185_v54  ;;  %v23764_v54 = vld [vmem:[%s32428_s1 + $0x668] ss:$20 sps:$4 sm:$0xff]  }
 0xa51   : > { %22935 = vmatpush3.bf16.msra.mxu0 %v23754_v25  ;;  %5297 = vmatpush1.bf16.msra.mxu1 %v23755_v45  ;;  %v23792_v45 = vld [vmem:[%s32428_s1 + $0x89c] ss:$20 sps:$4 sm:$0xff]  }
 0xa52   : > { %5245 = vmatprep.subr.bf16.mxu0 %v23760_v17  ;;  %5298 = vmatprep.subr.bf16.mxu1 %v23763_v33  ;;  %v23789_v17 = vld [vmem:[%s32428_s1 + $0x6f0] ss:$20 sps:$4 sm:$0xff]   ;;  %v23790_v33 = vld [vmem:[%s32428_s1 + $0x898] ss:$20 sps:$4 sm:$0xff]  }
 0xa53   : > { %5328 = vmatprep.mubr.bf16.mxu1 %v25793_v53 }
 0xa54   : > { %22937 = vmatmul.mubr.msk.bf16.vlgmr.msra.gmra.mrb[96].mxu0 %vm723_vm8, %v4695_v15 }
 0xa55   : > { %5246 = vmatpush1.bf16.msra.mxu0 %v23758_v50  ;;  %5299 = vmatpush1.bf16.msra.mxu1 %v23761_v49  ;;  %v23795_v50 = vld [vmem:[%s32428_s1 + $0x8a4] ss:$20 sps:$4 sm:$0xff]  }
 0xa56   : > { %5247 = vmatprep.subr.bf16.mxu0 %v23766_v46  ;;  %5277 = vmatprep.mubr.bf16.mxu0 %v25793_v53  ;;  %v23798_v49 = vld [vmem:[%s32428_s1 + $0x8c4] ss:$20 sps:$4 sm:$0xff]   ;;  %v23796_v46 = vld [vmem:[%s32428_s1 + $0x8c0] ss:$20 sps:$4 sm:$0xff]  }
 0xa57   : > { %5300 = vmatprep.subr.bf16.mxu1 %v23769_v29  ;;  %v23804_v29 = vld [vmem:[%s32428_s1 + $0x8ec] ss:$20 sps:$4 sm:$0xff]  }
 0xa59   : > { %5248 = vmatpush1.bf16.msra.mxu0 %v23764_v54  ;;  %5301 = vmatpush1.bf16.msra.mxu1 %v23767_v55  ;;  %v23801_v54 = vld [vmem:[%s32428_s1 + $0x8cc] ss:$20 sps:$4 sm:$0xff]   ;;  %v23802_v55 = vld [vmem:[%s32428_s1 + $0x8e8] ss:$20 sps:$4 sm:$0xff]  }
 0xa5a   : > { %5249 = vmatprep.subr.bf16.mxu0 %v23772_v43  ;;  %5302 = vmatprep.subr.bf16.mxu1 %v23775_v36  ;;  %v23807_v43 = vld [vmem:[%s32428_s1 + $0x8f4] ss:$20 sps:$4 sm:$0xff]  }
 0xa5b   : > { %v23810_v36 = vld [vmem:[%s32428_s1 + $0x914] ss:$20 sps:$4 sm:$0xff]  }
 0xa5d   : > { %5250 = vmatpush1.bf16.msra.mxu0 %v23770_v41  ;;  %5303 = vmatpush1.bf16.msra.mxu1 %v23773_v6  ;;  %v23805_v41 = vld [vmem:[%s32428_s1 + $0x8f0] ss:$20 sps:$4 sm:$0xff]  }
 0xa5e   : > { %5251 = vmatprep.subr.bf16.mxu0 %v23778_v58  ;;  %5304 = vmatprep.subr.bf16.mxu1 %v23781_v42  ;;  %v23808_v6 = vld [vmem:[%s32428_s1 + $0x910] ss:$20 sps:$4 sm:$0xff]  }
 0xa5f   : > { %v23813_v58 = vld [vmem:[%s32428_s1 + $0x91c] ss:$20 sps:$4 sm:$0xff]  }
 0xa60   : > { %v23816_v42 = vld [vmem:[%s32428_s1 + $0x93c] ss:$20 sps:$4 sm:$0xff]  }
 0xa61   : > { %5252 = vmatpush1.bf16.msra.mxu0 %v23776_v7  ;;  %5305 = vmatpush1.bf16.msra.mxu1 %v23779_v44  ;;  %v23811_v7 = vld [vmem:[%s32428_s1 + $0x918] ss:$20 sps:$4 sm:$0xff]  }
 0xa62   : > { %5253 = vmatprep.subr.bf16.mxu0 %v23784_v39  ;;  %22950 = vmatprep.subr.bf16.mxu1 %v23785_v21  ;;  %v23814_v44 = vld [vmem:[%s32428_s1 + $0x938] ss:$20 sps:$4 sm:$0xff]  }
 0xa63   : > { %v23819_v39 = vld [vmem:[%s32428_s1 + $0x944] ss:$20 sps:$4 sm:$0xff]  }
 0xa65   : > { %5254 = vmatpush1.bf16.msra.mxu0 %v23782_v0  ;;  %v23817_v0 = vld [vmem:[%s32428_s1 + $0x940] ss:$20 sps:$4 sm:$0xff]  }
 0xa66   : > { %22964 = vmatprep.subr.bf16.mxu0 %v27116_v61 }
 0xb1b   : > { %v4907_v9 = vpop.f32.mrb[92].mxu0  ;;  %v4958_v62 = vpop.f32.mrb[96].mxu1 }
 0xb1c   : > { %v27482_v35 = vadd.f32 %v4907_v9, %v27365_v16  ;;  %v27485_v60 = vadd.f32 %v4958_v62, %v27368_v57  ;;  %v4909_v30 = vpop.f32.mrb[93].mxu0  ;;  %v4960_v38 = vpop.f32.mrb[97].mxu1  ;;  %v23786_v57 = vld [vmem:[%s32428_s1 + $0x678] ss:$20 sps:$4 sm:$0xff]  }
 0xb1d   : > { %v27488_v4 = vadd.f32 %v4909_v30, %v27371_v2  ;;  %v27491_v40 = vadd.f32 %v4960_v38, %v27374_v47  ;;  %v4911_v18 = vpop.f32.mrb[94].mxu0  ;;  %v4962_v3 = vpop.f32.mrb[98].mxu1 }
 0xb1e   : > { %v4912_v22 = vpop.f32.mrb[95].mxu0  ;;  %v4963_v28 = vpop.f32.mrb[99].mxu1 }
 0xb23   : > { %v22948_v52 = vpop.f32.mrb[100].mxu1 }
 0xb24   : > { %v5062_v26 = vpop.f32.mrb[101].mxu1 }
 0xb25   : > { %v22949_v51 = vpop.f32.mrb[102].mxu1 }
 0xb26   : > { %v5065_v16 = vpop.f32.mrb[103].mxu1 }
 0xb27   : > { %v22938_v34 = vpop.f32.mrb[96].mxu0  ;;  %v5076_v59 = vpack.c.bf16 %v5065_v16, %v5062_v26 }
 0xb28   : > { %v27497_v2 = vadd.f32 %v22938_v34, %v27380_v10  ;;  %v4999_v15 = vpop.f32.mrb[97].mxu0  ;;  %v23787_v10 = vld [vmem:[%s32428_s1 + $0x6a0] ss:$20 sps:$4 sm:$0xff]  }
 0xb29   : > { %v27500_v47 = vadd.f32 %v4999_v15, %v27383_v37  ;;  %v22939_v23 = vpop.f32.mrb[98].mxu0  ;;  %19465 = vmatmul.mubr.msk.bf16.vlgmr.msra.gmra.mrb[4].mxu0 %vm723_vm8, %v5076_v59  ;;  %19467 = vmatmul.mubr.msk.bf16.vlgmr.msra.gmra.mrb[4].mxu1 %vm723_vm8, %v5076_v59  ;;  %v5077_v37 = vpack.c.bf16 %v22948_v52, %v22948_v52 }
 0xb2a   : > { %v5002_v56 = vpop.f32.mrb[99].mxu0  ;;  %22951 = vmatpush3.bf16.msra.mxu1 %v23785_v21  ;;  %22965 = vmatpush3.bf16.msra.mxu0 %v27116_v61  ;;  %v23820_v21 = vld [vmem:[%s32428_s1 + $0x8a8] ss:$20 sps:$4 sm:$0xff]  }
 0xb2b   : > { %v27506_v25 = vadd.f32 %v5002_v56, %v27389_v5  ;;  %22952 = vmatprep.subr.bf16.mxu1 %v23786_v57  ;;  %5287 = vmatprep.mubr.bf16.mxu0 %v25793_v53  ;;  %v23788_v5 = vld [vmem:[%s32428_s1 + $0x6c8] ss:$20 sps:$4 sm:$0xff]  }
 0xb2c   : > { %5338 = vmatprep.mubr.bf16.mxu1 %v25793_v53  ;;  %22966 = vmatprep.subr.bf16.mxu0 %v27139_v11 }
 0xb2e   : > { %22953 = vmatpush3.bf16.msra.mxu1 %v23786_v57  ;;  %22967 = vmatpush3.bf16.msra.mxu0 %v27139_v11 }
 0xb2f   : > { %22954 = vmatprep.subr.bf16.mxu1 %v23787_v10  ;;  %23289 = vmatprep.subr.msk.bf16.mxu0 %vm422_vm6, %v27155_v63 }
 0xb31   : > { %19466 = vmatmul.mubr.msk.bf16.gmra.mrb[100].mxu0 %vm723_vm8, %v5077_v37  ;;  %19468 = vmatmul.mubr.msk.bf16.gmra.mrb[104].mxu1 %vm723_vm8, %v5077_v37 }
 0xb32   : > { %22955 = vmatpush3.bf16.msra.mxu1 %v23787_v10  ;;  %22960 = vmatprep.mubr.msk.bf16.mxu1 %vm723_vm8, %v5076_v59 }
 0xb33   : > { %22956 = vmatprep.subr.bf16.mxu1 %v23788_v5  ;;  %22969 = vmatpush3.bf16.msra.mxu0 %v27167_v31 }
 0xb34   : > { %22970 = vmatprep.mubr.msk.bf16.mxu0 %vm415_vm4, %v26302_v27  ;;  %5627 = vmatprep.subr.bf16.mxu0 %v23792_v45  ;;  %v23793_v27 = vld [vmem:[%s32428_s1 + $0x8a0] ss:$20 sps:$4 sm:$0xff]  }
 0xb35   : > { %v23830_v45 = vld [vmem:[%s32428_s1 + $0xaf4] ss:$20 sps:$4 sm:$0xff]  }
 0xb36   : > { %22957 = vmatpush3.bf16.msra.mxu1 %v23788_v5 }
 0xb37   : > { %22958 = vmatprep.subr.bf16.mxu1 %v23789_v17 }
 0xb39   : > { %22971 = vmatmul.mubr.msk.bf16.vlgmr.msra.gmra.mrb[104].mxu0 %vm415_vm4, %v26317_v32  ;;  %v23799_v32 = vld [vmem:[%s32428_s1 + $0x8c8] ss:$20 sps:$4 sm:$0xff]  }
 0xb3a   : > { %22959 = vmatpush3.bf16.msra.mxu1 %v23789_v17  ;;  %5628 = vmatpush1.bf16.msra.mxu0 %v23790_v33  ;;  %v23831_v17 = vld [vmem:[%s32428_s1 + $0xb20] ss:$20 sps:$4 sm:$0xff]   ;;  %v23836_v33 = vld [vmem:[%s32428_s1 + $0xb1c] ss:$20 sps:$4 sm:$0xff]  }
 0xb3b   : > { %5678 = vmatprep.subr.bf16.mxu1 %v23795_v50  ;;  %5629 = vmatprep.subr.bf16.mxu0 %v23798_v49  ;;  %v23839_v50 = vld [vmem:[%s32428_s1 + $0xb4c] ss:$20 sps:$4 sm:$0xff]   ;;  %v23837_v49 = vld [vmem:[%s32428_s1 + $0xb48] ss:$20 sps:$4 sm:$0xff]  }
 0xb3c   : > { %5659 = vmatprep.mubr.bf16.mxu0 %v25793_v53 }
 0xb3d   : > { %22961 = vmatmul.mubr.msk.bf16.vlgmr.msra.gmra.mrb[108].mxu1 %vm723_vm8, %v5077_v37 }
 0xb3e   : > { %5679 = vmatpush1.bf16.msra.mxu1 %v23793_v27  ;;  %5630 = vmatpush1.bf16.msra.mxu0 %v23796_v46  ;;  %v23842_v27 = vld [vmem:[%s32428_s1 + $0xb44] ss:$20 sps:$4 sm:$0xff]   ;;  %v23840_v46 = vld [vmem:[%s32428_s1 + $0xb40] ss:$20 sps:$4 sm:$0xff]  }
 0xb3f   : > { %5680 = vmatprep.subr.bf16.mxu1 %v23801_v54  ;;  %5710 = vmatprep.mubr.bf16.mxu1 %v25793_v53  ;;  %v23843_v54 = vld [vmem:[%s32428_s1 + $0xb70] ss:$20 sps:$4 sm:$0xff]  }
 0xb40   : > { %5631 = vmatprep.subr.bf16.mxu0 %v23804_v29  ;;  %v23846_v29 = vld [vmem:[%s32428_s1 + $0xb68] ss:$20 sps:$4 sm:$0xff]  }
 0xb42   : > { %5681 = vmatpush1.bf16.msra.mxu1 %v23799_v32  ;;  %5632 = vmatpush1.bf16.msra.mxu0 %v23802_v55  ;;  %v23845_v32 = vld [vmem:[%s32428_s1 + $0xb74] ss:$20 sps:$4 sm:$0xff]   ;;  %v23848_v55 = vld [vmem:[%s32428_s1 + $0xb6c] ss:$20 sps:$4 sm:$0xff]  }
 0xb43   : > { %5682 = vmatprep.subr.bf16.mxu1 %v23807_v43  ;;  %5633 = vmatprep.subr.bf16.mxu0 %v23810_v36  ;;  %v23851_v43 = vld [vmem:[%s32428_s1 + $0xb9c] ss:$20 sps:$4 sm:$0xff]  }
 0xb44   : > { %v23852_v36 = vld [vmem:[%s32428_s1 + $0xb90] ss:$20 sps:$4 sm:$0xff]  }
 0xb46   : > { %5683 = vmatpush1.bf16.msra.mxu1 %v23805_v41  ;;  %5634 = vmatpush1.bf16.msra.mxu0 %v23808_v6  ;;  %v23849_v41 = vld [vmem:[%s32428_s1 + $0xb98] ss:$20 sps:$4 sm:$0xff]   ;;  %v23854_v6 = vld [vmem:[%s32428_s1 + $0xb94] ss:$20 sps:$4 sm:$0xff]  }
 0xb47   : > { %5684 = vmatprep.subr.bf16.mxu1 %v23813_v58  ;;  %5635 = vmatprep.subr.bf16.mxu0 %v23816_v42 }
 0xb4a   : > { %5685 = vmatpush1.bf16.msra.mxu1 %v23811_v7  ;;  %5636 = vmatpush1.bf16.msra.mxu0 %v23814_v44  ;;  %v23855_v7 = vld [vmem:[%s32428_s1 + $0xb00] ss:$20 sps:$4 sm:$0xff]  }
 0xb4b   : > { %5686 = vmatprep.subr.bf16.mxu1 %v23819_v39  ;;  %22974 = vmatprep.subr.bf16.mxu0 %v23820_v21 }
 0xb4e   : > { %5687 = vmatpush1.bf16.msra.mxu1 %v23817_v0 }
 0xb4f   : > { %22988 = vmatprep.subr.bf16.mxu1 %v27116_v61 }
 0xc04   : > { %v5289_v9 = vpop.f32.mrb[100].mxu0  ;;  %v5340_v62 = vpop.f32.mrb[104].mxu1 }
 0xc05   : > { %v27599_v30 = vadd.f32 %v5289_v9, %v27482_v35  ;;  %v27602_v38 = vadd.f32 %v5340_v62, %v27485_v60  ;;  %v5291_v18 = vpop.f32.mrb[101].mxu0  ;;  %v5342_v3 = vpop.f32.mrb[105].mxu1  ;;  %v23821_v60 = vld [vmem:[%s32428_s1 + $0x8d0] ss:$20 sps:$4 sm:$0xff]  }
 0xc06   : > { %v27605_v22 = vadd.f32 %v5291_v18, %v27488_v4  ;;  %v27608_v28 = vadd.f32 %v5342_v3, %v27491_v40  ;;  %v5293_v52 = vpop.f32.mrb[102].mxu0  ;;  %v5344_v26 = vpop.f32.mrb[106].mxu1 }
 0xc07   : > { %v5294_v51 = vpop.f32.mrb[103].mxu0  ;;  %v5345_v16 = vpop.f32.mrb[107].mxu1 }
 0xc0c   : > { %v22972_v34 = vpop.f32.mrb[104].mxu0 }
 0xc0d   : > { %v5444_v59 = vpop.f32.mrb[105].mxu0 }
 0xc0e   : > { %v22973_v57 = vpop.f32.mrb[106].mxu0 }
 0xc0f   : > { %v5447_v35 = vpop.f32.mrb[107].mxu0 }
 0xc10   : > { %v22962_v15 = vpop.f32.mrb[108].mxu1  ;;  %v5458_v23 = vpack.c.bf16 %v5447_v35, %v5444_v59 }
 0xc11   : > { %v27614_v4 = vadd.f32 %v22962_v15, %v27497_v2  ;;  %v5381_v56 = vpop.f32.mrb[109].mxu1  ;;  %v23822_v2 = vld [vmem:[%s32428_s1 + $0x8f8] ss:$20 sps:$4 sm:$0xff]  }
 0xc12   : > { %v27617_v40 = vadd.f32 %v5381_v56, %v27500_v47  ;;  %v22963_v10 = vpop.f32.mrb[110].mxu1  ;;  %19528 = vmatmul.mubr.msk.bf16.vlgmr.msra.gmra.mrb[4].mxu0 %vm723_vm8, %v5458_v23  ;;  %19530 = vmatmul.mubr.msk.bf16.vlgmr.msra.gmra.mrb[4].mxu1 %vm723_vm8, %v5458_v23  ;;  %v5459_v47 = vpack.c.bf16 %v22972_v34, %v22972_v34 }
 0xc13   : > { %v5384_v37 = vpop.f32.mrb[111].mxu1  ;;  %22975 = vmatpush3.bf16.msra.mxu0 %v23820_v21  ;;  %22989 = vmatpush3.bf16.msra.mxu1 %v27116_v61  ;;  %v23823_v61 = vld [vmem:[%s32428_s1 + $0x920] ss:$20 sps:$4 sm:$0xff]  }
 0xc14   : > { %v27623_v5 = vadd.f32 %v5384_v37, %v27506_v25  ;;  %22976 = vmatprep.subr.bf16.mxu0 %v23821_v60  ;;  %5669 = vmatprep.mubr.bf16.mxu0 %v25793_v53  ;;  %v23827_v25 = vld [vmem:[%s32428_s1 + $0xafc] ss:$20 sps:$4 sm:$0xff]   ;;  %v23859_v10 = vld [vmem:[%s32428_s1 + $0xba0] ss:$20 sps:$4 sm:$0xff]   ;;  %v27760_v37 = vsub.s32 0, %v25897_v1 }
 0xc15   : > { %5720 = vmatprep.mubr.bf16.mxu1 %v25793_v53  ;;  %22990 = vmatprep.subr.bf16.mxu1 %v27139_v11 }
 0xc17   : > { %22977 = vmatpush3.bf16.msra.mxu0 %v23821_v60  ;;  %22991 = vmatpush3.bf16.msra.mxu1 %v27139_v11  ;;  %v23824_v11 = vld [vmem:[%s32428_s1 + $0x948] ss:$20 sps:$4 sm:$0xff]  }
 0xc18   : > { %22978 = vmatprep.subr.bf16.mxu0 %v23822_v2  ;;  %23290 = vmatprep.subr.msk.bf16.mxu1 %vm422_vm6, %v27155_v63  ;;  %v23825_v63 = vld [vmem:[%s32428_s1 + $0xaf8] ss:$20 sps:$4 sm:$0xff]  }
 0xc1a   : > { %19529 = vmatmul.mubr.msk.bf16.gmra.mrb[108].mxu0 %vm723_vm8, %v5459_v47  ;;  %19531 = vmatmul.mubr.msk.bf16.gmra.mrb[112].mxu1 %vm723_vm8, %v5459_v47 }
 0xc1b   : > { %22979 = vmatpush3.bf16.msra.mxu0 %v23822_v2  ;;  %22984 = vmatprep.mubr.msk.bf16.mxu0 %vm723_vm8, %v5458_v23  ;;  %v27766_v2 = vld [vmem:[%s32432_s5] sm:$0x1f] }
 0xc1c   : > { %22980 = vmatprep.subr.bf16.mxu0 %v23823_v61  ;;  %22993 = vmatpush3.bf16.msra.mxu1 %v27167_v31  ;;  %v23833_v31 = vld [vmem:[%s32428_s1 + $0xb24] ss:$20 sps:$4 sm:$0xff]  }
 0xc1d   : > { %22994 = vmatprep.mubr.msk.bf16.mxu1 %vm415_vm4, %v26432_v8  ;;  %6060 = vmatprep.subr.bf16.mxu1 %v23827_v25  ;;  %v23828_v8 = vld [vmem:[%s32428_s1 + $0xaf0] ss:$20 sps:$4 sm:$0xff]   ;;  %v6179_v25 = vrot.slane %v27766_v2, %v27760_v37 }
 0xc1f   : > { %22981 = vmatpush3.bf16.msra.mxu0 %v23823_v61  ;;  %v6190_v61 = vsub.s32 3, %v25897_v1 }
 0xc20   : > { %22982 = vmatprep.subr.bf16.mxu0 %v23824_v11 }
 0xc22   : > { %22995 = vmatmul.mubr.msk.bf16.vlgmr.msra.gmra.mrb[116].mxu1 %vm415_vm4, %v26447_v24  ;;  %v23834_v24 = vld [vmem:[%s32428_s1 + $0xb18] ss:$20 sps:$4 sm:$0xff]   ;;  %vm6242_vm4 = vcmask 146432  }
 0xc23   : > { %22983 = vmatpush3.bf16.msra.mxu0 %v23824_v11  ;;  %6061 = vmatpush1.bf16.msra.mxu1 %v23825_v63 }
 0xc24   : > { %6009 = vmatprep.subr.bf16.mxu0 %v23830_v45  ;;  %6062 = vmatprep.subr.bf16.mxu1 %v23833_v31  ;;  %v6191_v45 = vrot.slane %v27766_v2, %v6190_v61 }
 0xc25   : > { %6092 = vmatprep.mubr.bf16.mxu1 %v25793_v53 }
 0xc26   : > { %22985 = vmatmul.mubr.msk.bf16.vlgmr.msra.gmra.mrb[112].mxu0 %vm723_vm8, %v5459_v47  ;;  %v27769_v47 = vsub.s32 1, %v25897_v1 }
 0xc27   : > { %6010 = vmatpush1.bf16.msra.mxu0 %v23828_v8  ;;  %6063 = vmatpush1.bf16.msra.mxu1 %v23831_v17 }
 0xc28   : > { %6011 = vmatprep.subr.bf16.mxu0 %v23836_v33  ;;  %6041 = vmatprep.mubr.bf16.mxu0 %v25793_v53  ;;  %v6183_v63 = vrot.slane %v27766_v2, %v27769_v47 }
 0xc29   : > { %6064 = vmatprep.subr.bf16.mxu1 %v23839_v50 }
 0xc2b   : > { %6012 = vmatpush1.bf16.msra.mxu0 %v23834_v24  ;;  %6065 = vmatpush1.bf16.msra.mxu1 %v23837_v49 }
 0xc2c   : > { %6013 = vmatprep.subr.bf16.mxu0 %v23842_v27  ;;  %6066 = vmatprep.subr.bf16.mxu1 %v23845_v32 }
 0xc2f   : > { %6014 = vmatpush1.bf16.msra.mxu0 %v23840_v46  ;;  %6067 = vmatpush1.bf16.msra.mxu1 %v23843_v54 }
 0xc30   : > { %6015 = vmatprep.subr.bf16.mxu0 %v23848_v55  ;;  %6068 = vmatprep.subr.bf16.mxu1 %v23851_v43 }
 0xc33   : > { %6016 = vmatpush1.bf16.msra.mxu0 %v23846_v29  ;;  %6069 = vmatpush1.bf16.msra.mxu1 %v23849_v41 }
 0xc34   : > { %6017 = vmatprep.subr.bf16.mxu0 %v23854_v6  ;;  %22998 = vmatprep.subr.bf16.mxu1 %v23855_v7 }
 0xc37   : > { %6018 = vmatpush1.bf16.msra.mxu0 %v23852_v36 }
 0xced   : > { %v5671_v58 = vpop.f32.mrb[108].mxu0  ;;  %v5722_v42 = vpop.f32.mrb[112].mxu1 }
 0xcee   : > { %v27715_v44 = vadd.f32 %v5671_v58, %v27599_v30  ;;  %v27718_v39 = vadd.f32 %v5722_v42, %v27602_v38  ;;  %v5673_v0 = vpop.f32.mrb[109].mxu0  ;;  %v5724_v21 = vpop.f32.mrb[113].mxu1  ;;  %v23856_v38 = vld [vmem:[%s32428_s1 + $0xb28] ss:$20 sps:$4 sm:$0xff]  }
 0xcef   : > { %v27721_v9 = vadd.f32 %v5673_v0, %v27605_v22  ;;  %v27724_v62 = vadd.f32 %v5724_v21, %v27608_v28  ;;  %v5675_v18 = vpop.f32.mrb[110].mxu0  ;;  %v5726_v3 = vpop.f32.mrb[114].mxu1 }
 0xcf0   : > { %v5676_v52 = vpop.f32.mrb[111].mxu0  ;;  %v5727_v26 = vpop.f32.mrb[115].mxu1 }
 0xcf5   : > { %v22996_v51 = vpop.f32.mrb[116].mxu1 }
 0xcf6   : > { %v5826_v16 = vpop.f32.mrb[117].mxu1  ;;  %v5841_v56 = vpack.c.bf16 %v22996_v51, %v22996_v51 }
 0xcf7   : > { %v22997_v34 = vpop.f32.mrb[118].mxu1 }
 0xcf8   : > { %v5829_v30 = vpop.f32.mrb[119].mxu1 }
 0xcf9   : > { %v22986_v59 = vpop.f32.mrb[112].mxu0  ;;  %v5840_v57 = vpack.c.bf16 %v5829_v30, %v5826_v16 }
 0xcfa   : > { %v27730_v22 = vadd.f32 %v22986_v59, %v27614_v4  ;;  %v5763_v35 = vpop.f32.mrb[113].mxu0  ;;  %v23857_v4 = vld [vmem:[%s32428_s1 + $0xb50] ss:$20 sps:$4 sm:$0xff]  }
 0xcfb   : > { %v27733_v28 = vadd.f32 %v5763_v35, %v27617_v40  ;;  %v22987_v15 = vpop.f32.mrb[114].mxu0  ;;  %19591 = vmatmul.mubr.msk.bf16.vlgmr.msra.gmra.mrb[4].mxu0 %vm723_vm8, %v5840_v57  ;;  %19593 = vmatmul.mubr.msk.bf16.vlgmr.msra.gmra.mrb[4].mxu1 %vm723_vm8, %v5840_v57  ;;  %v23858_v40 = vld [vmem:[%s32428_s1 + $0xb78] ss:$20 sps:$4 sm:$0xff]  }
 0xcfc   : > { %v5766_v23 = vpop.f32.mrb[115].mxu0  ;;  %22999 = vmatpush3.bf16.msra.mxu1 %v23855_v7  ;;  %6051 = vmatprep.mubr.bf16.mxu0 %v25793_v53 }
 0xcfd   : > { %v27739_v60 = vadd.f32 %v5766_v23, %v27623_v5  ;;  %23000 = vmatprep.subr.bf16.mxu1 %v23856_v38  ;;  %6102 = vmatprep.mubr.bf16.mxu1 %v25793_v53  ;;  %v6186_v5 = vsub.s32 2, %v25897_v1 }
 0xcff   : > { %v6187_v11 = vrot.slane %v27766_v2, %v6186_v5 }
 0xd00   : > { %23001 = vmatpush3.bf16.msra.mxu1 %v23856_v38 }
 0xd01   : > { %23002 = vmatprep.subr.bf16.mxu1 %v23857_v4 }
 0xd03   : > { %19592 = vmatmul.mubr.msk.bf16.gmra.mrb[116].mxu0 %vm723_vm8, %v5841_v56  ;;  %19594 = vmatmul.mubr.msk.bf16.gmra.mrb[120].mxu1 %vm723_vm8, %v5841_v56 }
 0xd04   : > { %23003 = vmatpush3.bf16.msra.mxu1 %v23857_v4  ;;  %23008 = vmatprep.mubr.msk.bf16.mxu1 %vm723_vm8, %v5840_v57 }
 0xd05   : > { %23004 = vmatprep.subr.bf16.mxu1 %v23858_v40  ;;  %6294 = vmatprep.mubr.bf16.mxu0 %v25793_v53 }
 0xd08   : > { %23005 = vmatpush3.bf16.msra.mxu1 %v23858_v40 }
 0xd09   : > { %23006 = vmatprep.subr.bf16.mxu1 %v23859_v10 }
 0xd0c   : > { %23007 = vmatpush3.bf16.msra.mxu1 %v23859_v10 }
 0xd0d   : > { %23012 = vmatprep.subr.bf16.mxu1 %v25792_v12 }
 0xd0f   : > { %23009 = vmatmul.mubr.msk.bf16.vlgmr.msra.gmra.mrb[124].mxu1 %vm723_vm8, %v5841_v56  ;;  %vm14900_vm8 = vcmask 56320  }
 0xd10   : > { %23016 = vmatprep.mubr.msk.bf16.mxu1 %vm25794_vm2, %v25792_v12 }
 0xdce   : > { %v6043_v31 = vpop.f32.mrb[4].mxu0  ;;  %v6094_v8 = vpop.f32.mrb[4].mxu1 }
 0xdcf   : > { %v6201_v17 = vadd.f32 %v6179_v25, %v6043_v31  ;;  %v6203_v33 = vadd.f32 %v6187_v11, %v6094_v8  ;;  %v6045_v24 = vpop.f32.mrb[5].mxu0  ;;  %v6096_v50 = vpop.f32.mrb[5].mxu1 }
 0xdd0   : > { %v6202_v49 = vadd.f32 %v6183_v63, %v6045_v24  ;;  %v6204_v27 = vadd.f32 %v6191_v45, %v6096_v50  ;;  %v6047_v46 = vpop.f32.mrb[6].mxu0  ;;  %v6098_v54 = vpop.f32.mrb[6].mxu1 }
 0xdd1   : > { %v6206_v32 = vadd.f32 %v6179_v25, %v6047_v46  ;;  %v6208_v29 = vadd.f32 %v6187_v11, %v6098_v54  ;;  %v6049_v55 = vpop.f32.mrb[7].mxu0  ;;  %v6100_v43 = vpop.f32.mrb[7].mxu1  ;;  %v6216_v36 = vmax.f32 %v6201_v17, 0.0  ;;  %v6218_v7 = vmax.f32 %v6203_v33, 0.0 }
 0xdd2   : > { %v6207_v41 = vadd.f32 %v6183_v63, %v6049_v55  ;;  %v6209_v6 = vadd.f32 %v6191_v45, %v6100_v43  ;;  %v6217_v0 = vmax.f32 %v6202_v49, 0.0  ;;  %v6219_v21 = vmax.f32 %v6204_v27, 0.0 }
 0xdd3   : > { %v6221_v58 = vmax.f32 %v6206_v32, 0.0  ;;  %v6223_v42 = vmax.f32 %v6208_v29, 0.0 }
 0xdd4   : > { %v6222_v18 = vmax.f32 %v6207_v41, 0.0  ;;  %v6224_v3 = vmax.f32 %v6209_v6, 0.0 }
 0xdd5   : > { %v27782_v52 = vpack.c.bf16 %v6221_v58, %v6216_v36  ;;  %v27784_v26 = vpack.c.bf16 %v6223_v42, %v6218_v7  ;;  %v27841_v42 = vpack.c.bf16 %v25934_v20, %v25934_v20  ;;  %v23871_v20 = vld [vmem:[%s32429_s2 + $0x874] ss:$20 sps:$4 sm:$0xff]  }
 0xdd6   : > { %v27786_v51 = vpack.c.bf16 %v6222_v18, %v6217_v0  ;;  %v27788_v16 = vpack.c.bf16 %v6224_v3, %v6219_v21  ;;  %v6053_v34 = vpop.f32.mrb[116].mxu0  ;;  %v6104_v30 = vpop.f32.mrb[120].mxu1  ;;  %v23862_v21 = vld [vmem:[%s32429_s2 + $0x5f4] ss:$20 sps:$4 sm:$0xff]   ;;  %v23869_v18 = vld [vmem:[%s32429_s2 + $0x870] ss:$20 sps:$4 sm:$0xff]  }
 0xdd7   : > { %v6169_v59 = vadd.f32 %v6053_v34, %v27715_v44  ;;  %v6171_v57 = vadd.f32 %v6104_v30, %v27718_v39  ;;  %v6055_v38 = vpop.f32.mrb[117].mxu0  ;;  %v6106_v35 = vpop.f32.mrb[121].mxu1  ;;  %v23860_v3 = vld [vmem:[%s32429_s2 + $0x5f0] ss:$20 sps:$4 sm:$0xff]  }
 0xdd8   : > { %v6170_v15 = vadd.f32 %v6055_v38, %v27721_v9  ;;  %v6172_v23 = vadd.f32 %v6106_v35, %v27724_v62  ;;  %v6057_v4 = vpop.f32.mrb[118].mxu0  ;;  %v6108_v56 = vpop.f32.mrb[122].mxu1  ;;  %6262 = vmatprep.subr.bf16.mxu0 %v27786_v51  ;;  %v6194_v9 = vsub.s32 4, %v25897_v1  ;;  %v23877_v34 = vld [vmem:[%s32429_s2 + $0x89c] ss:$20 sps:$4 sm:$0xff]  }
 0xdd9   : > { %v6211_v40 = vadd.f32 %v6179_v25, %v6169_v59  ;;  %v6058_v10 = vpop.f32.mrb[119].mxu0  ;;  %v6109_v31 = vpop.f32.mrb[123].mxu1  ;;  %6263 = vmatpush1.bf16.msra.mxu0 %v27782_v52  ;;  %v6213_v44 = vadd.f32 %v6187_v11, %v6171_v57  ;;  %v27804_v25 = vpack.c.bf16 %v25922_v13, %v25922_v13  ;;  %v23865_v30 = vld [vmem:[%s32429_s2 + $0x61c] ss:$20 sps:$4 sm:$0xff]   ;;  %v23875_v59 = vld [vmem:[%s32429_s2 + $0x898] ss:$20 sps:$4 sm:$0xff]  }
 0xdda   : > { %v6212_v8 = vadd.f32 %v6183_v63, %v6170_v15  ;;  %v6214_v33 = vadd.f32 %v6191_v45, %v6172_v23  ;;  %v6195_v11 = vrot.slane %v27766_v2, %v6194_v9  ;;  %v23863_v57 = vld [vmem:[%s32429_s2 + $0x618] ss:$20 sps:$4 sm:$0xff]   ;;  %v23881_v15 = vld [vmem:[%s32429_s2 + $0x8c0] ss:$20 sps:$4 sm:$0xff]   ;;  %v23872_v10 = vld [vmem:[%s32429_s2 + $0x668] ss:$20 sps:$4 sm:$0xff]  }
 0xddb   : > { %v6226_v17 = vmax.f32 %v6211_v40, 0.0  ;;  %v6228_v49 = vmax.f32 %v6213_v44, 0.0  ;;  %v23883_v38 = vld [vmem:[%s32429_s2 + $0x8c4] ss:$20 sps:$4 sm:$0xff]   ;;  %v23866_v23 = vld [vmem:[%s32429_s2 + $0x640] ss:$20 sps:$4 sm:$0xff]  }
 0xddc   : > { %v6227_v39 = vmax.f32 %v6212_v8, 0.0  ;;  %v6229_v27 = vmax.f32 %v6214_v33, 0.0  ;;  %v23868_v35 = vld [vmem:[%s32429_s2 + $0x644] ss:$20 sps:$4 sm:$0xff]   ;;  %v23889_v4 = vld [vmem:[%s32429_s2 + $0x8ec] ss:$20 sps:$4 sm:$0xff]  }
 0xddd   : > { %v6236_v24 = vpack.c.bf16 %v6226_v17, %v6226_v17  ;;  %v6238_v13 = vpack.c.bf16 %v6228_v49, %v6228_v49  ;;  %v23874_v56 = vld [vmem:[%s32429_s2 + $0x66c] ss:$20 sps:$4 sm:$0xff]   ;;  %v23887_v40 = vld [vmem:[%s32429_s2 + $0x8e8] ss:$20 sps:$4 sm:$0xff]   ;;  %v23893_v17 = vld [vmem:[%s32429_s2 + $0x910] ss:$20 sps:$4 sm:$0xff]  }
 0xdde   : > { %v27797_v50 = vpack.c.bf16 %v6227_v39, %v6227_v39  ;;  %v27814_v54 = vpack.c.bf16 %v6229_v27, %v6229_v27  ;;  %v23895_v31 = vld [vmem:[%s32429_s2 + $0x914] ss:$20 sps:$4 sm:$0xff]   ;;  %v23878_v44 = vld [vmem:[%s32429_s2 + $0x690] ss:$20 sps:$4 sm:$0xff]   ;;  %v23884_v49 = vld [vmem:[%s32429_s2 + $0x6b8] ss:$20 sps:$4 sm:$0xff]  }
 0xddf   : > { %v27800_v62 = vsel %vm6246_vm3, %v6236_v24, 0  ;;  %v23880_v8 = vld [vmem:[%s32429_s2 + $0x694] ss:$20 sps:$4 sm:$0xff]   ;;  %v23901_v39 = vld [vmem:[%s32429_s2 + $0x93c] ss:$20 sps:$4 sm:$0xff]  }
 0xde0   : > { %19597 = vmatprep.subr.msk.bf16.mxu0 %vm6246_vm3, %v27797_v50  ;;  %v23886_v33 = vld [vmem:[%s32429_s2 + $0x6bc] ss:$20 sps:$4 sm:$0xff]   ;;  %v23899_v24 = vld [vmem:[%s32429_s2 + $0x938] ss:$20 sps:$4 sm:$0xff]  }
 0xde1   : > { %6265 = vmatpush1.bf16.msra.mxu0 %v27800_v62  ;;  %v23907_v27 = vld [vmem:[%s32429_s2 + $0x964] ss:$20 sps:$4 sm:$0xff]  }
 0xde2   : > { %v23010_v63 = vpop.f32.mrb[124].mxu1  ;;  %6303 = vmatprep.subr.bf16.mxu0 %v27788_v16  ;;  %v25192_v1 = vld [vmem:[%s32430_s3 + $0x224] ss:$8 sps:$4 sm:$0xff]  }
 0xde3   : > { %v6173_v45 = vadd.f32 %v23010_v63, %v27730_v22  ;;  %v6145_v46 = vpop.f32.mrb[125].mxu1  ;;  %v27825_v22 = vsel %vm6246_vm3, %v6238_v13, 0  ;;  %v23905_v63 = vld [vmem:[%s32429_s2 + $0x960] ss:$20 sps:$4 sm:$0xff]  }
 0xde4   : > { %v6163_v32 = vadd.f32 %v6145_v46, %v27733_v28  ;;  %v23011_v29 = vpop.f32.mrb[126].mxu1  ;;  %19598 = vmatmul.mubr.msk.bf16.vlgmr.msra.gmra.mrb[120].mxu0 %vm6242_vm4, %v27804_v25  ;;  %v23913_v46 = vld [vmem:[%s32429_s2 + $0x98c] ss:$20 sps:$4 sm:$0xff]  }
 0xde5   : > { %v6215_v55 = vadd.f32 %v6195_v11, %v6173_v45  ;;  %v6148_v2 = vpop.f32.mrb[127].mxu1  ;;  %6304 = vmatpush1.bf16.msra.mxu0 %v27784_v26  ;;  %6335 = vmatprep.mubr.bf16.mxu0 %v25793_v53  ;;  %v23890_v45 = vld [vmem:[%s32429_s2 + $0x6e0] ss:$20 sps:$4 sm:$0xff]   ;;  %v23896_v29 = vld [vmem:[%s32429_s2 + $0x708] ss:$20 sps:$4 sm:$0xff]  }
 0xde6   : > { %v6205_v43 = vadd.f32 %v6195_v11, %v6163_v32  ;;  %v6168_v41 = vadd.f32 %v6148_v2, %v27739_v60  ;;  %19599 = vmatprep.subr.msk.bf16.mxu0 %vm6246_vm3, %v27814_v54  ;;  %v23898_v13 = vld [vmem:[%s32429_s2 + $0x70c] ss:$20 sps:$4 sm:$0xff]   ;;  %v23911_v32 = vld [vmem:[%s32429_s2 + $0x988] ss:$20 sps:$4 sm:$0xff]  }
 0xde7   : > { %v6230_v6 = vmax.f32 %v6215_v55, 0.0  ;;  %v23919_v55 = vld [vmem:[%s32429_s2 + $0x9b4] ss:$20 sps:$4 sm:$0xff]  }
 0xde8   : > { %v6210_v28 = vadd.f32 %v6195_v11, %v6168_v41  ;;  %v6220_v36 = vmax.f32 %v6205_v43, 0.0  ;;  %v23892_v11 = vld [vmem:[%s32429_s2 + $0x6e4] ss:$20 sps:$4 sm:$0xff]   ;;  %v23904_v2 = vld [vmem:[%s32429_s2 + $0x734] ss:$20 sps:$4 sm:$0xff]  }
 0xde9   : > { %6306 = vmatpush1.bf16.msra.mxu0 %v27825_v22  ;;  %v6240_v60 = vpack.c.bf16 %v6230_v6, %v6230_v6  ;;  %v23917_v43 = vld [vmem:[%s32429_s2 + $0x9b0] ss:$20 sps:$4 sm:$0xff]  }
 0xdea   : > { %v6225_v7 = vmax.f32 %v6210_v28, 0.0  ;;  %6621 = vmatprep.subr.bf16.mxu0 %v27786_v51  ;;  %v23902_v41 = vld [vmem:[%s32429_s2 + $0x730] ss:$20 sps:$4 sm:$0xff]  }
 0xdeb   : > { %v27844_v0 = vsel %vm6246_vm3, %v6240_v60, 0  ;;  %v23925_v28 = vld [vmem:[%s32429_s2 + $0x9dc] ss:$20 sps:$4 sm:$0xff]   ;;  %v23931_v60 = vld [vmem:[%s32429_s2 + $0xa04] ss:$20 sps:$4 sm:$0xff]  }
 0xdec   : > { %v27829_v58 = vpack.c.bf16 %v6225_v7, %v6220_v36  ;;  %19600 = vmatmul.mubr.msk.bf16.vlgmr.msra.gmra.mrb[124].mxu0 %vm6242_vm4, %v27804_v25  ;;  %v23910_v6 = vld [vmem:[%s32429_s2 + $0x75c] ss:$20 sps:$4 sm:$0xff]   ;;  %v23923_v36 = vld [vmem:[%s32429_s2 + $0x9d8] ss:$20 sps:$4 sm:$0xff]  }
 0xded   : > { %6622 = vmatpush1.bf16.msra.mxu0 %v27782_v52  ;;  %6653 = vmatprep.mubr.bf16.mxu0 %v25793_v53  ;;  %v23908_v7 = vld [vmem:[%s32429_s2 + $0x758] ss:$20 sps:$4 sm:$0xff]  }
 0xdee   : > { %23013 = vmatpush3.bf16.msra.mxu1 %v27829_v58  ;;  %19602 = vmatprep.subr.msk.bf16.mxu0 %vm6246_vm3, %v27797_v50 }
 0xdef   : > { %23014 = vmatprep.subr.bf16.mxu1 %v25792_v12 }
 0xdf1   : > { %6624 = vmatpush1.bf16.msra.mxu0 %v27800_v62 }
 0xdf2   : > { %23015 = vmatpush3.bf16.msra.mxu1 %v27844_v0  ;;  %23020 = vmatprep.subr.bf16.mxu0 %v25792_v12 }
 0xdf3   : > { %6662 = vmatprep.subr.bf16.mxu1 %v27788_v16 }
 0xdf4   : > { %19603 = vmatmul.mubr.msk.bf16.vlgmr.msra.gmra.mrb[128].mxu0 %vm6242_vm4, %v27841_v42 }
 0xdf5   : > { %23017 = vmatmul.mubr.msk.bf16.vlgmr.msra.gmra.mrb[128].mxu1 %vm6242_vm4, %v27804_v25  ;;  %23021 = vmatpush3.bf16.msra.mxu0 %v27829_v58 }
 0xdf6   : > { %6663 = vmatpush1.bf16.msra.mxu1 %v27784_v26  ;;  %23022 = vmatprep.subr.bf16.mxu0 %v25792_v12 }
 0xdf7   : > { %19604 = vmatprep.subr.msk.bf16.mxu1 %vm6246_vm3, %v27814_v54  ;;  %6694 = vmatprep.mubr.bf16.mxu1 %v25793_v53 }
 0xdf8   : > { %23024 = vmatprep.mubr.msk.bf16.mxu0 %vm25794_vm2, %v25792_v12 }
 0xdf9   : > { %23023 = vmatpush3.bf16.msra.mxu0 %v27844_v0 }
 0xdfa   : > { %6665 = vmatpush1.bf16.msra.mxu1 %v27825_v22  ;;  %8010 = vmatprep.subr.bf16.mxu0 %v23871_v20  ;;  %v23916_v20 = vld [vmem:[%s32429_s2 + $0x784] ss:$20 sps:$4 sm:$0xff]  }
 0xdfb   : > { %7969 = vmatprep.subr.bf16.mxu1 %v23862_v21  ;;  %v23929_v21 = vld [vmem:[%s32429_s2 + $0xa00] ss:$20 sps:$4 sm:$0xff]  }
 0xdfc   : > { %23025 = vmatmul.mubr.msk.bf16.vlgmr.msra.gmra.mrb[132].mxu0 %vm6242_vm4, %v27841_v42 }
 0xdfd   : > { %19605 = vmatmul.mubr.msk.bf16.vlgmr.msra.gmra.mrb[132].mxu1 %vm6242_vm4, %v27841_v42  ;;  %8011 = vmatpush1.bf16.msra.mxu0 %v23869_v18  ;;  %v23914_v18 = vld [vmem:[%s32429_s2 + $0x780] ss:$20 sps:$4 sm:$0xff]  }
 0xdfe   : > { %7970 = vmatpush1.bf16.msra.mxu1 %v23860_v3  ;;  %8012 = vmatprep.subr.bf16.mxu0 %v23877_v34  ;;  %v23922_v3 = vld [vmem:[%s32429_s2 + $0x7ac] ss:$20 sps:$4 sm:$0xff]   ;;  %v23920_v34 = vld [vmem:[%s32429_s2 + $0x7a8] ss:$20 sps:$4 sm:$0xff]  }
 0xdff   : > { %7971 = vmatprep.subr.bf16.mxu1 %v23865_v30  ;;  %v23928_v30 = vld [vmem:[%s32429_s2 + $0x7d4] ss:$20 sps:$4 sm:$0xff]  }
 0xe01   : > { %8013 = vmatpush1.bf16.msra.mxu0 %v23875_v59  ;;  %v23926_v59 = vld [vmem:[%s32429_s2 + $0x7d0] ss:$20 sps:$4 sm:$0xff]  }
 0xe02   : > { %7972 = vmatpush1.bf16.msra.mxu1 %v23863_v57  ;;  %8014 = vmatprep.subr.bf16.mxu0 %v23883_v38  ;;  %v23932_v57 = vld [vmem:[%s32429_s2 + $0x7f8] ss:$20 sps:$4 sm:$0xff]   ;;  %v23934_v38 = vld [vmem:[%s32429_s2 + $0x7fc] ss:$20 sps:$4 sm:$0xff]  }
 0xe03   : > { %7973 = vmatprep.subr.bf16.mxu1 %v23868_v35  ;;  %v23935_v35 = vld [vmem:[%s32429_s2 + $0xa28] ss:$20 sps:$4 sm:$0xff]  }
 0xe05   : > { %8015 = vmatpush1.bf16.msra.mxu0 %v23881_v15  ;;  %v23937_v15 = vld [vmem:[%s32429_s2 + $0xa2c] ss:$20 sps:$4 sm:$0xff]  }
 0xe06   : > { %7974 = vmatpush1.bf16.msra.mxu1 %v23866_v23  ;;  %8016 = vmatprep.subr.bf16.mxu0 %v23889_v4  ;;  %v23938_v23 = vld [vmem:[%s32429_s2 + $0x820] ss:$20 sps:$4 sm:$0xff]   ;;  %v23940_v4 = vld [vmem:[%s32429_s2 + $0x824] ss:$20 sps:$4 sm:$0xff]  }
 0xe07   : > { %7975 = vmatprep.subr.bf16.mxu1 %v23874_v56  ;;  %v23941_v56 = vld [vmem:[%s32429_s2 + $0xa50] ss:$20 sps:$4 sm:$0xff]  }
 0xe09   : > { %8017 = vmatpush1.bf16.msra.mxu0 %v23887_v40  ;;  %v23943_v40 = vld [vmem:[%s32429_s2 + $0xa54] ss:$20 sps:$4 sm:$0xff]  }
 0xe0a   : > { %7976 = vmatpush1.bf16.msra.mxu1 %v23872_v10  ;;  %8018 = vmatprep.subr.bf16.mxu0 %v23895_v31  ;;  %v23946_v10 = vld [vmem:[%s32429_s2 + $0x84c] ss:$20 sps:$4 sm:$0xff]   ;;  %v23949_v31 = vld [vmem:[%s32429_s2 + $0xa7c] ss:$20 sps:$4 sm:$0xff]  }
 0xe0b   : > { %7977 = vmatprep.subr.bf16.mxu1 %v23880_v8  ;;  %v23944_v8 = vld [vmem:[%s32429_s2 + $0x848] ss:$20 sps:$4 sm:$0xff]  }
 0xe0d   : > { %8019 = vmatpush1.bf16.msra.mxu0 %v23893_v17  ;;  %v23947_v17 = vld [vmem:[%s32429_s2 + $0xa78] ss:$20 sps:$4 sm:$0xff]  }
 0xe0e   : > { %7978 = vmatpush1.bf16.msra.mxu1 %v23878_v44  ;;  %8020 = vmatprep.subr.bf16.mxu0 %v23901_v39  ;;  %v23952_v44 = vld [vmem:[%s32429_s2 + $0xaa4] ss:$20 sps:$4 sm:$0xff]   ;;  %v23955_v39 = vld [vmem:[%s32429_s2 + $0xaf4] ss:$20 sps:$4 sm:$0xff]  }
 0xe0f   : > { %7979 = vmatprep.subr.bf16.mxu1 %v23886_v33  ;;  %v23950_v33 = vld [vmem:[%s32429_s2 + $0xaa0] ss:$20 sps:$4 sm:$0xff]  }
 0xe11   : > { %8021 = vmatpush1.bf16.msra.mxu0 %v23899_v24  ;;  %v23958_v24 = vld [vmem:[%s32429_s2 + $0xacc] ss:$20 sps:$4 sm:$0xff]  }
 0xe12   : > { %7980 = vmatpush1.bf16.msra.mxu1 %v23884_v49  ;;  %8022 = vmatprep.subr.bf16.mxu0 %v23907_v27  ;;  %v23956_v49 = vld [vmem:[%s32429_s2 + $0xac8] ss:$20 sps:$4 sm:$0xff]  }
 0xe13   : > { %7981 = vmatprep.subr.bf16.mxu1 %v23892_v11  ;;  %v23967_v27 = vld [vmem:[%s32429_s2 + $0x5fc] ss:$20 sps:$4 sm:$0xff]  }
 0xe15   : > { %8023 = vmatpush1.bf16.msra.mxu0 %v23905_v63 }
 0xe16   : > { %7982 = vmatpush1.bf16.msra.mxu1 %v23890_v45  ;;  %8024 = vmatprep.subr.bf16.mxu0 %v23913_v46 }
 0xe17   : > { %7983 = vmatprep.subr.bf16.mxu1 %v23898_v13 }
 0xe19   : > { %8025 = vmatpush1.bf16.msra.mxu0 %v23911_v32 }
 0xe1a   : > { %7984 = vmatpush1.bf16.msra.mxu1 %v23896_v29  ;;  %8026 = vmatprep.subr.bf16.mxu0 %v23919_v55 }
 0xe1b   : > { %7985 = vmatprep.subr.bf16.mxu1 %v23904_v2 }
 0xe1d   : > { %8027 = vmatpush1.bf16.msra.mxu0 %v23917_v43 }
 0xe1e   : > { %7986 = vmatpush1.bf16.msra.mxu1 %v23902_v41  ;;  %8028 = vmatprep.subr.bf16.mxu0 %v23925_v28 }
 0xe1f   : > { %7987 = vmatprep.subr.bf16.mxu1 %v23910_v6 }
 0xe21   : > { %8029 = vmatpush1.bf16.msra.mxu0 %v23923_v36 }
 0xe22   : > { %7988 = vmatpush1.bf16.msra.mxu1 %v23908_v7  ;;  %8030 = vmatprep.subr.bf16.mxu0 %v23931_v60  ;;  %v23953_v7 = vld [vmem:[%s32429_s2 + $0xaf0] ss:$20 sps:$4 sm:$0xff]  }
 0xe23   : > { %7989 = vmatprep.subr.bf16.mxu1 %v23916_v20 }
 0xe25   : > { %8031 = vmatpush1.bf16.msra.mxu0 %v23929_v21  ;;  %v23961_v21 = vld [vmem:[%s32429_s2 + $0xb1c] ss:$20 sps:$4 sm:$0xff]  }
 0xe26   : > { %7990 = vmatpush1.bf16.msra.mxu1 %v23914_v18  ;;  %8032 = vmatprep.subr.bf16.mxu0 %v23937_v15  ;;  %v23962_v15 = vld [vmem:[%s32429_s2 + $0xb40] ss:$20 sps:$4 sm:$0xff]  }
 0xe27   : > { %7991 = vmatprep.subr.bf16.mxu1 %v23922_v3 }
 0xe29   : > { %8033 = vmatpush1.bf16.msra.mxu0 %v23935_v35 }
 0xe2a   : > { %7992 = vmatpush1.bf16.msra.mxu1 %v23920_v34  ;;  %8034 = vmatprep.subr.bf16.mxu0 %v23943_v40  ;;  %v23959_v34 = vld [vmem:[%s32429_s2 + $0xb18] ss:$20 sps:$4 sm:$0xff]  }
 0xe2b   : > { %7993 = vmatprep.subr.bf16.mxu1 %v23928_v30  ;;  %v23964_v30 = vld [vmem:[%s32429_s2 + $0xb44] ss:$20 sps:$4 sm:$0xff]  }
 0xe2c   : > { %v23965_v40 = vld [vmem:[%s32429_s2 + $0x5f8] ss:$20 sps:$4 sm:$0xff]  }
 0xe2d   : > { %8035 = vmatpush1.bf16.msra.mxu0 %v23941_v56 }
 0xe2e   : > { %7994 = vmatpush1.bf16.msra.mxu1 %v23926_v59  ;;  %8036 = vmatprep.subr.bf16.mxu0 %v23949_v31 }
 0xe2f   : > { %7995 = vmatprep.subr.bf16.mxu1 %v23934_v38 }
 0xe31   : > { %8037 = vmatpush1.bf16.msra.mxu0 %v23947_v17 }
 0xe32   : > { %7996 = vmatpush1.bf16.msra.mxu1 %v23932_v57  ;;  %8038 = vmatprep.subr.bf16.mxu0 %v23952_v44  ;;  %v23973_v44 = vld [vmem:[%s32429_s2 + $0x624] ss:$20 sps:$4 sm:$0xff]  }
 0xe33   : > { %7997 = vmatprep.subr.bf16.mxu1 %v23940_v4 }
 0xe35   : > { %8039 = vmatpush1.bf16.msra.mxu0 %v23950_v33  ;;  %v23971_v33 = vld [vmem:[%s32429_s2 + $0x620] ss:$20 sps:$4 sm:$0xff]  }
 0xe36   : > { %7998 = vmatpush1.bf16.msra.mxu1 %v23938_v23  ;;  %8040 = vmatprep.subr.bf16.mxu0 %v23958_v24  ;;  %v23976_v24 = vld [vmem:[%s32429_s2 + $0xb94] ss:$20 sps:$4 sm:$0xff]  }
 0xe37   : > { %7999 = vmatprep.subr.bf16.mxu1 %v23946_v10  ;;  %v23970_v10 = vld [vmem:[%s32429_s2 + $0xb6c] ss:$20 sps:$4 sm:$0xff]  }
 0xe39   : > { %8041 = vmatpush1.bf16.msra.mxu0 %v23956_v49  ;;  %v23979_v49 = vld [vmem:[%s32429_s2 + $0x64c] ss:$20 sps:$4 sm:$0xff]  }
 0xe3a   : > { %8000 = vmatpush1.bf16.msra.mxu1 %v23944_v8  ;;  %8092 = vmatprep.subr.bf16.mxu0 %v23967_v27  ;;  %v23974_v27 = vld [vmem:[%s32429_s2 + $0xb90] ss:$20 sps:$4 sm:$0xff]  }
 0xe3b   : > { %8051 = vmatprep.subr.bf16.mxu1 %v23955_v39  ;;  %v23968_v39 = vld [vmem:[%s32429_s2 + $0xb68] ss:$20 sps:$4 sm:$0xff]  }
 0xeb7   : > { %v28066_v11 = vpop.f32.mrb[120].mxu0 }
 0xeb8   : > { %v28068_v63 = vpop.f32.mrb[121].mxu0 }
 0xeb9   : > { %v6300_v45 = vpop.f32.mrb[122].mxu0 }
 0xeba   : > { %v6301_v46 = vpop.f32.mrb[123].mxu0  ;;  %v23977_v45 = vld [vmem:[%s32429_s2 + $0x648] ss:$20 sps:$4 sm:$0xff]  }
 0xebb   : > { %v23982_v46 = vld [vmem:[%s32429_s2 + $0xbbc] ss:$20 sps:$4 sm:$0xff]  }
 0xebf   : > { %v28070_v13 = vpop.f32.mrb[124].mxu0 }
 0xec0   : > { %v28072_v32 = vpop.f32.mrb[125].mxu0 }
 0xec1   : > { %v6341_v29 = vpop.f32.mrb[126].mxu0 }
 0xec2   : > { %v6342_v55 = vpop.f32.mrb[127].mxu0  ;;  %v23985_v29 = vld [vmem:[%s32429_s2 + $0x674] ss:$20 sps:$4 sm:$0xff]  }
 0xec3   : > { %v23980_v55 = vld [vmem:[%s32429_s2 + $0xbb8] ss:$20 sps:$4 sm:$0xff]  }
 0xec7   : > { %v6655_v2 = vpop.f32.mrb[128].mxu0 }
 0xec8   : > { %v28074_v43 = vpop.f32.mrb[128].mxu1  ;;  %v28076_v41 = vpack.c.bf16 %v6655_v2, %v6655_v2  ;;  %v6657_v28 = vpop.f32.mrb[129].mxu0  ;;  %v23983_v2 = vld [vmem:[%s32429_s2 + $0x670] ss:$20 sps:$4 sm:$0xff]  }
 0xec9   : > { %v23018_v6 = vpop.f32.mrb[129].mxu1  ;;  %v28078_v36 = vpack.c.bf16 %v6657_v28, %v6657_v28  ;;  %v6659_v60 = vpop.f32.mrb[130].mxu0  ;;  %v23991_v28 = vld [vmem:[%s32429_s2 + $0x87c] ss:$20 sps:$4 sm:$0xff]  }
 0xeca   : > { %v6381_v20 = vpop.f32.mrb[130].mxu1  ;;  %v6660_v18 = vpop.f32.mrb[131].mxu0  ;;  %v23988_v6 = vld [vmem:[%s32429_s2 + $0x69c] ss:$20 sps:$4 sm:$0xff]   ;;  %v23989_v60 = vld [vmem:[%s32429_s2 + $0x878] ss:$20 sps:$4 sm:$0xff]  }
 0xecb   : > { %v23019_v3 = vpop.f32.mrb[131].mxu1  ;;  %8001 = vmatprep.mubr.bf16.mxu1 %v28078_v36  ;;  %v23986_v20 = vld [vmem:[%s32429_s2 + $0x698] ss:$20 sps:$4 sm:$0xff]  }
 0xecc   : > { %8002 = vmatmul.mubr.bf16.vlgmr.msra.gmra.mrb[136].mxu1 %v28076_v41  ;;  %v23994_v18 = vld [vmem:[%s32429_s2 + $0x6c4] ss:$20 sps:$4 sm:$0xff]   ;;  %v23995_v3 = vld [vmem:[%s32429_s2 + $0x8a0] ss:$20 sps:$4 sm:$0xff]  }
 0xecd   : > { %8052 = vmatpush1.bf16.msra.mxu1 %v23953_v7  ;;  %8083 = vmatprep.mubr.bf16.mxu1 %v25793_v53 }
 0xece   : > { %8053 = vmatprep.subr.bf16.mxu1 %v23961_v21  ;;  %v23997_v21 = vld [vmem:[%s32429_s2 + $0x8a4] ss:$20 sps:$4 sm:$0xff]  }
 0xecf   : > { %v6737_v59 = vpop.f32.mrb[132].mxu0 }
 0xed0   : > { %v6696_v57 = vpop.f32.mrb[132].mxu1  ;;  %v23026_v38 = vpop.f32.mrb[133].mxu0  ;;  %v28150_v7 = vpack.c.bf16 %v6737_v59, %v6737_v59  ;;  %v24000_v59 = vld [vmem:[%s32429_s2 + $0x6ec] ss:$20 sps:$4 sm:$0xff]  }
 0xed1   : > { %v6698_v35 = vpop.f32.mrb[133].mxu1  ;;  %8054 = vmatpush1.bf16.msra.mxu1 %v23959_v34  ;;  %v6740_v23 = vpop.f32.mrb[134].mxu0  ;;  %v28106_v8 = vpack.c.bf16 %v6696_v57, %v6696_v57  ;;  %v23992_v34 = vld [vmem:[%s32429_s2 + $0x6c0] ss:$20 sps:$4 sm:$0xff]   ;;  %v24001_v57 = vld [vmem:[%s32429_s2 + $0x8c8] ss:$20 sps:$4 sm:$0xff]  }
 0xed2   : > { %v28098_v4 = vpack.c.bf16 %v6698_v35, %v6698_v35  ;;  %v6700_v56 = vpop.f32.mrb[134].mxu1  ;;  %8055 = vmatprep.subr.bf16.mxu1 %v23964_v30  ;;  %v23027_v31 = vpop.f32.mrb[135].mxu0  ;;  %v24003_v30 = vld [vmem:[%s32429_s2 + $0x8cc] ss:$20 sps:$4 sm:$0xff]   ;;  %v23998_v38 = vld [vmem:[%s32429_s2 + $0x6e8] ss:$20 sps:$4 sm:$0xff]  }
 0xed3   : > { %v6701_v17 = vpop.f32.mrb[135].mxu1  ;;  %v24009_v35 = vld [vmem:[%s32429_s2 + $0x8f4] ss:$20 sps:$4 sm:$0xff]   ;;  %v24007_v23 = vld [vmem:[%s32429_s2 + $0x8f0] ss:$20 sps:$4 sm:$0xff]  }
 0xed4   : > { %8042 = vmatprep.mubr.bf16.mxu0 %v28098_v4  ;;  %v24004_v56 = vld [vmem:[%s32429_s2 + $0x710] ss:$20 sps:$4 sm:$0xff]   ;;  %v24013_v31 = vld [vmem:[%s32429_s2 + $0x918] ss:$20 sps:$4 sm:$0xff]  }
 0xed5   : > { %8043 = vmatmul.mubr.bf16.vlgmr.msra.gmra.mrb[136].mxu0 %v28106_v8  ;;  %8056 = vmatpush1.bf16.msra.mxu1 %v23962_v15  ;;  %v24006_v15 = vld [vmem:[%s32429_s2 + $0x714] ss:$20 sps:$4 sm:$0xff]   ;;  %v24010_v17 = vld [vmem:[%s32429_s2 + $0x738] ss:$20 sps:$4 sm:$0xff]  }
 0xed6   : > { %8093 = vmatpush1.bf16.msra.mxu0 %v23965_v40  ;;  %8057 = vmatprep.subr.bf16.mxu1 %v23970_v10  ;;  %v24015_v40 = vld [vmem:[%s32429_s2 + $0x91c] ss:$20 sps:$4 sm:$0xff]  }
 0xed7   : > { %8094 = vmatprep.subr.bf16.mxu0 %v23973_v44  ;;  %8124 = vmatprep.mubr.bf16.mxu0 %v28078_v36  ;;  %v24012_v10 = vld [vmem:[%s32429_s2 + $0x73c] ss:$20 sps:$4 sm:$0xff]   ;;  %v24021_v44 = vld [vmem:[%s32429_s2 + $0x944] ss:$20 sps:$4 sm:$0xff]  }
 0xed9   : > { %8058 = vmatpush1.bf16.msra.mxu1 %v23968_v39  ;;  %v24018_v39 = vld [vmem:[%s32429_s2 + $0x764] ss:$20 sps:$4 sm:$0xff]  }
 0xeda   : > { %8095 = vmatpush1.bf16.msra.mxu0 %v23971_v33  ;;  %8059 = vmatprep.subr.bf16.mxu1 %v23976_v24  ;;  %v24019_v33 = vld [vmem:[%s32429_s2 + $0x940] ss:$20 sps:$4 sm:$0xff]  }
 0xedb   : > { %8096 = vmatprep.subr.bf16.mxu0 %v23979_v49  ;;  %v24016_v24 = vld [vmem:[%s32429_s2 + $0x760] ss:$20 sps:$4 sm:$0xff]  }
 0xedc   : > { %v24027_v49 = vld [vmem:[%s32429_s2 + $0x96c] ss:$20 sps:$4 sm:$0xff]  }
 0xedd   : > { %8060 = vmatpush1.bf16.msra.mxu1 %v23974_v27  ;;  %v24024_v27 = vld [vmem:[%s32429_s2 + $0x78c] ss:$20 sps:$4 sm:$0xff]  }
 0xede   : > { %8097 = vmatpush1.bf16.msra.mxu0 %v23977_v45  ;;  %8061 = vmatprep.subr.bf16.mxu1 %v23982_v46  ;;  %v24025_v45 = vld [vmem:[%s32429_s2 + $0x968] ss:$20 sps:$4 sm:$0xff]  }
 0xedf   : > { %8098 = vmatprep.subr.bf16.mxu0 %v23985_v29  ;;  %v24022_v46 = vld [vmem:[%s32429_s2 + $0x788] ss:$20 sps:$4 sm:$0xff]  }
 0xee0   : > { %v24033_v29 = vld [vmem:[%s32429_s2 + $0x994] ss:$20 sps:$4 sm:$0xff]  }
 0xee1   : > { %8062 = vmatpush1.bf16.msra.mxu1 %v23980_v55  ;;  %v24030_v55 = vld [vmem:[%s32429_s2 + $0x7b4] ss:$20 sps:$4 sm:$0xff]  }
 0xee2   : > { %8099 = vmatpush1.bf16.msra.mxu0 %v23983_v2  ;;  %8133 = vmatprep.subr.bf16.mxu1 %v23991_v28  ;;  %v24031_v2 = vld [vmem:[%s32429_s2 + $0x990] ss:$20 sps:$4 sm:$0xff]  }
 0xee3   : > { %8100 = vmatprep.subr.bf16.mxu0 %v23988_v6  ;;  %v24028_v28 = vld [vmem:[%s32429_s2 + $0x7b0] ss:$20 sps:$4 sm:$0xff]  }
 0xee4   : > { %20025 = vmatmul.mubr.msk.bf16.vlgmr.msra.gmra.mrb[140].mxu1 %vm7965_vm5, %v28150_v7  ;;  %v24039_v6 = vld [vmem:[%s32429_s2 + $0x9bc] ss:$20 sps:$4 sm:$0xff]  }
 0xee5   : > { %8134 = vmatpush1.bf16.msra.mxu1 %v23989_v60  ;;  %8165 = vmatprep.mubr.bf16.mxu1 %v28098_v4  ;;  %v24036_v60 = vld [vmem:[%s32429_s2 + $0x7dc] ss:$20 sps:$4 sm:$0xff]  }
 0xee6   : > { %8101 = vmatpush1.bf16.msra.mxu0 %v23986_v20  ;;  %8135 = vmatprep.subr.bf16.mxu1 %v23997_v21  ;;  %v24037_v20 = vld [vmem:[%s32429_s2 + $0x9b8] ss:$20 sps:$4 sm:$0xff]  }
 0xee7   : > { %8102 = vmatprep.subr.bf16.mxu0 %v23994_v18  ;;  %v24034_v21 = vld [vmem:[%s32429_s2 + $0x7d8] ss:$20 sps:$4 sm:$0xff]  }
 0xee8   : > { %v24045_v18 = vld [vmem:[%s32429_s2 + $0x9e4] ss:$20 sps:$4 sm:$0xff]  }
 0xee9   : > { %8136 = vmatpush1.bf16.msra.mxu1 %v23995_v3  ;;  %v24042_v3 = vld [vmem:[%s32429_s2 + $0x804] ss:$20 sps:$4 sm:$0xff]  }
 0xeea   : > { %8103 = vmatpush1.bf16.msra.mxu0 %v23992_v34  ;;  %8137 = vmatprep.subr.bf16.mxu1 %v24003_v30  ;;  %v24043_v34 = vld [vmem:[%s32429_s2 + $0x9e0] ss:$20 sps:$4 sm:$0xff]  }
 0xeeb   : > { %8104 = vmatprep.subr.bf16.mxu0 %v24000_v59  ;;  %v24040_v30 = vld [vmem:[%s32429_s2 + $0x800] ss:$20 sps:$4 sm:$0xff]  }
 0xeec   : > { %v24051_v59 = vld [vmem:[%s32429_s2 + $0xa0c] ss:$20 sps:$4 sm:$0xff]  }
 0xeed   : > { %8138 = vmatpush1.bf16.msra.mxu1 %v24001_v57  ;;  %v24048_v57 = vld [vmem:[%s32429_s2 + $0x82c] ss:$20 sps:$4 sm:$0xff]  }
 0xeee   : > { %8105 = vmatpush1.bf16.msra.mxu0 %v23998_v38  ;;  %8139 = vmatprep.subr.bf16.mxu1 %v24009_v35  ;;  %v24049_v38 = vld [vmem:[%s32429_s2 + $0xa08] ss:$20 sps:$4 sm:$0xff]  }
 0xeef   : > { %8106 = vmatprep.subr.bf16.mxu0 %v24006_v15  ;;  %v24046_v35 = vld [vmem:[%s32429_s2 + $0x828] ss:$20 sps:$4 sm:$0xff]  }
 0xef0   : > { %v24057_v15 = vld [vmem:[%s32429_s2 + $0xa34] ss:$20 sps:$4 sm:$0xff]  }
 0xef1   : > { %8140 = vmatpush1.bf16.msra.mxu1 %v24007_v23  ;;  %v24054_v23 = vld [vmem:[%s32429_s2 + $0x854] ss:$20 sps:$4 sm:$0xff]  }
 0xef2   : > { %8107 = vmatpush1.bf16.msra.mxu0 %v24004_v56  ;;  %8141 = vmatprep.subr.bf16.mxu1 %v24015_v40  ;;  %v24055_v56 = vld [vmem:[%s32429_s2 + $0xa30] ss:$20 sps:$4 sm:$0xff]  }
 0xef3   : > { %8108 = vmatprep.subr.bf16.mxu0 %v24012_v10  ;;  %v24052_v40 = vld [vmem:[%s32429_s2 + $0x850] ss:$20 sps:$4 sm:$0xff]  }
 0xef4   : > { %v24060_v10 = vld [vmem:[%s32429_s2 + $0xa5c] ss:$20 sps:$4 sm:$0xff]  }
 0xef5   : > { %8142 = vmatpush1.bf16.msra.mxu1 %v24013_v31  ;;  %v24063_v31 = vld [vmem:[%s32429_s2 + $0xafc] ss:$20 sps:$4 sm:$0xff]  }
 0xef6   : > { %8109 = vmatpush1.bf16.msra.mxu0 %v24010_v17  ;;  %8143 = vmatprep.subr.bf16.mxu1 %v24021_v44  ;;  %v24058_v17 = vld [vmem:[%s32429_s2 + $0xa58] ss:$20 sps:$4 sm:$0xff]  }
 0xef7   : > { %8110 = vmatprep.subr.bf16.mxu0 %v24018_v39  ;;  %v24061_v44 = vld [vmem:[%s32429_s2 + $0xaf8] ss:$20 sps:$4 sm:$0xff]  }
 0xef8   : > { %v24066_v39 = vld [vmem:[%s32429_s2 + $0xa84] ss:$20 sps:$4 sm:$0xff]  }
 0xef9   : > { %8144 = vmatpush1.bf16.msra.mxu1 %v24019_v33  ;;  %v24069_v33 = vld [vmem:[%s32429_s2 + $0xb24] ss:$20 sps:$4 sm:$0xff]  }
 0xefa   : > { %8111 = vmatpush1.bf16.msra.mxu0 %v24016_v24  ;;  %8145 = vmatprep.subr.bf16.mxu1 %v24027_v49  ;;  %v24064_v24 = vld [vmem:[%s32429_s2 + $0xa80] ss:$20 sps:$4 sm:$0xff]  }
 0xefb   : > { %8112 = vmatprep.subr.bf16.mxu0 %v24024_v27  ;;  %v24067_v49 = vld [vmem:[%s32429_s2 + $0xb20] ss:$20 sps:$4 sm:$0xff]  }
 0xefc   : > { %v24072_v27 = vld [vmem:[%s32429_s2 + $0xaac] ss:$20 sps:$4 sm:$0xff]  }
 0xefd   : > { %8146 = vmatpush1.bf16.msra.mxu1 %v24025_v45  ;;  %v24075_v45 = vld [vmem:[%s32429_s2 + $0xb4c] ss:$20 sps:$4 sm:$0xff]  }
 0xefe   : > { %8113 = vmatpush1.bf16.msra.mxu0 %v24022_v46  ;;  %8147 = vmatprep.subr.bf16.mxu1 %v24033_v29  ;;  %v24070_v46 = vld [vmem:[%s32429_s2 + $0xaa8] ss:$20 sps:$4 sm:$0xff]  }
 0xeff   : > { %8114 = vmatprep.subr.bf16.mxu0 %v24030_v55  ;;  %v24073_v29 = vld [vmem:[%s32429_s2 + $0xb48] ss:$20 sps:$4 sm:$0xff]  }
 0xf00   : > { %v24078_v55 = vld [vmem:[%s32429_s2 + $0xad4] ss:$20 sps:$4 sm:$0xff]  }
 0xf01   : > { %8148 = vmatpush1.bf16.msra.mxu1 %v24031_v2  ;;  %v24081_v2 = vld [vmem:[%s32429_s2 + $0xb74] ss:$20 sps:$4 sm:$0xff]  }
 0xf02   : > { %8115 = vmatpush1.bf16.msra.mxu0 %v24028_v28  ;;  %8149 = vmatprep.subr.bf16.mxu1 %v24039_v6  ;;  %v24076_v28 = vld [vmem:[%s32429_s2 + $0xad0] ss:$20 sps:$4 sm:$0xff]  }
 0xf03   : > { %8116 = vmatprep.subr.bf16.mxu0 %v24036_v60  ;;  %v24079_v6 = vld [vmem:[%s32429_s2 + $0xb70] ss:$20 sps:$4 sm:$0xff]   ;;  %v24085_v60 = vld [vmem:[%s32429_s2 + $0x740] ss:$20 sps:$4 sm:$0xff]  }
 0xf05   : > { %8150 = vmatpush1.bf16.msra.mxu1 %v24037_v20  ;;  %v24084_v20 = vld [vmem:[%s32429_s2 + $0xb9c] ss:$20 sps:$4 sm:$0xff]  }
 0xf06   : > { %8117 = vmatpush1.bf16.msra.mxu0 %v24034_v21  ;;  %8151 = vmatprep.subr.bf16.mxu1 %v24045_v18  ;;  %v24086_v21 = vld [vmem:[%s32429_s2 + $0x600] ss:$20 sps:$4 sm:$0xff]   ;;  %v24082_v18 = vld [vmem:[%s32429_s2 + $0xb98] ss:$20 sps:$4 sm:$0xff]  }
 0xf07   : > { %8118 = vmatprep.subr.bf16.mxu0 %v24042_v3  ;;  %v24090_v3 = vld [vmem:[%s32429_s2 + $0x768] ss:$20 sps:$4 sm:$0xff]  }
 0xf09   : > { %8152 = vmatpush1.bf16.msra.mxu1 %v24043_v34  ;;  %v24089_v34 = vld [vmem:[%s32429_s2 + $0xbc4] ss:$20 sps:$4 sm:$0xff]  }
 0xf0a   : > { %8119 = vmatpush1.bf16.msra.mxu0 %v24040_v30  ;;  %8153 = vmatprep.subr.bf16.mxu1 %v24051_v59  ;;  %v24091_v30 = vld [vmem:[%s32429_s2 + $0x628] ss:$20 sps:$4 sm:$0xff]   ;;  %v24087_v59 = vld [vmem:[%s32429_s2 + $0xbc0] ss:$20 sps:$4 sm:$0xff]  }
 0xf0b   : > { %8120 = vmatprep.subr.bf16.mxu0 %v24048_v57  ;;  %v24092_v57 = vld [vmem:[%s32429_s2 + $0x790] ss:$20 sps:$4 sm:$0xff]  }
 0xf0d   : > { %8154 = vmatpush1.bf16.msra.mxu1 %v24049_v38  ;;  %v24093_v38 = vld [vmem:[%s32429_s2 + $0x9c0] ss:$20 sps:$4 sm:$0xff]  }
 0xf0e   : > { %8121 = vmatpush1.bf16.msra.mxu0 %v24046_v35  ;;  %8155 = vmatprep.subr.bf16.mxu1 %v24057_v15  ;;  %v24095_v35 = vld [vmem:[%s32429_s2 + $0x880] ss:$20 sps:$4 sm:$0xff]   ;;  %v24096_v15 = vld [vmem:[%s32429_s2 + $0x7b8] ss:$20 sps:$4 sm:$0xff]  }
 0xf0f   : > { %8122 = vmatprep.subr.bf16.mxu0 %v24054_v23  ;;  %v24097_v23 = vld [vmem:[%s32429_s2 + $0x9e8] ss:$20 sps:$4 sm:$0xff]  }
 0xf11   : > { %8156 = vmatpush1.bf16.msra.mxu1 %v24055_v56  ;;  %v24098_v56 = vld [vmem:[%s32429_s2 + $0x678] ss:$20 sps:$4 sm:$0xff]  }
 0xf12   : > { %8123 = vmatpush1.bf16.msra.mxu0 %v24052_v40  ;;  %8157 = vmatprep.subr.bf16.mxu1 %v24060_v10  ;;  %v24099_v40 = vld [vmem:[%s32429_s2 + $0x8a8] ss:$20 sps:$4 sm:$0xff]   ;;  %v24100_v10 = vld [vmem:[%s32429_s2 + $0x7e0] ss:$20 sps:$4 sm:$0xff]  }
 0xf13   : > { %8174 = vmatprep.subr.bf16.mxu0 %v24063_v31  ;;  %v24101_v31 = vld [vmem:[%s32429_s2 + $0xa10] ss:$20 sps:$4 sm:$0xff]  }
 0xf15   : > { %8125 = vmatmul.mubr.bf16.vlgmr.msra.gmra.mrb[140].mxu0 %v28076_v41  ;;  %8158 = vmatpush1.bf16.msra.mxu1 %v24058_v17  ;;  %v24102_v17 = vld [vmem:[%s32429_s2 + $0x6a0] ss:$20 sps:$4 sm:$0xff]  }
 0xf16   : > { %8175 = vmatpush1.bf16.msra.mxu0 %v24061_v44  ;;  %8159 = vmatprep.subr.bf16.mxu1 %v24066_v39  ;;  %v24104_v44 = vld [vmem:[%s32429_s2 + $0x808] ss:$20 sps:$4 sm:$0xff]   ;;  %v24105_v39 = vld [vmem:[%s32429_s2 + $0xa38] ss:$20 sps:$4 sm:$0xff]  }
 0xf17   : > { %8176 = vmatprep.subr.bf16.mxu0 %v24069_v33  ;;  %8206 = vmatprep.mubr.bf16.mxu0 %v25793_v53  ;;  %v24106_v33 = vld [vmem:[%s32429_s2 + $0x6c8] ss:$20 sps:$4 sm:$0xff]  }
 0xf19   : > { %8160 = vmatpush1.bf16.msra.mxu1 %v24064_v24  ;;  %v24107_v24 = vld [vmem:[%s32429_s2 + $0x8f8] ss:$20 sps:$4 sm:$0xff]  }
 0xf1a   : > { %8177 = vmatpush1.bf16.msra.mxu0 %v24067_v49  ;;  %8161 = vmatprep.subr.bf16.mxu1 %v24072_v27  ;;  %v24108_v49 = vld [vmem:[%s32429_s2 + $0x830] ss:$20 sps:$4 sm:$0xff]   ;;  %v24109_v27 = vld [vmem:[%s32429_s2 + $0xa60] ss:$20 sps:$4 sm:$0xff]  }
 0xf1b   : > { %8178 = vmatprep.subr.bf16.mxu0 %v24075_v45  ;;  %v24110_v45 = vld [vmem:[%s32429_s2 + $0x6f0] ss:$20 sps:$4 sm:$0xff]  }
 0xf1d   : > { %8162 = vmatpush1.bf16.msra.mxu1 %v24070_v46  ;;  %v24111_v46 = vld [vmem:[%s32429_s2 + $0x920] ss:$20 sps:$4 sm:$0xff]  }
 0xf1e   : > { %8179 = vmatpush1.bf16.msra.mxu0 %v24073_v29  ;;  %8163 = vmatprep.subr.bf16.mxu1 %v24078_v55  ;;  %v24112_v29 = vld [vmem:[%s32429_s2 + $0x858] ss:$20 sps:$4 sm:$0xff]   ;;  %v24113_v55 = vld [vmem:[%s32429_s2 + $0xa88] ss:$20 sps:$4 sm:$0xff]  }
 0xf1f   : > { %8180 = vmatprep.subr.bf16.mxu0 %v24081_v2  ;;  %v24114_v2 = vld [vmem:[%s32429_s2 + $0x718] ss:$20 sps:$4 sm:$0xff]  }
 0xf21   : > { %8164 = vmatpush1.bf16.msra.mxu1 %v24076_v28  ;;  %v24115_v28 = vld [vmem:[%s32429_s2 + $0x948] ss:$20 sps:$4 sm:$0xff]  }
 0xf22   : > { %8181 = vmatpush1.bf16.msra.mxu0 %v24079_v6  ;;  %22378 = vmatprep.subr.bf16.mxu1 %v24085_v60  ;;  %v24116_v6 = vld [vmem:[%s32429_s2 + $0xab0] ss:$20 sps:$4 sm:$0xff]   ;;  %v24118_v60 = vld [vmem:[%s32429_s2 + $0xb00] ss:$20 sps:$4 sm:$0xff]  }
 0xf23   : > { %8182 = vmatprep.subr.bf16.mxu0 %v24084_v20  ;;  %v24117_v20 = vld [vmem:[%s32429_s2 + $0x970] ss:$20 sps:$4 sm:$0xff]  }
 0xf24   : > { %8166 = vmatmul.mubr.bf16.vlgmr.msra.gmra.mrb[144].mxu1 %v28106_v8 }
 0xf25   : > { %22379 = vmatpush3.bf16.msra.mxu1 %v24086_v21  ;;  %8247 = vmatprep.mubr.bf16.mxu1 %v28078_v36  ;;  %v24094_v36 = vld [vmem:[%s32429_s2 + $0x650] ss:$20 sps:$4 sm:$0xff]   ;;  %v24119_v21 = vld [vmem:[%s32429_s2 + $0xad8] ss:$20 sps:$4 sm:$0xff]  }
 0xf26   : > { %8183 = vmatpush1.bf16.msra.mxu0 %v24082_v18  ;;  %22380 = vmatprep.subr.bf16.mxu1 %v24090_v3  ;;  %v24121_v18 = vld [vmem:[%s32429_s2 + $0xb28] ss:$20 sps:$4 sm:$0xff]   ;;  %v24120_v3 = vld [vmem:[%s32429_s2 + $0x998] ss:$20 sps:$4 sm:$0xff]  }
 0xf27   : > { %8184 = vmatprep.subr.bf16.mxu0 %v24089_v34  ;;  %v24125_v34 = vld [vmem:[%s32429_s2 + $0xb50] ss:$20 sps:$4 sm:$0xff]  }
 0xf29   : > { %22381 = vmatpush3.bf16.msra.mxu1 %v24091_v30  ;;  %v24122_v30 = vld [vmem:[%s32429_s2] ss:$20 sps:$4 sm:$0xff]  }
 0xf2a   : > { %8185 = vmatpush1.bf16.msra.mxu0 %v24087_v59  ;;  %22382 = vmatprep.subr.bf16.mxu1 %v24092_v57  ;;  %v24128_v59 = vld [vmem:[%s32429_s2 + $0x2c] ss:$20 sps:$4 sm:$0xff]   ;;  %v28482_v57 = vpack.c.bf16 %v28068_v63, %v28068_v63  ;;  %v24132_v63 = vld [vmem:[%s32429_s2 + $0x54] ss:$20 sps:$4 sm:$0xff]  }
 0xf2b   : > { %22400 = vmatprep.subr.bf16.mxu0 %v24093_v38  ;;  %v24129_v38 = vld [vmem:[%s32429_s2 + $0xb78] ss:$20 sps:$4 sm:$0xff]  }
 0xf2d   : > { %20026 = vmatmul.mubr.msk.bf16.vlgmr.msra.gmra.mrb[144].mxu0 %vm7965_vm5, %v28150_v7  ;;  %22383 = vmatpush3.bf16.msra.mxu1 %v24094_v36  ;;  %v24126_v36 = vld [vmem:[%s32429_s2 + $0x28] ss:$20 sps:$4 sm:$0xff]  }
 0xf2e   : > { %22401 = vmatpush3.bf16.msra.mxu0 %v24095_v35  ;;  %8287 = vmatprep.mubr.bf16.mxu0 %v28098_v4  ;;  %v24103_v4 = vld [vmem:[%s32429_s2 + $0x8d0] ss:$20 sps:$4 sm:$0xff]  }
 0xf2f   : > { %22384 = vmatprep.subr.bf16.mxu1 %v24096_v15  ;;  %22402 = vmatprep.subr.bf16.mxu0 %v24097_v23  ;;  %v24130_v35 = vld [vmem:[%s32429_s2 + $0x50] ss:$20 sps:$4 sm:$0xff]   ;;  %v24137_v23 = vld [vmem:[%s32429_s2 + $0xbc8] ss:$20 sps:$4 sm:$0xff]  }
 0xf30   : > { %v24136_v15 = vld [vmem:[%s32429_s2 + $0x7c] ss:$20 sps:$4 sm:$0xff]  }
 0xf31   : > { %22385 = vmatpush3.bf16.msra.mxu1 %v24098_v56  ;;  %v24134_v56 = vld [vmem:[%s32429_s2 + $0x78] ss:$20 sps:$4 sm:$0xff]  }
 0xf32   : > { %22403 = vmatpush3.bf16.msra.mxu0 %v24099_v40  ;;  %22386 = vmatprep.subr.bf16.mxu1 %v24100_v10  ;;  %v24143_v40 = vld [vmem:[%s32429_s2 + $0x284] ss:$20 sps:$4 sm:$0xff]  }
 0xf33   : > { %22404 = vmatprep.subr.bf16.mxu0 %v24101_v31  ;;  %v24140_v10 = vld [vmem:[%s32429_s2 + $0xa4] ss:$20 sps:$4 sm:$0xff]   ;;  %v24141_v31 = vld [vmem:[%s32429_s2 + $0x280] ss:$20 sps:$4 sm:$0xff]  }
 0xf35   : > { %22387 = vmatpush3.bf16.msra.mxu1 %v24102_v17  ;;  %v24138_v17 = vld [vmem:[%s32429_s2 + $0xa0] ss:$20 sps:$4 sm:$0xff]  }
 0xf36   : > { %22405 = vmatpush3.bf16.msra.mxu0 %v24103_v4  ;;  %22388 = vmatprep.subr.bf16.mxu1 %v24104_v44  ;;  %v24149_v4 = vld [vmem:[%s32429_s2 + $0x2ac] ss:$20 sps:$4 sm:$0xff]   ;;  %v28530_v44 = vpack.c.bf16 %v28072_v32, %v28072_v32  ;;  %v24144_v32 = vld [vmem:[%s32429_s2 + $0xc8] ss:$20 sps:$4 sm:$0xff]  }
 0xf37   : > { %22406 = vmatprep.subr.bf16.mxu0 %v24105_v39  ;;  %v24146_v39 = vld [vmem:[%s32429_s2 + $0xcc] ss:$20 sps:$4 sm:$0xff]  }
 0xf39   : > { %22389 = vmatpush3.bf16.msra.mxu1 %v24106_v33  ;;  %v24147_v33 = vld [vmem:[%s32429_s2 + $0x2a8] ss:$20 sps:$4 sm:$0xff]  }
 0xf3a   : > { %22407 = vmatpush3.bf16.msra.mxu0 %v24107_v24  ;;  %22390 = vmatprep.subr.bf16.mxu1 %v24108_v49  ;;  %v24155_v24 = vld [vmem:[%s32429_s2 + $0x2d4] ss:$20 sps:$4 sm:$0xff]   ;;  %v24153_v49 = vld [vmem:[%s32429_s2 + $0x2d0] ss:$20 sps:$4 sm:$0xff]  }
 0xf3b   : > { %22408 = vmatprep.subr.bf16.mxu0 %v24109_v27  ;;  %v24150_v27 = vld [vmem:[%s32429_s2 + $0xf0] ss:$20 sps:$4 sm:$0xff]  }
 0xf3d   : > { %22391 = vmatpush3.bf16.msra.mxu1 %v24110_v45  ;;  %v24161_v45 = vld [vmem:[%s32429_s2 + $0x2fc] ss:$20 sps:$4 sm:$0xff]  }
 0xf3e   : > { %22409 = vmatpush3.bf16.msra.mxu0 %v24111_v46  ;;  %22392 = vmatprep.subr.bf16.mxu1 %v24112_v29  ;;  %v24158_v46 = vld [vmem:[%s32429_s2 + $0x11c] ss:$20 sps:$4 sm:$0xff]   ;;  %v24159_v29 = vld [vmem:[%s32429_s2 + $0x2f8] ss:$20 sps:$4 sm:$0xff]  }
 0xf3f   : > { %22410 = vmatprep.subr.bf16.mxu0 %v24113_v55  ;;  %v24156_v55 = vld [vmem:[%s32429_s2 + $0x118] ss:$20 sps:$4 sm:$0xff]  }
 0xf41   : > { %22393 = vmatpush3.bf16.msra.mxu1 %v24114_v2  ;;  %v24167_v2 = vld [vmem:[%s32429_s2 + $0x324] ss:$20 sps:$4 sm:$0xff]  }
 0xf42   : > { %22411 = vmatpush3.bf16.msra.mxu0 %v24115_v28  ;;  %23028 = vmatprep.subr.bf16.mxu1 %v25792_v12  ;;  %v24164_v28 = vld [vmem:[%s32429_s2 + $0x144] ss:$20 sps:$4 sm:$0xff]  }
 0xf43   : > { %22412 = vmatprep.subr.bf16.mxu0 %v24116_v6  ;;  %v24165_v6 = vld [vmem:[%s32429_s2 + $0x320] ss:$20 sps:$4 sm:$0xff]  }
 0xf44   : > { %8248 = vmatmul.mubr.bf16.vlgmr.msra.gmra.mrb[148].mxu1 %v28076_v41  ;;  %v24124_v41 = vld [vmem:[%s32429_s2 + $0x4] ss:$20 sps:$4 sm:$0xff]  }
 0xf45   : > { %23029 = vmatpush3.bf16.msra.mxu1 %v24118_v60  ;;  %23040 = vmatprep.mubr.msk.bf16.mxu1 %vm25794_vm2, %v25792_v12  ;;  %v24162_v60 = vld [vmem:[%s32429_s2 + $0x140] ss:$20 sps:$4 sm:$0xff]  }
 0xf46   : > { %22413 = vmatpush3.bf16.msra.mxu0 %v24117_v20  ;;  %23030 = vmatprep.subr.bf16.mxu1 %v25792_v12  ;;  %v24173_v20 = vld [vmem:[%s32429_s2 + $0x34c] ss:$20 sps:$4 sm:$0xff]  }
 0xf47   : > { %22414 = vmatprep.subr.bf16.mxu0 %v24119_v21  ;;  %v24170_v21 = vld [vmem:[%s32429_s2 + $0x16c] ss:$20 sps:$4 sm:$0xff]  }
 0xf49   : > { %23031 = vmatpush3.bf16.msra.mxu1 %v24121_v18  ;;  %v24171_v18 = vld [vmem:[%s32429_s2 + $0x348] ss:$20 sps:$4 sm:$0xff]  }
 0xf4a   : > { %22415 = vmatpush3.bf16.msra.mxu0 %v24120_v3  ;;  %23032 = vmatprep.subr.bf16.mxu1 %v25792_v12  ;;  %v24168_v3 = vld [vmem:[%s32429_s2 + $0x168] ss:$20 sps:$4 sm:$0xff]  }
 0xf4b   : > { %9326 = vmatprep.subr.bf16.mxu0 %v24124_v41  ;;  %v24179_v41 = vld [vmem:[%s32429_s2 + $0x374] ss:$20 sps:$4 sm:$0xff]  }
 0xf4d   : > { %8288 = vmatmul.mubr.bf16.vlgmr.msra.gmra.mrb[148].mxu0 %v28106_v8  ;;  %23033 = vmatpush3.bf16.msra.mxu1 %v24125_v34  ;;  %v24133_v8 = vld [vmem:[%s32429_s2 + $0xba0] ss:$20 sps:$4 sm:$0xff]  }
 0xf4e   : > { %9327 = vmatpush1.bf16.msra.mxu0 %v24122_v30  ;;  %9358 = vmatprep.mubr.bf16.mxu0 %v28482_v57  ;;  %v24176_v34 = vld [vmem:[%s32429_s2 + $0x194] ss:$20 sps:$4 sm:$0xff]   ;;  %v24177_v30 = vld [vmem:[%s32429_s2 + $0x370] ss:$20 sps:$4 sm:$0xff]  }
 0xf4f   : > { %23034 = vmatprep.subr.bf16.mxu1 %v25792_v12  ;;  %9328 = vmatprep.subr.bf16.mxu0 %v24128_v59  ;;  %v24174_v59 = vld [vmem:[%s32429_s2 + $0x190] ss:$20 sps:$4 sm:$0xff]  }
 0xf51   : > { %23035 = vmatpush3.bf16.msra.mxu1 %v24129_v38  ;;  %v24185_v38 = vld [vmem:[%s32429_s2 + $0x39c] ss:$20 sps:$4 sm:$0xff]  }
 0xf52   : > { %9329 = vmatpush1.bf16.msra.mxu0 %v24126_v36  ;;  %23036 = vmatprep.subr.bf16.mxu1 %v25792_v12  ;;  %v24182_v36 = vld [vmem:[%s32429_s2 + $0x1bc] ss:$20 sps:$4 sm:$0xff]  }
 0xf53   : > { %9330 = vmatprep.subr.bf16.mxu0 %v24132_v63  ;;  %v24183_v63 = vld [vmem:[%s32429_s2 + $0x398] ss:$20 sps:$4 sm:$0xff]  }
 0xf55   : > { %23037 = vmatpush3.bf16.msra.mxu1 %v24133_v8  ;;  %v24180_v8 = vld [vmem:[%s32429_s2 + $0x1b8] ss:$20 sps:$4 sm:$0xff]  }
 0xf56   : > { %9331 = vmatpush1.bf16.msra.mxu0 %v24130_v35  ;;  %23038 = vmatprep.subr.bf16.mxu1 %v25792_v12  ;;  %v24191_v35 = vld [vmem:[%s32429_s2 + $0x3c4] ss:$20 sps:$4 sm:$0xff]  }
 0xf57   : > { %9332 = vmatprep.subr.bf16.mxu0 %v24136_v15  ;;  %v24188_v15 = vld [vmem:[%s32429_s2 + $0x1e4] ss:$20 sps:$4 sm:$0xff]  }
 0xf59   : > { %23039 = vmatpush3.bf16.msra.mxu1 %v24137_v23  ;;  %v24189_v23 = vld [vmem:[%s32429_s2 + $0x3c0] ss:$20 sps:$4 sm:$0xff]  }
 0xf5a   : > { %9333 = vmatpush1.bf16.msra.mxu0 %v24134_v56  ;;  %9367 = vmatprep.subr.bf16.mxu1 %v24143_v40  ;;  %v24186_v56 = vld [vmem:[%s32429_s2 + $0x1e0] ss:$20 sps:$4 sm:$0xff]  }
 0xf5b   : > { %9334 = vmatprep.subr.bf16.mxu0 %v24140_v10  ;;  %v24197_v40 = vld [vmem:[%s32429_s2 + $0x3ec] ss:$20 sps:$4 sm:$0xff]  }
 0xf5c   : > { %23041 = vmatmul.mubr.msk.bf16.vlgmr.msra.gmra.mrb[152].mxu1 %vm7965_vm5, %v28150_v7  ;;  %v24152_v7 = vld [vmem:[%s32429_s2 + $0xf4] ss:$20 sps:$4 sm:$0xff]   ;;  %v24194_v10 = vld [vmem:[%s32429_s2 + $0x20c] ss:$20 sps:$4 sm:$0xff]  }
 0xf5d   : > { %9368 = vmatpush1.bf16.msra.mxu1 %v24141_v31  ;;  %9399 = vmatprep.mubr.bf16.mxu1 %v28530_v44  ;;  %v24195_v31 = vld [vmem:[%s32429_s2 + $0x3e8] ss:$20 sps:$4 sm:$0xff]  }
 0xf5e   : > { %9335 = vmatpush1.bf16.msra.mxu0 %v24138_v17  ;;  %9369 = vmatprep.subr.bf16.mxu1 %v24149_v4  ;;  %v24192_v17 = vld [vmem:[%s32429_s2 + $0x208] ss:$20 sps:$4 sm:$0xff]  }
 0xf5f   : > { %9336 = vmatprep.subr.bf16.mxu0 %v24146_v39  ;;  %v24203_v4 = vld [vmem:[%s32429_s2 + $0x414] ss:$20 sps:$4 sm:$0xff]  }
 0xf60   : > { %v24200_v39 = vld [vmem:[%s32429_s2 + $0x234] ss:$20 sps:$4 sm:$0xff]  }
 0xf61   : > { %9370 = vmatpush1.bf16.msra.mxu1 %v24147_v33  ;;  %v24201_v33 = vld [vmem:[%s32429_s2 + $0x410] ss:$20 sps:$4 sm:$0xff]  }
 0xf62   : > { %9337 = vmatpush1.bf16.msra.mxu0 %v24144_v32  ;;  %9371 = vmatprep.subr.bf16.mxu1 %v24155_v24  ;;  %v24198_v32 = vld [vmem:[%s32429_s2 + $0x230] ss:$20 sps:$4 sm:$0xff]  }
 0xf63   : > { %9338 = vmatprep.subr.bf16.mxu0 %v24152_v7  ;;  %v24209_v24 = vld [vmem:[%s32429_s2 + $0x43c] ss:$20 sps:$4 sm:$0xff]  }
 0xf64   : > { %v24206_v7 = vld [vmem:[%s32429_s2 + $0x25c] ss:$20 sps:$4 sm:$0xff]  }
 0xf65   : > { %9372 = vmatpush1.bf16.msra.mxu1 %v24153_v49  ;;  %v24207_v49 = vld [vmem:[%s32429_s2 + $0x438] ss:$20 sps:$4 sm:$0xff]  }
 0xf66   : > { %9339 = vmatpush1.bf16.msra.mxu0 %v24150_v27  ;;  %9373 = vmatprep.subr.bf16.mxu1 %v24161_v45  ;;  %v24204_v27 = vld [vmem:[%s32429_s2 + $0x258] ss:$20 sps:$4 sm:$0xff]  }
 0xf67   : > { %9340 = vmatprep.subr.bf16.mxu0 %v24158_v46  ;;  %v24212_v45 = vld [vmem:[%s32429_s2 + $0x464] ss:$20 sps:$4 sm:$0xff]  }
 0xf68   : > { %v24215_v46 = vld [vmem:[%s32429_s2 + $0x504] ss:$20 sps:$4 sm:$0xff]  }
 0xf69   : > { %9374 = vmatpush1.bf16.msra.mxu1 %v24159_v29  ;;  %v24210_v29 = vld [vmem:[%s32429_s2 + $0x460] ss:$20 sps:$4 sm:$0xff]  }
 0xf6a   : > { %9341 = vmatpush1.bf16.msra.mxu0 %v24156_v55  ;;  %9375 = vmatprep.subr.bf16.mxu1 %v24167_v2  ;;  %v24213_v55 = vld [vmem:[%s32429_s2 + $0x500] ss:$20 sps:$4 sm:$0xff]  }
 0xf6b   : > { %9342 = vmatprep.subr.bf16.mxu0 %v24164_v28  ;;  %v24218_v2 = vld [vmem:[%s32429_s2 + $0x48c] ss:$20 sps:$4 sm:$0xff]   ;;  %v28681_v28 = vpack.c.bf16 %v28066_v11, %v28066_v11  ;;  %v24224_v11 = vld [vmem:[%s32429_s2 + $0x4b4] ss:$20 sps:$4 sm:$0xff]  }
 0xf6d   : > { %9376 = vmatpush1.bf16.msra.mxu1 %v24165_v6  ;;  %v24221_v6 = vld [vmem:[%s32429_s2 + $0x52c] ss:$20 sps:$4 sm:$0xff]  }
 0xf6e   : > { %9343 = vmatpush1.bf16.msra.mxu0 %v24162_v60  ;;  %9377 = vmatprep.subr.bf16.mxu1 %v24173_v20  ;;  %v24216_v60 = vld [vmem:[%s32429_s2 + $0x488] ss:$20 sps:$4 sm:$0xff]  }
 0xf6f   : > { %9344 = vmatprep.subr.bf16.mxu0 %v24170_v21  ;;  %v24219_v20 = vld [vmem:[%s32429_s2 + $0x528] ss:$20 sps:$4 sm:$0xff]  }
 0xf70   : > { %v24227_v21 = vld [vmem:[%s32429_s2 + $0x554] ss:$20 sps:$4 sm:$0xff]  }
 0xf71   : > { %9378 = vmatpush1.bf16.msra.mxu1 %v24171_v18  ;;  %v24222_v18 = vld [vmem:[%s32429_s2 + $0x4b0] ss:$20 sps:$4 sm:$0xff]  }
 0xf72   : > { %9345 = vmatpush1.bf16.msra.mxu0 %v24168_v3  ;;  %9379 = vmatprep.subr.bf16.mxu1 %v24179_v41  ;;  %v24225_v3 = vld [vmem:[%s32429_s2 + $0x550] ss:$20 sps:$4 sm:$0xff]  }
 0xf73   : > { %9346 = vmatprep.subr.bf16.mxu0 %v24176_v34  ;;  %v24230_v41 = vld [vmem:[%s32429_s2 + $0x4dc] ss:$20 sps:$4 sm:$0xff]  }
 0xf74   : > { %v24233_v34 = vld [vmem:[%s32429_s2 + $0x57c] ss:$20 sps:$4 sm:$0xff]  }
 0xf75   : > { %9380 = vmatpush1.bf16.msra.mxu1 %v24177_v30  ;;  %v24228_v30 = vld [vmem:[%s32429_s2 + $0x4d8] ss:$20 sps:$4 sm:$0xff]  }
 0xf76   : > { %9347 = vmatpush1.bf16.msra.mxu0 %v24174_v59  ;;  %9381 = vmatprep.subr.bf16.mxu1 %v24185_v38  ;;  %v24231_v59 = vld [vmem:[%s32429_s2 + $0x578] ss:$20 sps:$4 sm:$0xff]  }
 0xf77   : > { %9348 = vmatprep.subr.bf16.mxu0 %v24182_v36  ;;  %v24239_v38 = vld [vmem:[%s32429_s2 + $0xc] ss:$20 sps:$4 sm:$0xff]   ;;  %v24236_v36 = vld [vmem:[%s32429_s2 + $0x5a4] ss:$20 sps:$4 sm:$0xff]  }
 0xf79   : > { %9382 = vmatpush1.bf16.msra.mxu1 %v24183_v63  ;;  %v24237_v63 = vld [vmem:[%s32429_s2 + $0x8] ss:$20 sps:$4 sm:$0xff]  }
 0xf7a   : > { %9349 = vmatpush1.bf16.msra.mxu0 %v24180_v8  ;;  %9383 = vmatprep.subr.bf16.mxu1 %v24191_v35  ;;  %v28729_v8 = vpack.c.bf16 %v28070_v13, %v28070_v13  ;;  %v24234_v35 = vld [vmem:[%s32429_s2 + $0x5a0] ss:$20 sps:$4 sm:$0xff]   ;;  %v24243_v13 = vld [vmem:[%s32429_s2 + $0x30] ss:$20 sps:$4 sm:$0xff]  }
 0xf7b   : > { %9350 = vmatprep.subr.bf16.mxu0 %v24188_v15  ;;  %v24245_v15 = vld [vmem:[%s32429_s2 + $0x34] ss:$20 sps:$4 sm:$0xff]  }
 0xf7d   : > { %9384 = vmatpush1.bf16.msra.mxu1 %v24189_v23  ;;  %v24242_v23 = vld [vmem:[%s32429_s2 + $0x5cc] ss:$20 sps:$4 sm:$0xff]  }
 0xf7e   : > { %9351 = vmatpush1.bf16.msra.mxu0 %v24186_v56  ;;  %9385 = vmatprep.subr.bf16.mxu1 %v24197_v40  ;;  %v24240_v56 = vld [vmem:[%s32429_s2 + $0x5c8] ss:$20 sps:$4 sm:$0xff]  }
 0xf7f   : > { %9352 = vmatprep.subr.bf16.mxu0 %v24194_v10  ;;  %v24248_v40 = vld [vmem:[%s32429_s2 + $0x5c] ss:$20 sps:$4 sm:$0xff]   ;;  %v24251_v10 = vld [vmem:[%s32429_s2 + $0x28c] ss:$20 sps:$4 sm:$0xff]  }
 0xf81   : > { %9386 = vmatpush1.bf16.msra.mxu1 %v24195_v31 }
 0xf82   : > { %9353 = vmatpush1.bf16.msra.mxu0 %v24192_v17  ;;  %9387 = vmatprep.subr.bf16.mxu1 %v24203_v4  ;;  %v24246_v4 = vld [vmem:[%s32429_s2 + $0x58] ss:$20 sps:$4 sm:$0xff]  }
 0xf83   : > { %9354 = vmatprep.subr.bf16.mxu0 %v24200_v39 }
 0xf85   : > { %9388 = vmatpush1.bf16.msra.mxu1 %v24201_v33  ;;  %v24249_v33 = vld [vmem:[%s32429_s2 + $0x288] ss:$20 sps:$4 sm:$0xff]  }
 0xf86   : > { %9355 = vmatpush1.bf16.msra.mxu0 %v24198_v32  ;;  %9389 = vmatprep.subr.bf16.mxu1 %v24209_v24  ;;  %v28762_v24 = vpack.c.bf16 %v28074_v43, %v28074_v43  ;;  %v24255_v43 = vld [vmem:[%s32429_s2 + $0x2b0] ss:$20 sps:$4 sm:$0xff]  }
 0xf87   : > { %9356 = vmatprep.subr.bf16.mxu0 %v24206_v7  ;;  %v24254_v7 = vld [vmem:[%s32429_s2 + $0x84] ss:$20 sps:$4 sm:$0xff]  }
 0xf89   : > { %9390 = vmatpush1.bf16.msra.mxu1 %v24207_v49  ;;  %v24257_v49 = vld [vmem:[%s32429_s2 + $0x2b4] ss:$20 sps:$4 sm:$0xff]  }
 0xf8a   : > { %9357 = vmatpush1.bf16.msra.mxu0 %v24204_v27  ;;  %9391 = vmatprep.subr.bf16.mxu1 %v24212_v45  ;;  %v24252_v27 = vld [vmem:[%s32429_s2 + $0x80] ss:$20 sps:$4 sm:$0xff]  }
 0xf8b   : > { %9408 = vmatprep.subr.bf16.mxu0 %v24215_v46  ;;  %v24260_v45 = vld [vmem:[%s32429_s2 + $0xac] ss:$20 sps:$4 sm:$0xff]   ;;  %v24263_v46 = vld [vmem:[%s32429_s2 + $0x2dc] ss:$20 sps:$4 sm:$0xff]  }
 0xf8d   : > { %9359 = vmatmul.mubr.bf16.vlgmr.msra.gmra.mrb[152].mxu0 %v28681_v28  ;;  %9392 = vmatpush1.bf16.msra.mxu1 %v24210_v29 }
 0xf8e   : > { %9409 = vmatpush1.bf16.msra.mxu0 %v24213_v55  ;;  %9393 = vmatprep.subr.bf16.mxu1 %v24218_v2 }
 0xf8f   : > { %9410 = vmatprep.subr.bf16.mxu0 %v24221_v6  ;;  %9440 = vmatprep.mubr.bf16.mxu0 %v25793_v53  ;;  %v24258_v6 = vld [vmem:[%s32429_s2 + $0xa8] ss:$20 sps:$4 sm:$0xff]  }
 0xf91   : > { %9394 = vmatpush1.bf16.msra.mxu1 %v24216_v60 }
 0xf92   : > { %9411 = vmatpush1.bf16.msra.mxu0 %v24219_v20  ;;  %9395 = vmatprep.subr.bf16.mxu1 %v24224_v11  ;;  %v24261_v11 = vld [vmem:[%s32429_s2 + $0x2d8] ss:$20 sps:$4 sm:$0xff]  }
 0xf93   : > { %9412 = vmatprep.subr.bf16.mxu0 %v24227_v21  ;;  %v24266_v21 = vld [vmem:[%s32429_s2 + $0xd4] ss:$20 sps:$4 sm:$0xff]  }
 0xf95   : > { %9396 = vmatpush1.bf16.msra.mxu1 %v24222_v18 }
 0xf96   : > { %9413 = vmatpush1.bf16.msra.mxu0 %v24225_v3  ;;  %9397 = vmatprep.subr.bf16.mxu1 %v24230_v41  ;;  %v24269_v3 = vld [vmem:[%s32429_s2 + $0x304] ss:$20 sps:$4 sm:$0xff]  }
 0xf97   : > { %9414 = vmatprep.subr.bf16.mxu0 %v24233_v34  ;;  %v24264_v41 = vld [vmem:[%s32429_s2 + $0xd0] ss:$20 sps:$4 sm:$0xff]   ;;  %v24267_v34 = vld [vmem:[%s32429_s2 + $0x300] ss:$20 sps:$4 sm:$0xff]  }
 0xf99   : > { %9398 = vmatpush1.bf16.msra.mxu1 %v24228_v30  ;;  %v24272_v30 = vld [vmem:[%s32429_s2 + $0xfc] ss:$20 sps:$4 sm:$0xff]  }
 0xf9a   : > { %9415 = vmatpush1.bf16.msra.mxu0 %v24231_v59  ;;  %9449 = vmatprep.subr.bf16.mxu1 %v24239_v38  ;;  %v24275_v59 = vld [vmem:[%s32429_s2 + $0x32c] ss:$20 sps:$4 sm:$0xff]  }
 0xf9b   : > { %9416 = vmatprep.subr.bf16.mxu0 %v24236_v36  ;;  %v24270_v38 = vld [vmem:[%s32429_s2 + $0xf8] ss:$20 sps:$4 sm:$0xff]   ;;  %v24273_v36 = vld [vmem:[%s32429_s2 + $0x328] ss:$20 sps:$4 sm:$0xff]  }
 0xf9c   : > { %9400 = vmatmul.mubr.bf16.vlgmr.msra.gmra.mrb[156].mxu1 %v28729_v8 }
 0xf9d   : > { %9450 = vmatpush1.bf16.msra.mxu1 %v24237_v63  ;;  %9481 = vmatprep.mubr.bf16.mxu1 %v28482_v57  ;;  %v24278_v63 = vld [vmem:[%s32429_s2 + $0x124] ss:$20 sps:$4 sm:$0xff]  }
 0xf9e   : > { %9417 = vmatpush1.bf16.msra.mxu0 %v24234_v35  ;;  %9451 = vmatprep.subr.bf16.mxu1 %v24245_v15  ;;  %v24281_v35 = vld [vmem:[%s32429_s2 + $0x354] ss:$20 sps:$4 sm:$0xff]  }
 0xf9f   : > { %9418 = vmatprep.subr.bf16.mxu0 %v24242_v23  ;;  %v8003_v31 = vpop.f32.mrb[136].mxu1  ;;  %v24276_v15 = vld [vmem:[%s32429_s2 + $0x120] ss:$20 sps:$4 sm:$0xff]   ;;  %v24279_v23 = vld [vmem:[%s32429_s2 + $0x350] ss:$20 sps:$4 sm:$0xff]  }
 0xfa0   : > { %v8005_v17 = vpop.f32.mrb[137].mxu1 }
 0xfa1   : > { %9452 = vmatpush1.bf16.msra.mxu1 %v24243_v13  ;;  %v8007_v39 = vpop.f32.mrb[138].mxu1  ;;  %v24284_v13 = vld [vmem:[%s32429_s2 + $0x14c] ss:$20 sps:$4 sm:$0xff]  }
 0xfa2   : > { %9419 = vmatpush1.bf16.msra.mxu0 %v24240_v56  ;;  %9453 = vmatprep.subr.bf16.mxu1 %v24248_v40  ;;  %v8008_v32 = vpop.f32.mrb[139].mxu1  ;;  %v24287_v40 = vld [vmem:[%s32429_s2 + $0x37c] ss:$20 sps:$4 sm:$0xff]  }
 0xfa3   : > { %9490 = vmatprep.subr.bf16.mxu0 %v24251_v10  ;;  %v24290_v32 = vld [vmem:[%s32429_s2 + $0x174] ss:$20 sps:$4 sm:$0xff]  }
 0xfa5   : > { %20218 = vmatmul.mubr.msk.bf16.vlgmr.msra.gmra.mrb[156].mxu0 %vm7965_vm5, %v28762_v24  ;;  %9454 = vmatpush1.bf16.msra.mxu1 %v24246_v4  ;;  %v24282_v4 = vld [vmem:[%s32429_s2 + $0x148] ss:$20 sps:$4 sm:$0xff]  }
 0xfa6   : > { %9491 = vmatpush1.bf16.msra.mxu0 %v24249_v33  ;;  %9522 = vmatprep.mubr.bf16.mxu0 %v28530_v44  ;;  %v24285_v33 = vld [vmem:[%s32429_s2 + $0x378] ss:$20 sps:$4 sm:$0xff]  }
 0xfa7   : > { %9455 = vmatprep.subr.bf16.mxu1 %v24254_v7  ;;  %9492 = vmatprep.subr.bf16.mxu0 %v24257_v49  ;;  %v24293_v49 = vld [vmem:[%s32429_s2 + $0x3a4] ss:$20 sps:$4 sm:$0xff]  }
 0xfa8   : > { %v8044_v29 = vpop.f32.mrb[136].mxu0 }
 0xfa9   : > { %v8045_v55 = vadd.f32 %v8044_v29, %v8003_v31  ;;  %v8046_v2 = vpop.f32.mrb[137].mxu0  ;;  %9456 = vmatpush1.bf16.msra.mxu1 %v24252_v27  ;;  %v24288_v27 = vld [vmem:[%s32429_s2 + $0x170] ss:$20 sps:$4 sm:$0xff]   ;;  %v24294_v29 = vld [vmem:[%s32429_s2 + $0x198] ss:$20 sps:$4 sm:$0xff]  }
 0xfaa   : > { %v8047_v60 = vadd.f32 %v8046_v2, %v8005_v17  ;;  %9493 = vmatpush1.bf16.msra.mxu0 %v24255_v43  ;;  %v8048_v20 = vpop.f32.mrb[138].mxu0  ;;  %9457 = vmatprep.subr.bf16.mxu1 %v24260_v45  ;;  %v24291_v43 = vld [vmem:[%s32429_s2 + $0x3a0] ss:$20 sps:$4 sm:$0xff]   ;;  %v24296_v45 = vld [vmem:[%s32429_s2 + $0x19c] ss:$20 sps:$4 sm:$0xff]  }
 0xfab   : > { %v8049_v18 = vpop.f32.mrb[139].mxu0  ;;  %9494 = vmatprep.subr.bf16.mxu0 %v24263_v46  ;;  %v24299_v46 = vld [vmem:[%s32429_s2 + $0x3cc] ss:$20 sps:$4 sm:$0xff]   ;;  %v24302_v2 = vld [vmem:[%s32429_s2 + $0x1c4] ss:$20 sps:$4 sm:$0xff]  }
 0xfac   : > { %v24303_v20 = vld [vmem:[%s32429_s2 + $0x3f0] ss:$20 sps:$4 sm:$0xff]   ;;  %v24306_v18 = vld [vmem:[%s32429_s2 + $0x1e8] ss:$20 sps:$4 sm:$0xff]  }
 0xfad   : > { %9458 = vmatpush1.bf16.msra.mxu1 %v24258_v6  ;;  %v24305_v6 = vld [vmem:[%s32429_s2 + $0x3f4] ss:$20 sps:$4 sm:$0xff]  }
 0xfae   : > { %9495 = vmatpush1.bf16.msra.mxu0 %v24261_v11  ;;  %9459 = vmatprep.subr.bf16.mxu1 %v24266_v21  ;;  %v24308_v11 = vld [vmem:[%s32429_s2 + $0x1ec] ss:$20 sps:$4 sm:$0xff]   ;;  %v24311_v21 = vld [vmem:[%s32429_s2 + $0x41c] ss:$20 sps:$4 sm:$0xff]  }
 0xfaf   : > { %9496 = vmatprep.subr.bf16.mxu0 %v24269_v3  ;;  %v24309_v3 = vld [vmem:[%s32429_s2 + $0x418] ss:$20 sps:$4 sm:$0xff]  }
 0xfb1   : > { %9460 = vmatpush1.bf16.msra.mxu1 %v24264_v41  ;;  %v24314_v41 = vld [vmem:[%s32429_s2 + $0x214] ss:$20 sps:$4 sm:$0xff]  }
 0xfb2   : > { %9497 = vmatpush1.bf16.msra.mxu0 %v24267_v34  ;;  %9461 = vmatprep.subr.bf16.mxu1 %v24272_v30  ;;  %v24317_v34 = vld [vmem:[%s32429_s2 + $0x444] ss:$20 sps:$4 sm:$0xff]  }
 0xfb3   : > { %9498 = vmatprep.subr.bf16.mxu0 %v24275_v59  ;;  %v24312_v30 = vld [vmem:[%s32429_s2 + $0x210] ss:$20 sps:$4 sm:$0xff]   ;;  %v24315_v59 = vld [vmem:[%s32429_s2 + $0x440] ss:$20 sps:$4 sm:$0xff]  }
 0xfb5   : > { %9462 = vmatpush1.bf16.msra.mxu1 %v24270_v38  ;;  %v24320_v38 = vld [vmem:[%s32429_s2 + $0x23c] ss:$20 sps:$4 sm:$0xff]  }
 0xfb6   : > { %9499 = vmatpush1.bf16.msra.mxu0 %v24273_v36  ;;  %9463 = vmatprep.subr.bf16.mxu1 %v24278_v63  ;;  %v24323_v36 = vld [vmem:[%s32429_s2 + $0x46c] ss:$20 sps:$4 sm:$0xff]  }
 0xfb7   : > { %v8085_v56 = vpop.f32.mrb[140].mxu1  ;;  %9500 = vmatprep.subr.bf16.mxu0 %v24281_v35  ;;  %v24318_v63 = vld [vmem:[%s32429_s2 + $0x238] ss:$20 sps:$4 sm:$0xff]   ;;  %v24321_v35 = vld [vmem:[%s32429_s2 + $0x468] ss:$20 sps:$4 sm:$0xff]  }
 0xfb8   : > { %v28833_v10 = vadd.f32 %v8085_v56, %v8045_v55  ;;  %v8087_v31 = vpop.f32.mrb[141].mxu1  ;;  %v24297_v55 = vld [vmem:[%s32429_s2 + $0x3c8] ss:$20 sps:$4 sm:$0xff]   ;;  %v24327_v56 = vld [vmem:[%s32429_s2 + $0x490] ss:$20 sps:$4 sm:$0xff]  }
 0xfb9   : > { %v28835_v17 = vadd.f32 %v8087_v31, %v8047_v60  ;;  %9464 = vmatpush1.bf16.msra.mxu1 %v24276_v15  ;;  %v8089_v39 = vpop.f32.mrb[142].mxu1  ;;  %v24300_v60 = vld [vmem:[%s32429_s2 + $0x1c0] ss:$20 sps:$4 sm:$0xff]   ;;  %v24326_v15 = vld [vmem:[%s32429_s2 + $0x264] ss:$20 sps:$4 sm:$0xff]  }
 0xfba   : > { %9501 = vmatpush1.bf16.msra.mxu0 %v24279_v23  ;;  %9465 = vmatprep.subr.bf16.mxu1 %v24284_v13  ;;  %v8090_v7 = vpop.f32.mrb[143].mxu1  ;;  %v24329_v23 = vld [vmem:[%s32429_s2 + $0x494] ss:$20 sps:$4 sm:$0xff]   ;;  %v24332_v31 = vld [vmem:[%s32429_s2 + $0x4bc] ss:$20 sps:$4 sm:$0xff]  }
 0xfbb   : > { %9502 = vmatprep.subr.bf16.mxu0 %v24287_v40  ;;  %v24324_v13 = vld [vmem:[%s32429_s2 + $0x260] ss:$20 sps:$4 sm:$0xff]   ;;  %v24330_v39 = vld [vmem:[%s32429_s2 + $0x4b8] ss:$20 sps:$4 sm:$0xff]   ;;  %v24339_v7 = vld [vmem:[%s32429_s2 + $0x530] ss:$20 sps:$4 sm:$0xff]  }
 0xfbc   : > { %v24335_v40 = vld [vmem:[%s32429_s2 + $0x50c] ss:$20 sps:$4 sm:$0xff]  }
 0xfbd   : > { %9466 = vmatpush1.bf16.msra.mxu1 %v24282_v4  ;;  %v24333_v4 = vld [vmem:[%s32429_s2 + $0x508] ss:$20 sps:$4 sm:$0xff]  }
 0xfbe   : > { %9503 = vmatpush1.bf16.msra.mxu0 %v24285_v33  ;;  %9467 = vmatprep.subr.bf16.mxu1 %v24290_v32  ;;  %v24341_v33 = vld [vmem:[%s32429_s2 + $0x534] ss:$20 sps:$4 sm:$0xff]   ;;  %v24338_v32 = vld [vmem:[%s32429_s2 + $0x4e4] ss:$20 sps:$4 sm:$0xff]  }
 0xfbf   : > { %9504 = vmatprep.subr.bf16.mxu0 %v24293_v49  ;;  %v24336_v49 = vld [vmem:[%s32429_s2 + $0x4e0] ss:$20 sps:$4 sm:$0xff]  }
 0xfc1   : > { %9468 = vmatpush1.bf16.msra.mxu1 %v24288_v27  ;;  %v24344_v27 = vld [vmem:[%s32429_s2 + $0x55c] ss:$20 sps:$4 sm:$0xff]  }
 0xfc2   : > { %9505 = vmatpush1.bf16.msra.mxu0 %v24291_v43  ;;  %9469 = vmatprep.subr.bf16.mxu1 %v24296_v45  ;;  %v24345_v43 = vld [vmem:[%s32429_s2 + $0x150] ss:$20 sps:$4 sm:$0xff]   ;;  %v24342_v45 = vld [vmem:[%s32429_s2 + $0x558] ss:$20 sps:$4 sm:$0xff]  }
 0xfc3   : > { %9506 = vmatprep.subr.bf16.mxu0 %v24299_v46  ;;  %v24346_v46 = vld [vmem:[%s32429_s2 + $0x10] ss:$20 sps:$4 sm:$0xff]  }
 0xfc5   : > { %9470 = vmatpush1.bf16.msra.mxu1 %v24294_v29  ;;  %v24349_v29 = vld [vmem:[%s32429_s2 + $0x584] ss:$20 sps:$4 sm:$0xff]  }
 0xfc6   : > { %9507 = vmatpush1.bf16.msra.mxu0 %v24297_v55  ;;  %9471 = vmatprep.subr.bf16.mxu1 %v24302_v2  ;;  %v24350_v55 = vld [vmem:[%s32429_s2 + $0x178] ss:$20 sps:$4 sm:$0xff]   ;;  %v24347_v2 = vld [vmem:[%s32429_s2 + $0x580] ss:$20 sps:$4 sm:$0xff]  }
 0xfc7   : > { %9508 = vmatprep.subr.bf16.mxu0 %v24305_v6  ;;  %v24351_v6 = vld [vmem:[%s32429_s2 + $0x38] ss:$20 sps:$4 sm:$0xff]  }
 0xfc9   : > { %9472 = vmatpush1.bf16.msra.mxu1 %v24300_v60  ;;  %v24354_v60 = vld [vmem:[%s32429_s2 + $0x5ac] ss:$20 sps:$4 sm:$0xff]  }
 0xfca   : > { %9509 = vmatpush1.bf16.msra.mxu0 %v24303_v20  ;;  %9473 = vmatprep.subr.bf16.mxu1 %v24308_v11  ;;  %v24355_v20 = vld [vmem:[%s32429_s2 + $0x1a0] ss:$20 sps:$4 sm:$0xff]  }
 0xfcb   : > { %9510 = vmatprep.subr.bf16.mxu0 %v24311_v21 }
 0xfcd   : > { %9474 = vmatpush1.bf16.msra.mxu1 %v24306_v18 }
 0xfce   : > { %9511 = vmatpush1.bf16.msra.mxu0 %v24309_v3  ;;  %9475 = vmatprep.subr.bf16.mxu1 %v24314_v41  ;;  %v24356_v3 = vld [vmem:[%s32429_s2 + $0x60] ss:$20 sps:$4 sm:$0xff]  }
 0xfcf   : > { %9512 = vmatprep.subr.bf16.mxu0 %v24317_v34  ;;  %v24359_v41 = vld [vmem:[%s32429_s2 + $0x5d4] ss:$20 sps:$4 sm:$0xff]  }
 0xfd1   : > { %9476 = vmatpush1.bf16.msra.mxu1 %v24312_v30  ;;  %v24360_v30 = vld [vmem:[%s32429_s2 + $0x1c8] ss:$20 sps:$4 sm:$0xff]  }
 0xfd2   : > { %9513 = vmatpush1.bf16.msra.mxu0 %v24315_v59  ;;  %9477 = vmatprep.subr.bf16.mxu1 %v24320_v38  ;;  %v24357_v59 = vld [vmem:[%s32429_s2 + $0x5d0] ss:$20 sps:$4 sm:$0xff]   ;;  %v24361_v38 = vld [vmem:[%s32429_s2 + $0x88] ss:$20 sps:$4 sm:$0xff]  }
 0xfd3   : > { %9514 = vmatprep.subr.bf16.mxu0 %v24323_v36  ;;  %v24363_v36 = vld [vmem:[%s32429_s2 + $0x3d0] ss:$20 sps:$4 sm:$0xff]  }
 0xfd5   : > { %9478 = vmatpush1.bf16.msra.mxu1 %v24318_v63  ;;  %v24362_v63 = vld [vmem:[%s32429_s2 + $0x1f0] ss:$20 sps:$4 sm:$0xff]  }
 0xfd6   : > { %9515 = vmatpush1.bf16.msra.mxu0 %v24321_v35  ;;  %9479 = vmatprep.subr.bf16.mxu1 %v24326_v15  ;;  %v24365_v35 = vld [vmem:[%s32429_s2 + $0x290] ss:$20 sps:$4 sm:$0xff]  }
 0xfd7   : > { %9516 = vmatprep.subr.bf16.mxu0 %v24329_v23  ;;  %v24364_v15 = vld [vmem:[%s32429_s2 + $0xb0] ss:$20 sps:$4 sm:$0xff]   ;;  %v24367_v23 = vld [vmem:[%s32429_s2 + $0x3f8] ss:$20 sps:$4 sm:$0xff]  }
 0xfd9   : > { %9480 = vmatpush1.bf16.msra.mxu1 %v24324_v13  ;;  %v24366_v13 = vld [vmem:[%s32429_s2 + $0x218] ss:$20 sps:$4 sm:$0xff]  }
 0xfda   : > { %9517 = vmatpush1.bf16.msra.mxu0 %v24327_v56  ;;  %9531 = vmatprep.subr.bf16.mxu1 %v24335_v40  ;;  %v24369_v56 = vld [vmem:[%s32429_s2 + $0x2b8] ss:$20 sps:$4 sm:$0xff]  }
 0xfdb   : > { %9518 = vmatprep.subr.bf16.mxu0 %v24332_v31  ;;  %v24368_v40 = vld [vmem:[%s32429_s2 + $0xd8] ss:$20 sps:$4 sm:$0xff]   ;;  %v24371_v31 = vld [vmem:[%s32429_s2 + $0x420] ss:$20 sps:$4 sm:$0xff]  }
 0xfdc   : > { %9482 = vmatmul.mubr.bf16.vlgmr.msra.gmra.mrb[160].mxu1 %v28681_v28 }
 0xfdd   : > { %9532 = vmatpush1.bf16.msra.mxu1 %v24333_v4  ;;  %9563 = vmatprep.mubr.bf16.mxu1 %v25793_v53 }
 0xfde   : > { %9519 = vmatpush1.bf16.msra.mxu0 %v24330_v39  ;;  %9533 = vmatprep.subr.bf16.mxu1 %v24341_v33 }
 0xfdf   : > { %9520 = vmatprep.subr.bf16.mxu0 %v24338_v32 }
 0xfe1   : > { %9534 = vmatpush1.bf16.msra.mxu1 %v24339_v7 }
 0xfe2   : > { %9521 = vmatpush1.bf16.msra.mxu0 %v24336_v49  ;;  %9535 = vmatprep.subr.bf16.mxu1 %v24344_v27  ;;  %v24373_v49 = vld [vmem:[%s32429_s2 + $0x2e0] ss:$20 sps:$4 sm:$0xff]  }
 0xfe3   : > { %22429 = vmatprep.subr.bf16.mxu0 %v24345_v43  ;;  %v24372_v43 = vld [vmem:[%s32429_s2 + $0x100] ss:$20 sps:$4 sm:$0xff]  }
 0xfe5   : > { %9523 = vmatmul.mubr.bf16.vlgmr.msra.gmra.mrb[160].mxu0 %v28729_v8  ;;  %9536 = vmatpush1.bf16.msra.mxu1 %v24342_v45  ;;  %v24375_v45 = vld [vmem:[%s32429_s2 + $0x448] ss:$20 sps:$4 sm:$0xff]  }
 0xfe6   : > { %22430 = vmatpush3.bf16.msra.mxu0 %v24346_v46  ;;  %9604 = vmatprep.mubr.bf16.mxu0 %v28482_v57  ;;  %v24352_v57 = vld [vmem:[%s32429_s2 + $0x5a8] ss:$20 sps:$4 sm:$0xff]  }
 0xfe7   : > { %9537 = vmatprep.subr.bf16.mxu1 %v24349_v29  ;;  %22431 = vmatprep.subr.bf16.mxu0 %v24350_v55  ;;  %v24374_v46 = vld [vmem:[%s32429_s2 + $0x268] ss:$20 sps:$4 sm:$0xff]  }
 0xfe8   : > { %v8126_v11 = vpop.f32.mrb[140].mxu0  ;;  %v24377_v29 = vld [vmem:[%s32429_s2 + $0x308] ss:$20 sps:$4 sm:$0xff]  }
 0xfe9   : > { %v8128_v21 = vpop.f32.mrb[141].mxu0  ;;  %9538 = vmatpush1.bf16.msra.mxu1 %v24347_v2  ;;  %v24376_v55 = vld [vmem:[%s32429_s2 + $0x128] ss:$20 sps:$4 sm:$0xff]   ;;  %v24378_v2 = vld [vmem:[%s32429_s2 + $0x470] ss:$20 sps:$4 sm:$0xff]  }
 0xfea   : > { %v8130_v18 = vpop.f32.mrb[142].mxu0  ;;  %22432 = vmatpush3.bf16.msra.mxu0 %v24351_v6  ;;  %9539 = vmatprep.subr.bf16.mxu1 %v24354_v60 }
 0xfeb   : > { %v8131_v34 = vpop.f32.mrb[143].mxu0  ;;  %22433 = vmatprep.subr.bf16.mxu0 %v24355_v20  ;;  %v24380_v18 = vld [vmem:[%s32429_s2 + $0x510] ss:$20 sps:$4 sm:$0xff]  }
 0xfec   : > { %v24382_v34 = vld [vmem:[%s32429_s2 + $0x358] ss:$20 sps:$4 sm:$0xff]  }
 0xfed   : > { %9540 = vmatpush1.bf16.msra.mxu1 %v24352_v57 }
 0xfee   : > { %22434 = vmatpush3.bf16.msra.mxu0 %v24356_v3  ;;  %9541 = vmatprep.subr.bf16.mxu1 %v24359_v41  ;;  %v24381_v3 = vld [vmem:[%s32429_s2 + $0x498] ss:$20 sps:$4 sm:$0xff]  }
 0xfef   : > { %22435 = vmatprep.subr.bf16.mxu0 %v24360_v30  ;;  %v24383_v30 = vld [vmem:[%s32429_s2 + $0x538] ss:$20 sps:$4 sm:$0xff]  }
 0xff1   : > { %9542 = vmatpush1.bf16.msra.mxu1 %v24357_v59  ;;  %v24384_v59 = vld [vmem:[%s32429_s2 + $0x4c0] ss:$20 sps:$4 sm:$0xff]  }
 0xff2   : > { %22436 = vmatpush3.bf16.msra.mxu0 %v24361_v38  ;;  %22451 = vmatprep.subr.bf16.mxu1 %v24363_v36  ;;  %v24386_v38 = vld [vmem:[%s32429_s2 + $0x560] ss:$20 sps:$4 sm:$0xff]   ;;  %v24387_v36 = vld [vmem:[%s32429_s2 + $0x4e8] ss:$20 sps:$4 sm:$0xff]  }
 0xff3   : > { %22437 = vmatprep.subr.bf16.mxu0 %v24362_v63  ;;  %v24388_v63 = vld [vmem:[%s32429_s2 + $0x3a8] ss:$20 sps:$4 sm:$0xff]  }
 0xff4   : > { %20219 = vmatmul.mubr.msk.bf16.vlgmr.msra.gmra.mrb[164].mxu1 %vm7965_vm5, %v28762_v24 }
 0xff5   : > { %22452 = vmatpush3.bf16.msra.mxu1 %v24365_v35  ;;  %9644 = vmatprep.mubr.bf16.mxu1 %v28530_v44  ;;  %v24370_v44 = vld [vmem:[%s32429_s2 + $0x240] ss:$20 sps:$4 sm:$0xff]   ;;  %v24389_v35 = vld [vmem:[%s32429_s2 + $0x588] ss:$20 sps:$4 sm:$0xff]  }
 0xff6   : > { %22438 = vmatpush3.bf16.msra.mxu0 %v24364_v15  ;;  %22453 = vmatprep.subr.bf16.mxu1 %v24367_v23  ;;  %v24390_v15 = vld [vmem:[%s32429_s2 + $0x5b0] ss:$20 sps:$4 sm:$0xff]   ;;  %v24391_v23 = vld [vmem:[%s32429_s2 + $0x5d8] ss:$20 sps:$4 sm:$0xff]  }
 0xff7   : > { %v8167_v4 = vpop.f32.mrb[144].mxu1  ;;  %22439 = vmatprep.subr.bf16.mxu0 %v24366_v13 }
 0xff8   : > { %v8168_v39 = vadd.f32 %v8167_v4, %v8126_v11  ;;  %v8169_v33 = vpop.f32.mrb[145].mxu1  ;;  %v24379_v11 = vld [vmem:[%s32429_s2 + $0x330] ss:$20 sps:$4 sm:$0xff]  }
 0xff9   : > { %v8170_v32 = vadd.f32 %v8169_v33, %v8128_v21  ;;  %v8171_v7 = vpop.f32.mrb[146].mxu1  ;;  %22454 = vmatpush3.bf16.msra.mxu1 %v24369_v56  ;;  %v29117_v56 = vpack.c.bf16 %v26163_v48, %v26163_v48 }
 0xffa   : > { %22440 = vmatpush3.bf16.msra.mxu0 %v24368_v40  ;;  %v8172_v27 = vpop.f32.mrb[147].mxu1  ;;  %22455 = vmatprep.subr.bf16.mxu1 %v24371_v31 }
 0xffb   : > { %22441 = vmatprep.subr.bf16.mxu0 %v24370_v44 }
 0xffd   : > { %22456 = vmatpush3.bf16.msra.mxu1 %v24373_v49 }
 0xffe   : > { %22442 = vmatpush3.bf16.msra.mxu0 %v24372_v43  ;;  %22457 = vmatprep.subr.bf16.mxu1 %v24375_v45 }
 0xfff   : > { %22443 = vmatprep.subr.bf16.mxu0 %v24374_v46  ;;  %v24392_v46 = vld [vmem:[%s32429_s2 + $0xbe0] ss:$20 sps:$4 sm:$0xff]  }
0x1000   : > { %v8208_v6 = vpop.f32.mrb[144].mxu0 }
0x1001   : > { %v29057_v60 = vadd.f32 %v8208_v6, %v8168_v39  ;;  %v8210_v20 = vpop.f32.mrb[145].mxu0  ;;  %22458 = vmatpush3.bf16.msra.mxu1 %v24377_v29  ;;  %v24394_v29 = vld [vmem:[%s32429_s2 + $0xbe4] ss:$20 sps:$4 sm:$0xff]   ;;  %v24400_v6 = vld [vmem:[%s32429_s2 + $0xc34] ss:$20 sps:$4 sm:$0xff]  }
0x1002   : > { %v29062_v21 = vadd.f32 %v8210_v20, %v8170_v32  ;;  %v8212_v57 = vpop.f32.mrb[146].mxu0  ;;  %22444 = vmatpush3.bf16.msra.mxu0 %v24376_v55  ;;  %22459 = vmatprep.subr.bf16.mxu1 %v24378_v2  ;;  %v24397_v55 = vld [vmem:[%s32429_s2 + $0xc0c] ss:$20 sps:$4 sm:$0xff]   ;;  %v24395_v2 = vld [vmem:[%s32429_s2 + $0xc08] ss:$20 sps:$4 sm:$0xff]  }
0x1003   : > { %v8213_v41 = vpop.f32.mrb[147].mxu0  ;;  %23044 = vmatprep.subr.bf16.mxu0 %v25792_v12  ;;  %v24403_v20 = vld [vmem:[%s32429_s2 + $0xe64] ss:$20 sps:$4 sm:$0xff]   ;;  %v24401_v57 = vld [vmem:[%s32429_s2 + $0xe60] ss:$20 sps:$4 sm:$0xff]  }
0x1004   : > { %v24404_v41 = vld [vmem:[%s32429_s2 + $0xc58] ss:$20 sps:$4 sm:$0xff]  }
0x1005   : > { %9605 = vmatmul.mubr.bf16.vlgmr.msra.gmra.mrb[164].mxu0 %v28681_v28  ;;  %22460 = vmatpush3.bf16.msra.mxu1 %v24379_v11  ;;  %v24385_v28 = vld [vmem:[%s32429_s2 + $0x380] ss:$20 sps:$4 sm:$0xff]   ;;  %v24398_v11 = vld [vmem:[%s32429_s2 + $0xc30] ss:$20 sps:$4 sm:$0xff]  }
0x1006   : > { %23045 = vmatpush3.bf16.msra.mxu0 %v24380_v18  ;;  %22461 = vmatprep.subr.bf16.mxu1 %v24381_v3  ;;  %v24406_v18 = vld [vmem:[%s32429_s2 + $0xc5c] ss:$20 sps:$4 sm:$0xff]   ;;  %v24409_v3 = vld [vmem:[%s32429_s2 + $0xe8c] ss:$20 sps:$4 sm:$0xff]  }
0x1007   : > { %23046 = vmatprep.subr.bf16.mxu0 %v25792_v12  ;;  %23056 = vmatprep.mubr.msk.bf16.mxu0 %vm25794_vm2, %v25792_v12 }
0x1009   : > { %22462 = vmatpush3.bf16.msra.mxu1 %v24382_v34  ;;  %v24407_v34 = vld [vmem:[%s32429_s2 + $0xe88] ss:$20 sps:$4 sm:$0xff]  }
0x100a   : > { %23047 = vmatpush3.bf16.msra.mxu0 %v24383_v30  ;;  %22463 = vmatprep.subr.bf16.mxu1 %v24384_v59  ;;  %v24412_v30 = vld [vmem:[%s32429_s2 + $0xc84] ss:$20 sps:$4 sm:$0xff]   ;;  %v24415_v59 = vld [vmem:[%s32429_s2 + $0xeb4] ss:$20 sps:$4 sm:$0xff]  }
0x100b   : > { %23048 = vmatprep.subr.bf16.mxu0 %v25792_v12 }
0x100d   : > { %22464 = vmatpush3.bf16.msra.mxu1 %v24385_v28  ;;  %v24410_v28 = vld [vmem:[%s32429_s2 + $0xc80] ss:$20 sps:$4 sm:$0xff]  }
0x100e   : > { %23049 = vmatpush3.bf16.msra.mxu0 %v24386_v38  ;;  %22465 = vmatprep.subr.bf16.mxu1 %v24387_v36  ;;  %v24413_v38 = vld [vmem:[%s32429_s2 + $0xeb0] ss:$20 sps:$4 sm:$0xff]   ;;  %v24418_v36 = vld [vmem:[%s32429_s2 + $0xcac] ss:$20 sps:$4 sm:$0xff]  }
0x100f   : > { %23050 = vmatprep.subr.bf16.mxu0 %v25792_v12 }
0x1011   : > { %22466 = vmatpush3.bf16.msra.mxu1 %v24388_v63  ;;  %v24421_v63 = vld [vmem:[%s32429_s2 + $0xedc] ss:$20 sps:$4 sm:$0xff]  }
0x1012   : > { %23051 = vmatpush3.bf16.msra.mxu0 %v24389_v35  ;;  %9696 = vmatprep.subr.bf16.mxu1 %v27786_v51  ;;  %v24416_v35 = vld [vmem:[%s32429_s2 + $0xca8] ss:$20 sps:$4 sm:$0xff]  }
0x1013   : > { %23052 = vmatprep.subr.bf16.mxu0 %v25792_v12 }
0x1014   : > { %9645 = vmatmul.mubr.bf16.vlgmr.msra.gmra.mrb[168].mxu1 %v28729_v8 }
0x1015   : > { %9697 = vmatpush1.bf16.msra.mxu1 %v27782_v52  ;;  %9728 = vmatprep.mubr.bf16.mxu1 %v25793_v53 }
0x1016   : > { %23053 = vmatpush3.bf16.msra.mxu0 %v24390_v15  ;;  %20221 = vmatprep.subr.msk.bf16.mxu1 %vm6246_vm3, %v27797_v50  ;;  %v24419_v15 = vld [vmem:[%s32429_s2 + $0xed8] ss:$20 sps:$4 sm:$0xff]  }
0x1017   : > { %v22394_v13 = vpop.f32.mrb[148].mxu1  ;;  %23054 = vmatprep.subr.bf16.mxu0 %v25792_v12 }
0x1018   : > { %v22395_v8 = vpop.f32.mrb[149].mxu1 }
0x1019   : > { %v22396_v40 = vadd.f32 %v22395_v8, %v22394_v13  ;;  %v22397_v31 = vpop.f32.mrb[150].mxu1  ;;  %9699 = vmatpush1.bf16.msra.mxu1 %v27800_v62  ;;  %v24424_v13 = vld [vmem:[%s32429_s2 + $0xcd4] ss:$20 sps:$4 sm:$0xff]  }
0x101a   : > { %23055 = vmatpush3.bf16.msra.mxu0 %v24391_v23  ;;  %v22398_v4 = vpop.f32.mrb[151].mxu1  ;;  %23060 = vmatprep.subr.bf16.mxu1 %v25792_v12  ;;  %v24422_v23 = vld [vmem:[%s32429_s2 + $0xcd0] ss:$20 sps:$4 sm:$0xff]   ;;  %v24425_v8 = vld [vmem:[%s32429_s2 + $0xf00] ss:$20 sps:$4 sm:$0xff]  }
0x101b   : > { %9737 = vmatprep.subr.bf16.mxu0 %v27788_v16  ;;  %v24430_v31 = vld [vmem:[%s32429_s2 + $0xcfc] ss:$20 sps:$4 sm:$0xff]   ;;  %v24433_v4 = vld [vmem:[%s32429_s2 + $0xf2c] ss:$20 sps:$4 sm:$0xff]  }
0x101c   : > { %20222 = vmatmul.mubr.msk.bf16.vlgmr.msra.gmra.mrb[172].mxu1 %vm6242_vm4, %v29117_v56 }
0x101d   : > { %23057 = vmatmul.mubr.msk.bf16.vlgmr.msra.gmra.mrb[168].mxu0 %vm7965_vm5, %v28762_v24  ;;  %23061 = vmatpush3.bf16.msra.mxu1 %v27829_v58 }
0x101e   : > { %9738 = vmatpush1.bf16.msra.mxu0 %v27784_v26  ;;  %23062 = vmatprep.subr.bf16.mxu1 %v25792_v12 }
0x101f   : > { %20223 = vmatprep.subr.msk.bf16.mxu0 %vm6246_vm3, %v27814_v54  ;;  %9769 = vmatprep.mubr.bf16.mxu0 %v25793_v53 }
0x1020   : > { %v22416_v48 = vpop.f32.mrb[148].mxu0  ;;  %23064 = vmatprep.mubr.msk.bf16.mxu1 %vm25794_vm2, %v25792_v12 }
0x1021   : > { %v22417_v44 = vpop.f32.mrb[149].mxu0  ;;  %23063 = vmatpush3.bf16.msra.mxu1 %v27844_v0 }
0x1022   : > { %v22418_v39 = vadd.f32 %v22417_v44, %v22416_v48  ;;  %v22419_v24 = vpop.f32.mrb[150].mxu0  ;;  %9740 = vmatpush1.bf16.msra.mxu0 %v27825_v22  ;;  %11084 = vmatprep.subr.bf16.mxu1 %v24403_v20  ;;  %v24428_v48 = vld [vmem:[%s32429_s2 + $0xcf8] ss:$20 sps:$4 sm:$0xff]   ;;  %v24431_v44 = vld [vmem:[%s32429_s2 + $0xf28] ss:$20 sps:$4 sm:$0xff]  }
0x1023   : > { %v22420_v33 = vpop.f32.mrb[151].mxu0  ;;  %11043 = vmatprep.subr.bf16.mxu0 %v24394_v29  ;;  %v24439_v24 = vld [vmem:[%s32429_s2 + $0xf54] ss:$20 sps:$4 sm:$0xff]   ;;  %v24451_v29 = vld [vmem:[%s32429_s2 + $0xfa4] ss:$20 sps:$4 sm:$0xff]  }
0x1024   : > { %v8290_v32 = vadd.f32 %v22418_v39, %v22396_v40  ;;  %23065 = vmatmul.mubr.msk.bf16.vlgmr.msra.gmra.mrb[176].mxu1 %vm6242_vm4, %v29117_v56  ;;  %v24427_v40 = vld [vmem:[%s32429_s2 + $0xf04] ss:$20 sps:$4 sm:$0xff]   ;;  %v24434_v33 = vld [vmem:[%s32429_s2 + $0xd20] ss:$20 sps:$4 sm:$0xff]  }
0x1025   : > { %20224 = vmatmul.mubr.msk.bf16.vlgmr.msra.gmra.mrb[172].mxu0 %vm6242_vm4, %v29117_v56  ;;  %11085 = vmatpush1.bf16.msra.mxu1 %v24401_v57  ;;  %v24436_v39 = vld [vmem:[%s32429_s2 + $0xd24] ss:$20 sps:$4 sm:$0xff]   ;;  %v24455_v57 = vld [vmem:[%s32429_s2 + $0xfc8] ss:$20 sps:$4 sm:$0xff]  }
0x1026   : > { %11044 = vmatpush1.bf16.msra.mxu0 %v24392_v46  ;;  %11086 = vmatprep.subr.bf16.mxu1 %v24409_v3  ;;  %v24448_v46 = vld [vmem:[%s32429_s2 + $0xd74] ss:$20 sps:$4 sm:$0xff]   ;;  %v24452_v20 = vld [vmem:[%s32429_s2 + $0xd98] ss:$20 sps:$4 sm:$0xff]  }
0x1027   : > { %11045 = vmatprep.subr.bf16.mxu0 %v24397_v55  ;;  %v24446_v55 = vld [vmem:[%s32429_s2 + $0xd70] ss:$20 sps:$4 sm:$0xff]   ;;  %v24463_v3 = vld [vmem:[%s32429_s2 + $0xff4] ss:$20 sps:$4 sm:$0xff]  }
0x1029   : > { %11087 = vmatpush1.bf16.msra.mxu1 %v24407_v34 }
0x102a   : > { %11046 = vmatpush1.bf16.msra.mxu0 %v24395_v2  ;;  %11088 = vmatprep.subr.bf16.mxu1 %v24415_v59  ;;  %v24449_v2 = vld [vmem:[%s32429_s2 + $0xfa0] ss:$20 sps:$4 sm:$0xff]  }
0x102b   : > { %11047 = vmatprep.subr.bf16.mxu0 %v24400_v6  ;;  %v24454_v6 = vld [vmem:[%s32429_s2 + $0xd9c] ss:$20 sps:$4 sm:$0xff]   ;;  %v24458_v59 = vld [vmem:[%s32429_s2 + $0xdc0] ss:$20 sps:$4 sm:$0xff]  }
0x102d   : > { %11089 = vmatpush1.bf16.msra.mxu1 %v24413_v38 }
0x102e   : > { %11048 = vmatpush1.bf16.msra.mxu0 %v24398_v11  ;;  %11090 = vmatprep.subr.bf16.mxu1 %v24421_v63  ;;  %v24457_v11 = vld [vmem:[%s32429_s2 + $0xfcc] ss:$20 sps:$4 sm:$0xff]  }
0x102f   : > { %v8329_v7 = vpop.f32.mrb[152].mxu1  ;;  %11049 = vmatprep.subr.bf16.mxu0 %v24406_v18  ;;  %v24460_v18 = vld [vmem:[%s32429_s2 + $0xdc4] ss:$20 sps:$4 sm:$0xff]  }
0x1030   : > { %v29140_v49 = vadd.f32 %v8329_v7, %v8290_v32  ;;  %v23042_v27 = vpop.f32.mrb[153].mxu1  ;;  %v24437_v32 = vld [vmem:[%s32429_s2 + $0xf50] ss:$20 sps:$4 sm:$0xff]   ;;  %v24442_v7 = vld [vmem:[%s32429_s2 + $0xd4c] ss:$20 sps:$4 sm:$0xff]  }
0x1031   : > { %v8332_v43 = vpop.f32.mrb[154].mxu1  ;;  %11091 = vmatpush1.bf16.msra.mxu1 %v24419_v15  ;;  %v24445_v27 = vld [vmem:[%s32429_s2 + $0xf7c] ss:$20 sps:$4 sm:$0xff]   ;;  %v24467_v15 = vld [vmem:[%s32429_s2 + $0x1018] ss:$20 sps:$4 sm:$0xff]  }
0x1032   : > { %v23043_v45 = vpop.f32.mrb[155].mxu1  ;;  %11050 = vmatpush1.bf16.msra.mxu0 %v24404_v41  ;;  %11092 = vmatprep.subr.bf16.mxu1 %v24427_v40  ;;  %v24440_v43 = vld [vmem:[%s32429_s2 + $0xd48] ss:$20 sps:$4 sm:$0xff]   ;;  %v24475_v40 = vld [vmem:[%s32429_s2 + $0x1044] ss:$20 sps:$4 sm:$0xff]  }
0x1033   : > { %11051 = vmatprep.subr.bf16.mxu0 %v24412_v30  ;;  %v24443_v45 = vld [vmem:[%s32429_s2 + $0xf78] ss:$20 sps:$4 sm:$0xff]  }
0x1035   : > { %11093 = vmatpush1.bf16.msra.mxu1 %v24425_v8  ;;  %v24473_v8 = vld [vmem:[%s32429_s2 + $0x1040] ss:$20 sps:$4 sm:$0xff]  }
0x1036   : > { %11052 = vmatpush1.bf16.msra.mxu0 %v24410_v28  ;;  %11094 = vmatprep.subr.bf16.mxu1 %v24433_v4  ;;  %v24481_v4 = vld [vmem:[%s32429_s2 + $0x106c] ss:$20 sps:$4 sm:$0xff]  }
0x1037   : > { %11053 = vmatprep.subr.bf16.mxu0 %v24418_v36  ;;  %v24461_v36 = vld [vmem:[%s32429_s2 + $0xff0] ss:$20 sps:$4 sm:$0xff]  }
0x1039   : > { %11095 = vmatpush1.bf16.msra.mxu1 %v24431_v44  ;;  %v24476_v44 = vld [vmem:[%s32429_s2 + $0xe38] ss:$20 sps:$4 sm:$0xff]  }
0x103a   : > { %11054 = vmatpush1.bf16.msra.mxu0 %v24416_v35  ;;  %11096 = vmatprep.subr.bf16.mxu1 %v24439_v24  ;;  %v24469_v35 = vld [vmem:[%s32429_s2 + $0x101c] ss:$20 sps:$4 sm:$0xff]  }
0x103b   : > { %11055 = vmatprep.subr.bf16.mxu0 %v24424_v13  ;;  %v24472_v13 = vld [vmem:[%s32429_s2 + $0xe14] ss:$20 sps:$4 sm:$0xff]  }
0x103d   : > { %11097 = vmatpush1.bf16.msra.mxu1 %v24437_v32 }
0x103e   : > { %11056 = vmatpush1.bf16.msra.mxu0 %v24422_v23  ;;  %11098 = vmatprep.subr.bf16.mxu1 %v24445_v27  ;;  %v24470_v23 = vld [vmem:[%s32429_s2 + $0xe10] ss:$20 sps:$4 sm:$0xff]  }
0x103f   : > { %11057 = vmatprep.subr.bf16.mxu0 %v24430_v31  ;;  %v24478_v31 = vld [vmem:[%s32429_s2 + $0xe3c] ss:$20 sps:$4 sm:$0xff]  }
0x1041   : > { %11099 = vmatpush1.bf16.msra.mxu1 %v24443_v45  ;;  %v24487_v45 = vld [vmem:[%s32429_s2 + $0x10e4] ss:$20 sps:$4 sm:$0xff]  }
0x1042   : > { %11058 = vmatpush1.bf16.msra.mxu0 %v24428_v48  ;;  %11100 = vmatprep.subr.bf16.mxu1 %v24451_v29  ;;  %v24490_v29 = vld [vmem:[%s32429_s2 + $0x10bc] ss:$20 sps:$4 sm:$0xff]  }
0x1043   : > { %11059 = vmatprep.subr.bf16.mxu0 %v24436_v39  ;;  %v24479_v39 = vld [vmem:[%s32429_s2 + $0x1068] ss:$20 sps:$4 sm:$0xff]  }
0x1045   : > { %11101 = vmatpush1.bf16.msra.mxu1 %v24449_v2 }
0x1046   : > { %11060 = vmatpush1.bf16.msra.mxu0 %v24434_v33  ;;  %11102 = vmatprep.subr.bf16.mxu1 %v24457_v11 }
0x1047   : > { %11061 = vmatprep.subr.bf16.mxu0 %v24442_v7 }
0x1049   : > { %11103 = vmatpush1.bf16.msra.mxu1 %v24455_v57 }
0x104a   : > { %11062 = vmatpush1.bf16.msra.mxu0 %v24440_v43  ;;  %11104 = vmatprep.subr.bf16.mxu1 %v24463_v3  ;;  %v24484_v43 = vld [vmem:[%s32429_s2 + $0x1094] ss:$20 sps:$4 sm:$0xff]  }
0x104b   : > { %11063 = vmatprep.subr.bf16.mxu0 %v24448_v46  ;;  %v24482_v46 = vld [vmem:[%s32429_s2 + $0x1090] ss:$20 sps:$4 sm:$0xff]  }
0x104d   : > { %11105 = vmatpush1.bf16.msra.mxu1 %v24461_v36 }
0x104e   : > { %11064 = vmatpush1.bf16.msra.mxu0 %v24446_v55  ;;  %11106 = vmatprep.subr.bf16.mxu1 %v24469_v35  ;;  %v24488_v55 = vld [vmem:[%s32429_s2 + $0x10b8] ss:$20 sps:$4 sm:$0xff]  }
0x104f   : > { %11065 = vmatprep.subr.bf16.mxu0 %v24454_v6 }
0x1051   : > { %11107 = vmatpush1.bf16.msra.mxu1 %v24467_v15 }
0x1052   : > { %11066 = vmatpush1.bf16.msra.mxu0 %v24452_v20  ;;  %11108 = vmatprep.subr.bf16.mxu1 %v24475_v40 }
0x1053   : > { %11067 = vmatprep.subr.bf16.mxu0 %v24460_v18  ;;  %v24499_v18 = vld [vmem:[%s32429_s2 + $0xbec] ss:$20 sps:$4 sm:$0xff]  }
0x1055   : > { %11109 = vmatpush1.bf16.msra.mxu1 %v24473_v8 }
0x1056   : > { %11068 = vmatpush1.bf16.msra.mxu0 %v24458_v59  ;;  %11110 = vmatprep.subr.bf16.mxu1 %v24481_v4 }
0x1059   : > { %11111 = vmatpush1.bf16.msra.mxu1 %v24479_v39 }
0x105a   : > { %11112 = vmatprep.subr.bf16.mxu1 %v24484_v43 }
0x105d   : > { %11113 = vmatpush1.bf16.msra.mxu1 %v24482_v46 }
0x105e   : > { %11114 = vmatprep.subr.bf16.mxu1 %v24490_v29 }
0x1060   : > { %v9360_v41 = vpop.f32.mrb[152].mxu0 }
0x1061   : > { %v9361_v34 = vadd.f32 %v9360_v41, %v28833_v10  ;;  %v9362_v30 = vpop.f32.mrb[153].mxu0  ;;  %v24466_v10 = vld [vmem:[%s32429_s2 + $0xdec] ss:$20 sps:$4 sm:$0xff]   ;;  %11115 = vmatpush1.bf16.msra.mxu1 %v24488_v55 }
0x1062   : > { %v9363_v28 = vadd.f32 %v9362_v30, %v28835_v17  ;;  %v9364_v38 = vpop.f32.mrb[154].mxu0  ;;  %v24464_v17 = vld [vmem:[%s32429_s2 + $0xde8] ss:$20 sps:$4 sm:$0xff]   ;;  %11069 = vmatprep.subr.bf16.mxu0 %v24466_v10  ;;  %11166 = vmatprep.subr.bf16.mxu1 %v24499_v18 }
0x1063   : > { %v9365_v63 = vpop.f32.mrb[155].mxu0  ;;  %11070 = vmatpush1.bf16.msra.mxu0 %v24464_v17 }
0x1064   : > { %11071 = vmatprep.subr.bf16.mxu0 %v24472_v13 }
0x1067   : > { %11072 = vmatpush1.bf16.msra.mxu0 %v24470_v23 }
0x1068   : > { %11073 = vmatprep.subr.bf16.mxu0 %v24478_v31 }
0x106b   : > { %11074 = vmatpush1.bf16.msra.mxu0 %v24476_v44 }
0x106c   : > { %11125 = vmatprep.subr.bf16.mxu0 %v24487_v45 }
0x106f   : > { %v9401_v48 = vpop.f32.mrb[156].mxu1 }
0x1070   : > { %v9402_v24 = vadd.f32 %v9401_v48, %v9361_v34  ;;  %v9403_v33 = vpop.f32.mrb[157].mxu1 }
0x1071   : > { %v9404_v32 = vadd.f32 %v9403_v33, %v9363_v28  ;;  %v9405_v7 = vpop.f32.mrb[158].mxu1 }
0x1072   : > { %v9406_v27 = vpop.f32.mrb[159].mxu1 }
0x1078   : > { %v9442_v2 = vpop.f32.mrb[156].mxu0 }
0x1079   : > { %v29339_v6 = vadd.f32 %v9442_v2, %v9402_v24  ;;  %v9444_v20 = vpop.f32.mrb[157].mxu0 }
0x107a   : > { %v29341_v11 = vadd.f32 %v9444_v20, %v9404_v32  ;;  %v9446_v57 = vpop.f32.mrb[158].mxu0 }
0x107b   : > { %v9447_v3 = vpop.f32.mrb[159].mxu0 }
0x10af   : > { %v9483_v41 = vpop.f32.mrb[160].mxu1 }
0x10b0   : > { %v9484_v34 = vadd.f32 %v9483_v41, %v29057_v60  ;;  %v9485_v30 = vpop.f32.mrb[161].mxu1 }
0x10b1   : > { %v9486_v59 = vadd.f32 %v9485_v30, %v29062_v21  ;;  %v9487_v28 = vpop.f32.mrb[162].mxu1 }
0x10b2   : > { %v9488_v38 = vpop.f32.mrb[163].mxu1  ;;  %v24491_v28 = vld [vmem:[%s32429_s2 + $0x1108] ss:$20 sps:$4 sm:$0xff]  }
0x10b3   : > { %v24496_v38 = vld [vmem:[%s32429_s2 + $0x1134] ss:$20 sps:$4 sm:$0xff]  }
0x10b8   : > { %v9524_v36 = vpop.f32.mrb[160].mxu0 }
0x10b9   : > { %v9525_v63 = vadd.f32 %v9524_v36, %v9484_v34  ;;  %v9526_v10 = vpop.f32.mrb[161].mxu0  ;;  %v24493_v34 = vld [vmem:[%s32429_s2 + $0x110c] ss:$20 sps:$4 sm:$0xff]  }
0x10ba   : > { %v9527_v35 = vadd.f32 %v9526_v10, %v9486_v59  ;;  %v9528_v17 = vpop.f32.mrb[162].mxu0 }
0x10bb   : > { %v9529_v15 = vpop.f32.mrb[163].mxu0  ;;  %v24494_v17 = vld [vmem:[%s32429_s2 + $0x1130] ss:$20 sps:$4 sm:$0xff]  }
0x10c7   : > { %v9565_v23 = vpop.f32.mrb[164].mxu1 }
0x10c8   : > { %v29348_v13 = vadd.f32 %v9565_v23, %v9525_v63  ;;  %v9567_v8 = vpop.f32.mrb[165].mxu1 }
0x10c9   : > { %v29350_v40 = vadd.f32 %v9567_v8, %v9527_v35  ;;  %v9569_v31 = vpop.f32.mrb[166].mxu1 }
0x10ca   : > { %v9570_v4 = vpop.f32.mrb[167].mxu1  ;;  %v24497_v31 = vld [vmem:[%s32429_s2 + $0xbe8] ss:$20 sps:$4 sm:$0xff]  }
0x10cb   : > { %v24502_v4 = vld [vmem:[%s32429_s2 + $0x115c] ss:$20 sps:$4 sm:$0xff]  }
0x10d8   : > { %v22445_v60 = vpop.f32.mrb[164].mxu0 }
0x10d9   : > { %v22446_v48 = vpop.f32.mrb[165].mxu0 }
0x10da   : > { %v22447_v44 = vadd.f32 %v22446_v48, %v22445_v60  ;;  %v22448_v21 = vpop.f32.mrb[166].mxu0 }
0x10db   : > { %v22449_v39 = vpop.f32.mrb[167].mxu0  ;;  %v24505_v21 = vld [vmem:[%s32429_s2 + $0xc14] ss:$20 sps:$4 sm:$0xff]  }
0x10dc   : > { %v9607_v24 = vadd.f32 %v22447_v44, %v29140_v49  ;;  %v24485_v49 = vld [vmem:[%s32429_s2 + $0x10e0] ss:$20 sps:$4 sm:$0xff]   ;;  %v24500_v39 = vld [vmem:[%s32429_s2 + $0x1158] ss:$20 sps:$4 sm:$0xff]  }
0x10e7   : > { %v22467_v33 = vpop.f32.mrb[168].mxu1 }
0x10e8   : > { %v22468_v32 = vpop.f32.mrb[169].mxu1 }
0x10e9   : > { %v22469_v7 = vadd.f32 %v22468_v32, %v22467_v33  ;;  %v22470_v27 = vpop.f32.mrb[170].mxu1  ;;  %v24508_v33 = vld [vmem:[%s32429_s2 + $0x1184] ss:$20 sps:$4 sm:$0xff]   ;;  %v24511_v32 = vld [vmem:[%s32429_s2 + $0xc3c] ss:$20 sps:$4 sm:$0xff]  }
0x10ea   : > { %v22471_v43 = vpop.f32.mrb[171].mxu1  ;;  %v24509_v27 = vld [vmem:[%s32429_s2 + $0xc38] ss:$20 sps:$4 sm:$0xff]  }
0x10eb   : > { %v9647_v45 = vadd.f32 %v22469_v7, %v9607_v24  ;;  %v24503_v24 = vld [vmem:[%s32429_s2 + $0xc10] ss:$20 sps:$4 sm:$0xff]   ;;  %v24506_v7 = vld [vmem:[%s32429_s2 + $0x1180] ss:$20 sps:$4 sm:$0xff]  }
0x10ec   : > { %v24514_v43 = vld [vmem:[%s32429_s2 + $0x11ac] ss:$20 sps:$4 sm:$0xff]  }
0x10ef   : > { %v9730_v46 = vpop.f32.mrb[172].mxu1 }
0x10f0   : > { %v9686_v29 = vpop.f32.mrb[168].mxu0  ;;  %v29353_v55 = vpack.c.bf16 %v9730_v46, %v9730_v46  ;;  %v9732_v2 = vpop.f32.mrb[173].mxu1  ;;  %v24512_v46 = vld [vmem:[%s32429_s2 + $0x11a8] ss:$20 sps:$4 sm:$0xff]  }
0x10f1   : > { %v29355_v20 = vadd.f32 %v9686_v29, %v9647_v45  ;;  %v23058_v57 = vpop.f32.mrb[169].mxu0  ;;  %v29357_v18 = vpack.c.bf16 %v9732_v2, %v9732_v2  ;;  %v9734_v3 = vpop.f32.mrb[174].mxu1  ;;  %v24517_v45 = vld [vmem:[%s32429_s2 + $0xc64] ss:$20 sps:$4 sm:$0xff]   ;;  %v24515_v29 = vld [vmem:[%s32429_s2 + $0xc60] ss:$20 sps:$4 sm:$0xff]  }
0x10f2   : > { %v9689_v41 = vpop.f32.mrb[170].mxu0  ;;  %v9735_v30 = vpop.f32.mrb[175].mxu1  ;;  %v24523_v2 = vld [vmem:[%s32429_s2 + $0xe6c] ss:$20 sps:$4 sm:$0xff]   ;;  %v24521_v3 = vld [vmem:[%s32429_s2 + $0xe68] ss:$20 sps:$4 sm:$0xff]  }
0x10f3   : > { %v23059_v59 = vpop.f32.mrb[171].mxu0  ;;  %11075 = vmatprep.mubr.bf16.mxu0 %v29357_v18  ;;  %v24520_v57 = vld [vmem:[%s32429_s2 + $0xc8c] ss:$20 sps:$4 sm:$0xff]   ;;  %v24518_v41 = vld [vmem:[%s32429_s2 + $0xc88] ss:$20 sps:$4 sm:$0xff]  }
0x10f4   : > { %11076 = vmatmul.mubr.bf16.vlgmr.msra.gmra.mrb[176].mxu0 %v29353_v55  ;;  %v24526_v30 = vld [vmem:[%s32429_s2 + $0xcb4] ss:$20 sps:$4 sm:$0xff]   ;;  %v24527_v59 = vld [vmem:[%s32429_s2 + $0xe90] ss:$20 sps:$4 sm:$0xff]  }
0x10f5   : > { %11126 = vmatpush1.bf16.msra.mxu0 %v24485_v49  ;;  %11157 = vmatprep.mubr.bf16.mxu0 %v25793_v53 }
0x10f6   : > { %11127 = vmatprep.subr.bf16.mxu0 %v24493_v34  ;;  %v24529_v34 = vld [vmem:[%s32429_s2 + $0xe94] ss:$20 sps:$4 sm:$0xff]  }
0x10f7   : > { %v9812_v36 = vpop.f32.mrb[176].mxu1 }
0x10f8   : > { %v9771_v63 = vpop.f32.mrb[172].mxu0  ;;  %v23066_v10 = vpop.f32.mrb[177].mxu1  ;;  %v29429_v49 = vpack.c.bf16 %v9812_v36, %v9812_v36  ;;  %v24532_v36 = vld [vmem:[%s32429_s2 + $0xcdc] ss:$20 sps:$4 sm:$0xff]  }
0x10f9   : > { %v9773_v35 = vpop.f32.mrb[173].mxu0  ;;  %11128 = vmatpush1.bf16.msra.mxu0 %v24491_v28  ;;  %v9815_v15 = vpop.f32.mrb[178].mxu1  ;;  %v29385_v48 = vpack.c.bf16 %v9771_v63, %v9771_v63  ;;  %v24524_v28 = vld [vmem:[%s32429_s2 + $0xcb0] ss:$20 sps:$4 sm:$0xff]   ;;  %v24533_v63 = vld [vmem:[%s32429_s2 + $0xeb8] ss:$20 sps:$4 sm:$0xff]  }
0x10fa   : > { %v29377_v23 = vpack.c.bf16 %v9773_v35, %v9773_v35  ;;  %v9775_v8 = vpop.f32.mrb[174].mxu0  ;;  %11129 = vmatprep.subr.bf16.mxu0 %v24496_v38  ;;  %v23067_v60 = vpop.f32.mrb[179].mxu1  ;;  %v24535_v38 = vld [vmem:[%s32429_s2 + $0xebc] ss:$20 sps:$4 sm:$0xff]   ;;  %v24530_v10 = vld [vmem:[%s32429_s2 + $0xcd8] ss:$20 sps:$4 sm:$0xff]  }
0x10fb   : > { %v9776_v44 = vpop.f32.mrb[175].mxu0  ;;  %v24541_v35 = vld [vmem:[%s32429_s2 + $0xee4] ss:$20 sps:$4 sm:$0xff]   ;;  %v24539_v15 = vld [vmem:[%s32429_s2 + $0xee0] ss:$20 sps:$4 sm:$0xff]  }
0x10fc   : > { %11116 = vmatprep.mubr.bf16.mxu1 %v29377_v23  ;;  %v24536_v8 = vld [vmem:[%s32429_s2 + $0xd00] ss:$20 sps:$4 sm:$0xff]   ;;  %v24545_v60 = vld [vmem:[%s32429_s2 + $0xf08] ss:$20 sps:$4 sm:$0xff]  }
0x10fd   : > { %11117 = vmatmul.mubr.bf16.vlgmr.msra.gmra.mrb[180].mxu1 %v29385_v48  ;;  %11130 = vmatpush1.bf16.msra.mxu0 %v24494_v17  ;;  %v24538_v17 = vld [vmem:[%s32429_s2 + $0xd04] ss:$20 sps:$4 sm:$0xff]   ;;  %v24542_v44 = vld [vmem:[%s32429_s2 + $0xd28] ss:$20 sps:$4 sm:$0xff]  }
0x10fe   : > { %11167 = vmatpush1.bf16.msra.mxu1 %v24497_v31  ;;  %11131 = vmatprep.subr.bf16.mxu0 %v24502_v4  ;;  %v24547_v31 = vld [vmem:[%s32429_s2 + $0xf0c] ss:$20 sps:$4 sm:$0xff]  }
0x10ff   : > { %11168 = vmatprep.subr.bf16.mxu1 %v24505_v21  ;;  %11198 = vmatprep.mubr.bf16.mxu1 %v29357_v18  ;;  %v24544_v4 = vld [vmem:[%s32429_s2 + $0xd2c] ss:$20 sps:$4 sm:$0xff]   ;;  %v24553_v21 = vld [vmem:[%s32429_s2 + $0xf34] ss:$20 sps:$4 sm:$0xff]  }
0x1101   : > { %11132 = vmatpush1.bf16.msra.mxu0 %v24500_v39  ;;  %v24550_v39 = vld [vmem:[%s32429_s2 + $0xd54] ss:$20 sps:$4 sm:$0xff]  }
0x1102   : > { %11169 = vmatpush1.bf16.msra.mxu1 %v24503_v24  ;;  %11133 = vmatprep.subr.bf16.mxu0 %v24508_v33  ;;  %v24551_v24 = vld [vmem:[%s32429_s2 + $0xf30] ss:$20 sps:$4 sm:$0xff]  }
0x1103   : > { %11170 = vmatprep.subr.bf16.mxu1 %v24511_v32  ;;  %v24548_v33 = vld [vmem:[%s32429_s2 + $0xd50] ss:$20 sps:$4 sm:$0xff]  }
0x1104   : > { %v24559_v32 = vld [vmem:[%s32429_s2 + $0xf5c] ss:$20 sps:$4 sm:$0xff]  }
0x1105   : > { %11134 = vmatpush1.bf16.msra.mxu0 %v24506_v7  ;;  %v24556_v7 = vld [vmem:[%s32429_s2 + $0xd7c] ss:$20 sps:$4 sm:$0xff]  }
0x1106   : > { %11171 = vmatpush1.bf16.msra.mxu1 %v24509_v27  ;;  %11135 = vmatprep.subr.bf16.mxu0 %v24514_v43  ;;  %v24557_v27 = vld [vmem:[%s32429_s2 + $0xf58] ss:$20 sps:$4 sm:$0xff]  }
0x1107   : > { %11172 = vmatprep.subr.bf16.mxu1 %v24517_v45  ;;  %v24554_v43 = vld [vmem:[%s32429_s2 + $0xd78] ss:$20 sps:$4 sm:$0xff]  }
0x1108   : > { %v24565_v45 = vld [vmem:[%s32429_s2 + $0xf84] ss:$20 sps:$4 sm:$0xff]  }
0x1109   : > { %11136 = vmatpush1.bf16.msra.mxu0 %v24512_v46  ;;  %v24562_v46 = vld [vmem:[%s32429_s2 + $0xda4] ss:$20 sps:$4 sm:$0xff]  }
0x110a   : > { %11173 = vmatpush1.bf16.msra.mxu1 %v24515_v29  ;;  %11207 = vmatprep.subr.bf16.mxu0 %v24523_v2  ;;  %v24563_v29 = vld [vmem:[%s32429_s2 + $0xf80] ss:$20 sps:$4 sm:$0xff]  }
0x110b   : > { %11174 = vmatprep.subr.bf16.mxu1 %v24520_v57  ;;  %v24560_v2 = vld [vmem:[%s32429_s2 + $0xda0] ss:$20 sps:$4 sm:$0xff]  }
0x110c   : > { %20644 = vmatmul.mubr.msk.bf16.vlgmr.msra.gmra.mrb[180].mxu0 %vm7965_vm5, %v29429_v49  ;;  %v24571_v57 = vld [vmem:[%s32429_s2 + $0xfac] ss:$20 sps:$4 sm:$0xff]  }
0x110d   : > { %11208 = vmatpush1.bf16.msra.mxu0 %v24521_v3  ;;  %11239 = vmatprep.mubr.bf16.mxu0 %v29377_v23  ;;  %v24568_v3 = vld [vmem:[%s32429_s2 + $0xdcc] ss:$20 sps:$4 sm:$0xff]  }
0x110e   : > { %11175 = vmatpush1.bf16.msra.mxu1 %v24518_v41  ;;  %11209 = vmatprep.subr.bf16.mxu0 %v24529_v34  ;;  %v24569_v41 = vld [vmem:[%s32429_s2 + $0xfa8] ss:$20 sps:$4 sm:$0xff]  }
0x110f   : > { %11176 = vmatprep.subr.bf16.mxu1 %v24526_v30  ;;  %v24566_v34 = vld [vmem:[%s32429_s2 + $0xdc8] ss:$20 sps:$4 sm:$0xff]  }
0x1110   : > { %v24577_v30 = vld [vmem:[%s32429_s2 + $0xfd4] ss:$20 sps:$4 sm:$0xff]  }
0x1111   : > { %11210 = vmatpush1.bf16.msra.mxu0 %v24527_v59  ;;  %v24574_v59 = vld [vmem:[%s32429_s2 + $0xdf4] ss:$20 sps:$4 sm:$0xff]  }
0x1112   : > { %11177 = vmatpush1.bf16.msra.mxu1 %v24524_v28  ;;  %11211 = vmatprep.subr.bf16.mxu0 %v24535_v38  ;;  %v24575_v28 = vld [vmem:[%s32429_s2 + $0xfd0] ss:$20 sps:$4 sm:$0xff]  }
0x1113   : > { %11178 = vmatprep.subr.bf16.mxu1 %v24532_v36  ;;  %v24572_v38 = vld [vmem:[%s32429_s2 + $0xdf0] ss:$20 sps:$4 sm:$0xff]  }
0x1114   : > { %v24583_v36 = vld [vmem:[%s32429_s2 + $0xffc] ss:$20 sps:$4 sm:$0xff]  }
0x1115   : > { %11212 = vmatpush1.bf16.msra.mxu0 %v24533_v63  ;;  %v24580_v63 = vld [vmem:[%s32429_s2 + $0xe1c] ss:$20 sps:$4 sm:$0xff]  }
0x1116   : > { %11179 = vmatpush1.bf16.msra.mxu1 %v24530_v10  ;;  %11213 = vmatprep.subr.bf16.mxu0 %v24541_v35  ;;  %v24581_v10 = vld [vmem:[%s32429_s2 + $0xff8] ss:$20 sps:$4 sm:$0xff]  }
0x1117   : > { %11180 = vmatprep.subr.bf16.mxu1 %v24538_v17  ;;  %v24578_v35 = vld [vmem:[%s32429_s2 + $0xe18] ss:$20 sps:$4 sm:$0xff]  }
0x1118   : > { %v24589_v17 = vld [vmem:[%s32429_s2 + $0x1024] ss:$20 sps:$4 sm:$0xff]  }
0x1119   : > { %11214 = vmatpush1.bf16.msra.mxu0 %v24539_v15  ;;  %v24586_v15 = vld [vmem:[%s32429_s2 + $0xe44] ss:$20 sps:$4 sm:$0xff]  }
0x111a   : > { %11181 = vmatpush1.bf16.msra.mxu1 %v24536_v8  ;;  %11215 = vmatprep.subr.bf16.mxu0 %v24547_v31  ;;  %v24587_v8 = vld [vmem:[%s32429_s2 + $0x1020] ss:$20 sps:$4 sm:$0xff]  }
0x111b   : > { %11182 = vmatprep.subr.bf16.mxu1 %v24544_v4  ;;  %v24584_v31 = vld [vmem:[%s32429_s2 + $0xe40] ss:$20 sps:$4 sm:$0xff]  }
0x111c   : > { %v24592_v4 = vld [vmem:[%s32429_s2 + $0x104c] ss:$20 sps:$4 sm:$0xff]  }
0x111d   : > { %11216 = vmatpush1.bf16.msra.mxu0 %v24545_v60  ;;  %v24595_v60 = vld [vmem:[%s32429_s2 + $0x10ec] ss:$20 sps:$4 sm:$0xff]  }
0x111e   : > { %11183 = vmatpush1.bf16.msra.mxu1 %v24542_v44  ;;  %11217 = vmatprep.subr.bf16.mxu0 %v24553_v21  ;;  %v24590_v44 = vld [vmem:[%s32429_s2 + $0x1048] ss:$20 sps:$4 sm:$0xff]  }
0x111f   : > { %11184 = vmatprep.subr.bf16.mxu1 %v24550_v39  ;;  %v24593_v21 = vld [vmem:[%s32429_s2 + $0x10e8] ss:$20 sps:$4 sm:$0xff]  }
0x1120   : > { %v24598_v39 = vld [vmem:[%s32429_s2 + $0x1074] ss:$20 sps:$4 sm:$0xff]  }
0x1121   : > { %11218 = vmatpush1.bf16.msra.mxu0 %v24551_v24  ;;  %v24601_v24 = vld [vmem:[%s32429_s2 + $0x1114] ss:$20 sps:$4 sm:$0xff]  }
0x1122   : > { %11185 = vmatpush1.bf16.msra.mxu1 %v24548_v33  ;;  %11219 = vmatprep.subr.bf16.mxu0 %v24559_v32  ;;  %v24596_v33 = vld [vmem:[%s32429_s2 + $0x1070] ss:$20 sps:$4 sm:$0xff]  }
0x1123   : > { %11186 = vmatprep.subr.bf16.mxu1 %v24556_v7  ;;  %v24599_v32 = vld [vmem:[%s32429_s2 + $0x1110] ss:$20 sps:$4 sm:$0xff]  }
0x1124   : > { %v24604_v7 = vld [vmem:[%s32429_s2 + $0x109c] ss:$20 sps:$4 sm:$0xff]  }
0x1125   : > { %11220 = vmatpush1.bf16.msra.mxu0 %v24557_v27  ;;  %v24607_v27 = vld [vmem:[%s32429_s2 + $0x113c] ss:$20 sps:$4 sm:$0xff]  }
0x1126   : > { %11187 = vmatpush1.bf16.msra.mxu1 %v24554_v43  ;;  %11221 = vmatprep.subr.bf16.mxu0 %v24565_v45  ;;  %v24602_v43 = vld [vmem:[%s32429_s2 + $0x1098] ss:$20 sps:$4 sm:$0xff]  }
0x1127   : > { %11188 = vmatprep.subr.bf16.mxu1 %v24562_v46  ;;  %v24605_v45 = vld [vmem:[%s32429_s2 + $0x1138] ss:$20 sps:$4 sm:$0xff]  }
0x1128   : > { %v24610_v46 = vld [vmem:[%s32429_s2 + $0x10c4] ss:$20 sps:$4 sm:$0xff]  }
0x1129   : > { %11222 = vmatpush1.bf16.msra.mxu0 %v24563_v29  ;;  %v24613_v29 = vld [vmem:[%s32429_s2 + $0x1164] ss:$20 sps:$4 sm:$0xff]  }
0x112a   : > { %11189 = vmatpush1.bf16.msra.mxu1 %v24560_v2  ;;  %11223 = vmatprep.subr.bf16.mxu0 %v24571_v57  ;;  %v24608_v2 = vld [vmem:[%s32429_s2 + $0x10c0] ss:$20 sps:$4 sm:$0xff]  }
0x112b   : > { %11190 = vmatprep.subr.bf16.mxu1 %v24568_v3  ;;  %v24611_v57 = vld [vmem:[%s32429_s2 + $0x1160] ss:$20 sps:$4 sm:$0xff]   ;;  %v24617_v3 = vld [vmem:[%s32429_s2 + $0xd30] ss:$20 sps:$4 sm:$0xff]  }
0x112d   : > { %11224 = vmatpush1.bf16.msra.mxu0 %v24569_v41  ;;  %v24616_v41 = vld [vmem:[%s32429_s2 + $0x118c] ss:$20 sps:$4 sm:$0xff]  }
0x112e   : > { %11191 = vmatpush1.bf16.msra.mxu1 %v24566_v34  ;;  %11225 = vmatprep.subr.bf16.mxu0 %v24577_v30  ;;  %v24618_v34 = vld [vmem:[%s32429_s2 + $0xbf0] ss:$20 sps:$4 sm:$0xff]   ;;  %v24614_v30 = vld [vmem:[%s32429_s2 + $0x1188] ss:$20 sps:$4 sm:$0xff]  }
0x112f   : > { %11192 = vmatprep.subr.bf16.mxu1 %v24574_v59  ;;  %v24622_v59 = vld [vmem:[%s32429_s2 + $0xd58] ss:$20 sps:$4 sm:$0xff]  }
0x1131   : > { %11226 = vmatpush1.bf16.msra.mxu0 %v24575_v28  ;;  %v24621_v28 = vld [vmem:[%s32429_s2 + $0x11b4] ss:$20 sps:$4 sm:$0xff]  }
0x1132   : > { %11193 = vmatpush1.bf16.msra.mxu1 %v24572_v38  ;;  %11227 = vmatprep.subr.bf16.mxu0 %v24583_v36  ;;  %v24623_v38 = vld [vmem:[%s32429_s2 + $0xc18] ss:$20 sps:$4 sm:$0xff]   ;;  %v24619_v36 = vld [vmem:[%s32429_s2 + $0x11b0] ss:$20 sps:$4 sm:$0xff]  }
0x1133   : > { %11194 = vmatprep.subr.bf16.mxu1 %v24580_v63  ;;  %v24624_v63 = vld [vmem:[%s32429_s2 + $0xd80] ss:$20 sps:$4 sm:$0xff]  }
0x1135   : > { %11228 = vmatpush1.bf16.msra.mxu0 %v24581_v10  ;;  %v24625_v10 = vld [vmem:[%s32429_s2 + $0xfb0] ss:$20 sps:$4 sm:$0xff]  }
0x1136   : > { %11195 = vmatpush1.bf16.msra.mxu1 %v24578_v35  ;;  %11229 = vmatprep.subr.bf16.mxu0 %v24589_v17  ;;  %v24627_v35 = vld [vmem:[%s32429_s2 + $0xe70] ss:$20 sps:$4 sm:$0xff]   ;;  %v24628_v17 = vld [vmem:[%s32429_s2 + $0xda8] ss:$20 sps:$4 sm:$0xff]  }
0x1137   : > { %11196 = vmatprep.subr.bf16.mxu1 %v24586_v15  ;;  %v24629_v15 = vld [vmem:[%s32429_s2 + $0xfd8] ss:$20 sps:$4 sm:$0xff]  }
0x1139   : > { %11230 = vmatpush1.bf16.msra.mxu0 %v24587_v8  ;;  %v24630_v8 = vld [vmem:[%s32429_s2 + $0xc68] ss:$20 sps:$4 sm:$0xff]  }
0x113a   : > { %11197 = vmatpush1.bf16.msra.mxu1 %v24584_v31  ;;  %11231 = vmatprep.subr.bf16.mxu0 %v24592_v4  ;;  %v24631_v31 = vld [vmem:[%s32429_s2 + $0xe98] ss:$20 sps:$4 sm:$0xff]   ;;  %v24632_v4 = vld [vmem:[%s32429_s2 + $0xdd0] ss:$20 sps:$4 sm:$0xff]  }
0x113b   : > { %11248 = vmatprep.subr.bf16.mxu1 %v24595_v60  ;;  %v24633_v60 = vld [vmem:[%s32429_s2 + $0x1000] ss:$20 sps:$4 sm:$0xff]  }
0x113d   : > { %11199 = vmatmul.mubr.bf16.vlgmr.msra.gmra.mrb[184].mxu1 %v29353_v55  ;;  %11232 = vmatpush1.bf16.msra.mxu0 %v24590_v44  ;;  %v24634_v44 = vld [vmem:[%s32429_s2 + $0xc90] ss:$20 sps:$4 sm:$0xff]  }
0x113e   : > { %11249 = vmatpush1.bf16.msra.mxu1 %v24593_v21  ;;  %11233 = vmatprep.subr.bf16.mxu0 %v24598_v39  ;;  %v24636_v21 = vld [vmem:[%s32429_s2 + $0xdf8] ss:$20 sps:$4 sm:$0xff]   ;;  %v24637_v39 = vld [vmem:[%s32429_s2 + $0x1028] ss:$20 sps:$4 sm:$0xff]  }
0x113f   : > { %11250 = vmatprep.subr.bf16.mxu1 %v24601_v24  ;;  %11280 = vmatprep.mubr.bf16.mxu1 %v25793_v53  ;;  %v24638_v24 = vld [vmem:[%s32429_s2 + $0xcb8] ss:$20 sps:$4 sm:$0xff]  }
0x1141   : > { %11234 = vmatpush1.bf16.msra.mxu0 %v24596_v33  ;;  %v24639_v33 = vld [vmem:[%s32429_s2 + $0xee8] ss:$20 sps:$4 sm:$0xff]  }
0x1142   : > { %11251 = vmatpush1.bf16.msra.mxu1 %v24599_v32  ;;  %11235 = vmatprep.subr.bf16.mxu0 %v24604_v7  ;;  %v24640_v32 = vld [vmem:[%s32429_s2 + $0xe20] ss:$20 sps:$4 sm:$0xff]   ;;  %v24641_v7 = vld [vmem:[%s32429_s2 + $0x1050] ss:$20 sps:$4 sm:$0xff]  }
0x1143   : > { %11252 = vmatprep.subr.bf16.mxu1 %v24607_v27  ;;  %v24642_v27 = vld [vmem:[%s32429_s2 + $0xce0] ss:$20 sps:$4 sm:$0xff]  }
0x1145   : > { %11236 = vmatpush1.bf16.msra.mxu0 %v24602_v43  ;;  %v24643_v43 = vld [vmem:[%s32429_s2 + $0xf10] ss:$20 sps:$4 sm:$0xff]  }
0x1146   : > { %11253 = vmatpush1.bf16.msra.mxu1 %v24605_v45  ;;  %11237 = vmatprep.subr.bf16.mxu0 %v24610_v46  ;;  %v24644_v45 = vld [vmem:[%s32429_s2 + $0xe48] ss:$20 sps:$4 sm:$0xff]   ;;  %v24645_v46 = vld [vmem:[%s32429_s2 + $0x1078] ss:$20 sps:$4 sm:$0xff]  }
0x1147   : > { %11254 = vmatprep.subr.bf16.mxu1 %v24613_v29  ;;  %v24646_v29 = vld [vmem:[%s32429_s2 + $0xd08] ss:$20 sps:$4 sm:$0xff]  }
0x1149   : > { %11238 = vmatpush1.bf16.msra.mxu0 %v24608_v2  ;;  %v24647_v2 = vld [vmem:[%s32429_s2 + $0xf38] ss:$20 sps:$4 sm:$0xff]  }
0x114a   : > { %11255 = vmatpush1.bf16.msra.mxu1 %v24611_v57  ;;  %22483 = vmatprep.subr.bf16.mxu0 %v24617_v3  ;;  %v24648_v57 = vld [vmem:[%s32429_s2 + $0x10a0] ss:$20 sps:$4 sm:$0xff]   ;;  %v24650_v3 = vld [vmem:[%s32429_s2 + $0x10f0] ss:$20 sps:$4 sm:$0xff]  }
0x114b   : > { %11256 = vmatprep.subr.bf16.mxu1 %v24616_v41  ;;  %v24649_v41 = vld [vmem:[%s32429_s2 + $0xf60] ss:$20 sps:$4 sm:$0xff]  }
0x114c   : > { %11240 = vmatmul.mubr.bf16.vlgmr.msra.gmra.mrb[184].mxu0 %v29385_v48 }
0x114d   : > { %22484 = vmatpush3.bf16.msra.mxu0 %v24618_v34  ;;  %11321 = vmatprep.mubr.bf16.mxu0 %v29357_v18  ;;  %v24626_v18 = vld [vmem:[%s32429_s2 + $0xc40] ss:$20 sps:$4 sm:$0xff]   ;;  %v24651_v34 = vld [vmem:[%s32429_s2 + $0x10c8] ss:$20 sps:$4 sm:$0xff]  }
0x114e   : > { %11257 = vmatpush1.bf16.msra.mxu1 %v24614_v30  ;;  %22485 = vmatprep.subr.bf16.mxu0 %v24622_v59  ;;  %v24653_v30 = vld [vmem:[%s32429_s2 + $0x1118] ss:$20 sps:$4 sm:$0xff]   ;;  %v24652_v59 = vld [vmem:[%s32429_s2 + $0xf88] ss:$20 sps:$4 sm:$0xff]  }
0x114f   : > { %11258 = vmatprep.subr.bf16.mxu1 %v24621_v28  ;;  %v24655_v28 = vld [vmem:[%s32429_s2 + $0x1168] ss:$20 sps:$4 sm:$0xff]  }
0x1151   : > { %22486 = vmatpush3.bf16.msra.mxu0 %v24623_v38  ;;  %v29762_v38 = vpack.c.bf16 %v26291_v19, %v26291_v19  ;;  %v24657_v19 = vld [vmem:[%s32429_s2 + $0x11b8] ss:$20 sps:$4 sm:$0xff]  }
0x1152   : > { %11259 = vmatpush1.bf16.msra.mxu1 %v24619_v36  ;;  %22487 = vmatprep.subr.bf16.mxu0 %v24624_v63  ;;  %v24660_v36 = vld [vmem:[%s32429_s2 + $0x11d4] ss:$20 sps:$4 sm:$0xff]   ;;  %v24663_v63 = vld [vmem:[%s32429_s2 + $0x11fc] ss:$20 sps:$4 sm:$0xff]  }
0x1153   : > { %22505 = vmatprep.subr.bf16.mxu1 %v24625_v10  ;;  %v24667_v10 = vld [vmem:[%s32429_s2 + $0x1450] ss:$20 sps:$4 sm:$0xff]  }
0x1155   : > { %20645 = vmatmul.mubr.msk.bf16.vlgmr.msra.gmra.mrb[188].mxu1 %vm7965_vm5, %v29429_v49  ;;  %22488 = vmatpush3.bf16.msra.mxu0 %v24626_v18  ;;  %v24661_v18 = vld [vmem:[%s32429_s2 + $0x11f8] ss:$20 sps:$4 sm:$0xff]  }
0x1156   : > { %22506 = vmatpush3.bf16.msra.mxu1 %v24627_v35  ;;  %11361 = vmatprep.mubr.bf16.mxu1 %v29377_v23  ;;  %v24635_v23 = vld [vmem:[%s32429_s2 + $0xec0] ss:$20 sps:$4 sm:$0xff]  }
0x1157   : > { %22489 = vmatprep.subr.bf16.mxu0 %v24628_v17  ;;  %22507 = vmatprep.subr.bf16.mxu1 %v24629_v15  ;;  %v24669_v35 = vld [vmem:[%s32429_s2 + $0x1454] ss:$20 sps:$4 sm:$0xff]   ;;  %v24666_v17 = vld [vmem:[%s32429_s2 + $0x1224] ss:$20 sps:$4 sm:$0xff]  }
0x1158   : > { %v24664_v15 = vld [vmem:[%s32429_s2 + $0x1220] ss:$20 sps:$4 sm:$0xff]  }
0x1159   : > { %22490 = vmatpush3.bf16.msra.mxu0 %v24630_v8  ;;  %v24672_v8 = vld [vmem:[%s32429_s2 + $0x124c] ss:$20 sps:$4 sm:$0xff]  }
0x115a   : > { %22508 = vmatpush3.bf16.msra.mxu1 %v24631_v31  ;;  %22491 = vmatprep.subr.bf16.mxu0 %v24632_v4  ;;  %v24675_v31 = vld [vmem:[%s32429_s2 + $0x147c] ss:$20 sps:$4 sm:$0xff]  }
0x115b   : > { %22509 = vmatprep.subr.bf16.mxu1 %v24633_v60  ;;  %v24670_v4 = vld [vmem:[%s32429_s2 + $0x1248] ss:$20 sps:$4 sm:$0xff]   ;;  %v24673_v60 = vld [vmem:[%s32429_s2 + $0x1478] ss:$20 sps:$4 sm:$0xff]  }
0x115d   : > { %22492 = vmatpush3.bf16.msra.mxu0 %v24634_v44  ;;  %v24676_v44 = vld [vmem:[%s32429_s2 + $0x1270] ss:$20 sps:$4 sm:$0xff]  }
0x115e   : > { %22510 = vmatpush3.bf16.msra.mxu1 %v24635_v23  ;;  %22493 = vmatprep.subr.bf16.mxu0 %v24636_v21  ;;  %v24678_v23 = vld [vmem:[%s32429_s2 + $0x1274] ss:$20 sps:$4 sm:$0xff]  }
0x115f   : > { %22511 = vmatprep.subr.bf16.mxu1 %v24637_v39  ;;  %v24679_v21 = vld [vmem:[%s32429_s2 + $0x14a0] ss:$20 sps:$4 sm:$0xff]   ;;  %v24681_v39 = vld [vmem:[%s32429_s2 + $0x14a4] ss:$20 sps:$4 sm:$0xff]  }
0x1161   : > { %22494 = vmatpush3.bf16.msra.mxu0 %v24638_v24  ;;  %v24684_v24 = vld [vmem:[%s32429_s2 + $0x129c] ss:$20 sps:$4 sm:$0xff]  }
0x1162   : > { %22512 = vmatpush3.bf16.msra.mxu1 %v24639_v33  ;;  %22495 = vmatprep.subr.bf16.mxu0 %v24640_v32  ;;  %v24687_v33 = vld [vmem:[%s32429_s2 + $0x14cc] ss:$20 sps:$4 sm:$0xff]  }
0x1163   : > { %22513 = vmatprep.subr.bf16.mxu1 %v24641_v7  ;;  %v24682_v32 = vld [vmem:[%s32429_s2 + $0x1298] ss:$20 sps:$4 sm:$0xff]   ;;  %v24685_v7 = vld [vmem:[%s32429_s2 + $0x14c8] ss:$20 sps:$4 sm:$0xff]  }
0x1165   : > { %22496 = vmatpush3.bf16.msra.mxu0 %v24642_v27  ;;  %v24690_v27 = vld [vmem:[%s32429_s2 + $0x12c4] ss:$20 sps:$4 sm:$0xff]  }
0x1166   : > { %22514 = vmatpush3.bf16.msra.mxu1 %v24643_v43  ;;  %22497 = vmatprep.subr.bf16.mxu0 %v24644_v45  ;;  %v24693_v43 = vld [vmem:[%s32429_s2 + $0x14f4] ss:$20 sps:$4 sm:$0xff]  }
0x1167   : > { %22515 = vmatprep.subr.bf16.mxu1 %v24645_v46  ;;  %v24688_v45 = vld [vmem:[%s32429_s2 + $0x12c0] ss:$20 sps:$4 sm:$0xff]   ;;  %v24691_v46 = vld [vmem:[%s32429_s2 + $0x14f0] ss:$20 sps:$4 sm:$0xff]  }
0x1169   : > { %22498 = vmatpush3.bf16.msra.mxu0 %v24646_v29  ;;  %v24696_v29 = vld [vmem:[%s32429_s2 + $0x12ec] ss:$20 sps:$4 sm:$0xff]  }
0x116a   : > { %22516 = vmatpush3.bf16.msra.mxu1 %v24647_v2  ;;  %23068 = vmatprep.subr.bf16.mxu0 %v25792_v12  ;;  %v24694_v2 = vld [vmem:[%s32429_s2 + $0x12e8] ss:$20 sps:$4 sm:$0xff]  }
0x116b   : > { %22517 = vmatprep.subr.bf16.mxu1 %v24648_v57  ;;  %v24699_v57 = vld [vmem:[%s32429_s2 + $0x151c] ss:$20 sps:$4 sm:$0xff]  }
0x116c   : > { %11322 = vmatmul.mubr.bf16.vlgmr.msra.gmra.mrb[188].mxu0 %v29353_v55  ;;  %v24654_v55 = vld [vmem:[%s32429_s2 + $0x1140] ss:$20 sps:$4 sm:$0xff]  }
0x116d   : > { %23069 = vmatpush3.bf16.msra.mxu0 %v24650_v3  ;;  %23080 = vmatprep.mubr.msk.bf16.mxu0 %vm25794_vm2, %v25792_v12  ;;  %v24697_v3 = vld [vmem:[%s32429_s2 + $0x1518] ss:$20 sps:$4 sm:$0xff]  }
0x116e   : > { %22518 = vmatpush3.bf16.msra.mxu1 %v24649_v41  ;;  %23070 = vmatprep.subr.bf16.mxu0 %v25792_v12  ;;  %v24702_v41 = vld [vmem:[%s32429_s2 + $0x1314] ss:$20 sps:$4 sm:$0xff]  }
0x116f   : > { %22519 = vmatprep.subr.bf16.mxu1 %v24651_v34  ;;  %v24705_v34 = vld [vmem:[%s32429_s2 + $0x1544] ss:$20 sps:$4 sm:$0xff]  }
0x1171   : > { %23071 = vmatpush3.bf16.msra.mxu0 %v24653_v30  ;;  %v24700_v30 = vld [vmem:[%s32429_s2 + $0x1310] ss:$20 sps:$4 sm:$0xff]  }
0x1172   : > { %22520 = vmatpush3.bf16.msra.mxu1 %v24652_v59  ;;  %23072 = vmatprep.subr.bf16.mxu0 %v25792_v12  ;;  %v24703_v59 = vld [vmem:[%s32429_s2 + $0x1540] ss:$20 sps:$4 sm:$0xff]  }
0x1173   : > { %11418 = vmatprep.subr.bf16.mxu1 %v27786_v51 }
0x1175   : > { %11362 = vmatmul.mubr.bf16.vlgmr.msra.gmra.mrb[192].mxu1 %v29385_v48  ;;  %23073 = vmatpush3.bf16.msra.mxu0 %v24654_v55  ;;  %v24656_v48 = vld [vmem:[%s32429_s2 + $0x1190] ss:$20 sps:$4 sm:$0xff]  }
0x1176   : > { %11419 = vmatpush1.bf16.msra.mxu1 %v27782_v52  ;;  %23074 = vmatprep.subr.bf16.mxu0 %v25792_v12  ;;  %v24708_v55 = vld [vmem:[%s32429_s2 + $0x133c] ss:$20 sps:$4 sm:$0xff]  }
0x1177   : > { %20647 = vmatprep.subr.msk.bf16.mxu1 %vm6246_vm3, %v27797_v50  ;;  %11450 = vmatprep.mubr.bf16.mxu1 %v25793_v53 }
0x1179   : > { %23075 = vmatpush3.bf16.msra.mxu0 %v24655_v28  ;;  %v24711_v28 = vld [vmem:[%s32429_s2 + $0x156c] ss:$20 sps:$4 sm:$0xff]  }
0x117a   : > { %11421 = vmatpush1.bf16.msra.mxu1 %v27800_v62  ;;  %23076 = vmatprep.subr.bf16.mxu0 %v25792_v12 }
0x117b   : > { %11459 = vmatprep.subr.bf16.mxu1 %v27788_v16 }
0x117d   : > { %20648 = vmatmul.mubr.msk.bf16.vlgmr.msra.gmra.mrb[196].mxu1 %vm6242_vm4, %v29762_v38  ;;  %23077 = vmatpush3.bf16.msra.mxu0 %v24656_v48  ;;  %v24706_v48 = vld [vmem:[%s32429_s2 + $0x1338] ss:$20 sps:$4 sm:$0xff]  }
0x117e   : > { %11460 = vmatpush1.bf16.msra.mxu1 %v27784_v26  ;;  %23078 = vmatprep.subr.bf16.mxu0 %v25792_v12 }
0x117f   : > { %20649 = vmatprep.subr.msk.bf16.mxu1 %vm6246_vm3, %v27814_v54  ;;  %11491 = vmatprep.mubr.bf16.mxu1 %v25793_v53 }
0x1181   : > { %23079 = vmatpush3.bf16.msra.mxu0 %v24657_v19  ;;  %v24709_v19 = vld [vmem:[%s32429_s2 + $0x1568] ss:$20 sps:$4 sm:$0xff]  }
0x1182   : > { %11462 = vmatpush1.bf16.msra.mxu1 %v27825_v22  ;;  %12765 = vmatprep.subr.bf16.mxu0 %v24660_v36  ;;  %v24714_v36 = vld [vmem:[%s32429_s2 + $0x1364] ss:$20 sps:$4 sm:$0xff]  }
0x1183   : > { %23084 = vmatprep.subr.bf16.mxu1 %v25792_v12 }
0x1184   : > { %23081 = vmatmul.mubr.msk.bf16.vlgmr.msra.gmra.mrb[192].mxu0 %vm7965_vm5, %v29429_v49  ;;  %v24658_v49 = vld [vmem:[%s32429_s2 + $0x11d0] ss:$20 sps:$4 sm:$0xff]  }
0x1185   : > { %20650 = vmatmul.mubr.msk.bf16.vlgmr.msra.gmra.mrb[200].mxu1 %vm6242_vm4, %v29762_v38  ;;  %12766 = vmatpush1.bf16.msra.mxu0 %v24658_v49  ;;  %v24717_v49 = vld [vmem:[%s32429_s2 + $0x1594] ss:$20 sps:$4 sm:$0xff]  }
0x1186   : > { %23085 = vmatpush3.bf16.msra.mxu1 %v27829_v58  ;;  %23088 = vmatprep.mubr.msk.bf16.mxu1 %vm25794_vm2, %v25792_v12 }
0x1187   : > { %23086 = vmatprep.subr.bf16.mxu1 %v25792_v12  ;;  %12767 = vmatprep.subr.bf16.mxu0 %v24663_v63  ;;  %v24712_v63 = vld [vmem:[%s32429_s2 + $0x1360] ss:$20 sps:$4 sm:$0xff]  }
0x1189   : > { %12768 = vmatpush1.bf16.msra.mxu0 %v24661_v18  ;;  %v24720_v18 = vld [vmem:[%s32429_s2 + $0x138c] ss:$20 sps:$4 sm:$0xff]  }
0x118a   : > { %23087 = vmatpush3.bf16.msra.mxu1 %v27844_v0  ;;  %12769 = vmatprep.subr.bf16.mxu0 %v24666_v17  ;;  %v24718_v17 = vld [vmem:[%s32429_s2 + $0x1388] ss:$20 sps:$4 sm:$0xff]  }
0x118b   : > { %12806 = vmatprep.subr.bf16.mxu1 %v24669_v35  ;;  %v24723_v35 = vld [vmem:[%s32429_s2 + $0x15bc] ss:$20 sps:$4 sm:$0xff]  }
0x118d   : > { %23089 = vmatmul.mubr.msk.bf16.vlgmr.msra.gmra.mrb[204].mxu1 %vm6242_vm4, %v29762_v38  ;;  %12770 = vmatpush1.bf16.msra.mxu0 %v24664_v15  ;;  %v24721_v15 = vld [vmem:[%s32429_s2 + $0x15b8] ss:$20 sps:$4 sm:$0xff]  }
0x118e   : > { %12807 = vmatpush1.bf16.msra.mxu1 %v24667_v10  ;;  %12771 = vmatprep.subr.bf16.mxu0 %v24672_v8  ;;  %v24715_v10 = vld [vmem:[%s32429_s2 + $0x1590] ss:$20 sps:$4 sm:$0xff]  }
0x118f   : > { %12808 = vmatprep.subr.bf16.mxu1 %v24675_v31  ;;  %v24724_v8 = vld [vmem:[%s32429_s2 + $0x13b0] ss:$20 sps:$4 sm:$0xff]   ;;  %v24726_v31 = vld [vmem:[%s32429_s2 + $0x13b4] ss:$20 sps:$4 sm:$0xff]  }
0x1191   : > { %12772 = vmatpush1.bf16.msra.mxu0 %v24670_v4  ;;  %v24727_v4 = vld [vmem:[%s32429_s2 + $0x15e0] ss:$20 sps:$4 sm:$0xff]  }
0x1192   : > { %12809 = vmatpush1.bf16.msra.mxu1 %v24673_v60  ;;  %12773 = vmatprep.subr.bf16.mxu0 %v24678_v23  ;;  %v24729_v60 = vld [vmem:[%s32429_s2 + $0x15e4] ss:$20 sps:$4 sm:$0xff]   ;;  %v24735_v23 = vld [vmem:[%s32429_s2 + $0x160c] ss:$20 sps:$4 sm:$0xff]  }
0x1193   : > { %12810 = vmatprep.subr.bf16.mxu1 %v24681_v39  ;;  %v24730_v39 = vld [vmem:[%s32429_s2 + $0x13d8] ss:$20 sps:$4 sm:$0xff]  }
0x1195   : > { %12774 = vmatpush1.bf16.msra.mxu0 %v24676_v44  ;;  %v24732_v44 = vld [vmem:[%s32429_s2 + $0x13dc] ss:$20 sps:$4 sm:$0xff]  }
0x1196   : > { %12811 = vmatpush1.bf16.msra.mxu1 %v24679_v21  ;;  %12775 = vmatprep.subr.bf16.mxu0 %v24684_v24  ;;  %v24733_v24 = vld [vmem:[%s32429_s2 + $0x1608] ss:$20 sps:$4 sm:$0xff]  }
0x1197   : > { %12812 = vmatprep.subr.bf16.mxu1 %v24687_v33 }
0x1199   : > { %12776 = vmatpush1.bf16.msra.mxu0 %v24682_v32 }
0x119a   : > { %12813 = vmatpush1.bf16.msra.mxu1 %v24685_v7  ;;  %12777 = vmatprep.subr.bf16.mxu0 %v24690_v27  ;;  %v24738_v27 = vld [vmem:[%s32429_s2 + $0x1404] ss:$20 sps:$4 sm:$0xff]  }
0x119b   : > { %12814 = vmatprep.subr.bf16.mxu1 %v24693_v43  ;;  %v24741_v43 = vld [vmem:[%s32429_s2 + $0x1634] ss:$20 sps:$4 sm:$0xff]  }
0x119d   : > { %12778 = vmatpush1.bf16.msra.mxu0 %v24688_v45  ;;  %v24736_v45 = vld [vmem:[%s32429_s2 + $0x1400] ss:$20 sps:$4 sm:$0xff]  }
0x119e   : > { %12815 = vmatpush1.bf16.msra.mxu1 %v24691_v46  ;;  %12779 = vmatprep.subr.bf16.mxu0 %v24696_v29  ;;  %v24739_v46 = vld [vmem:[%s32429_s2 + $0x1630] ss:$20 sps:$4 sm:$0xff]   ;;  %v24744_v29 = vld [vmem:[%s32429_s2 + $0x142c] ss:$20 sps:$4 sm:$0xff]  }
0x119f   : > { %12816 = vmatprep.subr.bf16.mxu1 %v24699_v57  ;;  %v24742_v57 = vld [vmem:[%s32429_s2 + $0x1428] ss:$20 sps:$4 sm:$0xff]  }
0x11a1   : > { %12780 = vmatpush1.bf16.msra.mxu0 %v24694_v2  ;;  %v24747_v2 = vld [vmem:[%s32429_s2 + $0x165c] ss:$20 sps:$4 sm:$0xff]  }
0x11a2   : > { %12817 = vmatpush1.bf16.msra.mxu1 %v24697_v3  ;;  %12781 = vmatprep.subr.bf16.mxu0 %v24702_v41  ;;  %v24745_v3 = vld [vmem:[%s32429_s2 + $0x1658] ss:$20 sps:$4 sm:$0xff]  }
0x11a3   : > { %12818 = vmatprep.subr.bf16.mxu1 %v24705_v34 }
0x11a5   : > { %12782 = vmatpush1.bf16.msra.mxu0 %v24700_v30 }
0x11a6   : > { %12819 = vmatpush1.bf16.msra.mxu1 %v24703_v59  ;;  %12783 = vmatprep.subr.bf16.mxu0 %v24708_v55 }
0x11a7   : > { %12820 = vmatprep.subr.bf16.mxu1 %v24711_v28  ;;  %v24750_v28 = vld [vmem:[%s32429_s2 + $0x1684] ss:$20 sps:$4 sm:$0xff]  }
0x11a9   : > { %12784 = vmatpush1.bf16.msra.mxu0 %v24706_v48  ;;  %v24753_v48 = vld [vmem:[%s32429_s2 + $0x16d4] ss:$20 sps:$4 sm:$0xff]  }
0x11aa   : > { %12821 = vmatpush1.bf16.msra.mxu1 %v24709_v19  ;;  %12785 = vmatprep.subr.bf16.mxu0 %v24714_v36  ;;  %v24748_v36 = vld [vmem:[%s32429_s2 + $0x1680] ss:$20 sps:$4 sm:$0xff]  }
0x11ab   : > { %12822 = vmatprep.subr.bf16.mxu1 %v24717_v49  ;;  %v24756_v49 = vld [vmem:[%s32429_s2 + $0x16ac] ss:$20 sps:$4 sm:$0xff]  }
0x11ad   : > { %12786 = vmatpush1.bf16.msra.mxu0 %v24712_v63  ;;  %v24754_v63 = vld [vmem:[%s32429_s2 + $0x16a8] ss:$20 sps:$4 sm:$0xff]  }
0x11ae   : > { %12823 = vmatpush1.bf16.msra.mxu1 %v24715_v10  ;;  %12787 = vmatprep.subr.bf16.mxu0 %v24720_v18  ;;  %v24765_v10 = vld [vmem:[%s32429_s2 + $0x11dc] ss:$20 sps:$4 sm:$0xff]  }
0x11af   : > { %12824 = vmatprep.subr.bf16.mxu1 %v24723_v35 }
0x11b1   : > { %12788 = vmatpush1.bf16.msra.mxu0 %v24718_v17 }
0x11b2   : > { %12825 = vmatpush1.bf16.msra.mxu1 %v24721_v15  ;;  %12789 = vmatprep.subr.bf16.mxu0 %v24726_v31 }
0x11b3   : > { %12826 = vmatprep.subr.bf16.mxu1 %v24729_v60 }
0x11b5   : > { %12790 = vmatpush1.bf16.msra.mxu0 %v24724_v8 }
0x11b6   : > { %12827 = vmatpush1.bf16.msra.mxu1 %v24727_v4  ;;  %12791 = vmatprep.subr.bf16.mxu0 %v24732_v44 }
0x11b7   : > { %12828 = vmatprep.subr.bf16.mxu1 %v24735_v23 }
0x11b9   : > { %12792 = vmatpush1.bf16.msra.mxu0 %v24730_v39 }
0x11ba   : > { %12829 = vmatpush1.bf16.msra.mxu1 %v24733_v24  ;;  %12793 = vmatprep.subr.bf16.mxu0 %v24738_v27 }
0x11bb   : > { %12830 = vmatprep.subr.bf16.mxu1 %v24741_v43 }
0x11bd   : > { %12794 = vmatpush1.bf16.msra.mxu0 %v24736_v45 }
0x11be   : > { %12831 = vmatpush1.bf16.msra.mxu1 %v24739_v46  ;;  %12795 = vmatprep.subr.bf16.mxu0 %v24744_v29 }
0x11bf   : > { %12832 = vmatprep.subr.bf16.mxu1 %v24747_v2 }
0x11c1   : > { %12796 = vmatpush1.bf16.msra.mxu0 %v24742_v57 }
0x11c2   : > { %12833 = vmatpush1.bf16.msra.mxu1 %v24745_v3  ;;  %12847 = vmatprep.subr.bf16.mxu0 %v24753_v48 }
0x11c3   : > { %12834 = vmatprep.subr.bf16.mxu1 %v24750_v28 }
0x11c6   : > { %12835 = vmatpush1.bf16.msra.mxu1 %v24748_v36 }
0x11c7   : > { %v11077_v21 = vpop.f32.mrb[176].mxu0  ;;  %12836 = vmatprep.subr.bf16.mxu1 %v24756_v49 }
0x11c8   : > { %v11079_v33 = vpop.f32.mrb[177].mxu0 }
0x11c9   : > { %v11081_v32 = vpop.f32.mrb[178].mxu0 }
0x11ca   : > { %v11082_v7 = vpop.f32.mrb[179].mxu0  ;;  %12837 = vmatpush1.bf16.msra.mxu1 %v24754_v63 }
0x11cb   : > { %12888 = vmatprep.subr.bf16.mxu1 %v24765_v10 }
0x11d0   : > { %v11118_v41 = vpop.f32.mrb[180].mxu1 }
0x11d1   : > { %v11119_v34 = vadd.f32 %v11118_v41, %v11077_v21  ;;  %v11120_v30 = vpop.f32.mrb[181].mxu1 }
0x11d2   : > { %v11121_v59 = vadd.f32 %v11120_v30, %v11079_v33  ;;  %v11122_v55 = vpop.f32.mrb[182].mxu1 }
0x11d3   : > { %v11123_v19 = vpop.f32.mrb[183].mxu1 }
0x11df   : > { %v11159_v18 = vpop.f32.mrb[180].mxu0 }
0x11e0   : > { %v11160_v35 = vadd.f32 %v11159_v18, %v11119_v34  ;;  %v11161_v17 = vpop.f32.mrb[181].mxu0 }
0x11e1   : > { %v11162_v15 = vadd.f32 %v11161_v17, %v11121_v59  ;;  %v11163_v8 = vpop.f32.mrb[182].mxu0 }
0x11e2   : > { %v29992_v31 = vadd.f32 %v11160_v35, %v29339_v6  ;;  %v11164_v4 = vpop.f32.mrb[183].mxu0  ;;  %v24759_v8 = vld [vmem:[%s32429_s2 + $0x16fc] ss:$20 sps:$4 sm:$0xff]  }
0x11e3   : > { %v29995_v60 = vadd.f32 %v11162_v15, %v29341_v11  ;;  %v24757_v4 = vld [vmem:[%s32429_s2 + $0x16f8] ss:$20 sps:$4 sm:$0xff]  }
0x1210   : > { %v11200_v44 = vpop.f32.mrb[184].mxu1 }
0x1211   : > { %v11202_v23 = vpop.f32.mrb[185].mxu1 }
0x1212   : > { %v11204_v21 = vpop.f32.mrb[186].mxu1 }
0x1213   : > { %v11205_v39 = vpop.f32.mrb[187].mxu1 }
0x121f   : > { %v11241_v24 = vpop.f32.mrb[184].mxu0 }
0x1220   : > { %v11242_v33 = vadd.f32 %v11241_v24, %v11200_v44  ;;  %v11243_v32 = vpop.f32.mrb[185].mxu0 }
0x1221   : > { %v11244_v7 = vadd.f32 %v11243_v32, %v11202_v23  ;;  %v11245_v27 = vpop.f32.mrb[186].mxu0  ;;  %v24762_v23 = vld [vmem:[%s32429_s2 + $0x1724] ss:$20 sps:$4 sm:$0xff]  }
0x1222   : > { %v11246_v43 = vpop.f32.mrb[187].mxu0 }
0x1228   : > { %v11282_v45 = vpop.f32.mrb[188].mxu1 }
0x1229   : > { %v11283_v46 = vadd.f32 %v11282_v45, %v11242_v33  ;;  %v11284_v29 = vpop.f32.mrb[189].mxu1 }
0x122a   : > { %v11285_v2 = vadd.f32 %v11284_v29, %v11244_v7  ;;  %v11286_v6 = vpop.f32.mrb[190].mxu1  ;;  %v24763_v29 = vld [vmem:[%s32429_s2 + $0x11d8] ss:$20 sps:$4 sm:$0xff]  }
0x122b   : > { %v29998_v57 = vadd.f32 %v11283_v46, %v29348_v13  ;;  %v11287_v11 = vpop.f32.mrb[191].mxu1  ;;  %v24760_v46 = vld [vmem:[%s32429_s2 + $0x1720] ss:$20 sps:$4 sm:$0xff]  }
0x122c   : > { %v30001_v3 = vadd.f32 %v11285_v2, %v29350_v40  ;;  %v24751_v40 = vld [vmem:[%s32429_s2 + $0x16d0] ss:$20 sps:$4 sm:$0xff]  }
0x122d   : > { %v24771_v11 = vld [vmem:[%s32429_s2 + $0x1204] ss:$20 sps:$4 sm:$0xff]  }
0x123f   : > { %v22499_v41 = vpop.f32.mrb[188].mxu0 }
0x1240   : > { %v22500_v34 = vpop.f32.mrb[189].mxu0 }
0x1241   : > { %v22501_v30 = vadd.f32 %v22500_v34, %v22499_v41  ;;  %v22502_v59 = vpop.f32.mrb[190].mxu0  ;;  %v24766_v41 = vld [vmem:[%s32429_s2 + $0x1748] ss:$20 sps:$4 sm:$0xff]   ;;  %v24769_v34 = vld [vmem:[%s32429_s2 + $0x1200] ss:$20 sps:$4 sm:$0xff]  }
0x1242   : > { %v22503_v55 = vpop.f32.mrb[191].mxu0  ;;  %v24777_v59 = vld [vmem:[%s32429_s2 + $0x122c] ss:$20 sps:$4 sm:$0xff]  }
0x1248   : > { %v22521_v28 = vpop.f32.mrb[192].mxu1 }
0x1249   : > { %v22522_v48 = vpop.f32.mrb[193].mxu1 }
0x124a   : > { %v22523_v19 = vadd.f32 %v22522_v48, %v22521_v28  ;;  %v22524_v36 = vpop.f32.mrb[194].mxu1  ;;  %v24772_v48 = vld [vmem:[%s32429_s2 + $0x1770] ss:$20 sps:$4 sm:$0xff]  }
0x124b   : > { %v22525_v49 = vpop.f32.mrb[195].mxu1 }
0x124c   : > { %v11364_v63 = vadd.f32 %v22523_v19, %v22501_v30  ;;  %v24774_v30 = vld [vmem:[%s32429_s2 + $0x1774] ss:$20 sps:$4 sm:$0xff]   ;;  %v24780_v49 = vld [vmem:[%s32429_s2 + $0x179c] ss:$20 sps:$4 sm:$0xff]  }
0x124d   : > { %v24775_v19 = vld [vmem:[%s32429_s2 + $0x1228] ss:$20 sps:$4 sm:$0xff]  }
0x1250   : > { %v11452_v10 = vpop.f32.mrb[196].mxu1 }
0x1251   : > { %v11454_v18 = vpop.f32.mrb[197].mxu1  ;;  %v30008_v17 = vpack.c.bf16 %v11452_v10, %v11452_v10 }
0x1252   : > { %v30003_v35 = vpack.c.bf16 %v11454_v18, %v11454_v18  ;;  %v11456_v13 = vpop.f32.mrb[198].mxu1  ;;  %v24778_v18 = vld [vmem:[%s32429_s2 + $0x1798] ss:$20 sps:$4 sm:$0xff]  }
0x1253   : > { %v11457_v15 = vpop.f32.mrb[199].mxu1  ;;  %v24781_v13 = vld [vmem:[%s32429_s2 + $0x1250] ss:$20 sps:$4 sm:$0xff]  }
0x1254   : > { %12797 = vmatprep.mubr.bf16.mxu0 %v30003_v35  ;;  %v24789_v15 = vld [vmem:[%s32429_s2 + $0x145c] ss:$20 sps:$4 sm:$0xff]  }
0x1255   : > { %12798 = vmatmul.mubr.bf16.vlgmr.msra.gmra.mrb[196].mxu0 %v30008_v17 }
0x1256   : > { %12848 = vmatpush1.bf16.msra.mxu0 %v24751_v40  ;;  %12879 = vmatprep.mubr.bf16.mxu0 %v25793_v53  ;;  %v24786_v40 = vld [vmem:[%s32429_s2 + $0x127c] ss:$20 sps:$4 sm:$0xff]  }
0x1257   : > { %v11403_v44 = vpop.f32.mrb[192].mxu0  ;;  %12849 = vmatprep.subr.bf16.mxu0 %v24759_v8 }
0x1258   : > { %v11404_v21 = vadd.f32 %v11403_v44, %v11364_v63  ;;  %v11493_v39 = vpop.f32.mrb[200].mxu1  ;;  %v23082_v24 = vpop.f32.mrb[193].mxu0  ;;  %v24783_v63 = vld [vmem:[%s32429_s2 + $0x1254] ss:$20 sps:$4 sm:$0xff]   ;;  %v24787_v44 = vld [vmem:[%s32429_s2 + $0x1458] ss:$20 sps:$4 sm:$0xff]  }
0x1259   : > { %v11495_v33 = vpop.f32.mrb[201].mxu1  ;;  %v11406_v32 = vpop.f32.mrb[194].mxu0  ;;  %v30033_v2 = vpack.c.bf16 %v11493_v39, %v11493_v39  ;;  %v24790_v39 = vld [vmem:[%s32429_s2 + $0x12a0] ss:$20 sps:$4 sm:$0xff]  }
0x125a   : > { %v30023_v7 = vadd.f32 %v11404_v21, %v29355_v20  ;;  %v30025_v27 = vpack.c.bf16 %v11495_v33, %v11495_v33  ;;  %12850 = vmatpush1.bf16.msra.mxu0 %v24757_v4  ;;  %v11497_v43 = vpop.f32.mrb[202].mxu1  ;;  %v23083_v45 = vpop.f32.mrb[195].mxu0  ;;  %v24768_v20 = vld [vmem:[%s32429_s2 + $0x174c] ss:$20 sps:$4 sm:$0xff]   ;;  %v24795_v21 = vld [vmem:[%s32429_s2 + $0x1484] ss:$20 sps:$4 sm:$0xff]  }
0x125b   : > { %v11498_v6 = vpop.f32.mrb[203].mxu1  ;;  %12851 = vmatprep.subr.bf16.mxu0 %v24762_v23  ;;  %v24784_v4 = vld [vmem:[%s32429_s2 + $0x1278] ss:$20 sps:$4 sm:$0xff]   ;;  %v24793_v24 = vld [vmem:[%s32429_s2 + $0x1480] ss:$20 sps:$4 sm:$0xff]  }
0x125c   : > { %12838 = vmatprep.mubr.bf16.mxu1 %v30025_v27  ;;  %v24792_v23 = vld [vmem:[%s32429_s2 + $0x12a4] ss:$20 sps:$4 sm:$0xff]   ;;  %v24798_v33 = vld [vmem:[%s32429_s2 + $0x12cc] ss:$20 sps:$4 sm:$0xff]   ;;  %v24796_v43 = vld [vmem:[%s32429_s2 + $0x12c8] ss:$20 sps:$4 sm:$0xff]  }
0x125d   : > { %12839 = vmatmul.mubr.bf16.vlgmr.msra.gmra.mrb[208].mxu1 %v30033_v2  ;;  %v24801_v32 = vld [vmem:[%s32429_s2 + $0x14ac] ss:$20 sps:$4 sm:$0xff]   ;;  %v24799_v45 = vld [vmem:[%s32429_s2 + $0x14a8] ss:$20 sps:$4 sm:$0xff]   ;;  %v24802_v6 = vld [vmem:[%s32429_s2 + $0x12f0] ss:$20 sps:$4 sm:$0xff]  }
0x125e   : > { %12852 = vmatpush1.bf16.msra.mxu0 %v24760_v46  ;;  %12889 = vmatpush1.bf16.msra.mxu1 %v24763_v29  ;;  %v24804_v46 = vld [vmem:[%s32429_s2 + $0x12f4] ss:$20 sps:$4 sm:$0xff]  }
0x125f   : > { %12920 = vmatprep.mubr.bf16.mxu1 %v30003_v35  ;;  %12853 = vmatprep.subr.bf16.mxu0 %v24768_v20  ;;  %v24807_v29 = vld [vmem:[%s32429_s2 + $0x14d4] ss:$20 sps:$4 sm:$0xff]   ;;  %v24805_v20 = vld [vmem:[%s32429_s2 + $0x14d0] ss:$20 sps:$4 sm:$0xff]  }
0x1260   : > { %12890 = vmatprep.subr.bf16.mxu1 %v24771_v11  ;;  %v11534_v55 = vpop.f32.mrb[204].mxu1  ;;  %v24810_v11 = vld [vmem:[%s32429_s2 + $0x131c] ss:$20 sps:$4 sm:$0xff]  }
0x1261   : > { %v23090_v28 = vpop.f32.mrb[205].mxu1  ;;  %v30080_v8 = vpack.c.bf16 %v11534_v55, %v11534_v55  ;;  %v24819_v55 = vld [vmem:[%s32429_s2 + $0x1524] ss:$20 sps:$4 sm:$0xff]  }
0x1262   : > { %12854 = vmatpush1.bf16.msra.mxu0 %v24766_v41  ;;  %12891 = vmatpush1.bf16.msra.mxu1 %v24769_v34  ;;  %v11537_v36 = vpop.f32.mrb[206].mxu1  ;;  %v24813_v41 = vld [vmem:[%s32429_s2 + $0x14fc] ss:$20 sps:$4 sm:$0xff]   ;;  %v24808_v34 = vld [vmem:[%s32429_s2 + $0x1318] ss:$20 sps:$4 sm:$0xff]  }
0x1263   : > { %12855 = vmatprep.subr.bf16.mxu0 %v24774_v30  ;;  %12892 = vmatprep.subr.bf16.mxu1 %v24777_v59  ;;  %v23091_v10 = vpop.f32.mrb[207].mxu1  ;;  %v24811_v30 = vld [vmem:[%s32429_s2 + $0x14f8] ss:$20 sps:$4 sm:$0xff]   ;;  %v24814_v28 = vld [vmem:[%s32429_s2 + $0x1340] ss:$20 sps:$4 sm:$0xff]  }
0x1264   : > { %v24816_v59 = vld [vmem:[%s32429_s2 + $0x1344] ss:$20 sps:$4 sm:$0xff]   ;;  %v24825_v36 = vld [vmem:[%s32429_s2 + $0x154c] ss:$20 sps:$4 sm:$0xff]   ;;  %v24828_v10 = vld [vmem:[%s32429_s2 + $0x1394] ss:$20 sps:$4 sm:$0xff]  }
0x1266   : > { %12856 = vmatpush1.bf16.msra.mxu0 %v24772_v48  ;;  %12893 = vmatpush1.bf16.msra.mxu1 %v24775_v19  ;;  %v24817_v48 = vld [vmem:[%s32429_s2 + $0x1520] ss:$20 sps:$4 sm:$0xff]  }
0x1267   : > { %12857 = vmatprep.subr.bf16.mxu0 %v24780_v49  ;;  %12894 = vmatprep.subr.bf16.mxu1 %v24783_v63  ;;  %v24822_v19 = vld [vmem:[%s32429_s2 + $0x136c] ss:$20 sps:$4 sm:$0xff]   ;;  %v24820_v49 = vld [vmem:[%s32429_s2 + $0x1368] ss:$20 sps:$4 sm:$0xff]  }
0x1268   : > { %v24823_v63 = vld [vmem:[%s32429_s2 + $0x1548] ss:$20 sps:$4 sm:$0xff]  }
0x126a   : > { %12858 = vmatpush1.bf16.msra.mxu0 %v24778_v18  ;;  %12895 = vmatpush1.bf16.msra.mxu1 %v24781_v13  ;;  %v24831_v18 = vld [vmem:[%s32429_s2 + $0x1574] ss:$20 sps:$4 sm:$0xff]   ;;  %v24826_v13 = vld [vmem:[%s32429_s2 + $0x1390] ss:$20 sps:$4 sm:$0xff]  }
0x126b   : > { %12896 = vmatprep.subr.bf16.mxu1 %v24786_v40  ;;  %12929 = vmatprep.subr.bf16.mxu0 %v24789_v15  ;;  %v24829_v40 = vld [vmem:[%s32429_s2 + $0x1570] ss:$20 sps:$4 sm:$0xff]  }
0x126c   : > { %v24834_v15 = vld [vmem:[%s32429_s2 + $0x13bc] ss:$20 sps:$4 sm:$0xff]  }
0x126d   : > { %21070 = vmatmul.mubr.msk.bf16.vlgmr.msra.gmra.mrb[200].mxu0 %vm7965_vm5, %v30080_v8 }
0x126e   : > { %12897 = vmatpush1.bf16.msra.mxu1 %v24784_v4  ;;  %12930 = vmatpush1.bf16.msra.mxu0 %v24787_v44  ;;  %v24837_v4 = vld [vmem:[%s32429_s2 + $0x159c] ss:$20 sps:$4 sm:$0xff]   ;;  %v24832_v44 = vld [vmem:[%s32429_s2 + $0x13b8] ss:$20 sps:$4 sm:$0xff]  }
0x126f   : > { %12961 = vmatprep.mubr.bf16.mxu0 %v30025_v27  ;;  %12898 = vmatprep.subr.bf16.mxu1 %v24792_v23  ;;  %v24835_v23 = vld [vmem:[%s32429_s2 + $0x1598] ss:$20 sps:$4 sm:$0xff]  }
0x1270   : > { %12931 = vmatprep.subr.bf16.mxu0 %v24795_v21  ;;  %v24840_v21 = vld [vmem:[%s32429_s2 + $0x13e4] ss:$20 sps:$4 sm:$0xff]  }
0x1272   : > { %12899 = vmatpush1.bf16.msra.mxu1 %v24790_v39  ;;  %12932 = vmatpush1.bf16.msra.mxu0 %v24793_v24  ;;  %v24843_v39 = vld [vmem:[%s32429_s2 + $0x15c4] ss:$20 sps:$4 sm:$0xff]   ;;  %v24838_v24 = vld [vmem:[%s32429_s2 + $0x13e0] ss:$20 sps:$4 sm:$0xff]  }
0x1273   : > { %12900 = vmatprep.subr.bf16.mxu1 %v24798_v33  ;;  %12933 = vmatprep.subr.bf16.mxu0 %v24801_v32  ;;  %v24841_v33 = vld [vmem:[%s32429_s2 + $0x15c0] ss:$20 sps:$4 sm:$0xff]  }
0x1274   : > { %v24846_v32 = vld [vmem:[%s32429_s2 + $0x140c] ss:$20 sps:$4 sm:$0xff]  }
0x1276   : > { %12901 = vmatpush1.bf16.msra.mxu1 %v24796_v43  ;;  %12934 = vmatpush1.bf16.msra.mxu0 %v24799_v45  ;;  %v24849_v43 = vld [vmem:[%s32429_s2 + $0x15ec] ss:$20 sps:$4 sm:$0xff]   ;;  %v24844_v45 = vld [vmem:[%s32429_s2 + $0x1408] ss:$20 sps:$4 sm:$0xff]  }
0x1277   : > { %12902 = vmatprep.subr.bf16.mxu1 %v24804_v46  ;;  %12935 = vmatprep.subr.bf16.mxu0 %v24807_v29  ;;  %v24847_v46 = vld [vmem:[%s32429_s2 + $0x15e8] ss:$20 sps:$4 sm:$0xff]  }
0x1278   : > { %v24852_v29 = vld [vmem:[%s32429_s2 + $0x1434] ss:$20 sps:$4 sm:$0xff]  }
0x127a   : > { %12903 = vmatpush1.bf16.msra.mxu1 %v24802_v6  ;;  %12936 = vmatpush1.bf16.msra.mxu0 %v24805_v20  ;;  %v24855_v6 = vld [vmem:[%s32429_s2 + $0x1614] ss:$20 sps:$4 sm:$0xff]   ;;  %v24850_v20 = vld [vmem:[%s32429_s2 + $0x1430] ss:$20 sps:$4 sm:$0xff]  }
0x127b   : > { %12904 = vmatprep.subr.bf16.mxu1 %v24810_v11  ;;  %12937 = vmatprep.subr.bf16.mxu0 %v24813_v41  ;;  %v24853_v11 = vld [vmem:[%s32429_s2 + $0x1610] ss:$20 sps:$4 sm:$0xff]  }
0x127c   : > { %v24858_v41 = vld [vmem:[%s32429_s2 + $0x163c] ss:$20 sps:$4 sm:$0xff]  }
0x127e   : > { %12905 = vmatpush1.bf16.msra.mxu1 %v24808_v34  ;;  %12938 = vmatpush1.bf16.msra.mxu0 %v24811_v30  ;;  %v24861_v34 = vld [vmem:[%s32429_s2 + $0x16dc] ss:$20 sps:$4 sm:$0xff]   ;;  %v24856_v30 = vld [vmem:[%s32429_s2 + $0x1638] ss:$20 sps:$4 sm:$0xff]  }
0x127f   : > { %12906 = vmatprep.subr.bf16.mxu1 %v24816_v59  ;;  %12939 = vmatprep.subr.bf16.mxu0 %v24819_v55  ;;  %v24859_v59 = vld [vmem:[%s32429_s2 + $0x16d8] ss:$20 sps:$4 sm:$0xff]  }
0x1280   : > { %v24864_v55 = vld [vmem:[%s32429_s2 + $0x1664] ss:$20 sps:$4 sm:$0xff]  }
0x1282   : > { %12907 = vmatpush1.bf16.msra.mxu1 %v24814_v28  ;;  %12940 = vmatpush1.bf16.msra.mxu0 %v24817_v48  ;;  %v24867_v28 = vld [vmem:[%s32429_s2 + $0x1704] ss:$20 sps:$4 sm:$0xff]   ;;  %v24862_v48 = vld [vmem:[%s32429_s2 + $0x1660] ss:$20 sps:$4 sm:$0xff]  }
0x1283   : > { %12908 = vmatprep.subr.bf16.mxu1 %v24822_v19  ;;  %12941 = vmatprep.subr.bf16.mxu0 %v24825_v36  ;;  %v24865_v19 = vld [vmem:[%s32429_s2 + $0x1700] ss:$20 sps:$4 sm:$0xff]  }
0x1284   : > { %v24870_v36 = vld [vmem:[%s32429_s2 + $0x168c] ss:$20 sps:$4 sm:$0xff]  }
0x1286   : > { %12909 = vmatpush1.bf16.msra.mxu1 %v24820_v49  ;;  %12942 = vmatpush1.bf16.msra.mxu0 %v24823_v63  ;;  %v24873_v49 = vld [vmem:[%s32429_s2 + $0x172c] ss:$20 sps:$4 sm:$0xff]   ;;  %v24868_v63 = vld [vmem:[%s32429_s2 + $0x1688] ss:$20 sps:$4 sm:$0xff]  }
0x1287   : > { %12910 = vmatprep.subr.bf16.mxu1 %v24828_v10  ;;  %12943 = vmatprep.subr.bf16.mxu0 %v24831_v18  ;;  %v24871_v10 = vld [vmem:[%s32429_s2 + $0x1728] ss:$20 sps:$4 sm:$0xff]  }
0x1288   : > { %v24876_v18 = vld [vmem:[%s32429_s2 + $0x16b4] ss:$20 sps:$4 sm:$0xff]  }
0x128a   : > { %12911 = vmatpush1.bf16.msra.mxu1 %v24826_v13  ;;  %12944 = vmatpush1.bf16.msra.mxu0 %v24829_v40  ;;  %v24879_v13 = vld [vmem:[%s32429_s2 + $0x1754] ss:$20 sps:$4 sm:$0xff]   ;;  %v24874_v40 = vld [vmem:[%s32429_s2 + $0x16b0] ss:$20 sps:$4 sm:$0xff]  }
0x128b   : > { %12912 = vmatprep.subr.bf16.mxu1 %v24834_v15  ;;  %12945 = vmatprep.subr.bf16.mxu0 %v24837_v4  ;;  %v24877_v15 = vld [vmem:[%s32429_s2 + $0x1750] ss:$20 sps:$4 sm:$0xff]  }
0x128c   : > { %v24882_v4 = vld [vmem:[%s32429_s2 + $0x177c] ss:$20 sps:$4 sm:$0xff]  }
0x128e   : > { %12913 = vmatpush1.bf16.msra.mxu1 %v24832_v44  ;;  %12946 = vmatpush1.bf16.msra.mxu0 %v24835_v23  ;;  %v24883_v44 = vld [vmem:[%s32429_s2 + $0x1320] ss:$20 sps:$4 sm:$0xff]   ;;  %v24880_v23 = vld [vmem:[%s32429_s2 + $0x1778] ss:$20 sps:$4 sm:$0xff]  }
0x128f   : > { %12914 = vmatprep.subr.bf16.mxu1 %v24840_v21  ;;  %12947 = vmatprep.subr.bf16.mxu0 %v24843_v39  ;;  %v24884_v21 = vld [vmem:[%s32429_s2 + $0x11e0] ss:$20 sps:$4 sm:$0xff]   ;;  %v24887_v39 = vld [vmem:[%s32429_s2 + $0x17a4] ss:$20 sps:$4 sm:$0xff]  }
0x1292   : > { %12915 = vmatpush1.bf16.msra.mxu1 %v24838_v24  ;;  %12948 = vmatpush1.bf16.msra.mxu0 %v24841_v33  ;;  %v24888_v24 = vld [vmem:[%s32429_s2 + $0x1348] ss:$20 sps:$4 sm:$0xff]   ;;  %v24885_v33 = vld [vmem:[%s32429_s2 + $0x17a0] ss:$20 sps:$4 sm:$0xff]  }
0x1293   : > { %12916 = vmatprep.subr.bf16.mxu1 %v24846_v32  ;;  %12949 = vmatprep.subr.bf16.mxu0 %v24849_v43  ;;  %v24889_v32 = vld [vmem:[%s32429_s2 + $0x1208] ss:$20 sps:$4 sm:$0xff]   ;;  %v24890_v43 = vld [vmem:[%s32429_s2 + $0x1370] ss:$20 sps:$4 sm:$0xff]  }
0x1296   : > { %12917 = vmatpush1.bf16.msra.mxu1 %v24844_v45  ;;  %12950 = vmatpush1.bf16.msra.mxu0 %v24847_v46  ;;  %v24891_v45 = vld [vmem:[%s32429_s2 + $0x15a0] ss:$20 sps:$4 sm:$0xff]   ;;  %v24892_v46 = vld [vmem:[%s32429_s2 + $0x1230] ss:$20 sps:$4 sm:$0xff]  }
0x1297   : > { %12918 = vmatprep.subr.bf16.mxu1 %v24852_v29  ;;  %12951 = vmatprep.subr.bf16.mxu0 %v24855_v6  ;;  %v24894_v29 = vld [vmem:[%s32429_s2 + $0x1398] ss:$20 sps:$4 sm:$0xff]   ;;  %v24895_v6 = vld [vmem:[%s32429_s2 + $0x15c8] ss:$20 sps:$4 sm:$0xff]  }
0x129a   : > { %12919 = vmatpush1.bf16.msra.mxu1 %v24850_v20  ;;  %12952 = vmatpush1.bf16.msra.mxu0 %v24853_v11  ;;  %v24896_v20 = vld [vmem:[%s32429_s2 + $0x1258] ss:$20 sps:$4 sm:$0xff]   ;;  %v24897_v11 = vld [vmem:[%s32429_s2 + $0x1488] ss:$20 sps:$4 sm:$0xff]  }
0x129b   : > { %12953 = vmatprep.subr.bf16.mxu0 %v24858_v41  ;;  %12970 = vmatprep.subr.bf16.mxu1 %v24861_v34  ;;  %v24898_v41 = vld [vmem:[%s32429_s2 + $0x13c0] ss:$20 sps:$4 sm:$0xff]   ;;  %v24899_v34 = vld [vmem:[%s32429_s2 + $0x15f0] ss:$20 sps:$4 sm:$0xff]  }
0x129d   : > { %12921 = vmatmul.mubr.bf16.vlgmr.msra.gmra.mrb[212].mxu1 %v30008_v17 }
0x129e   : > { %12954 = vmatpush1.bf16.msra.mxu0 %v24856_v30  ;;  %12971 = vmatpush1.bf16.msra.mxu1 %v24859_v59  ;;  %v24900_v30 = vld [vmem:[%s32429_s2 + $0x1280] ss:$20 sps:$4 sm:$0xff]   ;;  %v24902_v59 = vld [vmem:[%s32429_s2 + $0x13e8] ss:$20 sps:$4 sm:$0xff]  }
0x129f   : > { %12955 = vmatprep.subr.bf16.mxu0 %v24864_v55  ;;  %12972 = vmatprep.subr.bf16.mxu1 %v24867_v28  ;;  %v24903_v55 = vld [vmem:[%s32429_s2 + $0x1618] ss:$20 sps:$4 sm:$0xff]   ;;  %v24904_v28 = vld [vmem:[%s32429_s2 + $0x12a8] ss:$20 sps:$4 sm:$0xff]  }
0x12a0   : > { %13002 = vmatprep.mubr.bf16.mxu1 %v25793_v53 }
0x12a2   : > { %12956 = vmatpush1.bf16.msra.mxu0 %v24862_v48  ;;  %12973 = vmatpush1.bf16.msra.mxu1 %v24865_v19  ;;  %v24905_v48 = vld [vmem:[%s32429_s2 + $0x14d8] ss:$20 sps:$4 sm:$0xff]   ;;  %v24906_v19 = vld [vmem:[%s32429_s2 + $0x1410] ss:$20 sps:$4 sm:$0xff]  }
0x12a3   : > { %12957 = vmatprep.subr.bf16.mxu0 %v24870_v36  ;;  %12974 = vmatprep.subr.bf16.mxu1 %v24873_v49  ;;  %v24907_v36 = vld [vmem:[%s32429_s2 + $0x1640] ss:$20 sps:$4 sm:$0xff]   ;;  %v24908_v49 = vld [vmem:[%s32429_s2 + $0x12d0] ss:$20 sps:$4 sm:$0xff]  }
0x12a6   : > { %12958 = vmatpush1.bf16.msra.mxu0 %v24868_v63  ;;  %12975 = vmatpush1.bf16.msra.mxu1 %v24871_v10  ;;  %v24909_v63 = vld [vmem:[%s32429_s2 + $0x1500] ss:$20 sps:$4 sm:$0xff]   ;;  %v24910_v10 = vld [vmem:[%s32429_s2 + $0x1438] ss:$20 sps:$4 sm:$0xff]  }
0x12a7   : > { %12959 = vmatprep.subr.bf16.mxu0 %v24876_v18  ;;  %12976 = vmatprep.subr.bf16.mxu1 %v24879_v13  ;;  %v24911_v18 = vld [vmem:[%s32429_s2 + $0x1668] ss:$20 sps:$4 sm:$0xff]   ;;  %v24912_v13 = vld [vmem:[%s32429_s2 + $0x12f8] ss:$20 sps:$4 sm:$0xff]  }
0x12aa   : > { %12960 = vmatpush1.bf16.msra.mxu0 %v24874_v40  ;;  %12977 = vmatpush1.bf16.msra.mxu1 %v24877_v15  ;;  %v24913_v40 = vld [vmem:[%s32429_s2 + $0x1528] ss:$20 sps:$4 sm:$0xff]   ;;  %v24914_v15 = vld [vmem:[%s32429_s2 + $0x1690] ss:$20 sps:$4 sm:$0xff]  }
0x12ab   : > { %12978 = vmatprep.subr.bf16.mxu1 %v24882_v4  ;;  %22537 = vmatprep.subr.bf16.mxu0 %v24883_v44  ;;  %v24915_v4 = vld [vmem:[%s32429_s2 + $0x1550] ss:$20 sps:$4 sm:$0xff]   ;;  %v24916_v44 = vld [vmem:[%s32429_s2 + $0x16e0] ss:$20 sps:$4 sm:$0xff]  }
0x12ad   : > { %12962 = vmatmul.mubr.bf16.vlgmr.msra.gmra.mrb[204].mxu0 %v30033_v2 }
0x12ae   : > { %12979 = vmatpush1.bf16.msra.mxu1 %v24880_v23  ;;  %22538 = vmatpush3.bf16.msra.mxu0 %v24884_v21  ;;  %v24917_v23 = vld [vmem:[%s32429_s2 + $0x16b8] ss:$20 sps:$4 sm:$0xff]  }
0x12af   : > { %13043 = vmatprep.mubr.bf16.mxu0 %v30003_v35  ;;  %12980 = vmatprep.subr.bf16.mxu1 %v24887_v39  ;;  %v24893_v35 = vld [vmem:[%s32429_s2 + $0x1460] ss:$20 sps:$4 sm:$0xff]   ;;  %v24918_v21 = vld [vmem:[%s32429_s2 + $0x1578] ss:$20 sps:$4 sm:$0xff]   ;;  %v24919_v39 = vld [vmem:[%s32429_s2 + $0x1708] ss:$20 sps:$4 sm:$0xff]  }
0x12b0   : > { %22539 = vmatprep.subr.bf16.mxu0 %v24888_v24  ;;  %v24921_v24 = vld [vmem:[%s32429_s2 + $0x1758] ss:$20 sps:$4 sm:$0xff]  }
0x12b2   : > { %12981 = vmatpush1.bf16.msra.mxu1 %v24885_v33  ;;  %22540 = vmatpush3.bf16.msra.mxu0 %v24889_v32  ;;  %v24936_v33 = vld [vmem:[%s32429_s2 + $0x1838] ss:$20 sps:$4 sm:$0xff]   ;;  %v24939_v32 = vld [vmem:[%s32429_s2 + $0x1a68] ss:$20 sps:$4 sm:$0xff]  }
0x12b3   : > { %22541 = vmatprep.subr.bf16.mxu0 %v24890_v43  ;;  %22559 = vmatprep.subr.bf16.mxu1 %v24891_v45  ;;  %v24942_v43 = vld [vmem:[%s32429_s2 + $0x1860] ss:$20 sps:$4 sm:$0xff]   ;;  %v24944_v45 = vld [vmem:[%s32429_s2 + $0x1864] ss:$20 sps:$4 sm:$0xff]  }
0x12b5   : > { %21071 = vmatmul.mubr.msk.bf16.vlgmr.msra.gmra.mrb[216].mxu1 %vm7965_vm5, %v30080_v8 }
0x12b6   : > { %22542 = vmatpush3.bf16.msra.mxu0 %v24892_v46  ;;  %22560 = vmatpush3.bf16.msra.mxu1 %v24893_v35  ;;  %v24945_v46 = vld [vmem:[%s32429_s2 + $0x1a90] ss:$20 sps:$4 sm:$0xff]   ;;  %v24947_v35 = vld [vmem:[%s32429_s2 + $0x1a94] ss:$20 sps:$4 sm:$0xff]  }
0x12b7   : > { %13083 = vmatprep.mubr.bf16.mxu1 %v30025_v27  ;;  %22543 = vmatprep.subr.bf16.mxu0 %v24894_v29  ;;  %v24901_v27 = vld [vmem:[%s32429_s2 + $0x14b0] ss:$20 sps:$4 sm:$0xff]   ;;  %v24950_v29 = vld [vmem:[%s32429_s2 + $0x188c] ss:$20 sps:$4 sm:$0xff]  }
0x12b8   : > { %22561 = vmatprep.subr.bf16.mxu1 %v24895_v6  ;;  %v24953_v6 = vld [vmem:[%s32429_s2 + $0x1abc] ss:$20 sps:$4 sm:$0xff]  }
0x12ba   : > { %22544 = vmatpush3.bf16.msra.mxu0 %v24896_v20  ;;  %22562 = vmatpush3.bf16.msra.mxu1 %v24897_v11  ;;  %v24948_v20 = vld [vmem:[%s32429_s2 + $0x1888] ss:$20 sps:$4 sm:$0xff]   ;;  %v24951_v11 = vld [vmem:[%s32429_s2 + $0x1ab8] ss:$20 sps:$4 sm:$0xff]  }
0x12bb   : > { %22545 = vmatprep.subr.bf16.mxu0 %v24898_v41  ;;  %22563 = vmatprep.subr.bf16.mxu1 %v24899_v34  ;;  %v24956_v41 = vld [vmem:[%s32429_s2 + $0x18b4] ss:$20 sps:$4 sm:$0xff]   ;;  %v24959_v34 = vld [vmem:[%s32429_s2 + $0x1ae4] ss:$20 sps:$4 sm:$0xff]  }
0x12be   : > { %22546 = vmatpush3.bf16.msra.mxu0 %v24900_v30  ;;  %22564 = vmatpush3.bf16.msra.mxu1 %v24901_v27  ;;  %v24954_v30 = vld [vmem:[%s32429_s2 + $0x18b0] ss:$20 sps:$4 sm:$0xff]   ;;  %v24957_v27 = vld [vmem:[%s32429_s2 + $0x1ae0] ss:$20 sps:$4 sm:$0xff]  }
0x12bf   : > { %22547 = vmatprep.subr.bf16.mxu0 %v24902_v59  ;;  %22565 = vmatprep.subr.bf16.mxu1 %v24903_v55  ;;  %v24962_v59 = vld [vmem:[%s32429_s2 + $0x18dc] ss:$20 sps:$4 sm:$0xff]   ;;  %v24965_v55 = vld [vmem:[%s32429_s2 + $0x1b0c] ss:$20 sps:$4 sm:$0xff]  }
0x12c2   : > { %22548 = vmatpush3.bf16.msra.mxu0 %v24904_v28  ;;  %22566 = vmatpush3.bf16.msra.mxu1 %v24905_v48  ;;  %v24960_v28 = vld [vmem:[%s32429_s2 + $0x18d8] ss:$20 sps:$4 sm:$0xff]   ;;  %v24963_v48 = vld [vmem:[%s32429_s2 + $0x1b08] ss:$20 sps:$4 sm:$0xff]  }
0x12c3   : > { %22549 = vmatprep.subr.bf16.mxu0 %v24906_v19  ;;  %22567 = vmatprep.subr.bf16.mxu1 %v24907_v36  ;;  %v24968_v19 = vld [vmem:[%s32429_s2 + $0x1904] ss:$20 sps:$4 sm:$0xff]   ;;  %v24971_v36 = vld [vmem:[%s32429_s2 + $0x1b34] ss:$20 sps:$4 sm:$0xff]  }
0x12c6   : > { %22550 = vmatpush3.bf16.msra.mxu0 %v24908_v49  ;;  %22568 = vmatpush3.bf16.msra.mxu1 %v24909_v63  ;;  %v24966_v49 = vld [vmem:[%s32429_s2 + $0x1900] ss:$20 sps:$4 sm:$0xff]   ;;  %v24969_v63 = vld [vmem:[%s32429_s2 + $0x1b30] ss:$20 sps:$4 sm:$0xff]  }
0x12c7   : > { %22551 = vmatprep.subr.bf16.mxu0 %v24910_v10  ;;  %22569 = vmatprep.subr.bf16.mxu1 %v24911_v18  ;;  %v24974_v10 = vld [vmem:[%s32429_s2 + $0x192c] ss:$20 sps:$4 sm:$0xff]   ;;  %v24977_v18 = vld [vmem:[%s32429_s2 + $0x1b5c] ss:$20 sps:$4 sm:$0xff]  }
0x12ca   : > { %22552 = vmatpush3.bf16.msra.mxu0 %v24912_v13  ;;  %22570 = vmatpush3.bf16.msra.mxu1 %v24913_v40  ;;  %v24972_v13 = vld [vmem:[%s32429_s2 + $0x1928] ss:$20 sps:$4 sm:$0xff]   ;;  %v24975_v40 = vld [vmem:[%s32429_s2 + $0x1b58] ss:$20 sps:$4 sm:$0xff]  }
0x12cb   : > { %22571 = vmatprep.subr.bf16.mxu1 %v24914_v15  ;;  %23092 = vmatprep.subr.bf16.mxu0 %v25792_v12  ;;  %v24980_v15 = vld [vmem:[%s32429_s2 + $0x1954] ss:$20 sps:$4 sm:$0xff]  }
0x12cd   : > { %13044 = vmatmul.mubr.bf16.vlgmr.msra.gmra.mrb[208].mxu0 %v30008_v17  ;;  %v24920_v17 = vld [vmem:[%s32429_s2 + $0x1730] ss:$20 sps:$4 sm:$0xff]  }
0x12ce   : > { %22572 = vmatpush3.bf16.msra.mxu1 %v24915_v4  ;;  %23093 = vmatpush3.bf16.msra.mxu0 %v24916_v44  ;;  %v24983_v4 = vld [vmem:[%s32429_s2 + $0x1b84] ss:$20 sps:$4 sm:$0xff]  }
0x12cf   : > { %22573 = vmatprep.subr.bf16.mxu1 %v24917_v23  ;;  %23094 = vmatprep.subr.bf16.mxu0 %v25792_v12  ;;  %v24978_v44 = vld [vmem:[%s32429_s2 + $0x1950] ss:$20 sps:$4 sm:$0xff]   ;;  %v24981_v23 = vld [vmem:[%s32429_s2 + $0x1b80] ss:$20 sps:$4 sm:$0xff]  }
0x12d0   : > { %23104 = vmatprep.mubr.msk.bf16.mxu0 %vm25794_vm2, %v25792_v12 }
0x12d2   : > { %22574 = vmatpush3.bf16.msra.mxu1 %v24918_v21  ;;  %23095 = vmatpush3.bf16.msra.mxu0 %v24919_v39  ;;  %v24986_v21 = vld [vmem:[%s32429_s2 + $0x197c] ss:$20 sps:$4 sm:$0xff]   ;;  %v24989_v39 = vld [vmem:[%s32429_s2 + $0x1bac] ss:$20 sps:$4 sm:$0xff]  }
0x12d3   : > { %13140 = vmatprep.subr.bf16.mxu1 %v27786_v51  ;;  %23096 = vmatprep.subr.bf16.mxu0 %v25792_v12  ;;  %v30413_v51 = vpack.c.bf16 %v26421_v14, %v26421_v14  ;;  %v24923_v14 = vld [vmem:[%s32429_s2 + $0x17a8] ss:$20 sps:$4 sm:$0xff]  }
0x12d5   : > { %13084 = vmatmul.mubr.bf16.vlgmr.msra.gmra.mrb[220].mxu1 %v30033_v2  ;;  %v24938_v2 = vld [vmem:[%s32429_s2 + $0x183c] ss:$20 sps:$4 sm:$0xff]  }
0x12d6   : > { %23097 = vmatpush3.bf16.msra.mxu0 %v24920_v17  ;;  %13141 = vmatpush1.bf16.msra.mxu1 %v27782_v52  ;;  %v24922_v52 = vld [vmem:[%s32429_s2 + $0x1780] ss:$20 sps:$4 sm:$0xff]   ;;  %v24984_v17 = vld [vmem:[%s32429_s2 + $0x1978] ss:$20 sps:$4 sm:$0xff]  }
0x12d7   : > { %21073 = vmatprep.subr.msk.bf16.mxu1 %vm6246_vm3, %v27797_v50  ;;  %23098 = vmatprep.subr.bf16.mxu0 %v25792_v12  ;;  %v24929_v50 = vld [vmem:[%s32429_s2 + $0x17ec] ss:$20 sps:$4 sm:$0xff]  }
0x12d8   : > { %13172 = vmatprep.mubr.bf16.mxu1 %v25793_v53 }
0x12da   : > { %23099 = vmatpush3.bf16.msra.mxu0 %v24921_v24  ;;  %13143 = vmatpush1.bf16.msra.mxu1 %v27800_v62  ;;  %v24933_v62 = vld [vmem:[%s32429_s2 + $0x1a40] ss:$20 sps:$4 sm:$0xff]   ;;  %v24987_v24 = vld [vmem:[%s32429_s2 + $0x1ba8] ss:$20 sps:$4 sm:$0xff]  }
0x12db   : > { %13181 = vmatprep.subr.bf16.mxu1 %v27788_v16  ;;  %23100 = vmatprep.subr.bf16.mxu0 %v25792_v12  ;;  %v24926_v16 = vld [vmem:[%s32429_s2 + $0x17c4] ss:$20 sps:$4 sm:$0xff]  }
0x12dd   : > { %21074 = vmatmul.mubr.msk.bf16.vlgmr.msra.gmra.mrb[224].mxu1 %vm6242_vm4, %v30413_v51 }
0x12de   : > { %23101 = vmatpush3.bf16.msra.mxu0 %v24922_v52  ;;  %13182 = vmatpush1.bf16.msra.mxu1 %v27784_v26  ;;  %v24924_v26 = vld [vmem:[%s32429_s2 + $0x17c0] ss:$20 sps:$4 sm:$0xff]  }
0x12df   : > { %21075 = vmatprep.subr.msk.bf16.mxu1 %vm6246_vm3, %v27814_v54  ;;  %23102 = vmatprep.subr.bf16.mxu0 %v25792_v12  ;;  %v24935_v54 = vld [vmem:[%s32429_s2 + $0x1a44] ss:$20 sps:$4 sm:$0xff]   ;;  %v24990_v52 = vld [vmem:[%s32429_s2 + $0x19a0] ss:$20 sps:$4 sm:$0xff]  }
0x12e0   : > { %13213 = vmatprep.mubr.bf16.mxu1 %v25793_v53 }
0x12e2   : > { %23103 = vmatpush3.bf16.msra.mxu0 %v24923_v14  ;;  %13184 = vmatpush1.bf16.msra.mxu1 %v27825_v22  ;;  %v24927_v22 = vld [vmem:[%s32429_s2 + $0x17e8] ss:$20 sps:$4 sm:$0xff]   ;;  %v24992_v14 = vld [vmem:[%s32429_s2 + $0x19a4] ss:$20 sps:$4 sm:$0xff]  }
0x12e3   : > { %23108 = vmatprep.subr.bf16.mxu1 %v25792_v12  ;;  %14487 = vmatprep.subr.bf16.mxu0 %v24926_v16  ;;  %v24995_v16 = vld [vmem:[%s32429_s2 + $0x1bd4] ss:$20 sps:$4 sm:$0xff]  }
0x12e5   : > { %23105 = vmatmul.mubr.msk.bf16.vlgmr.msra.gmra.mrb[212].mxu0 %vm7965_vm5, %v30080_v8  ;;  %21076 = vmatmul.mubr.msk.bf16.vlgmr.msra.gmra.mrb[228].mxu1 %vm6242_vm4, %v30413_v51  ;;  %v24941_v8 = vld [vmem:[%s32429_s2 + $0x1a6c] ss:$20 sps:$4 sm:$0xff]  }
0x12e6   : > { %23109 = vmatpush3.bf16.msra.mxu1 %v27829_v58  ;;  %23112 = vmatprep.mubr.msk.bf16.mxu1 %vm25794_vm2, %v25792_v12  ;;  %v24932_v58 = vld [vmem:[%s32429_s2 + $0x1814] ss:$20 sps:$4 sm:$0xff]  }
0x12e7   : > { %23110 = vmatprep.subr.bf16.mxu1 %v25792_v12  ;;  %14488 = vmatpush1.bf16.msra.mxu0 %v24924_v26  ;;  %v24993_v26 = vld [vmem:[%s32429_s2 + $0x1bd0] ss:$20 sps:$4 sm:$0xff]  }
0x12e8   : > { %14489 = vmatprep.subr.bf16.mxu0 %v24929_v50  ;;  %v24998_v50 = vld [vmem:[%s32429_s2 + $0x19cc] ss:$20 sps:$4 sm:$0xff]  }
0x12ea   : > { %23111 = vmatpush3.bf16.msra.mxu1 %v27844_v0  ;;  %v24930_v0 = vld [vmem:[%s32429_s2 + $0x1810] ss:$20 sps:$4 sm:$0xff]  }
0x12eb   : > { %14528 = vmatprep.subr.bf16.mxu1 %v24935_v54  ;;  %14490 = vmatpush1.bf16.msra.mxu0 %v24927_v22  ;;  %v24996_v22 = vld [vmem:[%s32429_s2 + $0x19c8] ss:$20 sps:$4 sm:$0xff]  }
0x12ec   : > { %14491 = vmatprep.subr.bf16.mxu0 %v24932_v58  ;;  %v24999_v58 = vld [vmem:[%s32429_s2 + $0x1bf8] ss:$20 sps:$4 sm:$0xff]  }
0x12ed   : > { %23113 = vmatmul.mubr.msk.bf16.vlgmr.msra.gmra.mrb[232].mxu1 %vm6242_vm4, %v30413_v51 }
0x12ee   : > { %14529 = vmatpush1.bf16.msra.mxu1 %v24933_v62  ;;  %v25001_v62 = vld [vmem:[%s32429_s2 + $0x1bfc] ss:$20 sps:$4 sm:$0xff]  }
0x12ef   : > { %14492 = vmatpush1.bf16.msra.mxu0 %v24930_v0  ;;  %14530 = vmatprep.subr.bf16.mxu1 %v24941_v8 }
0x12f0   : > { %14493 = vmatprep.subr.bf16.mxu0 %v24938_v2 }
0x12f2   : > { %14531 = vmatpush1.bf16.msra.mxu1 %v24939_v32  ;;  %v25004_v32 = vld [vmem:[%s32429_s2 + $0x19f4] ss:$20 sps:$4 sm:$0xff]  }
0x12f3   : > { %14494 = vmatpush1.bf16.msra.mxu0 %v24936_v33  ;;  %14532 = vmatprep.subr.bf16.mxu1 %v24947_v35  ;;  %v25002_v33 = vld [vmem:[%s32429_s2 + $0x19f0] ss:$20 sps:$4 sm:$0xff]   ;;  %v25013_v35 = vld [vmem:[%s32429_s2 + $0x1c4c] ss:$20 sps:$4 sm:$0xff]  }
0x12f4   : > { %14495 = vmatprep.subr.bf16.mxu0 %v24944_v45  ;;  %v25007_v45 = vld [vmem:[%s32429_s2 + $0x1c24] ss:$20 sps:$4 sm:$0xff]  }
0x12f6   : > { %14533 = vmatpush1.bf16.msra.mxu1 %v24945_v46  ;;  %v25010_v46 = vld [vmem:[%s32429_s2 + $0x1a1c] ss:$20 sps:$4 sm:$0xff]  }
0x12f7   : > { %14496 = vmatpush1.bf16.msra.mxu0 %v24942_v43  ;;  %14534 = vmatprep.subr.bf16.mxu1 %v24953_v6  ;;  %v25005_v43 = vld [vmem:[%s32429_s2 + $0x1c20] ss:$20 sps:$4 sm:$0xff]   ;;  %v25008_v6 = vld [vmem:[%s32429_s2 + $0x1a18] ss:$20 sps:$4 sm:$0xff]  }
0x12f8   : > { %14497 = vmatprep.subr.bf16.mxu0 %v24950_v29 }
0x12fa   : > { %14535 = vmatpush1.bf16.msra.mxu1 %v24951_v11 }
0x12fb   : > { %14498 = vmatpush1.bf16.msra.mxu0 %v24948_v20  ;;  %14536 = vmatprep.subr.bf16.mxu1 %v24959_v34  ;;  %v25011_v20 = vld [vmem:[%s32429_s2 + $0x1c48] ss:$20 sps:$4 sm:$0xff]  }
0x12fc   : > { %14499 = vmatprep.subr.bf16.mxu0 %v24956_v41 }
0x12fe   : > { %14537 = vmatpush1.bf16.msra.mxu1 %v24957_v27 }
0x12ff   : > { %14500 = vmatpush1.bf16.msra.mxu0 %v24954_v30  ;;  %14538 = vmatprep.subr.bf16.mxu1 %v24965_v55  ;;  %v25019_v55 = vld [vmem:[%s32429_s2 + $0x1cc4] ss:$20 sps:$4 sm:$0xff]  }
0x1300   : > { %14501 = vmatprep.subr.bf16.mxu0 %v24962_v59  ;;  %v25016_v59 = vld [vmem:[%s32429_s2 + $0x1c74] ss:$20 sps:$4 sm:$0xff]  }
0x1302   : > { %14539 = vmatpush1.bf16.msra.mxu1 %v24963_v48  ;;  %v25022_v48 = vld [vmem:[%s32429_s2 + $0x1c9c] ss:$20 sps:$4 sm:$0xff]  }
0x1303   : > { %14502 = vmatpush1.bf16.msra.mxu0 %v24960_v28  ;;  %14540 = vmatprep.subr.bf16.mxu1 %v24971_v36  ;;  %v25014_v28 = vld [vmem:[%s32429_s2 + $0x1c70] ss:$20 sps:$4 sm:$0xff]   ;;  %v25031_v36 = vld [vmem:[%s32429_s2 + $0x17cc] ss:$20 sps:$4 sm:$0xff]  }
0x1304   : > { %14503 = vmatprep.subr.bf16.mxu0 %v24968_v19  ;;  %v25020_v19 = vld [vmem:[%s32429_s2 + $0x1c98] ss:$20 sps:$4 sm:$0xff]  }
0x1306   : > { %14541 = vmatpush1.bf16.msra.mxu1 %v24969_v63 }
0x1307   : > { %14504 = vmatpush1.bf16.msra.mxu0 %v24966_v49  ;;  %14542 = vmatprep.subr.bf16.mxu1 %v24977_v18 }
0x1308   : > { %14505 = vmatprep.subr.bf16.mxu0 %v24974_v10 }
0x130a   : > { %14543 = vmatpush1.bf16.msra.mxu1 %v24975_v40 }
0x130b   : > { %14506 = vmatpush1.bf16.msra.mxu0 %v24972_v13  ;;  %14544 = vmatprep.subr.bf16.mxu1 %v24983_v4 }
0x130c   : > { %14507 = vmatprep.subr.bf16.mxu0 %v24980_v15 }
0x130e   : > { %14545 = vmatpush1.bf16.msra.mxu1 %v24981_v23 }
0x130f   : > { %14508 = vmatpush1.bf16.msra.mxu0 %v24978_v44  ;;  %14546 = vmatprep.subr.bf16.mxu1 %v24989_v39 }
0x1310   : > { %14509 = vmatprep.subr.bf16.mxu0 %v24986_v21 }
0x1312   : > { %14547 = vmatpush1.bf16.msra.mxu1 %v24987_v24 }
0x1313   : > { %14510 = vmatpush1.bf16.msra.mxu0 %v24984_v17  ;;  %14548 = vmatprep.subr.bf16.mxu1 %v24995_v16 }
0x1314   : > { %14511 = vmatprep.subr.bf16.mxu0 %v24992_v14 }
0x1316   : > { %14549 = vmatpush1.bf16.msra.mxu1 %v24993_v26 }
0x1317   : > { %14512 = vmatpush1.bf16.msra.mxu0 %v24990_v52  ;;  %14550 = vmatprep.subr.bf16.mxu1 %v25001_v62 }
0x1318   : > { %14513 = vmatprep.subr.bf16.mxu0 %v24998_v50 }
0x131a   : > { %14551 = vmatpush1.bf16.msra.mxu1 %v24999_v58 }
0x131b   : > { %14514 = vmatpush1.bf16.msra.mxu0 %v24996_v22  ;;  %14552 = vmatprep.subr.bf16.mxu1 %v25007_v45 }
0x131c   : > { %14515 = vmatprep.subr.bf16.mxu0 %v25004_v32 }
0x131e   : > { %14553 = vmatpush1.bf16.msra.mxu1 %v25005_v43 }
0x131f   : > { %14516 = vmatpush1.bf16.msra.mxu0 %v25002_v33  ;;  %14554 = vmatprep.subr.bf16.mxu1 %v25013_v35 }
0x1320   : > { %14517 = vmatprep.subr.bf16.mxu0 %v25010_v46 }
0x1322   : > { %14555 = vmatpush1.bf16.msra.mxu1 %v25011_v20 }
0x1323   : > { %14518 = vmatpush1.bf16.msra.mxu0 %v25008_v6  ;;  %14556 = vmatprep.subr.bf16.mxu1 %v25016_v59  ;;  %v25025_v59 = vld [vmem:[%s32429_s2 + $0x1cec] ss:$20 sps:$4 sm:$0xff]  }
0x1324   : > { %14569 = vmatprep.subr.bf16.mxu0 %v25019_v55  ;;  %v25023_v55 = vld [vmem:[%s32429_s2 + $0x1ce8] ss:$20 sps:$4 sm:$0xff]  }
0x1326   : > { %14557 = vmatpush1.bf16.msra.mxu1 %v25014_v28  ;;  %v25028_v28 = vld [vmem:[%s32429_s2 + $0x1d14] ss:$20 sps:$4 sm:$0xff]  }
0x1327   : > { %14558 = vmatprep.subr.bf16.mxu1 %v25022_v48 }
0x1328   : > { %v12799_v54 = vpop.f32.mrb[196].mxu0 }
0x1329   : > { %v12801_v0 = vpop.f32.mrb[197].mxu0 }
0x132a   : > { %v12803_v2 = vpop.f32.mrb[198].mxu0  ;;  %14559 = vmatpush1.bf16.msra.mxu1 %v25020_v19 }
0x132b   : > { %v12804_v8 = vpop.f32.mrb[199].mxu0  ;;  %14610 = vmatprep.subr.bf16.mxu1 %v25031_v36 }
0x1330   : > { %v12840_v29 = vpop.f32.mrb[208].mxu1 }
0x1331   : > { %v12841_v11 = vadd.f32 %v12840_v29, %v12799_v54  ;;  %v12842_v41 = vpop.f32.mrb[209].mxu1 }
0x1332   : > { %v12843_v34 = vadd.f32 %v12842_v41, %v12801_v0  ;;  %v12844_v30 = vpop.f32.mrb[210].mxu1 }
0x1333   : > { %v12845_v27 = vpop.f32.mrb[211].mxu1 }
0x1340   : > { %v12881_v49 = vpop.f32.mrb[200].mxu0 }
0x1341   : > { %v12882_v63 = vadd.f32 %v12881_v49, %v12841_v11  ;;  %v12883_v10 = vpop.f32.mrb[201].mxu0 }
0x1342   : > { %v12884_v18 = vadd.f32 %v12883_v10, %v12843_v34  ;;  %v12885_v13 = vpop.f32.mrb[202].mxu0 }
0x1343   : > { %v30643_v40 = vadd.f32 %v12882_v63, %v29992_v31  ;;  %v12886_v15 = vpop.f32.mrb[203].mxu0 }
0x1344   : > { %v30646_v4 = vadd.f32 %v12884_v18, %v29995_v60  ;;  %v25026_v15 = vld [vmem:[%s32429_s2 + $0x1d10] ss:$20 sps:$4 sm:$0xff]  }
0x1370   : > { %v12922_v44 = vpop.f32.mrb[212].mxu1 }
0x1371   : > { %v12924_v23 = vpop.f32.mrb[213].mxu1 }
0x1372   : > { %v12926_v21 = vpop.f32.mrb[214].mxu1 }
0x1373   : > { %v12927_v39 = vpop.f32.mrb[215].mxu1 }
0x1380   : > { %v12963_v17 = vpop.f32.mrb[204].mxu0 }
0x1381   : > { %v12964_v24 = vadd.f32 %v12963_v17, %v12922_v44  ;;  %v12965_v52 = vpop.f32.mrb[205].mxu0  ;;  %v25029_v44 = vld [vmem:[%s32429_s2 + $0x17c8] ss:$20 sps:$4 sm:$0xff]  }
0x1382   : > { %v12966_v14 = vadd.f32 %v12965_v52, %v12924_v23  ;;  %v12967_v26 = vpop.f32.mrb[206].mxu0  ;;  %v25034_v17 = vld [vmem:[%s32429_s2 + $0x1d3c] ss:$20 sps:$4 sm:$0xff]   ;;  %v25037_v52 = vld [vmem:[%s32429_s2 + $0x17f4] ss:$20 sps:$4 sm:$0xff]  }
0x1383   : > { %v12968_v16 = vpop.f32.mrb[207].mxu0  ;;  %v25040_v26 = vld [vmem:[%s32429_s2 + $0x1d64] ss:$20 sps:$4 sm:$0xff]  }
0x1384   : > { %v25043_v16 = vld [vmem:[%s32429_s2 + $0x181c] ss:$20 sps:$4 sm:$0xff]  }
0x1388   : > { %v13004_v50 = vpop.f32.mrb[216].mxu1 }
0x1389   : > { %v13005_v62 = vadd.f32 %v13004_v50, %v12964_v24  ;;  %v13006_v54 = vpop.f32.mrb[217].mxu1 }
0x138a   : > { %v13007_v22 = vadd.f32 %v13006_v54, %v12966_v14  ;;  %v13008_v31 = vpop.f32.mrb[218].mxu1  ;;  %v25035_v14 = vld [vmem:[%s32429_s2 + $0x17f0] ss:$20 sps:$4 sm:$0xff]   ;;  %v25038_v54 = vld [vmem:[%s32429_s2 + $0x1d60] ss:$20 sps:$4 sm:$0xff]  }
0x138b   : > { %v30649_v58 = vadd.f32 %v13005_v62, %v29998_v57  ;;  %v13009_v60 = vpop.f32.mrb[219].mxu1 }
0x138c   : > { %v30652_v0 = vadd.f32 %v13007_v22, %v30001_v3  ;;  %v25017_v3 = vld [vmem:[%s32429_s2 + $0x1cc0] ss:$20 sps:$4 sm:$0xff]   ;;  %v25041_v22 = vld [vmem:[%s32429_s2 + $0x1818] ss:$20 sps:$4 sm:$0xff]  }
0x138d   : > { %v25046_v60 = vld [vmem:[%s32429_s2 + $0x1d8c] ss:$20 sps:$4 sm:$0xff]  }
0x13a0   : > { %v22553_v2 = vpop.f32.mrb[208].mxu0 }
0x13a1   : > { %v22554_v8 = vpop.f32.mrb[209].mxu0 }
0x13a2   : > { %v22555_v33 = vadd.f32 %v22554_v8, %v22553_v2  ;;  %v22556_v32 = vpop.f32.mrb[210].mxu0  ;;  %v25049_v2 = vld [vmem:[%s32429_s2 + $0x1844] ss:$20 sps:$4 sm:$0xff]  }
0x13a3   : > { %v22557_v43 = vpop.f32.mrb[211].mxu0  ;;  %v25047_v32 = vld [vmem:[%s32429_s2 + $0x1840] ss:$20 sps:$4 sm:$0xff]  }
0x13a4   : > { %v25052_v43 = vld [vmem:[%s32429_s2 + $0x186c] ss:$20 sps:$4 sm:$0xff]  }
0x13a8   : > { %v22575_v45 = vpop.f32.mrb[220].mxu1 }
0x13a9   : > { %v22576_v46 = vpop.f32.mrb[221].mxu1 }
0x13aa   : > { %v22577_v35 = vadd.f32 %v22576_v46, %v22575_v45  ;;  %v22578_v29 = vpop.f32.mrb[222].mxu1  ;;  %v25055_v45 = vld [vmem:[%s32429_s2 + $0x1a4c] ss:$20 sps:$4 sm:$0xff]  }
0x13ab   : > { %v22579_v6 = vpop.f32.mrb[223].mxu1  ;;  %v25053_v29 = vld [vmem:[%s32429_s2 + $0x1a48] ss:$20 sps:$4 sm:$0xff]  }
0x13ac   : > { %v13086_v20 = vadd.f32 %v22577_v35, %v22555_v33  ;;  %v25044_v33 = vld [vmem:[%s32429_s2 + $0x1d88] ss:$20 sps:$4 sm:$0xff]  }
0x13ad   : > { %v25050_v35 = vld [vmem:[%s32429_s2 + $0x1868] ss:$20 sps:$4 sm:$0xff]  }
0x13ae   : > { %v25058_v6 = vld [vmem:[%s32429_s2 + $0x1894] ss:$20 sps:$4 sm:$0xff]  }
0x13b0   : > { %v13174_v11 = vpop.f32.mrb[224].mxu1 }
0x13b1   : > { %v13176_v41 = vpop.f32.mrb[225].mxu1  ;;  %v30659_v30 = vpack.c.bf16 %v13174_v11, %v13174_v11  ;;  %v25056_v11 = vld [vmem:[%s32429_s2 + $0x1890] ss:$20 sps:$4 sm:$0xff]  }
0x13b2   : > { %v30654_v34 = vpack.c.bf16 %v13176_v41, %v13176_v41  ;;  %v13178_v57 = vpop.f32.mrb[226].mxu1  ;;  %v25059_v41 = vld [vmem:[%s32429_s2 + $0x1a70] ss:$20 sps:$4 sm:$0xff]  }
0x13b3   : > { %v13179_v27 = vpop.f32.mrb[227].mxu1  ;;  %v25064_v57 = vld [vmem:[%s32429_s2 + $0x18bc] ss:$20 sps:$4 sm:$0xff]  }
0x13b4   : > { %14519 = vmatprep.mubr.bf16.mxu0 %v30654_v34  ;;  %v25062_v27 = vld [vmem:[%s32429_s2 + $0x18b8] ss:$20 sps:$4 sm:$0xff]  }
0x13b5   : > { %14520 = vmatmul.mubr.bf16.vlgmr.msra.gmra.mrb[216].mxu0 %v30659_v30 }
0x13b6   : > { %14570 = vmatpush1.bf16.msra.mxu0 %v25017_v3  ;;  %14601 = vmatprep.mubr.bf16.mxu0 %v25793_v53  ;;  %v25067_v3 = vld [vmem:[%s32429_s2 + $0x1a9c] ss:$20 sps:$4 sm:$0xff]  }
0x13b7   : > { %14571 = vmatprep.subr.bf16.mxu0 %v25025_v59  ;;  %v25065_v59 = vld [vmem:[%s32429_s2 + $0x1a98] ss:$20 sps:$4 sm:$0xff]  }
0x13b8   : > { %v13125_v48 = vpop.f32.mrb[212].mxu0  ;;  %v13215_v19 = vpop.f32.mrb[228].mxu1 }
0x13b9   : > { %v13126_v36 = vadd.f32 %v13125_v48, %v13086_v20  ;;  %v30673_v49 = vpack.c.bf16 %v13215_v19, %v13215_v19  ;;  %v23106_v63 = vpop.f32.mrb[213].mxu0  ;;  %v13217_v10 = vpop.f32.mrb[229].mxu1  ;;  %v25061_v20 = vld [vmem:[%s32429_s2 + $0x1a74] ss:$20 sps:$4 sm:$0xff]  }
0x13ba   : > { %v30675_v18 = vpack.c.bf16 %v13217_v10, %v13217_v10  ;;  %14572 = vmatpush1.bf16.msra.mxu0 %v25023_v55  ;;  %v13128_v13 = vpop.f32.mrb[214].mxu0  ;;  %v13219_v23 = vpop.f32.mrb[230].mxu1  ;;  %v25070_v55 = vld [vmem:[%s32429_s2 + $0x18e4] ss:$20 sps:$4 sm:$0xff]   ;;  %v25068_v48 = vld [vmem:[%s32429_s2 + $0x18e0] ss:$20 sps:$4 sm:$0xff]  }
0x13bb   : > { %v30684_v21 = vadd.f32 %v13126_v36, %v30023_v7  ;;  %v23107_v39 = vpop.f32.mrb[215].mxu0  ;;  %14573 = vmatprep.subr.bf16.mxu0 %v25028_v28  ;;  %v13220_v24 = vpop.f32.mrb[231].mxu1  ;;  %v25032_v7 = vld [vmem:[%s32429_s2 + $0x1d38] ss:$20 sps:$4 sm:$0xff]   ;;  %v25071_v19 = vld [vmem:[%s32429_s2 + $0x1ac0] ss:$20 sps:$4 sm:$0xff]  }
0x13bc   : > { %14560 = vmatprep.mubr.bf16.mxu1 %v30675_v18  ;;  %v25073_v28 = vld [vmem:[%s32429_s2 + $0x1ac4] ss:$20 sps:$4 sm:$0xff]   ;;  %v25076_v36 = vld [vmem:[%s32429_s2 + $0x190c] ss:$20 sps:$4 sm:$0xff]   ;;  %v25074_v10 = vld [vmem:[%s32429_s2 + $0x1908] ss:$20 sps:$4 sm:$0xff]  }
0x13bd   : > { %14561 = vmatmul.mubr.bf16.vlgmr.msra.gmra.mrb[236].mxu1 %v30673_v49  ;;  %v25079_v63 = vld [vmem:[%s32429_s2 + $0x1aec] ss:$20 sps:$4 sm:$0xff]   ;;  %v25077_v13 = vld [vmem:[%s32429_s2 + $0x1ae8] ss:$20 sps:$4 sm:$0xff]   ;;  %v25080_v23 = vld [vmem:[%s32429_s2 + $0x1930] ss:$20 sps:$4 sm:$0xff]  }
0x13be   : > { %14574 = vmatpush1.bf16.msra.mxu0 %v25026_v15  ;;  %14611 = vmatpush1.bf16.msra.mxu1 %v25029_v44  ;;  %v25082_v15 = vld [vmem:[%s32429_s2 + $0x1934] ss:$20 sps:$4 sm:$0xff]   ;;  %v25083_v39 = vld [vmem:[%s32429_s2 + $0x1b10] ss:$20 sps:$4 sm:$0xff]  }
0x13bf   : > { %14642 = vmatprep.mubr.bf16.mxu1 %v30654_v34  ;;  %14575 = vmatprep.subr.bf16.mxu0 %v25034_v17  ;;  %v25085_v44 = vld [vmem:[%s32429_s2 + $0x1b14] ss:$20 sps:$4 sm:$0xff]   ;;  %v25088_v17 = vld [vmem:[%s32429_s2 + $0x195c] ss:$20 sps:$4 sm:$0xff]  }
0x13c0   : > { %14612 = vmatprep.subr.bf16.mxu1 %v25037_v52  ;;  %v13256_v50 = vpop.f32.mrb[232].mxu1  ;;  %v25091_v24 = vld [vmem:[%s32429_s2 + $0x1b3c] ss:$20 sps:$4 sm:$0xff]   ;;  %v25086_v52 = vld [vmem:[%s32429_s2 + $0x1958] ss:$20 sps:$4 sm:$0xff]  }
0x13c1   : > { %v23114_v62 = vpop.f32.mrb[233].mxu1  ;;  %v30731_v46 = vpack.c.bf16 %v13256_v50, %v13256_v50  ;;  %v25095_v50 = vld [vmem:[%s32429_s2 + $0x1b60] ss:$20 sps:$4 sm:$0xff]  }
0x13c2   : > { %14576 = vmatpush1.bf16.msra.mxu0 %v25032_v7  ;;  %14613 = vmatpush1.bf16.msra.mxu1 %v25035_v14  ;;  %v13259_v31 = vpop.f32.mrb[234].mxu1  ;;  %v25089_v7 = vld [vmem:[%s32429_s2 + $0x1b38] ss:$20 sps:$4 sm:$0xff]  }
0x13c3   : > { %14577 = vmatprep.subr.bf16.mxu0 %v25040_v26  ;;  %14614 = vmatprep.subr.bf16.mxu1 %v25043_v16  ;;  %v23115_v8 = vpop.f32.mrb[235].mxu1  ;;  %v25094_v14 = vld [vmem:[%s32429_s2 + $0x1984] ss:$20 sps:$4 sm:$0xff]   ;;  %v25092_v16 = vld [vmem:[%s32429_s2 + $0x1980] ss:$20 sps:$4 sm:$0xff]  }
0x13c4   : > { %v25097_v26 = vld [vmem:[%s32429_s2 + $0x1b64] ss:$20 sps:$4 sm:$0xff]   ;;  %v25100_v62 = vld [vmem:[%s32429_s2 + $0x19ac] ss:$20 sps:$4 sm:$0xff]   ;;  %v25101_v31 = vld [vmem:[%s32429_s2 + $0x1b88] ss:$20 sps:$4 sm:$0xff]  }
0x13c5   : > { %v25104_v8 = vld [vmem:[%s32429_s2 + $0x19d0] ss:$20 sps:$4 sm:$0xff]  }
0x13c6   : > { %14578 = vmatpush1.bf16.msra.mxu0 %v25038_v54  ;;  %14615 = vmatpush1.bf16.msra.mxu1 %v25041_v22  ;;  %v25103_v54 = vld [vmem:[%s32429_s2 + $0x1b8c] ss:$20 sps:$4 sm:$0xff]   ;;  %v25098_v22 = vld [vmem:[%s32429_s2 + $0x19a8] ss:$20 sps:$4 sm:$0xff]  }
0x13c7   : > { %14579 = vmatprep.subr.bf16.mxu0 %v25046_v60  ;;  %14616 = vmatprep.subr.bf16.mxu1 %v25049_v2  ;;  %v25106_v60 = vld [vmem:[%s32429_s2 + $0x19d4] ss:$20 sps:$4 sm:$0xff]  }
0x13c8   : > { %v25109_v2 = vld [vmem:[%s32429_s2 + $0x1bb4] ss:$20 sps:$4 sm:$0xff]  }
0x13ca   : > { %14580 = vmatpush1.bf16.msra.mxu0 %v25044_v33  ;;  %14617 = vmatpush1.bf16.msra.mxu1 %v25047_v32  ;;  %v25107_v33 = vld [vmem:[%s32429_s2 + $0x1bb0] ss:$20 sps:$4 sm:$0xff]  }
0x13cb   : > { %14618 = vmatprep.subr.bf16.mxu1 %v25052_v43  ;;  %14651 = vmatprep.subr.bf16.mxu0 %v25055_v45  ;;  %v25112_v32 = vld [vmem:[%s32429_s2 + $0x19fc] ss:$20 sps:$4 sm:$0xff]   ;;  %v25110_v45 = vld [vmem:[%s32429_s2 + $0x19f8] ss:$20 sps:$4 sm:$0xff]  }
0x13cc   : > { %v25115_v43 = vld [vmem:[%s32429_s2 + $0x1bdc] ss:$20 sps:$4 sm:$0xff]  }
0x13cd   : > { %21496 = vmatmul.mubr.msk.bf16.vlgmr.msra.gmra.mrb[220].mxu0 %vm7965_vm5, %v30731_v46 }
0x13ce   : > { %14619 = vmatpush1.bf16.msra.mxu1 %v25050_v35  ;;  %14652 = vmatpush1.bf16.msra.mxu0 %v25053_v29  ;;  %v25113_v35 = vld [vmem:[%s32429_s2 + $0x1bd8] ss:$20 sps:$4 sm:$0xff]  }
0x13cf   : > { %14683 = vmatprep.mubr.bf16.mxu0 %v30675_v18  ;;  %14620 = vmatprep.subr.bf16.mxu1 %v25058_v6  ;;  %v25118_v29 = vld [vmem:[%s32429_s2 + $0x1a24] ss:$20 sps:$4 sm:$0xff]  }
0x13d0   : > { %14653 = vmatprep.subr.bf16.mxu0 %v25061_v20  ;;  %v25121_v6 = vld [vmem:[%s32429_s2 + $0x1c04] ss:$20 sps:$4 sm:$0xff]   ;;  %v25116_v20 = vld [vmem:[%s32429_s2 + $0x1a20] ss:$20 sps:$4 sm:$0xff]  }
0x13d2   : > { %14621 = vmatpush1.bf16.msra.mxu1 %v25056_v11  ;;  %14654 = vmatpush1.bf16.msra.mxu0 %v25059_v41  ;;  %v25119_v11 = vld [vmem:[%s32429_s2 + $0x1c00] ss:$20 sps:$4 sm:$0xff]  }
0x13d3   : > { %14622 = vmatprep.subr.bf16.mxu1 %v25064_v57  ;;  %14655 = vmatprep.subr.bf16.mxu0 %v25067_v3  ;;  %v25124_v41 = vld [vmem:[%s32429_s2 + $0x1c2c] ss:$20 sps:$4 sm:$0xff]   ;;  %v25122_v3 = vld [vmem:[%s32429_s2 + $0x1c28] ss:$20 sps:$4 sm:$0xff]  }
0x13d4   : > { %v25127_v57 = vld [vmem:[%s32429_s2 + $0x1ccc] ss:$20 sps:$4 sm:$0xff]  }
0x13d6   : > { %14623 = vmatpush1.bf16.msra.mxu1 %v25062_v27  ;;  %14656 = vmatpush1.bf16.msra.mxu0 %v25065_v59  ;;  %v25125_v27 = vld [vmem:[%s32429_s2 + $0x1cc8] ss:$20 sps:$4 sm:$0xff]  }
0x13d7   : > { %14624 = vmatprep.subr.bf16.mxu1 %v25070_v55  ;;  %14657 = vmatprep.subr.bf16.mxu0 %v25073_v28  ;;  %v25130_v59 = vld [vmem:[%s32429_s2 + $0x1c54] ss:$20 sps:$4 sm:$0xff]   ;;  %v25128_v28 = vld [vmem:[%s32429_s2 + $0x1c50] ss:$20 sps:$4 sm:$0xff]  }
0x13d8   : > { %v25133_v55 = vld [vmem:[%s32429_s2 + $0x1cf4] ss:$20 sps:$4 sm:$0xff]  }
0x13da   : > { %14625 = vmatpush1.bf16.msra.mxu1 %v25068_v48  ;;  %14658 = vmatpush1.bf16.msra.mxu0 %v25071_v19  ;;  %v25131_v48 = vld [vmem:[%s32429_s2 + $0x1cf0] ss:$20 sps:$4 sm:$0xff]  }
0x13db   : > { %14626 = vmatprep.subr.bf16.mxu1 %v25076_v36  ;;  %14659 = vmatprep.subr.bf16.mxu0 %v25079_v63  ;;  %v25136_v19 = vld [vmem:[%s32429_s2 + $0x1c7c] ss:$20 sps:$4 sm:$0xff]   ;;  %v25134_v63 = vld [vmem:[%s32429_s2 + $0x1c78] ss:$20 sps:$4 sm:$0xff]  }
0x13dc   : > { %v25139_v36 = vld [vmem:[%s32429_s2 + $0x1d1c] ss:$20 sps:$4 sm:$0xff]  }
0x13de   : > { %14627 = vmatpush1.bf16.msra.mxu1 %v25074_v10  ;;  %14660 = vmatpush1.bf16.msra.mxu0 %v25077_v13  ;;  %v25137_v10 = vld [vmem:[%s32429_s2 + $0x1d18] ss:$20 sps:$4 sm:$0xff]  }
0x13df   : > { %14628 = vmatprep.subr.bf16.mxu1 %v25082_v15  ;;  %14661 = vmatprep.subr.bf16.mxu0 %v25085_v44  ;;  %v25142_v13 = vld [vmem:[%s32429_s2 + $0x1ca4] ss:$20 sps:$4 sm:$0xff]   ;;  %v25140_v44 = vld [vmem:[%s32429_s2 + $0x1ca0] ss:$20 sps:$4 sm:$0xff]  }
0x13e0   : > { %v25145_v15 = vld [vmem:[%s32429_s2 + $0x1d44] ss:$20 sps:$4 sm:$0xff]  }
0x13e2   : > { %14629 = vmatpush1.bf16.msra.mxu1 %v25080_v23  ;;  %14662 = vmatpush1.bf16.msra.mxu0 %v25083_v39  ;;  %v25143_v23 = vld [vmem:[%s32429_s2 + $0x1d40] ss:$20 sps:$4 sm:$0xff]  }
0x13e3   : > { %14630 = vmatprep.subr.bf16.mxu1 %v25088_v17  ;;  %14663 = vmatprep.subr.bf16.mxu0 %v25091_v24  ;;  %v25148_v39 = vld [vmem:[%s32429_s2 + $0x1d6c] ss:$20 sps:$4 sm:$0xff]   ;;  %v25149_v17 = vld [vmem:[%s32429_s2 + $0x1910] ss:$20 sps:$4 sm:$0xff]   ;;  %v25146_v24 = vld [vmem:[%s32429_s2 + $0x1d68] ss:$20 sps:$4 sm:$0xff]  }
0x13e6   : > { %14631 = vmatpush1.bf16.msra.mxu1 %v25086_v52  ;;  %14664 = vmatpush1.bf16.msra.mxu0 %v25089_v7  ;;  %v25150_v52 = vld [vmem:[%s32429_s2 + $0x17d0] ss:$20 sps:$4 sm:$0xff]   ;;  %v25153_v7 = vld [vmem:[%s32429_s2 + $0x1d94] ss:$20 sps:$4 sm:$0xff]  }
0x13e7   : > { %14632 = vmatprep.subr.bf16.mxu1 %v25094_v14  ;;  %14665 = vmatprep.subr.bf16.mxu0 %v25097_v26  ;;  %v25154_v14 = vld [vmem:[%s32429_s2 + $0x1938] ss:$20 sps:$4 sm:$0xff]   ;;  %v25151_v26 = vld [vmem:[%s32429_s2 + $0x1d90] ss:$20 sps:$4 sm:$0xff]  }
0x13ea   : > { %14633 = vmatpush1.bf16.msra.mxu1 %v25092_v16  ;;  %14666 = vmatpush1.bf16.msra.mxu0 %v25095_v50  ;;  %v25155_v16 = vld [vmem:[%s32429_s2 + $0x17f8] ss:$20 sps:$4 sm:$0xff]   ;;  %v25156_v50 = vld [vmem:[%s32429_s2 + $0x1960] ss:$20 sps:$4 sm:$0xff]  }
0x13eb   : > { %14634 = vmatprep.subr.bf16.mxu1 %v25100_v62  ;;  %14667 = vmatprep.subr.bf16.mxu0 %v25103_v54  ;;  %v25157_v62 = vld [vmem:[%s32429_s2 + $0x1b90] ss:$20 sps:$4 sm:$0xff]   ;;  %v25158_v54 = vld [vmem:[%s32429_s2 + $0x1820] ss:$20 sps:$4 sm:$0xff]  }
0x13ee   : > { %14635 = vmatpush1.bf16.msra.mxu1 %v25098_v22  ;;  %14668 = vmatpush1.bf16.msra.mxu0 %v25101_v31  ;;  %v25160_v22 = vld [vmem:[%s32429_s2 + $0x1988] ss:$20 sps:$4 sm:$0xff]   ;;  %v25161_v31 = vld [vmem:[%s32429_s2 + $0x1bb8] ss:$20 sps:$4 sm:$0xff]  }
0x13ef   : > { %14636 = vmatprep.subr.bf16.mxu1 %v25106_v60  ;;  %14669 = vmatprep.subr.bf16.mxu0 %v25109_v2  ;;  %v25162_v60 = vld [vmem:[%s32429_s2 + $0x1848] ss:$20 sps:$4 sm:$0xff]   ;;  %v25163_v2 = vld [vmem:[%s32429_s2 + $0x1a78] ss:$20 sps:$4 sm:$0xff]  }
0x13f2   : > { %14637 = vmatpush1.bf16.msra.mxu1 %v25104_v8  ;;  %14670 = vmatpush1.bf16.msra.mxu0 %v25107_v33  ;;  %v25164_v8 = vld [vmem:[%s32429_s2 + $0x19b0] ss:$20 sps:$4 sm:$0xff]   ;;  %v25165_v33 = vld [vmem:[%s32429_s2 + $0x1be0] ss:$20 sps:$4 sm:$0xff]  }
0x13f3   : > { %14638 = vmatprep.subr.bf16.mxu1 %v25112_v32  ;;  %14671 = vmatprep.subr.bf16.mxu0 %v25115_v43  ;;  %v25166_v32 = vld [vmem:[%s32429_s2 + $0x1870] ss:$20 sps:$4 sm:$0xff]   ;;  %v25168_v43 = vld [vmem:[%s32429_s2 + $0x19d8] ss:$20 sps:$4 sm:$0xff]  }
0x13f6   : > { %14639 = vmatpush1.bf16.msra.mxu1 %v25110_v45  ;;  %14672 = vmatpush1.bf16.msra.mxu0 %v25113_v35  ;;  %v25169_v45 = vld [vmem:[%s32429_s2 + $0x1c08] ss:$20 sps:$4 sm:$0xff]   ;;  %v25170_v35 = vld [vmem:[%s32429_s2 + $0x1898] ss:$20 sps:$4 sm:$0xff]  }
0x13f7   : > { %14640 = vmatprep.subr.bf16.mxu1 %v25118_v29  ;;  %14673 = vmatprep.subr.bf16.mxu0 %v25121_v6  ;;  %v25171_v29 = vld [vmem:[%s32429_s2 + $0x1ac8] ss:$20 sps:$4 sm:$0xff]   ;;  %v25172_v6 = vld [vmem:[%s32429_s2 + $0x1a00] ss:$20 sps:$4 sm:$0xff]  }
0x13fa   : > { %14641 = vmatpush1.bf16.msra.mxu1 %v25116_v20  ;;  %14674 = vmatpush1.bf16.msra.mxu0 %v25119_v11  ;;  %v25173_v20 = vld [vmem:[%s32429_s2 + $0x1c30] ss:$20 sps:$4 sm:$0xff]   ;;  %v25174_v11 = vld [vmem:[%s32429_s2 + $0x18c0] ss:$20 sps:$4 sm:$0xff]  }
0x13fb   : > { %14675 = vmatprep.subr.bf16.mxu0 %v25124_v41  ;;  %14692 = vmatprep.subr.bf16.mxu1 %v25127_v57  ;;  %v25175_v41 = vld [vmem:[%s32429_s2 + $0x1af0] ss:$20 sps:$4 sm:$0xff]   ;;  %v25176_v57 = vld [vmem:[%s32429_s2 + $0x1a28] ss:$20 sps:$4 sm:$0xff]  }
0x13fd   : > { %14643 = vmatmul.mubr.bf16.vlgmr.msra.gmra.mrb[240].mxu1 %v30659_v30 }
0x13fe   : > { %14676 = vmatpush1.bf16.msra.mxu0 %v25122_v3  ;;  %14693 = vmatpush1.bf16.msra.mxu1 %v25125_v27  ;;  %v25177_v3 = vld [vmem:[%s32429_s2 + $0x1c58] ss:$20 sps:$4 sm:$0xff]   ;;  %v25178_v27 = vld [vmem:[%s32429_s2 + $0x18e8] ss:$20 sps:$4 sm:$0xff]  }
0x13ff   : > { %14677 = vmatprep.subr.bf16.mxu0 %v25130_v59  ;;  %14694 = vmatprep.subr.bf16.mxu1 %v25133_v55  ;;  %v25179_v59 = vld [vmem:[%s32429_s2 + $0x1b18] ss:$20 sps:$4 sm:$0xff]   ;;  %v25180_v55 = vld [vmem:[%s32429_s2 + $0x1c80] ss:$20 sps:$4 sm:$0xff]  }
0x1400   : > { %14724 = vmatprep.mubr.bf16.mxu1 %v25793_v53 }
0x1402   : > { %14678 = vmatpush1.bf16.msra.mxu0 %v25128_v28  ;;  %14695 = vmatpush1.bf16.msra.mxu1 %v25131_v48  ;;  %v25181_v28 = vld [vmem:[%s32429_s2 + $0x1b40] ss:$20 sps:$4 sm:$0xff]   ;;  %v25182_v48 = vld [vmem:[%s32429_s2 + $0x1cd0] ss:$20 sps:$4 sm:$0xff]  }
0x1403   : > { %14679 = vmatprep.subr.bf16.mxu0 %v25136_v19  ;;  %14696 = vmatprep.subr.bf16.mxu1 %v25139_v36  ;;  %v25183_v19 = vld [vmem:[%s32429_s2 + $0x1ca8] ss:$20 sps:$4 sm:$0xff]  }
0x1404   : > { %v25184_v36 = vld [vmem:[%s32429_s2 + $0x1b68] ss:$20 sps:$4 sm:$0xff]  }
0x1406   : > { %14680 = vmatpush1.bf16.msra.mxu0 %v25134_v63  ;;  %14697 = vmatpush1.bf16.msra.mxu1 %v25137_v10  ;;  %v25185_v63 = vld [vmem:[%s32429_s2 + $0x1cf8] ss:$20 sps:$4 sm:$0xff]   ;;  %v25187_v10 = vld [vmem:[%s32429_s2 + $0x1d48] ss:$20 sps:$4 sm:$0xff]  }
0x1407   : > { %14681 = vmatprep.subr.bf16.mxu0 %v25142_v13  ;;  %14698 = vmatprep.subr.bf16.mxu1 %v25145_v15  ;;  %v25188_v13 = vld [vmem:[%s32429_s2 + $0x1d70] ss:$20 sps:$4 sm:$0xff]  }
0x140a   : > { %14682 = vmatpush1.bf16.msra.mxu0 %v25140_v44  ;;  %14699 = vmatpush1.bf16.msra.mxu1 %v25143_v23 }
0x140b   : > { %14700 = vmatprep.subr.bf16.mxu1 %v25148_v39  ;;  %22591 = vmatprep.subr.bf16.mxu0 %v25149_v17 }
0x140d   : > { %14684 = vmatmul.mubr.bf16.vlgmr.msra.gmra.mrb[224].mxu0 %v30673_v49 }
0x140e   : > { %14701 = vmatpush1.bf16.msra.mxu1 %v25146_v24  ;;  %22592 = vmatpush3.bf16.msra.mxu0 %v25150_v52 }
0x140f   : > { %14765 = vmatprep.mubr.bf16.mxu0 %v30654_v34  ;;  %14702 = vmatprep.subr.bf16.mxu1 %v25153_v7  ;;  %v25159_v34 = vld [vmem:[%s32429_s2 + $0x1a50] ss:$20 sps:$4 sm:$0xff]  }
0x1410   : > { %22593 = vmatprep.subr.bf16.mxu0 %v25154_v14 }
0x1412   : > { %14703 = vmatpush1.bf16.msra.mxu1 %v25151_v26  ;;  %22594 = vmatpush3.bf16.msra.mxu0 %v25155_v16  ;;  %v31072_v16 = vld [vmem:[%s32433_s6] sm:$0x1f] }
0x1413   : > { %22595 = vmatprep.subr.bf16.mxu0 %v25156_v50  ;;  %22613 = vmatprep.subr.bf16.mxu1 %v25157_v62 }
0x1415   : > { %21497 = vmatmul.mubr.msk.bf16.vlgmr.msra.gmra.mrb[244].mxu1 %vm7965_vm5, %v30731_v46 }
0x1416   : > { %22596 = vmatpush3.bf16.msra.mxu0 %v25158_v54  ;;  %22614 = vmatpush3.bf16.msra.mxu1 %v25159_v34 }
0x1417   : > { %14805 = vmatprep.mubr.bf16.mxu1 %v30675_v18  ;;  %22597 = vmatprep.subr.bf16.mxu0 %v25160_v22  ;;  %v25167_v18 = vld [vmem:[%s32429_s2 + $0x1aa0] ss:$20 sps:$4 sm:$0xff]   ;;  %v14867_v22 = vrot.slane %v31072_v16, %v27769_v47 }
0x1418   : > { %22615 = vmatprep.subr.bf16.mxu1 %v25161_v31 }
0x141a   : > { %22598 = vmatpush3.bf16.msra.mxu0 %v25162_v60  ;;  %22616 = vmatpush3.bf16.msra.mxu1 %v25163_v2 }
0x141b   : > { %22599 = vmatprep.subr.bf16.mxu0 %v25164_v8  ;;  %22617 = vmatprep.subr.bf16.mxu1 %v25165_v33 }
0x141e   : > { %22600 = vmatpush3.bf16.msra.mxu0 %v25166_v32  ;;  %22618 = vmatpush3.bf16.msra.mxu1 %v25167_v18  ;;  %v25795_v32 = vmov 65535  }
0x141f   : > { %22601 = vmatprep.subr.bf16.mxu0 %v25168_v43  ;;  %22619 = vmatprep.subr.bf16.mxu1 %v25169_v45  ;;  %v14904_v18 = vsel %vm14903_vm7, 4294967295, %v25795_v32  ;;  %v14879_v32 = vrot.slane %v31072_v16, %v6194_v9  ;;  %v25205_v9 = vld [vmem:[%s32430_s3 + $0x320] ss:$8 sps:$4 sm:$0xff]  }
0x1422   : > { %22602 = vmatpush3.bf16.msra.mxu0 %v25170_v35  ;;  %22620 = vmatpush3.bf16.msra.mxu1 %v25171_v29 }
0x1423   : > { %22603 = vmatprep.subr.bf16.mxu0 %v25172_v6  ;;  %22621 = vmatprep.subr.bf16.mxu1 %v25173_v20  ;;  %v31081_v6 = vsel %vm422_vm6, %v14904_v18, 0  ;;  %vm15654_vm6 = vcmask 261120  }
0x1426   : > { %22604 = vmatpush3.bf16.msra.mxu0 %v25174_v11  ;;  %22622 = vmatpush3.bf16.msra.mxu1 %v25175_v41 }
0x1427   : > { %22605 = vmatprep.subr.bf16.mxu0 %v25176_v57  ;;  %22623 = vmatprep.subr.bf16.mxu1 %v25177_v3 }
0x142a   : > { %22606 = vmatpush3.bf16.msra.mxu0 %v25178_v27  ;;  %22624 = vmatpush3.bf16.msra.mxu1 %v25179_v59 }
0x142b   : > { %22625 = vmatprep.subr.bf16.mxu1 %v25180_v55  ;;  %23116 = vmatprep.subr.bf16.mxu0 %v25792_v12 }
0x142d   : > { %14766 = vmatmul.mubr.bf16.vlgmr.msra.gmra.mrb[228].mxu0 %v30659_v30  ;;  %v25186_v30 = vld [vmem:[%s32429_s2 + $0x1d20] ss:$20 sps:$4 sm:$0xff]  }
0x142e   : > { %22626 = vmatpush3.bf16.msra.mxu1 %v25181_v28  ;;  %23117 = vmatpush3.bf16.msra.mxu0 %v25182_v48 }
0x142f   : > { %22627 = vmatprep.subr.bf16.mxu1 %v25183_v19  ;;  %23118 = vmatprep.subr.bf16.mxu0 %v25792_v12 }
0x1430   : > { %23128 = vmatprep.mubr.msk.bf16.mxu0 %vm25794_vm2, %v25792_v12 }
0x1432   : > { %22628 = vmatpush3.bf16.msra.mxu1 %v25184_v36  ;;  %23119 = vmatpush3.bf16.msra.mxu0 %v25185_v63 }
0x1433   : > { %23120 = vmatprep.subr.bf16.mxu0 %v25792_v12 }
0x1435   : > { %14806 = vmatmul.mubr.bf16.vlgmr.msra.gmra.mrb[248].mxu1 %v30673_v49  ;;  %v25189_v49 = vld [vmem:[%s32429_s2 + $0x1d98] ss:$20 sps:$4 sm:$0xff]  }
0x1436   : > { %23121 = vmatpush3.bf16.msra.mxu0 %v25186_v30  ;;  %14953 = vmatprep.mubr.bf16.mxu1 %v25793_v53  ;;  %v14871_v30 = vrot.slane %v31072_v16, %v6186_v5 }
0x1437   : > { %23122 = vmatprep.subr.bf16.mxu0 %v25792_v12 }
0x143a   : > { %23123 = vmatpush3.bf16.msra.mxu0 %v25187_v10 }
0x143b   : > { %23124 = vmatprep.subr.bf16.mxu0 %v25792_v12 }
0x143e   : > { %23125 = vmatpush3.bf16.msra.mxu0 %v25188_v13 }
0x143f   : > { %23126 = vmatprep.subr.bf16.mxu0 %v25792_v12 }
0x1442   : > { %23127 = vmatpush3.bf16.msra.mxu0 %v25189_v49  ;;  %v14875_v49 = vrot.slane %v31072_v16, %v6190_v61 }
0x1445   : > { %23129 = vmatmul.mubr.msk.bf16.vlgmr.msra.gmra.mrb[232].mxu0 %vm7965_vm5, %v30731_v46  ;;  %v14863_v46 = vrot.slane %v31072_v16, %v27760_v37  ;;  %v25211_v16 = vld [vmem:[%s32430_s3 + $0x330] ss:$8 sps:$4 sm:$0xff]  }
0x1446   : > { %15150 = vmatprep.mubr.bf16.mxu0 %v25793_v53 }
0x1488   : > { %v14521_v15 = vpop.f32.mrb[216].mxu0 }
0x1489   : > { %v14523_v44 = vpop.f32.mrb[217].mxu0 }
0x148a   : > { %v14525_v23 = vpop.f32.mrb[218].mxu0 }
0x148b   : > { %v14526_v39 = vpop.f32.mrb[219].mxu0 }
0x1490   : > { %v14562_v17 = vpop.f32.mrb[236].mxu1 }
0x1491   : > { %v14563_v24 = vadd.f32 %v14562_v17, %v14521_v15  ;;  %v14564_v52 = vpop.f32.mrb[237].mxu1 }
0x1492   : > { %v14565_v7 = vadd.f32 %v14564_v52, %v14523_v44  ;;  %v14566_v14 = vpop.f32.mrb[238].mxu1 }
0x1493   : > { %v14567_v26 = vpop.f32.mrb[239].mxu1 }
0x14a0   : > { %v14603_v50 = vpop.f32.mrb[220].mxu0 }
0x14a1   : > { %v14604_v62 = vadd.f32 %v14603_v50, %v14563_v24  ;;  %v14605_v54 = vpop.f32.mrb[221].mxu0 }
0x14a2   : > { %v14606_v34 = vadd.f32 %v14605_v54, %v14565_v7  ;;  %v14607_v31 = vpop.f32.mrb[222].mxu0 }
0x14a3   : > { %v14853_v60 = vadd.f32 %v14604_v62, %v30643_v40  ;;  %v14608_v2 = vpop.f32.mrb[223].mxu0 }
0x14a4   : > { %v14854_v8 = vadd.f32 %v14606_v34, %v30646_v4 }
0x14a5   : > { %v14885_v33 = vadd.f32 %v14863_v46, %v14853_v60 }
0x14a6   : > { %v14886_v43 = vadd.f32 %v14867_v22, %v14854_v8 }
0x14a7   : > { %v14890_v45 = vmax.f32 %v14885_v33, 0.0 }
0x14a8   : > { %v14891_v35 = vmax.f32 %v14886_v43, 0.0 }
0x14a9   : > { %v14895_v29 = vpack.c.bf16 %v14890_v45, %v14890_v45 }
0x14aa   : > { %v14896_v20 = vpack.c.bf16 %v14891_v35, %v14891_v35 }
0x14ab   : > { %v31087_v40 = vand.u32 %v31081_v6, %v14895_v29 }
0x14ac   : > { %v31084_v11 = vand.u32 %v31081_v6, %v14896_v20 }
0x14ae   : > { %14921 = vmatprep.subr.bf16.mxu1 %v31084_v11  ;;  %15118 = vmatprep.subr.bf16.mxu0 %v31084_v11 }
0x14af   : > { %14922 = vmatpush1.bf16.msra.mxu1 %v31087_v40  ;;  %15119 = vmatpush1.bf16.msra.mxu0 %v31087_v40 }
0x14b0   : > { %23138 = vmatprep.subr.bf16.mxu0 %v25792_v12 }
0x14b2   : > { %21499 = vmatmul.mubr.msk.bf16.vlgmr.msra.gmra.mrb[252].mxu1 %vm14900_vm8, %v27804_v25  ;;  %21502 = vmatmul.mubr.msk.bf16.vlgmr.msra.gmra.mrb[236].mxu0 %vm14900_vm8, %v27841_v42 }
0x14b3   : > { %14994 = vmatprep.mubr.bf16.mxu1 %v25793_v53  ;;  %23140 = vmatprep.mubr.msk.bf16.mxu0 %vm25794_vm2, %v25792_v12 }
0x14d0   : > { %v14644_v4 = vpop.f32.mrb[240].mxu1 }
0x14d1   : > { %v14646_v41 = vpop.f32.mrb[241].mxu1 }
0x14d2   : > { %v14648_v57 = vpop.f32.mrb[242].mxu1 }
0x14d3   : > { %v14649_v3 = vpop.f32.mrb[243].mxu1 }
0x14d4   : > { %v25195_v3 = vld [vmem:[%s32430_s3 + $0x234] ss:$8 sps:$4 sm:$0xff]  }
0x14e0   : > { %v14685_v27 = vpop.f32.mrb[224].mxu0 }
0x14e1   : > { %v14686_v59 = vadd.f32 %v14685_v27, %v14644_v4  ;;  %v14687_v55 = vpop.f32.mrb[225].mxu0  ;;  %v25217_v27 = vld [vmem:[%s32430_s3 + $0x340] ss:$8 sps:$4 sm:$0xff]  }
0x14e2   : > { %v14688_v28 = vadd.f32 %v14687_v55, %v14646_v41  ;;  %v14689_v48 = vpop.f32.mrb[226].mxu0  ;;  %v25207_v41 = vld [vmem:[%s32430_s3 + $0x324] ss:$8 sps:$4 sm:$0xff]   ;;  %v25193_v55 = vld [vmem:[%s32430_s3 + $0x230] ss:$8 sps:$4 sm:$0xff]  }
0x14e3   : > { %v14690_v19 = vpop.f32.mrb[227].mxu0  ;;  %v25223_v48 = vld [vmem:[%s32430_s3 + $0x350] ss:$8 sps:$4 sm:$0xff]  }
0x14e4   : > { %v25196_v19 = vld [vmem:[%s32430_s3 + $0x240] ss:$8 sps:$4 sm:$0xff]  }
0x14e8   : > { %v14726_v36 = vpop.f32.mrb[244].mxu1 }
0x14e9   : > { %v14727_v63 = vadd.f32 %v14726_v36, %v14686_v59  ;;  %v14728_v10 = vpop.f32.mrb[245].mxu1  ;;  %v25225_v59 = vld [vmem:[%s32430_s3 + $0x354] ss:$8 sps:$4 sm:$0xff]  }
0x14ea   : > { %v14729_v13 = vadd.f32 %v14728_v10, %v14688_v28  ;;  %v14730_v15 = vpop.f32.mrb[246].mxu1  ;;  %v25198_v28 = vld [vmem:[%s32430_s3 + $0x244] ss:$8 sps:$4 sm:$0xff]   ;;  %v25201_v36 = vld [vmem:[%s32430_s3 + $0x254] ss:$8 sps:$4 sm:$0xff]  }
0x14eb   : > { %v14855_v44 = vadd.f32 %v14727_v63, %v30649_v58  ;;  %v14731_v23 = vpop.f32.mrb[247].mxu1  ;;  %v25229_v63 = vld [vmem:[%s32430_s3 + $0x360] ss:$8 sps:$4 sm:$0xff]   ;;  %v25199_v10 = vld [vmem:[%s32430_s3 + $0x250] ss:$8 sps:$4 sm:$0xff]  }
0x14ec   : > { %v14856_v39 = vadd.f32 %v14729_v13, %v30652_v0  ;;  %v25204_v13 = vld [vmem:[%s32430_s3 + $0x264] ss:$8 sps:$4 sm:$0xff]   ;;  %v25210_v23 = vld [vmem:[%s32430_s3 + $0x274] ss:$8 sps:$4 sm:$0xff]  }
0x14ed   : > { %v14887_v17 = vadd.f32 %v14871_v30, %v14855_v44  ;;  %v25237_v30 = vld [vmem:[%s32430_s3 + $0x374] ss:$8 sps:$4 sm:$0xff]   ;;  %v25243_v15 = vld [vmem:[%s32430_s3 + $0x384] ss:$8 sps:$4 sm:$0xff]   ;;  %v25202_v44 = vld [vmem:[%s32430_s3 + $0x260] ss:$8 sps:$4 sm:$0xff]  }
0x14ee   : > { %v14888_v24 = vadd.f32 %v14875_v49, %v14856_v39  ;;  %v25235_v49 = vld [vmem:[%s32430_s3 + $0x370] ss:$8 sps:$4 sm:$0xff]   ;;  %v25241_v39 = vld [vmem:[%s32430_s3 + $0x380] ss:$8 sps:$4 sm:$0xff]  }
0x14ef   : > { %v14892_v52 = vmax.f32 %v14887_v17, 0.0  ;;  %v25249_v17 = vld [vmem:[%s32430_s3 + $0x394] ss:$8 sps:$4 sm:$0xff]  }
0x14f0   : > { %v14893_v7 = vmax.f32 %v14888_v24, 0.0  ;;  %v25208_v24 = vld [vmem:[%s32430_s3 + $0x270] ss:$8 sps:$4 sm:$0xff]  }
0x14f1   : > { %v14897_v14 = vpack.c.bf16 %v14892_v52, %v14892_v52  ;;  %v25216_v52 = vld [vmem:[%s32430_s3 + $0x284] ss:$8 sps:$4 sm:$0xff]  }
0x14f2   : > { %v14898_v26 = vpack.c.bf16 %v14893_v7, %v14893_v7  ;;  %v25247_v7 = vld [vmem:[%s32430_s3 + $0x390] ss:$8 sps:$4 sm:$0xff]  }
0x14f3   : > { %v31113_v50 = vand.u32 %v31081_v6, %v14897_v14  ;;  %v25255_v14 = vld [vmem:[%s32430_s3 + $0x3a4] ss:$8 sps:$4 sm:$0xff]  }
0x14f4   : > { %v31110_v5 = vand.u32 %v31081_v6, %v14898_v26  ;;  %v25214_v26 = vld [vmem:[%s32430_s3 + $0x280] ss:$8 sps:$4 sm:$0xff]  }
0x14f6   : > { %14962 = vmatprep.subr.bf16.mxu1 %v31110_v5 }
0x14f7   : > { %14963 = vmatpush1.bf16.msra.mxu1 %v31113_v50 }
0x14f8   : > { %23132 = vmatprep.subr.bf16.mxu1 %v25792_v12 }
0x14fa   : > { %21500 = vmatmul.mubr.msk.bf16.vlgmr.msra.gmra.mrb[0].mxu1 %vm14900_vm8, %v27804_v25 }
0x14fb   : > { %23134 = vmatprep.mubr.msk.bf16.mxu1 %vm25794_vm2, %v25792_v12 }
0x1500   : > { %v22607_v61 = vpop.f32.mrb[228].mxu0 }
0x1501   : > { %v22608_v58 = vpop.f32.mrb[229].mxu0 }
0x1502   : > { %v22609_v0 = vadd.f32 %v22608_v58, %v22607_v61  ;;  %v22610_v62 = vpop.f32.mrb[230].mxu0  ;;  %v25222_v61 = vld [vmem:[%s32430_s3 + $0x294] ss:$8 sps:$4 sm:$0xff]   ;;  %v25253_v58 = vld [vmem:[%s32430_s3 + $0x3a0] ss:$8 sps:$4 sm:$0xff]  }
0x1503   : > { %v22611_v46 = vpop.f32.mrb[231].mxu0  ;;  %v25220_v62 = vld [vmem:[%s32430_s3 + $0x290] ss:$8 sps:$4 sm:$0xff]  }
0x1504   : > { %v25228_v46 = vld [vmem:[%s32430_s3 + $0x2a4] ss:$8 sps:$4 sm:$0xff]  }
0x1508   : > { %v22629_v54 = vpop.f32.mrb[248].mxu1 }
0x1509   : > { %v22630_v34 = vpop.f32.mrb[249].mxu1 }
0x150a   : > { %v22631_v22 = vadd.f32 %v22630_v34, %v22629_v54  ;;  %v22632_v31 = vpop.f32.mrb[250].mxu1  ;;  %v25259_v54 = vld [vmem:[%s32430_s3 + $0x3b0] ss:$8 sps:$4 sm:$0xff]   ;;  %v25267_v34 = vld [vmem:[%s32430_s3 + $0x3c4] ss:$8 sps:$4 sm:$0xff]  }
0x150b   : > { %v22633_v60 = vpop.f32.mrb[251].mxu1  ;;  %v25234_v31 = vld [vmem:[%s32430_s3 + $0x2b4] ss:$8 sps:$4 sm:$0xff]  }
0x150c   : > { %v14808_v2 = vadd.f32 %v22631_v22, %v22609_v0  ;;  %v25261_v0 = vld [vmem:[%s32430_s3 + $0x3b4] ss:$8 sps:$4 sm:$0xff]   ;;  %v25226_v22 = vld [vmem:[%s32430_s3 + $0x2a0] ss:$8 sps:$4 sm:$0xff]  }
0x150d   : > { %v25265_v60 = vld [vmem:[%s32430_s3 + $0x3c0] ss:$8 sps:$4 sm:$0xff]  }
0x1518   : > { %v14847_v8 = vpop.f32.mrb[232].mxu0 }
0x1519   : > { %v14848_v33 = vadd.f32 %v14847_v8, %v14808_v2  ;;  %v23130_v18 = vpop.f32.mrb[233].mxu0  ;;  %v25273_v2 = vld [vmem:[%s32430_s3 + $0x3d4] ss:$8 sps:$4 sm:$0xff]   ;;  %v25232_v8 = vld [vmem:[%s32430_s3 + $0x2b0] ss:$8 sps:$4 sm:$0xff]  }
0x151a   : > { %v14850_v43 = vpop.f32.mrb[234].mxu0  ;;  %v25279_v18 = vld [vmem:[%s32430_s3 + $0x3e4] ss:$8 sps:$4 sm:$0xff]  }
0x151b   : > { %v14857_v45 = vadd.f32 %v14848_v33, %v30684_v21  ;;  %v23131_v35 = vpop.f32.mrb[235].mxu0  ;;  %v25213_v21 = vld [vmem:[%s32430_s3 + $0x334] ss:$8 sps:$4 sm:$0xff]   ;;  %v25240_v33 = vld [vmem:[%s32430_s3 + $0x2c4] ss:$8 sps:$4 sm:$0xff]  }
0x151c   : > { %v25238_v43 = vld [vmem:[%s32430_s3 + $0x2c0] ss:$8 sps:$4 sm:$0xff]  }
0x151d   : > { %v14889_v29 = vadd.f32 %v14879_v32, %v14857_v45  ;;  %v25271_v32 = vld [vmem:[%s32430_s3 + $0x3d0] ss:$8 sps:$4 sm:$0xff]   ;;  %v25246_v45 = vld [vmem:[%s32430_s3 + $0x2d4] ss:$8 sps:$4 sm:$0xff]   ;;  %v25277_v35 = vld [vmem:[%s32430_s3 + $0x3e0] ss:$8 sps:$4 sm:$0xff]  }
0x151f   : > { %v14894_v20 = vmax.f32 %v14889_v29, 0.0  ;;  %v25244_v29 = vld [vmem:[%s32430_s3 + $0x2d0] ss:$8 sps:$4 sm:$0xff]  }
0x1521   : > { %v14899_v4 = vpack.c.bf16 %v14894_v20, %v14894_v20  ;;  %v25252_v20 = vld [vmem:[%s32430_s3 + $0x2e4] ss:$8 sps:$4 sm:$0xff]  }
0x1523   : > { %v31130_v57 = vand.u32 %v31081_v6, %v14899_v4  ;;  %v25219_v6 = vld [vmem:[%s32430_s3 + $0x344] ss:$8 sps:$4 sm:$0xff]   ;;  %v25250_v4 = vld [vmem:[%s32430_s3 + $0x2e0] ss:$8 sps:$4 sm:$0xff]  }
0x1525   : > { %23133 = vmatpush3.bf16.msra.mxu1 %v31130_v57  ;;  %23139 = vmatpush3.bf16.msra.mxu0 %v31130_v57 }
0x1526   : > { %15159 = vmatprep.subr.bf16.mxu1 %v31110_v5  ;;  %15699 = vmatprep.subr.bf16.mxu0 %v25207_v41  ;;  %v25258_v41 = vld [vmem:[%s32430_s3 + $0x2f4] ss:$8 sps:$4 sm:$0xff]  }
0x1528   : > { %23135 = vmatmul.mubr.msk.bf16.vlgmr.msra.gmra.mrb[8].mxu1 %vm14900_vm8, %v27804_v25  ;;  %23141 = vmatmul.mubr.msk.bf16.vlgmr.msra.gmra.mrb[240].mxu0 %vm14900_vm8, %v27841_v42  ;;  %v25190_v25 = vld [vmem:[%s32430_s3 + $0x220] ss:$8 sps:$4 sm:$0xff]  }
0x1529   : > { %15160 = vmatpush1.bf16.msra.mxu1 %v31113_v50  ;;  %15191 = vmatprep.mubr.bf16.mxu1 %v25793_v53 }
0x152a   : > { %15658 = vmatprep.subr.bf16.mxu1 %v25192_v1  ;;  %15700 = vmatpush1.bf16.msra.mxu0 %v25205_v9  ;;  %v25256_v1 = vld [vmem:[%s32430_s3 + $0x2f0] ss:$8 sps:$4 sm:$0xff]   ;;  %v25264_v9 = vld [vmem:[%s32430_s3 + $0x304] ss:$8 sps:$4 sm:$0xff]  }
0x152b   : > { %15701 = vmatprep.subr.bf16.mxu0 %v25213_v21  ;;  %v25262_v21 = vld [vmem:[%s32430_s3 + $0x300] ss:$8 sps:$4 sm:$0xff]  }
0x152e   : > { %15702 = vmatpush1.bf16.msra.mxu0 %v25211_v16  ;;  %v25270_v16 = vld [vmem:[%s32430_s3 + $0x314] ss:$8 sps:$4 sm:$0xff]  }
0x152f   : > { %15703 = vmatprep.subr.bf16.mxu0 %v25219_v6  ;;  %v25268_v6 = vld [vmem:[%s32430_s3 + $0x310] ss:$8 sps:$4 sm:$0xff]  }
0x1530   : > { %21503 = vmatmul.mubr.msk.bf16.vlgmr.msra.gmra.mrb[12].mxu1 %vm14900_vm8, %v27841_v42  ;;  %v25231_v42 = vld [vmem:[%s32430_s3 + $0x364] ss:$8 sps:$4 sm:$0xff]  }
0x1531   : > { %15659 = vmatpush1.bf16.msra.mxu1 %v25190_v25  ;;  %v25276_v25 = vld [vmem:[%s32430_s3 + $0x424] ss:$8 sps:$4 sm:$0xff]  }
0x1532   : > { %15660 = vmatprep.subr.bf16.mxu1 %v25195_v3  ;;  %15704 = vmatpush1.bf16.msra.mxu0 %v25217_v27  ;;  %v25285_v3 = vld [vmem:[%s32430_s3 + $0x3f4] ss:$8 sps:$4 sm:$0xff]   ;;  %v25283_v27 = vld [vmem:[%s32430_s3 + $0x3f0] ss:$8 sps:$4 sm:$0xff]  }
0x1533   : > { %15705 = vmatprep.subr.bf16.mxu0 %v25225_v59  ;;  %v25291_v59 = vld [vmem:[%s32430_s3 + $0x404] ss:$8 sps:$4 sm:$0xff]  }
0x1535   : > { %15661 = vmatpush1.bf16.msra.mxu1 %v25193_v55  ;;  %v25289_v55 = vld [vmem:[%s32430_s3 + $0x400] ss:$8 sps:$4 sm:$0xff]  }
0x1536   : > { %15662 = vmatprep.subr.bf16.mxu1 %v25198_v28  ;;  %15706 = vmatpush1.bf16.msra.mxu0 %v25223_v48  ;;  %v25297_v28 = vld [vmem:[%s32430_s3 + $0x414] ss:$8 sps:$4 sm:$0xff]   ;;  %v25295_v48 = vld [vmem:[%s32430_s3 + $0x410] ss:$8 sps:$4 sm:$0xff]  }
0x1537   : > { %15707 = vmatprep.subr.bf16.mxu0 %v25231_v42 }
0x1539   : > { %15663 = vmatpush1.bf16.msra.mxu1 %v25196_v19 }
0x153a   : > { %15664 = vmatprep.subr.bf16.mxu1 %v25201_v36  ;;  %15708 = vmatpush1.bf16.msra.mxu0 %v25229_v63 }
0x153b   : > { %15709 = vmatprep.subr.bf16.mxu0 %v25237_v30 }
0x153d   : > { %15665 = vmatpush1.bf16.msra.mxu1 %v25199_v10  ;;  %v25303_v10 = vld [vmem:[%s32430_s3 + $0x4] ss:$8 sps:$4 sm:$0xff]  }
0x153e   : > { %15666 = vmatprep.subr.bf16.mxu1 %v25204_v13  ;;  %15710 = vmatpush1.bf16.msra.mxu0 %v25235_v49 }
0x153f   : > { %15711 = vmatprep.subr.bf16.mxu0 %v25243_v15  ;;  %v25274_v15 = vld [vmem:[%s32430_s3 + $0x420] ss:$8 sps:$4 sm:$0xff]  }
0x1541   : > { %15667 = vmatpush1.bf16.msra.mxu1 %v25202_v44 }
0x1542   : > { %15668 = vmatprep.subr.bf16.mxu1 %v25210_v23  ;;  %15712 = vmatpush1.bf16.msra.mxu0 %v25241_v39  ;;  %v25282_v39 = vld [vmem:[%s32430_s3 + $0x434] ss:$8 sps:$4 sm:$0xff]  }
0x1543   : > { %15713 = vmatprep.subr.bf16.mxu0 %v25249_v17 }
0x1545   : > { %15669 = vmatpush1.bf16.msra.mxu1 %v25208_v24  ;;  %v25280_v24 = vld [vmem:[%s32430_s3 + $0x430] ss:$8 sps:$4 sm:$0xff]  }
0x1546   : > { %15670 = vmatprep.subr.bf16.mxu1 %v25216_v52  ;;  %15714 = vmatpush1.bf16.msra.mxu0 %v25247_v7  ;;  %v25288_v52 = vld [vmem:[%s32430_s3 + $0x104] ss:$8 sps:$4 sm:$0xff]  }
0x1547   : > { %15715 = vmatprep.subr.bf16.mxu0 %v25255_v14 }
0x1549   : > { %15671 = vmatpush1.bf16.msra.mxu1 %v25214_v26 }
0x154a   : > { %15672 = vmatprep.subr.bf16.mxu1 %v25222_v61  ;;  %15716 = vmatpush1.bf16.msra.mxu0 %v25253_v58 }
0x154b   : > { %15717 = vmatprep.subr.bf16.mxu0 %v25261_v0 }
0x154d   : > { %15673 = vmatpush1.bf16.msra.mxu1 %v25220_v62  ;;  %v25286_v62 = vld [vmem:[%s32430_s3 + $0x100] ss:$8 sps:$4 sm:$0xff]  }
0x154e   : > { %15674 = vmatprep.subr.bf16.mxu1 %v25228_v46  ;;  %15718 = vmatpush1.bf16.msra.mxu0 %v25259_v54 }
0x154f   : > { %15719 = vmatprep.subr.bf16.mxu0 %v25267_v34  ;;  %v25294_v34 = vld [vmem:[%s32430_s3 + $0x114] ss:$8 sps:$4 sm:$0xff]  }
0x1551   : > { %15675 = vmatpush1.bf16.msra.mxu1 %v25226_v22 }
0x1552   : > { %15676 = vmatprep.subr.bf16.mxu1 %v25234_v31  ;;  %15720 = vmatpush1.bf16.msra.mxu0 %v25265_v60 }
0x1553   : > { %15721 = vmatprep.subr.bf16.mxu0 %v25273_v2 }
0x1555   : > { %15677 = vmatpush1.bf16.msra.mxu1 %v25232_v8 }
0x1556   : > { %15678 = vmatprep.subr.bf16.mxu1 %v25240_v33  ;;  %15722 = vmatpush1.bf16.msra.mxu0 %v25271_v32  ;;  %v25292_v32 = vld [vmem:[%s32430_s3 + $0x110] ss:$8 sps:$4 sm:$0xff]  }
0x1557   : > { %15723 = vmatprep.subr.bf16.mxu0 %v25279_v18  ;;  %v25300_v18 = vld [vmem:[%s32430_s3 + $0x124] ss:$8 sps:$4 sm:$0xff]  }
0x1559   : > { %15679 = vmatpush1.bf16.msra.mxu1 %v25238_v43 }
0x155a   : > { %15680 = vmatprep.subr.bf16.mxu1 %v25246_v45  ;;  %15724 = vmatpush1.bf16.msra.mxu0 %v25277_v35  ;;  %v25298_v45 = vld [vmem:[%s32430_s3 + $0x120] ss:$8 sps:$4 sm:$0xff]  }
0x155b   : > { %15725 = vmatprep.subr.bf16.mxu0 %v25285_v3  ;;  %v25307_v3 = vld [vmem:[%s32430_s3 + $0x10] ss:$8 sps:$4 sm:$0xff]  }
0x155d   : > { %15681 = vmatpush1.bf16.msra.mxu1 %v25244_v29  ;;  %v25306_v29 = vld [vmem:[%s32430_s3 + $0x134] ss:$8 sps:$4 sm:$0xff]  }
0x155e   : > { %15682 = vmatprep.subr.bf16.mxu1 %v25252_v20  ;;  %15726 = vmatpush1.bf16.msra.mxu0 %v25283_v27  ;;  %v25315_v27 = vld [vmem:[%s32430_s3 + $0x24] ss:$8 sps:$4 sm:$0xff]  }
0x155f   : > { %15727 = vmatprep.subr.bf16.mxu0 %v25291_v59  ;;  %v25310_v59 = vld [vmem:[%s32430_s3 + $0x140] ss:$8 sps:$4 sm:$0xff]  }
0x1561   : > { %15683 = vmatpush1.bf16.msra.mxu1 %v25250_v4 }
0x1562   : > { %15684 = vmatprep.subr.bf16.mxu1 %v25258_v41  ;;  %15728 = vmatpush1.bf16.msra.mxu0 %v25289_v55  ;;  %v25301_v41 = vld [vmem:[%s32430_s3] ss:$8 sps:$4 sm:$0xff]   ;;  %v25318_v55 = vld [vmem:[%s32430_s3 + $0x154] ss:$8 sps:$4 sm:$0xff]  }
0x1563   : > { %15729 = vmatprep.subr.bf16.mxu0 %v25297_v28  ;;  %v25313_v28 = vld [vmem:[%s32430_s3 + $0x20] ss:$8 sps:$4 sm:$0xff]  }
0x1565   : > { %15685 = vmatpush1.bf16.msra.mxu1 %v25256_v1 }
0x1566   : > { %15686 = vmatprep.subr.bf16.mxu1 %v25264_v9  ;;  %15730 = vmatpush1.bf16.msra.mxu0 %v25295_v48  ;;  %v25321_v48 = vld [vmem:[%s32430_s3 + $0x34] ss:$8 sps:$4 sm:$0xff]  }
0x1567   : > { %16124 = vmatprep.subr.bf16.mxu0 %v25303_v10  ;;  %v25322_v10 = vld [vmem:[%s32430_s3 + $0x160] ss:$8 sps:$4 sm:$0xff]  }
0x1569   : > { %15687 = vmatpush1.bf16.msra.mxu1 %v25262_v21  ;;  %v25309_v21 = vld [vmem:[%s32430_s3 + $0x14] ss:$8 sps:$4 sm:$0xff]  }
0x156a   : > { %15688 = vmatprep.subr.bf16.mxu1 %v25270_v16 }
0x156d   : > { %15689 = vmatpush1.bf16.msra.mxu1 %v25268_v6  ;;  %v25304_v6 = vld [vmem:[%s32430_s3 + $0x130] ss:$8 sps:$4 sm:$0xff]  }
0x156e   : > { %15740 = vmatprep.subr.bf16.mxu1 %v25276_v25  ;;  %v25312_v25 = vld [vmem:[%s32430_s3 + $0x144] ss:$8 sps:$4 sm:$0xff]  }
0x1585   : > { %v31335_v42 = vpop.f32.mrb[252].mxu1  ;;  %v15152_v19 = vpop.f32.mrb[236].mxu0 }
0x1586   : > { %v31337_v36 = vpop.f32.mrb[253].mxu1  ;;  %v15240_v63 = vpack.c.bf16 %v15152_v19, %v15152_v19  ;;  %v15154_v30 = vpop.f32.mrb[237].mxu0  ;;  %v25316_v19 = vld [vmem:[%s32430_s3 + $0x150] ss:$8 sps:$4 sm:$0xff]  }
0x1587   : > { %v14959_v13 = vpop.f32.mrb[254].mxu1  ;;  %v15241_v49 = vpack.c.bf16 %v15154_v30, %v15154_v30  ;;  %v15156_v44 = vpop.f32.mrb[238].mxu0  ;;  %v15044_v16 = vpack.c.bf16 %v31337_v36, %v31337_v36  ;;  %v25324_v36 = vld [vmem:[%s32430_s3 + $0x164] ss:$8 sps:$4 sm:$0xff]  }
0x1588   : > { %v14960_v23 = vpop.f32.mrb[255].mxu1  ;;  %v15157_v17 = vpop.f32.mrb[239].mxu0  ;;  %v25327_v30 = vld [vmem:[%s32430_s3 + $0x44] ss:$8 sps:$4 sm:$0xff]   ;;  %v25330_v13 = vld [vmem:[%s32430_s3 + $0x174] ss:$8 sps:$4 sm:$0xff]  }
0x1589   : > { %15690 = vmatprep.mubr.bf16.mxu1 %v15241_v49  ;;  %v25325_v49 = vld [vmem:[%s32430_s3 + $0x40] ss:$8 sps:$4 sm:$0xff]   ;;  %v25328_v44 = vld [vmem:[%s32430_s3 + $0x170] ss:$8 sps:$4 sm:$0xff]   ;;  %v25336_v23 = vld [vmem:[%s32430_s3 + $0x184] ss:$8 sps:$4 sm:$0xff]  }
0x158a   : > { %15691 = vmatmul.mubr.bf16.vlgmr.msra.gmra.mrb[16].mxu1 %v15240_v63  ;;  %v25319_v63 = vld [vmem:[%s32430_s3 + $0x30] ss:$8 sps:$4 sm:$0xff]   ;;  %v25339_v17 = vld [vmem:[%s32430_s3 + $0x64] ss:$8 sps:$4 sm:$0xff]  }
0x158b   : > { %15741 = vmatpush1.bf16.msra.mxu1 %v25274_v15  ;;  %15772 = vmatprep.mubr.bf16.mxu1 %v25793_v53  ;;  %v25333_v15 = vld [vmem:[%s32430_s3 + $0x54] ss:$8 sps:$4 sm:$0xff]  }
0x158c   : > { %15742 = vmatprep.subr.bf16.mxu1 %v25282_v39  ;;  %v25331_v39 = vld [vmem:[%s32430_s3 + $0x50] ss:$8 sps:$4 sm:$0xff]  }
0x158f   : > { %15743 = vmatpush1.bf16.msra.mxu1 %v25280_v24  ;;  %v25334_v24 = vld [vmem:[%s32430_s3 + $0x180] ss:$8 sps:$4 sm:$0xff]  }
0x1590   : > { %16165 = vmatprep.subr.bf16.mxu1 %v25288_v52  ;;  %v25342_v52 = vld [vmem:[%s32430_s3 + $0x194] ss:$8 sps:$4 sm:$0xff]  }
0x15cd   : > { %v31355_v7 = vpop.f32.mrb[0].mxu1 }
0x15ce   : > { %v14998_v14 = vpop.f32.mrb[1].mxu1 }
0x15cf   : > { %v15000_v26 = vpop.f32.mrb[2].mxu1  ;;  %v15046_v31 = vpack.c.bf16 %v14998_v14, %v14998_v14  ;;  %v25337_v14 = vld [vmem:[%s32430_s3 + $0x60] ss:$8 sps:$4 sm:$0xff]  }
0x15d0   : > { %v15001_v61 = vpop.f32.mrb[3].mxu1  ;;  %v25345_v26 = vld [vmem:[%s32430_s3 + $0x74] ss:$8 sps:$4 sm:$0xff]  }
0x15d1   : > { %v25340_v61 = vld [vmem:[%s32430_s3 + $0x190] ss:$8 sps:$4 sm:$0xff]  }
0x15fb   : > { %v15234_v58 = vpop.f32.mrb[240].mxu0  ;;  %v31357_v0 = vpop.f32.mrb[8].mxu1 }
0x15fc   : > { %v15244_v46 = vpack.c.bf16 %v15234_v58, %v15234_v58  ;;  %v23136_v54 = vpop.f32.mrb[9].mxu1  ;;  %v23142_v22 = vpop.f32.mrb[241].mxu0  ;;  %v25348_v58 = vld [vmem:[%s32430_s3 + $0x1a4] ss:$8 sps:$4 sm:$0xff]  }
0x15fd   : > { %v15040_v60 = vpop.f32.mrb[10].mxu1  ;;  %v15237_v2 = vpop.f32.mrb[242].mxu0  ;;  %v25346_v54 = vld [vmem:[%s32430_s3 + $0x1a0] ss:$8 sps:$4 sm:$0xff]  }
0x15fe   : > { %21641 = vmatmul.mubr.msk.bf16.vlgmr.msra.gmra.mrb[20].mxu1 %vm15654_vm6, %v15244_v46  ;;  %v23137_v8 = vpop.f32.mrb[11].mxu1  ;;  %v23143_v33 = vpop.f32.mrb[243].mxu0  ;;  %v25351_v46 = vld [vmem:[%s32430_s3 + $0x84] ss:$8 sps:$4 sm:$0xff]   ;;  %v25349_v22 = vld [vmem:[%s32430_s3 + $0x80] ss:$8 sps:$4 sm:$0xff]  }
0x15ff   : > { %16166 = vmatpush1.bf16.msra.mxu1 %v25286_v62  ;;  %16197 = vmatprep.mubr.bf16.mxu1 %v15046_v31  ;;  %v25343_v62 = vld [vmem:[%s32430_s3 + $0x70] ss:$8 sps:$4 sm:$0xff]   ;;  %v25357_v31 = vld [vmem:[%s32430_s3 + $0x94] ss:$8 sps:$4 sm:$0xff]   ;;  %v25360_v2 = vld [vmem:[%s32430_s3 + $0x1c4] ss:$8 sps:$4 sm:$0xff]  }
0x1600   : > { %16167 = vmatprep.subr.bf16.mxu1 %v25294_v34  ;;  %v25354_v34 = vld [vmem:[%s32430_s3 + $0x1b4] ss:$8 sps:$4 sm:$0xff]   ;;  %v25352_v60 = vld [vmem:[%s32430_s3 + $0x1b0] ss:$8 sps:$4 sm:$0xff]   ;;  %v25363_v33 = vld [vmem:[%s32430_s3 + $0xa4] ss:$8 sps:$4 sm:$0xff]  }
0x1601   : > { %v25355_v8 = vld [vmem:[%s32430_s3 + $0x90] ss:$8 sps:$4 sm:$0xff]  }
0x1603   : > { %16168 = vmatpush1.bf16.msra.mxu1 %v25292_v32  ;;  %v15193_v43 = vpop.f32.mrb[12].mxu1  ;;  %v25358_v32 = vld [vmem:[%s32430_s3 + $0x1c0] ss:$8 sps:$4 sm:$0xff]  }
0x1604   : > { %v15195_v35 = vpop.f32.mrb[13].mxu1  ;;  %16169 = vmatprep.subr.bf16.mxu1 %v25300_v18  ;;  %v15242_v1 = vpack.c.bf16 %v15193_v43, %v15193_v43  ;;  %v25366_v18 = vld [vmem:[%s32430_s3 + $0x1d4] ss:$8 sps:$4 sm:$0xff]   ;;  %v25361_v43 = vld [vmem:[%s32430_s3 + $0xa0] ss:$8 sps:$4 sm:$0xff]  }
0x1605   : > { %v15243_v20 = vpack.c.bf16 %v15195_v35, %v15195_v35  ;;  %v15197_v4 = vpop.f32.mrb[14].mxu1  ;;  %v25364_v35 = vld [vmem:[%s32430_s3 + $0x1d0] ss:$8 sps:$4 sm:$0xff]  }
0x1606   : > { %v15198_v9 = vpop.f32.mrb[15].mxu1  ;;  %v25375_v4 = vld [vmem:[%s32430_s3 + $0xc4] ss:$8 sps:$4 sm:$0xff]  }
0x1607   : > { %16170 = vmatpush1.bf16.msra.mxu1 %v25298_v45  ;;  %15731 = vmatprep.mubr.bf16.mxu0 %v15243_v20  ;;  %v25369_v45 = vld [vmem:[%s32430_s3 + $0xb4] ss:$8 sps:$4 sm:$0xff]   ;;  %v25367_v20 = vld [vmem:[%s32430_s3 + $0xb0] ss:$8 sps:$4 sm:$0xff]   ;;  %v25373_v9 = vld [vmem:[%s32430_s3 + $0xc0] ss:$8 sps:$4 sm:$0xff]  }
0x1608   : > { %15732 = vmatmul.mubr.bf16.vlgmr.msra.gmra.mrb[244].mxu0 %v15242_v1  ;;  %16171 = vmatprep.subr.bf16.mxu1 %v25306_v29  ;;  %v25372_v29 = vld [vmem:[%s32430_s3 + $0x1e4] ss:$8 sps:$4 sm:$0xff]   ;;  %v25378_v1 = vld [vmem:[%s32430_s3 + $0x1f4] ss:$8 sps:$4 sm:$0xff]  }
0x1609   : > { %16125 = vmatpush1.bf16.msra.mxu0 %v25301_v41  ;;  %16156 = vmatprep.mubr.bf16.mxu0 %v15044_v16  ;;  %v25370_v41 = vld [vmem:[%s32430_s3 + $0x1e0] ss:$8 sps:$4 sm:$0xff]   ;;  %v25376_v16 = vld [vmem:[%s32430_s3 + $0x1f0] ss:$8 sps:$4 sm:$0xff]  }
0x160a   : > { %16126 = vmatprep.subr.bf16.mxu0 %v25309_v21  ;;  %v25381_v21 = vld [vmem:[%s32430_s3 + $0xd4] ss:$8 sps:$4 sm:$0xff]  }
0x160b   : > { %16172 = vmatpush1.bf16.msra.mxu1 %v25304_v6  ;;  %v25379_v6 = vld [vmem:[%s32430_s3 + $0xd0] ss:$8 sps:$4 sm:$0xff]  }
0x160c   : > { %16173 = vmatprep.subr.bf16.mxu1 %v25312_v25  ;;  %v25384_v25 = vld [vmem:[%s32430_s3 + $0xe4] ss:$8 sps:$4 sm:$0xff]  }
0x160d   : > { %16127 = vmatpush1.bf16.msra.mxu0 %v25307_v3  ;;  %v15045_v3 = vpack.c.bf16 %v31355_v7, %v31355_v7  ;;  %v25385_v7 = vld [vmem:[%s32430_s3 + $0xf0] ss:$8 sps:$4 sm:$0xff]  }
0x160e   : > { %16128 = vmatprep.subr.bf16.mxu0 %v25315_v27  ;;  %v25382_v27 = vld [vmem:[%s32430_s3 + $0xe0] ss:$8 sps:$4 sm:$0xff]  }
0x160f   : > { %16174 = vmatpush1.bf16.msra.mxu1 %v25310_v59  ;;  %v25387_v59 = vld [vmem:[%s32430_s3 + $0xf4] ss:$8 sps:$4 sm:$0xff]  }
0x1610   : > { %16175 = vmatprep.subr.bf16.mxu1 %v25318_v55  ;;  %v25390_v55 = vld [vmem:[%s32430_s3 + $0x204] ss:$8 sps:$4 sm:$0xff]  }
0x1611   : > { %16129 = vmatpush1.bf16.msra.mxu0 %v25313_v28  ;;  %v25396_v28 = vld [vmem:[%s32430_s3 + $0x544] ss:$8 sps:$4 sm:$0xff]  }
0x1612   : > { %16130 = vmatprep.subr.bf16.mxu0 %v25321_v48  ;;  %v25388_v48 = vld [vmem:[%s32430_s3 + $0x200] ss:$8 sps:$4 sm:$0xff]  }
0x1613   : > { %16176 = vmatpush1.bf16.msra.mxu1 %v25316_v19  ;;  %v15043_v19 = vpack.c.bf16 %v31335_v42, %v31335_v42  ;;  %v25391_v42 = vld [vmem:[%s32430_s3 + $0x210] ss:$8 sps:$4 sm:$0xff]  }
0x1614   : > { %16177 = vmatprep.subr.bf16.mxu1 %v25324_v36  ;;  %v25393_v36 = vld [vmem:[%s32430_s3 + $0x214] ss:$8 sps:$4 sm:$0xff]  }
0x1615   : > { %16131 = vmatpush1.bf16.msra.mxu0 %v25319_v63  ;;  %v25394_v63 = vld [vmem:[%s32430_s3 + $0x540] ss:$8 sps:$4 sm:$0xff]  }
0x1616   : > { %16132 = vmatprep.subr.bf16.mxu0 %v25327_v30  ;;  %v25399_v30 = vld [vmem:[%s32430_s3 + $0x554] ss:$8 sps:$4 sm:$0xff]  }
0x1617   : > { %16178 = vmatpush1.bf16.msra.mxu1 %v25322_v10  ;;  %v15047_v10 = vpack.c.bf16 %v31357_v0, %v31357_v0  ;;  %v25400_v0 = vld [vmem:[%s32430_s3 + $0x560] ss:$8 sps:$4 sm:$0xff]  }
0x1618   : > { %16179 = vmatprep.subr.bf16.mxu1 %v25330_v13  ;;  %v25397_v13 = vld [vmem:[%s32430_s3 + $0x550] ss:$8 sps:$4 sm:$0xff]  }
0x1619   : > { %16133 = vmatpush1.bf16.msra.mxu0 %v25325_v49  ;;  %v25402_v49 = vld [vmem:[%s32430_s3 + $0x564] ss:$8 sps:$4 sm:$0xff]  }
0x161a   : > { %16134 = vmatprep.subr.bf16.mxu0 %v25333_v15  ;;  %v25405_v15 = vld [vmem:[%s32430_s3 + $0x574] ss:$8 sps:$4 sm:$0xff]  }
0x161b   : > { %16180 = vmatpush1.bf16.msra.mxu1 %v25328_v44  ;;  %v25403_v44 = vld [vmem:[%s32430_s3 + $0x570] ss:$8 sps:$4 sm:$0xff]  }
0x161c   : > { %16181 = vmatprep.subr.bf16.mxu1 %v25336_v23  ;;  %v25408_v23 = vld [vmem:[%s32430_s3 + $0x584] ss:$8 sps:$4 sm:$0xff]  }
0x161d   : > { %16135 = vmatpush1.bf16.msra.mxu0 %v25331_v39  ;;  %v25406_v39 = vld [vmem:[%s32430_s3 + $0x580] ss:$8 sps:$4 sm:$0xff]  }
0x161e   : > { %16136 = vmatprep.subr.bf16.mxu0 %v25339_v17  ;;  %v25411_v17 = vld [vmem:[%s32430_s3 + $0x594] ss:$8 sps:$4 sm:$0xff]  }
0x161f   : > { %16182 = vmatpush1.bf16.msra.mxu1 %v25334_v24  ;;  %v25444_v24 = vld [vmem:[%s32430_s3 + $0x444] ss:$8 sps:$4 sm:$0xff]  }
0x1620   : > { %16183 = vmatprep.subr.bf16.mxu1 %v25342_v52  ;;  %v25442_v52 = vld [vmem:[%s32430_s3 + $0x440] ss:$8 sps:$4 sm:$0xff]  }
0x1621   : > { %16137 = vmatpush1.bf16.msra.mxu0 %v25337_v14  ;;  %v25409_v14 = vld [vmem:[%s32430_s3 + $0x590] ss:$8 sps:$4 sm:$0xff]  }
0x1622   : > { %16138 = vmatprep.subr.bf16.mxu0 %v25345_v26 }
0x1623   : > { %16184 = vmatpush1.bf16.msra.mxu1 %v25340_v61 }
0x1624   : > { %16185 = vmatprep.subr.bf16.mxu1 %v25348_v58  ;;  %v25445_v58 = vld [vmem:[%s32430_s3 + $0x450] ss:$8 sps:$4 sm:$0xff]  }
0x1625   : > { %16139 = vmatpush1.bf16.msra.mxu0 %v25343_v62  ;;  %v25447_v62 = vld [vmem:[%s32430_s3 + $0x454] ss:$8 sps:$4 sm:$0xff]  }
0x1626   : > { %16140 = vmatprep.subr.bf16.mxu0 %v25351_v46  ;;  %v25414_v46 = vld [vmem:[%s32430_s3 + $0x5a4] ss:$8 sps:$4 sm:$0xff]  }
0x1627   : > { %16186 = vmatpush1.bf16.msra.mxu1 %v25346_v54 }
0x1628   : > { %16187 = vmatprep.subr.bf16.mxu1 %v25354_v34  ;;  %v25450_v34 = vld [vmem:[%s32430_s3 + $0x464] ss:$8 sps:$4 sm:$0xff]  }
0x1629   : > { %16141 = vmatpush1.bf16.msra.mxu0 %v25349_v22  ;;  %v25412_v22 = vld [vmem:[%s32430_s3 + $0x5a0] ss:$8 sps:$4 sm:$0xff]  }
0x162a   : > { %16142 = vmatprep.subr.bf16.mxu0 %v25357_v31  ;;  %v25448_v31 = vld [vmem:[%s32430_s3 + $0x460] ss:$8 sps:$4 sm:$0xff]  }
0x162b   : > { %16188 = vmatpush1.bf16.msra.mxu1 %v25352_v60  ;;  %v25417_v60 = vld [vmem:[%s32430_s3 + $0x5b4] ss:$8 sps:$4 sm:$0xff]  }
0x162c   : > { %16189 = vmatprep.subr.bf16.mxu1 %v25360_v2  ;;  %v25453_v2 = vld [vmem:[%s32430_s3 + $0x474] ss:$8 sps:$4 sm:$0xff]  }
0x162d   : > { %16143 = vmatpush1.bf16.msra.mxu0 %v25355_v8  ;;  %v25415_v8 = vld [vmem:[%s32430_s3 + $0x5b0] ss:$8 sps:$4 sm:$0xff]  }
0x162e   : > { %16144 = vmatprep.subr.bf16.mxu0 %v25363_v33  ;;  %v25451_v33 = vld [vmem:[%s32430_s3 + $0x470] ss:$8 sps:$4 sm:$0xff]  }
0x162f   : > { %16190 = vmatpush1.bf16.msra.mxu1 %v25358_v32  ;;  %v25420_v32 = vld [vmem:[%s32430_s3 + $0x5c4] ss:$8 sps:$4 sm:$0xff]  }
0x1630   : > { %16191 = vmatprep.subr.bf16.mxu1 %v25366_v18  ;;  %v25456_v18 = vld [vmem:[%s32430_s3 + $0x484] ss:$8 sps:$4 sm:$0xff]  }
0x1631   : > { %16145 = vmatpush1.bf16.msra.mxu0 %v25361_v43  ;;  %v25418_v43 = vld [vmem:[%s32430_s3 + $0x5c0] ss:$8 sps:$4 sm:$0xff]  }
0x1632   : > { %16146 = vmatprep.subr.bf16.mxu0 %v25369_v45  ;;  %v25454_v45 = vld [vmem:[%s32430_s3 + $0x480] ss:$8 sps:$4 sm:$0xff]  }
0x1633   : > { %16192 = vmatpush1.bf16.msra.mxu1 %v25364_v35  ;;  %v25423_v35 = vld [vmem:[%s32430_s3 + $0x5d4] ss:$8 sps:$4 sm:$0xff]  }
0x1634   : > { %16193 = vmatprep.subr.bf16.mxu1 %v25372_v29  ;;  %v25459_v29 = vld [vmem:[%s32430_s3 + $0x494] ss:$8 sps:$4 sm:$0xff]  }
0x1635   : > { %16147 = vmatpush1.bf16.msra.mxu0 %v25367_v20  ;;  %v25421_v20 = vld [vmem:[%s32430_s3 + $0x5d0] ss:$8 sps:$4 sm:$0xff]  }
0x1636   : > { %16148 = vmatprep.subr.bf16.mxu0 %v25375_v4  ;;  %v25457_v4 = vld [vmem:[%s32430_s3 + $0x490] ss:$8 sps:$4 sm:$0xff]  }
0x1637   : > { %16194 = vmatpush1.bf16.msra.mxu1 %v25370_v41  ;;  %v25426_v41 = vld [vmem:[%s32430_s3 + $0x5e4] ss:$8 sps:$4 sm:$0xff]  }
0x1638   : > { %16195 = vmatprep.subr.bf16.mxu1 %v25378_v1  ;;  %v25462_v1 = vld [vmem:[%s32430_s3 + $0x4a4] ss:$8 sps:$4 sm:$0xff]  }
0x1639   : > { %16149 = vmatpush1.bf16.msra.mxu0 %v25373_v9  ;;  %v25424_v9 = vld [vmem:[%s32430_s3 + $0x5e0] ss:$8 sps:$4 sm:$0xff]  }
0x163a   : > { %16150 = vmatprep.subr.bf16.mxu0 %v25381_v21  ;;  %v25460_v21 = vld [vmem:[%s32430_s3 + $0x4a0] ss:$8 sps:$4 sm:$0xff]  }
0x163b   : > { %16196 = vmatpush1.bf16.msra.mxu1 %v25376_v16  ;;  %v25429_v16 = vld [vmem:[%s32430_s3 + $0x5f4] ss:$8 sps:$4 sm:$0xff]  }
0x163c   : > { %16249 = vmatprep.subr.bf16.mxu1 %v31084_v11 }
0x163d   : > { %16151 = vmatpush1.bf16.msra.mxu0 %v25379_v6  ;;  %v25465_v6 = vld [vmem:[%s32430_s3 + $0x4b4] ss:$8 sps:$4 sm:$0xff]  }
0x163e   : > { %16198 = vmatmul.mubr.bf16.vlgmr.msra.gmra.mrb[24].mxu1 %v15045_v3  ;;  %16152 = vmatprep.subr.bf16.mxu0 %v25384_v25  ;;  %v25427_v25 = vld [vmem:[%s32430_s3 + $0x5f0] ss:$8 sps:$4 sm:$0xff]  }
0x163f   : > { %16250 = vmatpush1.bf16.msra.mxu1 %v31087_v40  ;;  %16281 = vmatprep.mubr.bf16.mxu1 %v25793_v53  ;;  %v25463_v3 = vld [vmem:[%s32430_s3 + $0x4b0] ss:$8 sps:$4 sm:$0xff]  }
0x1640   : > { %23144 = vmatprep.subr.bf16.mxu1 %v25792_v12 }
0x1641   : > { %16153 = vmatpush1.bf16.msra.mxu0 %v25382_v27  ;;  %v25432_v27 = vld [vmem:[%s32430_s3 + $0x604] ss:$8 sps:$4 sm:$0xff]  }
0x1642   : > { %16154 = vmatprep.subr.bf16.mxu0 %v25387_v59  ;;  %v25468_v59 = vld [vmem:[%s32430_s3 + $0x4c4] ss:$8 sps:$4 sm:$0xff]  }
0x1645   : > { %16155 = vmatpush1.bf16.msra.mxu0 %v25385_v7  ;;  %v25430_v7 = vld [vmem:[%s32430_s3 + $0x600] ss:$8 sps:$4 sm:$0xff]  }
0x1646   : > { %21711 = vmatmul.mubr.msk.bf16.vlgmr.msra.gmra.mrb[28].mxu1 %vm14900_vm8, %v29117_v56  ;;  %16206 = vmatprep.subr.bf16.mxu0 %v25390_v55  ;;  %v25466_v55 = vld [vmem:[%s32430_s3 + $0x4c0] ss:$8 sps:$4 sm:$0xff]  }
0x1647   : > { %23145 = vmatpush3.bf16.msra.mxu1 %v31130_v57  ;;  %23146 = vmatprep.mubr.msk.bf16.mxu1 %vm25794_vm2, %v25792_v12 }
0x1648   : > { %16157 = vmatmul.mubr.bf16.vlgmr.msra.gmra.mrb[248].mxu0 %v15043_v19  ;;  %16829 = vmatprep.subr.bf16.mxu1 %v25396_v28  ;;  %v25435_v28 = vld [vmem:[%s32430_s3 + $0x614] ss:$8 sps:$4 sm:$0xff]   ;;  %v25433_v19 = vld [vmem:[%s32430_s3 + $0x610] ss:$8 sps:$4 sm:$0xff]  }
0x1649   : > { %16207 = vmatpush1.bf16.msra.mxu0 %v25388_v48  ;;  %16238 = vmatprep.mubr.bf16.mxu0 %v25793_v53  ;;  %v25471_v48 = vld [vmem:[%s32430_s3 + $0x4d4] ss:$8 sps:$4 sm:$0xff]  }
0x164a   : > { %16208 = vmatprep.subr.bf16.mxu0 %v25393_v36  ;;  %v25469_v36 = vld [vmem:[%s32430_s3 + $0x4d0] ss:$8 sps:$4 sm:$0xff]  }
0x164d   : > { %16209 = vmatpush1.bf16.msra.mxu0 %v25391_v42  ;;  %v25438_v42 = vld [vmem:[%s32430_s3 + $0x624] ss:$8 sps:$4 sm:$0xff]  }
0x164e   : > { %16290 = vmatprep.subr.bf16.mxu0 %v31110_v5  ;;  %23147 = vmatmul.mubr.msk.bf16.vlgmr.msra.gmra.mrb[32].mxu1 %vm14900_vm8, %v29117_v56 }
0x164f   : > { %16830 = vmatpush1.bf16.msra.mxu1 %v25394_v63  ;;  %v25474_v63 = vld [vmem:[%s32430_s3 + $0x4e4] ss:$8 sps:$4 sm:$0xff]  }
0x1650   : > { %21710 = vmatmul.mubr.msk.bf16.vlgmr.msra.gmra.mrb[252].mxu0 %vm15654_vm6, %v15047_v10  ;;  %16831 = vmatprep.subr.bf16.mxu1 %v25399_v30  ;;  %v25436_v30 = vld [vmem:[%s32430_s3 + $0x620] ss:$8 sps:$4 sm:$0xff]  }
0x1651   : > { %16291 = vmatpush1.bf16.msra.mxu0 %v31113_v50  ;;  %16322 = vmatprep.mubr.bf16.mxu0 %v25793_v53  ;;  %v25472_v10 = vld [vmem:[%s32430_s3 + $0x4e0] ss:$8 sps:$4 sm:$0xff]  }
0x1652   : > { %16788 = vmatprep.subr.bf16.mxu0 %v25444_v24  ;;  %v25484_v24 = vld [vmem:[%s32430_s3 + $0x520] ss:$8 sps:$4 sm:$0xff]  }
0x1653   : > { %16832 = vmatpush1.bf16.msra.mxu1 %v25397_v13  ;;  %v25441_v13 = vld [vmem:[%s32430_s3 + $0x634] ss:$8 sps:$4 sm:$0xff]  }
0x1654   : > { %16833 = vmatprep.subr.bf16.mxu1 %v25402_v49  ;;  %v25477_v49 = vld [vmem:[%s32430_s3 + $0x4f4] ss:$8 sps:$4 sm:$0xff]  }
0x1657   : > { %16834 = vmatpush1.bf16.msra.mxu1 %v25400_v0  ;;  %v25439_v0 = vld [vmem:[%s32430_s3 + $0x630] ss:$8 sps:$4 sm:$0xff]  }
0x1658   : > { %21712 = vmatmul.mubr.msk.bf16.vlgmr.msra.gmra.mrb[0].mxu0 %vm14900_vm8, %v29117_v56  ;;  %16835 = vmatprep.subr.bf16.mxu1 %v25405_v15  ;;  %v25475_v15 = vld [vmem:[%s32430_s3 + $0x4f0] ss:$8 sps:$4 sm:$0xff]  }
0x1659   : > { %16789 = vmatpush1.bf16.msra.mxu0 %v25442_v52  ;;  %v25486_v52 = vld [vmem:[%s32430_s3 + $0x524] ss:$8 sps:$4 sm:$0xff]  }
0x165a   : > { %16790 = vmatprep.subr.bf16.mxu0 %v25447_v62 }
0x165b   : > { %16836 = vmatpush1.bf16.msra.mxu1 %v25403_v44  ;;  %v25480_v44 = vld [vmem:[%s32430_s3 + $0x504] ss:$8 sps:$4 sm:$0xff]  }
0x165c   : > { %16837 = vmatprep.subr.bf16.mxu1 %v25408_v23  ;;  %v25478_v23 = vld [vmem:[%s32430_s3 + $0x500] ss:$8 sps:$4 sm:$0xff]  }
0x165d   : > { %v31620_v56 = vpop.f32.mrb[16].mxu1  ;;  %16791 = vmatpush1.bf16.msra.mxu0 %v25445_v58  ;;  %v25492_v58 = vld [vmem:[%s32430_s3 + $0x644] ss:$8 sps:$4 sm:$0xff]  }
0x165e   : > { %v31628_v26 = vpop.f32.mrb[17].mxu1  ;;  %16792 = vmatprep.subr.bf16.mxu0 %v25450_v34 }
0x165f   : > { %16838 = vmatpush1.bf16.msra.mxu1 %v25406_v39  ;;  %v15696_v61 = vpop.f32.mrb[18].mxu1  ;;  %v25483_v39 = vld [vmem:[%s32430_s3 + $0x514] ss:$8 sps:$4 sm:$0xff]  }
0x1660   : > { %16839 = vmatprep.subr.bf16.mxu1 %v25411_v17  ;;  %v15697_v54 = vpop.f32.mrb[19].mxu1  ;;  %v25481_v17 = vld [vmem:[%s32430_s3 + $0x510] ss:$8 sps:$4 sm:$0xff]  }
0x1661   : > { %16793 = vmatpush1.bf16.msra.mxu0 %v25448_v31  ;;  %v25487_v61 = vld [vmem:[%s32430_s3 + $0x530] ss:$8 sps:$4 sm:$0xff]  }
0x1662   : > { %16794 = vmatprep.subr.bf16.mxu0 %v25453_v2 }
0x1663   : > { %16840 = vmatpush1.bf16.msra.mxu1 %v25409_v14  ;;  %v25489_v14 = vld [vmem:[%s32430_s3 + $0x534] ss:$8 sps:$4 sm:$0xff]  }
0x1664   : > { %16841 = vmatprep.subr.bf16.mxu1 %v25414_v46 }
0x1665   : > { %16795 = vmatpush1.bf16.msra.mxu0 %v25451_v33 }
0x1666   : > { %16796 = vmatprep.subr.bf16.mxu0 %v25456_v18 }
0x1667   : > { %16842 = vmatpush1.bf16.msra.mxu1 %v25412_v22 }
0x1668   : > { %16843 = vmatprep.subr.bf16.mxu1 %v25417_v60 }
0x1669   : > { %16797 = vmatpush1.bf16.msra.mxu0 %v25454_v45 }
0x166a   : > { %16798 = vmatprep.subr.bf16.mxu0 %v25459_v29 }
0x166b   : > { %16844 = vmatpush1.bf16.msra.mxu1 %v25415_v8 }
0x166c   : > { %16845 = vmatprep.subr.bf16.mxu1 %v25420_v32 }
0x166d   : > { %16799 = vmatpush1.bf16.msra.mxu0 %v25457_v4 }
0x166e   : > { %16800 = vmatprep.subr.bf16.mxu0 %v25462_v1 }
0x166f   : > { %16846 = vmatpush1.bf16.msra.mxu1 %v25418_v43 }
0x1670   : > { %16847 = vmatprep.subr.bf16.mxu1 %v25423_v35 }
0x1671   : > { %16801 = vmatpush1.bf16.msra.mxu0 %v25460_v21 }
0x1672   : > { %16802 = vmatprep.subr.bf16.mxu0 %v25465_v6  ;;  %v25495_v6 = vld [vmem:[%s32430_s3 + $0x654] ss:$8 sps:$4 sm:$0xff]  }
0x1673   : > { %16848 = vmatpush1.bf16.msra.mxu1 %v25421_v20 }
0x1674   : > { %16849 = vmatprep.subr.bf16.mxu1 %v25426_v41 }
0x1675   : > { %16803 = vmatpush1.bf16.msra.mxu0 %v25463_v3 }
0x1676   : > { %16804 = vmatprep.subr.bf16.mxu0 %v25468_v59 }
0x1677   : > { %16850 = vmatpush1.bf16.msra.mxu1 %v25424_v9 }
0x1678   : > { %16851 = vmatprep.subr.bf16.mxu1 %v25429_v16 }
0x1679   : > { %16805 = vmatpush1.bf16.msra.mxu0 %v25466_v55  ;;  %v25493_v55 = vld [vmem:[%s32430_s3 + $0x650] ss:$8 sps:$4 sm:$0xff]  }
0x167a   : > { %16806 = vmatprep.subr.bf16.mxu0 %v25471_v48 }
0x167b   : > { %16852 = vmatpush1.bf16.msra.mxu1 %v25427_v25 }
0x167c   : > { %16853 = vmatprep.subr.bf16.mxu1 %v25432_v27 }
0x167d   : > { %16807 = vmatpush1.bf16.msra.mxu0 %v25469_v36 }
0x167e   : > { %16808 = vmatprep.subr.bf16.mxu0 %v25474_v63 }
0x167f   : > { %16854 = vmatpush1.bf16.msra.mxu1 %v25430_v7 }
0x1680   : > { %16855 = vmatprep.subr.bf16.mxu1 %v25435_v28 }
0x1681   : > { %16809 = vmatpush1.bf16.msra.mxu0 %v25472_v10 }
0x1682   : > { %16810 = vmatprep.subr.bf16.mxu0 %v25477_v49  ;;  %v25546_v49 = vld [vmem:[%s32430_s3 + $0x664] ss:$8 sps:$4 sm:$0xff]  }
0x1683   : > { %16856 = vmatpush1.bf16.msra.mxu1 %v25433_v19 }
0x1684   : > { %16857 = vmatprep.subr.bf16.mxu1 %v25438_v42 }
0x1685   : > { %16811 = vmatpush1.bf16.msra.mxu0 %v25475_v15 }
0x1686   : > { %16812 = vmatprep.subr.bf16.mxu0 %v25480_v44 }
0x1687   : > { %16858 = vmatpush1.bf16.msra.mxu1 %v25436_v30 }
0x1688   : > { %16859 = vmatprep.subr.bf16.mxu1 %v25441_v13 }
0x1689   : > { %16813 = vmatpush1.bf16.msra.mxu0 %v25478_v23 }
0x168a   : > { %16814 = vmatprep.subr.bf16.mxu0 %v25483_v39  ;;  %v25544_v39 = vld [vmem:[%s32430_s3 + $0x660] ss:$8 sps:$4 sm:$0xff]  }
0x168b   : > { %16860 = vmatpush1.bf16.msra.mxu1 %v25439_v0 }
0x168c   : > { %16915 = vmatprep.subr.bf16.mxu1 %v31084_v11 }
0x168d   : > { %16815 = vmatpush1.bf16.msra.mxu0 %v25481_v17 }
0x168e   : > { %16816 = vmatprep.subr.bf16.mxu0 %v25486_v52 }
0x1691   : > { %16817 = vmatpush1.bf16.msra.mxu0 %v25484_v24  ;;  %v25549_v24 = vld [vmem:[%s32430_s3 + $0x674] ss:$8 sps:$4 sm:$0xff]  }
0x1692   : > { %16818 = vmatprep.subr.bf16.mxu0 %v25489_v14 }
0x1695   : > { %16819 = vmatpush1.bf16.msra.mxu0 %v25487_v61 }
0x1696   : > { %16870 = vmatprep.subr.bf16.mxu0 %v25492_v58 }
0x16d1   : > { %v15774_v62 = vpop.f32.mrb[20].mxu1 }
0x16d2   : > { %v15776_v46 = vpop.f32.mrb[21].mxu1 }
0x16d3   : > { %v15778_v54 = vpop.f32.mrb[22].mxu1 }
0x16d4   : > { %v15779_v34 = vpop.f32.mrb[23].mxu1  ;;  %v25550_v54 = vld [vmem:[%s32430_s3 + $0x680] ss:$8 sps:$4 sm:$0xff]  }
0x16d5   : > { %v25555_v34 = vld [vmem:[%s32430_s3 + $0x694] ss:$8 sps:$4 sm:$0xff]  }
0x16db   : > { %v15733_v22 = vpop.f32.mrb[244].mxu0 }
0x16dc   : > { %v15734_v31 = vadd.f32 %v15733_v22, %v31620_v56  ;;  %v15735_v60 = vpop.f32.mrb[245].mxu0  ;;  %v25490_v56 = vld [vmem:[%s32430_s3 + $0x640] ss:$8 sps:$4 sm:$0xff]   ;;  %v25498_v22 = vld [vmem:[%s32430_s3 + $0x764] ss:$8 sps:$4 sm:$0xff]  }
0x16dd   : > { %v15736_v2 = vadd.f32 %v15735_v60, %v31628_v26  ;;  %v15737_v8 = vpop.f32.mrb[246].mxu0  ;;  %v25558_v60 = vld [vmem:[%s32430_s3 + $0x6a4] ss:$8 sps:$4 sm:$0xff]  }
0x16de   : > { %v15775_v33 = vadd.f32 %v15774_v62, %v15734_v31  ;;  %v15738_v32 = vpop.f32.mrb[247].mxu0  ;;  %v25547_v62 = vld [vmem:[%s32430_s3 + $0x670] ss:$8 sps:$4 sm:$0xff]   ;;  %v25561_v8 = vld [vmem:[%s32430_s3 + $0x6b4] ss:$8 sps:$4 sm:$0xff]  }
0x16df   : > { %v15777_v18 = vadd.f32 %v15776_v46, %v15736_v2  ;;  %v25552_v46 = vld [vmem:[%s32430_s3 + $0x684] ss:$8 sps:$4 sm:$0xff]   ;;  %v25553_v31 = vld [vmem:[%s32430_s3 + $0x690] ss:$8 sps:$4 sm:$0xff]   ;;  %v25556_v2 = vld [vmem:[%s32430_s3 + $0x6a0] ss:$8 sps:$4 sm:$0xff]  }
0x16e0   : > { %v25501_v32 = vld [vmem:[%s32430_s3 + $0x774] ss:$8 sps:$4 sm:$0xff]  }
0x1711   : > { %v16199_v43 = vpop.f32.mrb[24].mxu1 }
0x1712   : > { %v16201_v45 = vpop.f32.mrb[25].mxu1 }
0x1713   : > { %v16203_v35 = vpop.f32.mrb[26].mxu1 }
0x1714   : > { %v16204_v29 = vpop.f32.mrb[27].mxu1  ;;  %v25504_v35 = vld [vmem:[%s32430_s3 + $0x784] ss:$8 sps:$4 sm:$0xff]  }
0x1715   : > { %v25567_v29 = vld [vmem:[%s32430_s3 + $0x6d4] ss:$8 sps:$4 sm:$0xff]  }
0x1719   : > { %v16283_v20 = vpop.f32.mrb[28].mxu1 }
0x171a   : > { %v16371_v4 = vpack.c.bf16 %v16283_v20, %v16283_v20  ;;  %v16285_v41 = vpop.f32.mrb[29].mxu1  ;;  %v25502_v20 = vld [vmem:[%s32430_s3 + $0x780] ss:$8 sps:$4 sm:$0xff]  }
0x171b   : > { %v16372_v1 = vpack.c.bf16 %v16285_v41, %v16285_v41  ;;  %v16158_v9 = vpop.f32.mrb[248].mxu0  ;;  %v16287_v21 = vpop.f32.mrb[30].mxu1  ;;  %v25565_v41 = vld [vmem:[%s32430_s3 + $0x6d0] ss:$8 sps:$4 sm:$0xff]  }
0x171c   : > { %v16159_v16 = vadd.f32 %v16158_v9, %v15775_v33  ;;  %v16160_v26 = vpop.f32.mrb[249].mxu0  ;;  %v16288_v25 = vpop.f32.mrb[31].mxu1  ;;  %v25496_v33 = vld [vmem:[%s32430_s3 + $0x760] ss:$8 sps:$4 sm:$0xff]   ;;  %v25505_v9 = vld [vmem:[%s32430_s3 + $0x790] ss:$8 sps:$4 sm:$0xff]  }
0x171d   : > { %v16161_v3 = vadd.f32 %v16160_v26, %v15777_v18  ;;  %v16162_v27 = vpop.f32.mrb[250].mxu0  ;;  %16820 = vmatprep.mubr.bf16.mxu0 %v16372_v1  ;;  %v25559_v18 = vld [vmem:[%s32430_s3 + $0x6b0] ss:$8 sps:$4 sm:$0xff]   ;;  %v25570_v1 = vld [vmem:[%s32430_s3 + $0x6e4] ss:$8 sps:$4 sm:$0xff]  }
0x171e   : > { %v16163_v59 = vpop.f32.mrb[251].mxu0  ;;  %16821 = vmatmul.mubr.bf16.vlgmr.msra.gmra.mrb[8].mxu0 %v16371_v4  ;;  %v16200_v7 = vadd.f32 %v16199_v43, %v16159_v16  ;;  %v25564_v43 = vld [vmem:[%s32430_s3 + $0x6c4] ss:$8 sps:$4 sm:$0xff]   ;;  %v25507_v4 = vld [vmem:[%s32430_s3 + $0x794] ss:$8 sps:$4 sm:$0xff]  }
0x171f   : > { %16871 = vmatpush1.bf16.msra.mxu0 %v25490_v56  ;;  %v16202_v28 = vadd.f32 %v16201_v45, %v16161_v3  ;;  %16902 = vmatprep.mubr.bf16.mxu0 %v25793_v53  ;;  %v25499_v45 = vld [vmem:[%s32430_s3 + $0x770] ss:$8 sps:$4 sm:$0xff]   ;;  %v25510_v56 = vld [vmem:[%s32430_s3 + $0x7a4] ss:$8 sps:$4 sm:$0xff]   ;;  %v25568_v21 = vld [vmem:[%s32430_s3 + $0x6e0] ss:$8 sps:$4 sm:$0xff]  }
0x1720   : > { %16872 = vmatprep.subr.bf16.mxu0 %v25495_v6  ;;  %v25573_v16 = vld [vmem:[%s32430_s3 + $0x6f4] ss:$8 sps:$4 sm:$0xff]   ;;  %v25508_v26 = vld [vmem:[%s32430_s3 + $0x7a0] ss:$8 sps:$4 sm:$0xff]   ;;  %v25571_v25 = vld [vmem:[%s32430_s3 + $0x6f0] ss:$8 sps:$4 sm:$0xff]  }
0x1721   : > { %v16365_v48 = vpop.f32.mrb[32].mxu1  ;;  %v25513_v6 = vld [vmem:[%s32430_s3 + $0x7b4] ss:$8 sps:$4 sm:$0xff]   ;;  %v25576_v3 = vld [vmem:[%s32430_s3 + $0x704] ss:$8 sps:$4 sm:$0xff]  }
0x1722   : > { %v16375_v19 = vpack.c.bf16 %v16365_v48, %v16365_v48  ;;  %v23148_v36 = vpop.f32.mrb[33].mxu1  ;;  %v25511_v27 = vld [vmem:[%s32430_s3 + $0x7b0] ss:$8 sps:$4 sm:$0xff]   ;;  %v25516_v59 = vld [vmem:[%s32430_s3 + $0x7c4] ss:$8 sps:$4 sm:$0xff]  }
0x1723   : > { %16873 = vmatpush1.bf16.msra.mxu0 %v25493_v55  ;;  %v16240_v42 = vpop.f32.mrb[252].mxu0  ;;  %v16368_v63 = vpop.f32.mrb[34].mxu1  ;;  %v25514_v55 = vld [vmem:[%s32430_s3 + $0x7c0] ss:$8 sps:$4 sm:$0xff]   ;;  %v25517_v48 = vld [vmem:[%s32430_s3 + $0x7d0] ss:$8 sps:$4 sm:$0xff]  }
0x1724   : > { %v31796_v30 = vadd.f32 %v16240_v42, %v16200_v7  ;;  %16956 = vmatprep.subr.bf16.mxu0 %v31110_v5  ;;  %v16242_v10 = vpop.f32.mrb[253].mxu0  ;;  %v23149_v13 = vpop.f32.mrb[35].mxu1  ;;  %v25574_v7 = vld [vmem:[%s32430_s3 + $0x700] ss:$8 sps:$4 sm:$0xff]   ;;  %v25525_v42 = vld [vmem:[%s32430_s3 + $0x7f4] ss:$8 sps:$4 sm:$0xff]  }
0x1725   : > { %v31802_v0 = vadd.f32 %v16242_v10, %v16202_v28  ;;  %v16244_v15 = vpop.f32.mrb[254].mxu0  ;;  %v25519_v28 = vld [vmem:[%s32430_s3 + $0x7d4] ss:$8 sps:$4 sm:$0xff]   ;;  %v25520_v36 = vld [vmem:[%s32430_s3 + $0x7e0] ss:$8 sps:$4 sm:$0xff]  }
0x1726   : > { %v16245_v44 = vpop.f32.mrb[255].mxu0  ;;  %21850 = vmatmul.mubr.msk.bf16.vlgmr.msra.gmra.mrb[12].mxu0 %vm15654_vm6, %v16375_v19  ;;  %v25522_v19 = vld [vmem:[%s32430_s3 + $0x7e4] ss:$8 sps:$4 sm:$0xff]   ;;  %v25523_v63 = vld [vmem:[%s32430_s3 + $0x7f0] ss:$8 sps:$4 sm:$0xff]  }
0x1727   : > { %16957 = vmatpush1.bf16.msra.mxu0 %v31113_v50  ;;  %16988 = vmatprep.mubr.bf16.mxu0 %v25793_v53  ;;  %v25528_v10 = vld [vmem:[%s32430_s3 + $0x804] ss:$8 sps:$4 sm:$0xff]   ;;  %v25526_v13 = vld [vmem:[%s32430_s3 + $0x800] ss:$8 sps:$4 sm:$0xff]   ;;  %v25529_v15 = vld [vmem:[%s32430_s3 + $0x810] ss:$8 sps:$4 sm:$0xff]  }
0x1728   : > { %17454 = vmatprep.subr.bf16.mxu0 %v25546_v49  ;;  %v25531_v49 = vld [vmem:[%s32430_s3 + $0x814] ss:$8 sps:$4 sm:$0xff]   ;;  %v25534_v44 = vld [vmem:[%s32430_s3 + $0x824] ss:$8 sps:$4 sm:$0xff]  }
0x172b   : > { %v16324_v23 = vpop.f32.mrb[0].mxu0 }
0x172c   : > { %v16326_v17 = vpop.f32.mrb[1].mxu0  ;;  %v16373_v61 = vpack.c.bf16 %v16324_v23, %v16324_v23  ;;  %v25532_v23 = vld [vmem:[%s32430_s3 + $0x820] ss:$8 sps:$4 sm:$0xff]  }
0x172d   : > { %v16374_v52 = vpack.c.bf16 %v16326_v17, %v16326_v17  ;;  %v16328_v14 = vpop.f32.mrb[2].mxu0  ;;  %v25535_v17 = vld [vmem:[%s32430_s3 + $0x830] ss:$8 sps:$4 sm:$0xff]  }
0x172e   : > { %21852 = vmatmul.mubr.msk.bf16.vlgmr.msra.gmra.mrb[16].mxu0 %vm14900_vm8, %v29762_v38  ;;  %v16329_v58 = vpop.f32.mrb[3].mxu0  ;;  %v25579_v14 = vld [vmem:[%s32430_s3 + $0x714] ss:$8 sps:$4 sm:$0xff]  }
0x172f   : > { %16861 = vmatprep.mubr.bf16.mxu1 %v16374_v52  ;;  %17455 = vmatpush1.bf16.msra.mxu0 %v25544_v39  ;;  %v25537_v39 = vld [vmem:[%s32430_s3 + $0x834] ss:$8 sps:$4 sm:$0xff]   ;;  %v25577_v52 = vld [vmem:[%s32430_s3 + $0x710] ss:$8 sps:$4 sm:$0xff]  }
0x1730   : > { %16862 = vmatmul.mubr.bf16.vlgmr.msra.gmra.mrb[36].mxu1 %v16373_v61  ;;  %17456 = vmatprep.subr.bf16.mxu0 %v25549_v24  ;;  %v25540_v24 = vld [vmem:[%s32430_s3 + $0x844] ss:$8 sps:$4 sm:$0xff]   ;;  %v25538_v61 = vld [vmem:[%s32430_s3 + $0x840] ss:$8 sps:$4 sm:$0xff]   ;;  %v25543_v58 = vld [vmem:[%s32430_s3 + $0x854] ss:$8 sps:$4 sm:$0xff]  }
0x1731   : > { %16916 = vmatpush1.bf16.msra.mxu1 %v31087_v40  ;;  %16947 = vmatprep.mubr.bf16.mxu1 %v25793_v53 }
0x1732   : > { %23150 = vmatprep.subr.bf16.mxu1 %v25792_v12 }
0x1733   : > { %17457 = vmatpush1.bf16.msra.mxu0 %v25547_v62  ;;  %v25541_v62 = vld [vmem:[%s32430_s3 + $0x850] ss:$8 sps:$4 sm:$0xff]  }
0x1734   : > { %17458 = vmatprep.subr.bf16.mxu0 %v25552_v46  ;;  %v25580_v46 = vld [vmem:[%s32430_s3 + $0x720] ss:$8 sps:$4 sm:$0xff]  }
0x1737   : > { %17459 = vmatpush1.bf16.msra.mxu0 %v25550_v54  ;;  %v25582_v54 = vld [vmem:[%s32430_s3 + $0x724] ss:$8 sps:$4 sm:$0xff]  }
0x1738   : > { %21851 = vmatmul.mubr.msk.bf16.vlgmr.msra.gmra.mrb[40].mxu1 %vm14900_vm8, %v29762_v38  ;;  %17460 = vmatprep.subr.bf16.mxu0 %v25555_v34  ;;  %v25585_v34 = vld [vmem:[%s32430_s3 + $0x734] ss:$8 sps:$4 sm:$0xff]  }
0x1739   : > { %23151 = vmatpush3.bf16.msra.mxu1 %v31130_v57  ;;  %23152 = vmatprep.mubr.msk.bf16.mxu1 %vm25794_vm2, %v25792_v12 }
0x173a   : > { %17495 = vmatprep.subr.bf16.mxu1 %v25498_v22  ;;  %v25583_v22 = vld [vmem:[%s32430_s3 + $0x730] ss:$8 sps:$4 sm:$0xff]  }
0x173b   : > { %17461 = vmatpush1.bf16.msra.mxu0 %v25553_v31  ;;  %v25588_v31 = vld [vmem:[%s32430_s3 + $0x744] ss:$8 sps:$4 sm:$0xff]  }
0x173c   : > { %17462 = vmatprep.subr.bf16.mxu0 %v25558_v60  ;;  %v25586_v60 = vld [vmem:[%s32430_s3 + $0x740] ss:$8 sps:$4 sm:$0xff]  }
0x173f   : > { %17463 = vmatpush1.bf16.msra.mxu0 %v25556_v2  ;;  %v25589_v2 = vld [vmem:[%s32430_s3 + $0x750] ss:$8 sps:$4 sm:$0xff]  }
0x1740   : > { %23153 = vmatmul.mubr.msk.bf16.vlgmr.msra.gmra.mrb[44].mxu1 %vm14900_vm8, %v29762_v38  ;;  %17464 = vmatprep.subr.bf16.mxu0 %v25561_v8  ;;  %v25562_v38 = vld [vmem:[%s32430_s3 + $0x6c0] ss:$8 sps:$4 sm:$0xff]   ;;  %v25594_v8 = vld [vmem:[%s32430_s3 + $0x864] ss:$8 sps:$4 sm:$0xff]  }
0x1741   : > { %17496 = vmatpush1.bf16.msra.mxu1 %v25496_v33 }
0x1742   : > { %17497 = vmatprep.subr.bf16.mxu1 %v25501_v32 }
0x1743   : > { %17465 = vmatpush1.bf16.msra.mxu0 %v25559_v18 }
0x1744   : > { %17466 = vmatprep.subr.bf16.mxu0 %v25564_v43 }
0x1745   : > { %17498 = vmatpush1.bf16.msra.mxu1 %v25499_v45 }
0x1746   : > { %17499 = vmatprep.subr.bf16.mxu1 %v25504_v35 }
0x1747   : > { %17467 = vmatpush1.bf16.msra.mxu0 %v25562_v38 }
0x1748   : > { %17468 = vmatprep.subr.bf16.mxu0 %v25567_v29 }
0x1749   : > { %17500 = vmatpush1.bf16.msra.mxu1 %v25502_v20 }
0x174a   : > { %17501 = vmatprep.subr.bf16.mxu1 %v25507_v4 }
0x174b   : > { %17469 = vmatpush1.bf16.msra.mxu0 %v25565_v41 }
0x174c   : > { %17470 = vmatprep.subr.bf16.mxu0 %v25570_v1 }
0x174d   : > { %17502 = vmatpush1.bf16.msra.mxu1 %v25505_v9 }
0x174e   : > { %17503 = vmatprep.subr.bf16.mxu1 %v25510_v56 }
0x174f   : > { %17471 = vmatpush1.bf16.msra.mxu0 %v25568_v21 }
0x1750   : > { %17472 = vmatprep.subr.bf16.mxu0 %v25573_v16 }
0x1751   : > { %17504 = vmatpush1.bf16.msra.mxu1 %v25508_v26 }
0x1752   : > { %17505 = vmatprep.subr.bf16.mxu1 %v25513_v6 }
0x1753   : > { %17473 = vmatpush1.bf16.msra.mxu0 %v25571_v25 }
0x1754   : > { %17474 = vmatprep.subr.bf16.mxu0 %v25576_v3 }
0x1755   : > { %17506 = vmatpush1.bf16.msra.mxu1 %v25511_v27 }
0x1756   : > { %17507 = vmatprep.subr.bf16.mxu1 %v25516_v59 }
0x1757   : > { %17475 = vmatpush1.bf16.msra.mxu0 %v25574_v7 }
0x1758   : > { %17476 = vmatprep.subr.bf16.mxu0 %v25579_v14  ;;  %v25598_v14 = vld [vmem:[%s32430_s3 + $0x880] ss:$8 sps:$4 sm:$0xff]  }
0x1759   : > { %17508 = vmatpush1.bf16.msra.mxu1 %v25514_v55 }
0x175a   : > { %17509 = vmatprep.subr.bf16.mxu1 %v25519_v28 }
0x175b   : > { %17477 = vmatpush1.bf16.msra.mxu0 %v25577_v52  ;;  %v25624_v52 = vld [vmem:[%s32430_s3 + $0x9b4] ss:$8 sps:$4 sm:$0xff]  }
0x175c   : > { %17478 = vmatprep.subr.bf16.mxu0 %v25582_v54  ;;  %v25636_v54 = vld [vmem:[%s32430_s3 + $0x9d4] ss:$8 sps:$4 sm:$0xff]  }
0x175d   : > { %17510 = vmatpush1.bf16.msra.mxu1 %v25517_v48 }
0x175e   : > { %17511 = vmatprep.subr.bf16.mxu1 %v25522_v19 }
0x175f   : > { %17479 = vmatpush1.bf16.msra.mxu0 %v25580_v46  ;;  %v25609_v46 = vld [vmem:[%s32430_s3 + $0x8a4] ss:$8 sps:$4 sm:$0xff]  }
0x1760   : > { %17480 = vmatprep.subr.bf16.mxu0 %v25585_v34  ;;  %v25607_v34 = vld [vmem:[%s32430_s3 + $0x8a0] ss:$8 sps:$4 sm:$0xff]  }
0x1761   : > { %17512 = vmatpush1.bf16.msra.mxu1 %v25520_v36 }
0x1762   : > { %17513 = vmatprep.subr.bf16.mxu1 %v25525_v42  ;;  %v25592_v42 = vld [vmem:[%s32430_s3 + $0x860] ss:$8 sps:$4 sm:$0xff]  }
0x1763   : > { %17481 = vmatpush1.bf16.msra.mxu0 %v25583_v22  ;;  %v25615_v22 = vld [vmem:[%s32430_s3 + $0x8b4] ss:$8 sps:$4 sm:$0xff]  }
0x1764   : > { %17482 = vmatprep.subr.bf16.mxu0 %v25588_v31  ;;  %v25634_v31 = vld [vmem:[%s32430_s3 + $0x9d0] ss:$8 sps:$4 sm:$0xff]  }
0x1765   : > { %17514 = vmatpush1.bf16.msra.mxu1 %v25523_v63 }
0x1766   : > { %17515 = vmatprep.subr.bf16.mxu1 %v25528_v10  ;;  %v25595_v10 = vld [vmem:[%s32430_s3 + $0x870] ss:$8 sps:$4 sm:$0xff]  }
0x1767   : > { %17483 = vmatpush1.bf16.msra.mxu0 %v25586_v60  ;;  %v25642_v60 = vld [vmem:[%s32430_s3 + $0x9e4] ss:$8 sps:$4 sm:$0xff]  }
0x1769   : > { %17516 = vmatpush1.bf16.msra.mxu1 %v25526_v13 }
0x176a   : > { %17517 = vmatprep.subr.bf16.mxu1 %v25531_v49  ;;  %v25604_v49 = vld [vmem:[%s32430_s3 + $0x980] ss:$8 sps:$4 sm:$0xff]  }
0x176d   : > { %17518 = vmatpush1.bf16.msra.mxu1 %v25529_v15 }
0x176e   : > { %17519 = vmatprep.subr.bf16.mxu1 %v25534_v44 }
0x1771   : > { %17520 = vmatpush1.bf16.msra.mxu1 %v25532_v23 }
0x1772   : > { %17521 = vmatprep.subr.bf16.mxu1 %v25537_v39  ;;  %v25600_v39 = vld [vmem:[%s32430_s3 + $0x884] ss:$8 sps:$4 sm:$0xff]  }
0x1775   : > { %17522 = vmatpush1.bf16.msra.mxu1 %v25535_v17  ;;  %v25610_v17 = vld [vmem:[%s32430_s3 + $0x990] ss:$8 sps:$4 sm:$0xff]  }
0x1776   : > { %17523 = vmatprep.subr.bf16.mxu1 %v25540_v24  ;;  %v25616_v24 = vld [vmem:[%s32430_s3 + $0x9a0] ss:$8 sps:$4 sm:$0xff]  }
0x1779   : > { %17524 = vmatpush1.bf16.msra.mxu1 %v25538_v61  ;;  %v25622_v61 = vld [vmem:[%s32430_s3 + $0x9b0] ss:$8 sps:$4 sm:$0xff]  }
0x177a   : > { %17525 = vmatprep.subr.bf16.mxu1 %v25543_v58  ;;  %v25630_v58 = vld [vmem:[%s32430_s3 + $0x9c4] ss:$8 sps:$4 sm:$0xff]  }
0x177d   : > { %17526 = vmatpush1.bf16.msra.mxu1 %v25541_v62  ;;  %v25601_v62 = vld [vmem:[%s32430_s3 + $0x890] ss:$8 sps:$4 sm:$0xff]  }
0x177e   : > { %17581 = vmatprep.subr.bf16.mxu1 %v31084_v11  ;;  %v25591_v11 = vld [vmem:[%s32430_s3 + $0x754] ss:$8 sps:$4 sm:$0xff]  }
0x177f   : > { %17484 = vmatprep.subr.bf16.mxu0 %v25591_v11  ;;  %v25613_v11 = vld [vmem:[%s32430_s3 + $0x8b0] ss:$8 sps:$4 sm:$0xff]  }
0x1780   : > { %17485 = vmatpush1.bf16.msra.mxu0 %v25589_v2  ;;  %v25621_v2 = vld [vmem:[%s32430_s3 + $0x8c4] ss:$8 sps:$4 sm:$0xff]  }
0x1781   : > { %17536 = vmatprep.subr.bf16.mxu0 %v25594_v8  ;;  %v25640_v8 = vld [vmem:[%s32430_s3 + $0x9e0] ss:$8 sps:$4 sm:$0xff]  }
0x17f1   : > { %v16822_v33 = vpop.f32.mrb[8].mxu0 }
0x17f2   : > { %v16824_v32 = vpop.f32.mrb[9].mxu0 }
0x17f3   : > { %v16826_v18 = vpop.f32.mrb[10].mxu0 }
0x17f4   : > { %v16827_v43 = vpop.f32.mrb[11].mxu0  ;;  %v25627_v18 = vld [vmem:[%s32430_s3 + $0x8d4] ss:$8 sps:$4 sm:$0xff]  }
0x17f5   : > { %v25646_v43 = vld [vmem:[%s32430_s3 + $0x9f0] ss:$8 sps:$4 sm:$0xff]  }
0x17f9   : > { %v16904_v45 = vpop.f32.mrb[12].mxu0 }
0x17fa   : > { %v16906_v35 = vpop.f32.mrb[13].mxu0 }
0x17fb   : > { %v16908_v38 = vpop.f32.mrb[14].mxu0 }
0x17fc   : > { %v16909_v29 = vpop.f32.mrb[15].mxu0  ;;  %v25633_v38 = vld [vmem:[%s32430_s3 + $0x8e4] ss:$8 sps:$4 sm:$0xff]  }
0x17fd   : > { %v25652_v29 = vld [vmem:[%s32430_s3 + $0xa00] ss:$8 sps:$4 sm:$0xff]  }
0x1801   : > { %v16990_v20 = vpop.f32.mrb[16].mxu0 }
0x1802   : > { %v17039_v4 = vpack.c.bf16 %v16990_v20, %v16990_v20  ;;  %v16992_v41 = vpop.f32.mrb[17].mxu0  ;;  %v25660_v20 = vld [vmem:[%s32430_s3 + $0xa14] ss:$8 sps:$4 sm:$0xff]  }
0x1803   : > { %v17040_v1 = vpack.c.bf16 %v16992_v41, %v16992_v41  ;;  %v16863_v9 = vpop.f32.mrb[36].mxu1  ;;  %v16994_v56 = vpop.f32.mrb[18].mxu0  ;;  %v25639_v41 = vld [vmem:[%s32430_s3 + $0x8f4] ss:$8 sps:$4 sm:$0xff]  }
0x1804   : > { %v16864_v21 = vadd.f32 %v16863_v9, %v16822_v33  ;;  %v16865_v16 = vpop.f32.mrb[37].mxu1  ;;  %v16995_v26 = vpop.f32.mrb[19].mxu0  ;;  %v25648_v33 = vld [vmem:[%s32430_s3 + $0x9f4] ss:$8 sps:$4 sm:$0xff]   ;;  %v25666_v9 = vld [vmem:[%s32430_s3 + $0xa24] ss:$8 sps:$4 sm:$0xff]  }
0x1805   : > { %v16866_v6 = vadd.f32 %v16865_v16, %v16824_v32  ;;  %v16867_v25 = vpop.f32.mrb[38].mxu1  ;;  %17527 = vmatprep.mubr.bf16.mxu1 %v17040_v1  ;;  %v25619_v32 = vld [vmem:[%s32430_s3 + $0x8c0] ss:$8 sps:$4 sm:$0xff]   ;;  %v25658_v1 = vld [vmem:[%s32430_s3 + $0xa10] ss:$8 sps:$4 sm:$0xff]  }
0x1806   : > { %v16905_v3 = vadd.f32 %v16904_v45, %v16864_v21  ;;  %v16868_v27 = vpop.f32.mrb[39].mxu1  ;;  %17528 = vmatmul.mubr.bf16.vlgmr.msra.gmra.mrb[48].mxu1 %v17039_v4  ;;  %v25654_v45 = vld [vmem:[%s32430_s3 + $0xa04] ss:$8 sps:$4 sm:$0xff]   ;;  %v25631_v4 = vld [vmem:[%s32430_s3 + $0x8e0] ss:$8 sps:$4 sm:$0xff]  }
0x1807   : > { %v16907_v59 = vadd.f32 %v16906_v35, %v16866_v6  ;;  %17582 = vmatpush1.bf16.msra.mxu1 %v31087_v40  ;;  %17613 = vmatprep.mubr.bf16.mxu1 %v25793_v53  ;;  %v25625_v35 = vld [vmem:[%s32430_s3 + $0x8d0] ss:$8 sps:$4 sm:$0xff]   ;;  %v25645_v21 = vld [vmem:[%s32430_s3 + $0x904] ss:$8 sps:$4 sm:$0xff]   ;;  %v25664_v16 = vld [vmem:[%s32430_s3 + $0xa20] ss:$8 sps:$4 sm:$0xff]  }
0x1808   : > { %23156 = vmatprep.subr.bf16.mxu1 %v25792_v12  ;;  %v32016_v7 = vadd.f32 %v16905_v3, %v31796_v30  ;;  %v25597_v30 = vld [vmem:[%s32430_s3 + $0x874] ss:$8 sps:$4 sm:$0xff]   ;;  %v25637_v56 = vld [vmem:[%s32430_s3 + $0x8f0] ss:$8 sps:$4 sm:$0xff]   ;;  %v25643_v26 = vld [vmem:[%s32430_s3 + $0x900] ss:$8 sps:$4 sm:$0xff]  }
0x1809   : > { %v32019_v55 = vadd.f32 %v16907_v59, %v31802_v0  ;;  %v25606_v0 = vld [vmem:[%s32430_s3 + $0x984] ss:$8 sps:$4 sm:$0xff]   ;;  %v25651_v6 = vld [vmem:[%s32430_s3 + $0x914] ss:$8 sps:$4 sm:$0xff]   ;;  %v25649_v25 = vld [vmem:[%s32430_s3 + $0x910] ss:$8 sps:$4 sm:$0xff]  }
0x180a   : > { %v25657_v3 = vld [vmem:[%s32430_s3 + $0x924] ss:$8 sps:$4 sm:$0xff]   ;;  %v25655_v27 = vld [vmem:[%s32430_s3 + $0x920] ss:$8 sps:$4 sm:$0xff]   ;;  %v25663_v59 = vld [vmem:[%s32430_s3 + $0x934] ss:$8 sps:$4 sm:$0xff]  }
0x180b   : > { %v16949_v28 = vpop.f32.mrb[40].mxu1 }
0x180c   : > { %v16951_v48 = vpop.f32.mrb[41].mxu1  ;;  %v17037_v63 = vpack.c.bf16 %v16949_v28, %v16949_v28  ;;  %v25661_v28 = vld [vmem:[%s32430_s3 + $0x930] ss:$8 sps:$4 sm:$0xff]  }
0x180d   : > { %v17038_v19 = vpack.c.bf16 %v16951_v48, %v16951_v48  ;;  %v16953_v36 = vpop.f32.mrb[42].mxu1  ;;  %v25669_v48 = vld [vmem:[%s32430_s3 + $0x944] ss:$8 sps:$4 sm:$0xff]  }
0x180e   : > { %21991 = vmatmul.mubr.msk.bf16.vlgmr.msra.gmra.mrb[52].mxu1 %vm14900_vm8, %v30413_v51  ;;  %v16954_v40 = vpop.f32.mrb[43].mxu1  ;;  %v25675_v36 = vld [vmem:[%s32430_s3 + $0x954] ss:$8 sps:$4 sm:$0xff]  }
0x180f   : > { %23157 = vmatpush3.bf16.msra.mxu1 %v31130_v57  ;;  %17486 = vmatprep.mubr.bf16.mxu0 %v17038_v19  ;;  %v25667_v19 = vld [vmem:[%s32430_s3 + $0x940] ss:$8 sps:$4 sm:$0xff]   ;;  %v25670_v40 = vld [vmem:[%s32430_s3 + $0xa30] ss:$8 sps:$4 sm:$0xff]  }
0x1810   : > { %17487 = vmatmul.mubr.bf16.vlgmr.msra.gmra.mrb[20].mxu0 %v17037_v63  ;;  %23158 = vmatprep.mubr.msk.bf16.mxu1 %vm25794_vm2, %v25792_v12  ;;  %v25612_v12 = vld [vmem:[%s32430_s3 + $0x994] ss:$8 sps:$4 sm:$0xff]  }
0x1811   : > { %17537 = vmatpush1.bf16.msra.mxu0 %v25592_v42  ;;  %17568 = vmatprep.mubr.bf16.mxu0 %v25793_v53  ;;  %v25673_v42 = vld [vmem:[%s32430_s3 + $0x950] ss:$8 sps:$4 sm:$0xff]   ;;  %v25672_v63 = vld [vmem:[%s32430_s3 + $0xa34] ss:$8 sps:$4 sm:$0xff]  }
0x1812   : > { %17538 = vmatprep.subr.bf16.mxu0 %v25597_v30  ;;  %18161 = vmatprep.subr.bf16.mxu1 %v25606_v0  ;;  %v25681_v30 = vld [vmem:[%s32430_s3 + $0x964] ss:$8 sps:$4 sm:$0xff]   ;;  %v25679_v0 = vld [vmem:[%s32430_s3 + $0x960] ss:$8 sps:$4 sm:$0xff]  }
0x1813   : > { %v17031_v13 = vpop.f32.mrb[44].mxu1 }
0x1814   : > { %v17041_v57 = vpack.c.bf16 %v17031_v13, %v17031_v13  ;;  %v23154_v15 = vpop.f32.mrb[45].mxu1  ;;  %v25678_v13 = vld [vmem:[%s32430_s3 + $0xa44] ss:$8 sps:$4 sm:$0xff]  }
0x1815   : > { %17539 = vmatpush1.bf16.msra.mxu0 %v25595_v10  ;;  %v17034_v44 = vpop.f32.mrb[46].mxu1  ;;  %v25676_v10 = vld [vmem:[%s32430_s3 + $0xa40] ss:$8 sps:$4 sm:$0xff]   ;;  %v25684_v15 = vld [vmem:[%s32430_s3 + $0xa54] ss:$8 sps:$4 sm:$0xff]  }
0x1816   : > { %17622 = vmatprep.subr.bf16.mxu0 %v31110_v5  ;;  %v23155_v23 = vpop.f32.mrb[47].mxu1  ;;  %23159 = vmatmul.mubr.msk.bf16.vlgmr.msra.gmra.mrb[56].mxu1 %vm14900_vm8, %v30413_v51  ;;  %v25618_v5 = vld [vmem:[%s32430_s3 + $0x9a4] ss:$8 sps:$4 sm:$0xff]  }
0x1817   : > { %18162 = vmatpush1.bf16.msra.mxu1 %v25604_v49  ;;  %v25687_v49 = vld [vmem:[%s32430_s3 + $0x974] ss:$8 sps:$4 sm:$0xff]   ;;  %v25693_v44 = vld [vmem:[%s32430_s3 + $0xa84] ss:$8 sps:$4 sm:$0xff]   ;;  %v25688_v23 = vld [vmem:[%s32430_s3 + $0xa60] ss:$8 sps:$4 sm:$0xff]  }
0x1818   : > { %21990 = vmatmul.mubr.msk.bf16.vlgmr.msra.gmra.mrb[24].mxu0 %vm15654_vm6, %v17041_v57  ;;  %18163 = vmatprep.subr.bf16.mxu1 %v25612_v12  ;;  %v25685_v57 = vld [vmem:[%s32430_s3 + $0x970] ss:$8 sps:$4 sm:$0xff]  }
0x1819   : > { %17623 = vmatpush1.bf16.msra.mxu0 %v31113_v50  ;;  %17654 = vmatprep.mubr.bf16.mxu0 %v25793_v53  ;;  %v25603_v50 = vld [vmem:[%s32430_s3 + $0x894] ss:$8 sps:$4 sm:$0xff]   ;;  %v25682_v12 = vld [vmem:[%s32430_s3 + $0xa50] ss:$8 sps:$4 sm:$0xff]  }
0x181a   : > { %18120 = vmatprep.subr.bf16.mxu0 %v25600_v39  ;;  %v25690_v39 = vld [vmem:[%s32430_s3 + $0xa64] ss:$8 sps:$4 sm:$0xff]  }
0x181b   : > { %18164 = vmatpush1.bf16.msra.mxu1 %v25610_v17  ;;  %v25696_v17 = vld [vmem:[%s32430_s3 + $0xa74] ss:$8 sps:$4 sm:$0xff]  }
0x181c   : > { %18165 = vmatprep.subr.bf16.mxu1 %v25618_v5  ;;  %v25694_v5 = vld [vmem:[%s32430_s3 + $0xa70] ss:$8 sps:$4 sm:$0xff]  }
0x181f   : > { %18166 = vmatpush1.bf16.msra.mxu1 %v25616_v24 }
0x1820   : > { %21992 = vmatmul.mubr.msk.bf16.vlgmr.msra.gmra.mrb[28].mxu0 %vm14900_vm8, %v30413_v51  ;;  %18167 = vmatprep.subr.bf16.mxu1 %v25624_v52  ;;  %v25628_v51 = vld [vmem:[%s32430_s3 + $0x9c0] ss:$8 sps:$4 sm:$0xff]  }
0x1821   : > { %18121 = vmatpush1.bf16.msra.mxu0 %v25598_v14 }
0x1822   : > { %18122 = vmatprep.subr.bf16.mxu0 %v25603_v50 }
0x1823   : > { %18168 = vmatpush1.bf16.msra.mxu1 %v25622_v61 }
0x1824   : > { %18169 = vmatprep.subr.bf16.mxu1 %v25630_v58 }
0x1825   : > { %18123 = vmatpush1.bf16.msra.mxu0 %v25601_v62 }
0x1826   : > { %18124 = vmatprep.subr.bf16.mxu0 %v25609_v46 }
0x1827   : > { %18170 = vmatpush1.bf16.msra.mxu1 %v25628_v51 }
0x1828   : > { %18171 = vmatprep.subr.bf16.mxu1 %v25636_v54 }
0x1829   : > { %18125 = vmatpush1.bf16.msra.mxu0 %v25607_v34  ;;  %v25691_v34 = vld [vmem:[%s32430_s3 + $0xa80] ss:$8 sps:$4 sm:$0xff]  }
0x182a   : > { %18126 = vmatprep.subr.bf16.mxu0 %v25615_v22 }
0x182b   : > { %18172 = vmatpush1.bf16.msra.mxu1 %v25634_v31 }
0x182c   : > { %18173 = vmatprep.subr.bf16.mxu1 %v25642_v60 }
0x182d   : > { %18127 = vmatpush1.bf16.msra.mxu0 %v25613_v11  ;;  %v25699_v11 = vld [vmem:[%s32430_s3 + $0xa94] ss:$8 sps:$4 sm:$0xff]  }
0x182e   : > { %18128 = vmatprep.subr.bf16.mxu0 %v25621_v2 }
0x182f   : > { %18174 = vmatpush1.bf16.msra.mxu1 %v25640_v8 }
0x1830   : > { %18175 = vmatprep.subr.bf16.mxu1 %v25648_v33 }
0x1831   : > { %18129 = vmatpush1.bf16.msra.mxu0 %v25619_v32  ;;  %v25697_v32 = vld [vmem:[%s32430_s3 + $0xa90] ss:$8 sps:$4 sm:$0xff]  }
0x1832   : > { %18130 = vmatprep.subr.bf16.mxu0 %v25627_v18 }
0x1833   : > { %18176 = vmatpush1.bf16.msra.mxu1 %v25646_v43 }
0x1834   : > { %18177 = vmatprep.subr.bf16.mxu1 %v25654_v45 }
0x1835   : > { %18131 = vmatpush1.bf16.msra.mxu0 %v25625_v35 }
0x1836   : > { %18132 = vmatprep.subr.bf16.mxu0 %v25633_v38 }
0x1837   : > { %18178 = vmatpush1.bf16.msra.mxu1 %v25652_v29  ;;  %v25700_v29 = vld [vmem:[%s32431_s4] sm:$0xff]  }
0x1838   : > { %18179 = vmatprep.subr.bf16.mxu1 %v25660_v20 }
0x1839   : > { %18133 = vmatpush1.bf16.msra.mxu0 %v25631_v4 }
0x183a   : > { %18134 = vmatprep.subr.bf16.mxu0 %v25639_v41 }
0x183b   : > { %18180 = vmatpush1.bf16.msra.mxu1 %v25658_v1 }
0x183c   : > { %18181 = vmatprep.subr.bf16.mxu1 %v25666_v9 }
0x183d   : > { %18135 = vmatpush1.bf16.msra.mxu0 %v25637_v56 }
0x183e   : > { %18136 = vmatprep.subr.bf16.mxu0 %v25645_v21 }
0x183f   : > { %18182 = vmatpush1.bf16.msra.mxu1 %v25664_v16 }
0x1840   : > { %18183 = vmatprep.subr.bf16.mxu1 %v25672_v63  ;;  %v25710_v63 = vld [vmem:[%s32431_s4 + $0x28] sm:$0xff]  }
0x1841   : > { %18137 = vmatpush1.bf16.msra.mxu0 %v25643_v26  ;;  %v25702_v26 = vld [vmem:[%s32431_s4 + $0x8] sm:$0xff]  }
0x1842   : > { %18138 = vmatprep.subr.bf16.mxu0 %v25651_v6 }
0x1843   : > { %18184 = vmatpush1.bf16.msra.mxu1 %v25670_v40  ;;  %v25707_v40 = vld [vmem:[%s32431_s4 + $0x88] sm:$0xff]  }
0x1844   : > { %18185 = vmatprep.subr.bf16.mxu1 %v25678_v13  ;;  %v25711_v13 = vld [vmem:[%s32431_s4 + $0x98] sm:$0xff]  }
0x1845   : > { %18139 = vmatpush1.bf16.msra.mxu0 %v25649_v25 }
0x1846   : > { %18140 = vmatprep.subr.bf16.mxu0 %v25657_v3 }
0x1847   : > { %18186 = vmatpush1.bf16.msra.mxu1 %v25676_v10  ;;  %v25714_v10 = vld [vmem:[%s32431_s4 + $0x38] sm:$0xff]  }
0x1848   : > { %18187 = vmatprep.subr.bf16.mxu1 %v25684_v15  ;;  %v25715_v15 = vld [vmem:[%s32431_s4 + $0xa8] sm:$0xff]  }
0x1849   : > { %18141 = vmatpush1.bf16.msra.mxu0 %v25655_v27 }
0x184a   : > { %18142 = vmatprep.subr.bf16.mxu0 %v25663_v59 }
0x184b   : > { %18188 = vmatpush1.bf16.msra.mxu1 %v25682_v12  ;;  %v25717_v12 = vld [vmem:[%s32431_s4 + $0xb0] sm:$0xff]  }
0x184c   : > { %18189 = vmatprep.subr.bf16.mxu1 %v25690_v39  ;;  %v25720_v39 = vld [vmem:[%s32431_s4 + $0x50] sm:$0xff]  }
0x184d   : > { %18143 = vmatpush1.bf16.msra.mxu0 %v25661_v28 }
0x184e   : > { %18144 = vmatprep.subr.bf16.mxu0 %v25669_v48  ;;  %v25706_v48 = vld [vmem:[%s32431_s4 + $0x18] sm:$0xff]  }
0x184f   : > { %18190 = vmatpush1.bf16.msra.mxu1 %v25688_v23  ;;  %v25719_v23 = vld [vmem:[%s32431_s4 + $0xb8] sm:$0xff]  }
0x1850   : > { %18191 = vmatprep.subr.bf16.mxu1 %v25696_v17  ;;  %v25721_v17 = vld [vmem:[%s32431_s4 + $0xc0] sm:$0xff]  }
0x1851   : > { %18145 = vmatpush1.bf16.msra.mxu0 %v25667_v19  ;;  %v25703_v19 = vld [vmem:[%s32431_s4 + $0x78] sm:$0xff]  }
0x1852   : > { %18146 = vmatprep.subr.bf16.mxu0 %v25675_v36  ;;  %v25708_v36 = vld [vmem:[%s32431_s4 + $0x20] sm:$0xff]  }
0x1853   : > { %18192 = vmatpush1.bf16.msra.mxu1 %v25694_v5  ;;  %v25722_v5 = vld [vmem:[%s32431_s4 + $0x58] sm:$0xff]  }
0x1854   : > { %18542 = vmatprep.subr.bf16.mxu1 %v25793_v53 }
0x1855   : > { %18147 = vmatpush1.bf16.msra.mxu0 %v25673_v42  ;;  %v25705_v42 = vld [vmem:[%s32431_s4 + $0x80] sm:$0xff]  }
0x1856   : > { %18148 = vmatprep.subr.bf16.mxu0 %v25681_v30  ;;  %v25712_v30 = vld [vmem:[%s32431_s4 + $0x30] sm:$0xff]  }
0x1859   : > { %18149 = vmatpush1.bf16.msra.mxu0 %v25679_v0  ;;  %v25709_v0 = vld [vmem:[%s32431_s4 + $0x90] sm:$0xff]  }
0x185a   : > { %18150 = vmatprep.subr.bf16.mxu0 %v25687_v49  ;;  %v25716_v49 = vld [vmem:[%s32431_s4 + $0x40] sm:$0xff]  }
0x185d   : > { %18151 = vmatpush1.bf16.msra.mxu0 %v25685_v57  ;;  %v25713_v57 = vld [vmem:[%s32431_s4 + $0xa0] sm:$0xff]  }
0x185e   : > { %18202 = vmatprep.subr.bf16.mxu0 %v25693_v44  ;;  %v25718_v44 = vld [vmem:[%s32431_s4 + $0x48] sm:$0xff]  }
0x18d9   : > { %v17529_v24 = vpop.f32.mrb[48].mxu1 }
0x18da   : > { %v17531_v52 = vpop.f32.mrb[49].mxu1 }
0x18db   : > { %v17533_v14 = vpop.f32.mrb[50].mxu1 }
0x18dc   : > { %v17534_v50 = vpop.f32.mrb[51].mxu1  ;;  %v25725_v14 = vld [vmem:[%s32431_s4 + $0xd0] sm:$0xff]  }
0x18dd   : > { %v25726_v50 = vld [vmem:[%s32431_s4 + $0x68] sm:$0xff]  }
0x18e1   : > { %v17615_v61 = vpop.f32.mrb[52].mxu1 }
0x18e2   : > { %v17703_v58 = vpack.c.bf16 %v17615_v61, %v17615_v61  ;;  %v17617_v62 = vpop.f32.mrb[53].mxu1  ;;  %v25727_v61 = vld [vmem:[%s32431_s4 + $0xd8] sm:$0xff]  }
0x18e3   : > { %v17488_v46 = vpop.f32.mrb[20].mxu0  ;;  %v17704_v51 = vpack.c.bf16 %v17617_v62, %v17617_v62  ;;  %v17619_v54 = vpop.f32.mrb[54].mxu1 }
0x18e4   : > { %v17490_v22 = vpop.f32.mrb[21].mxu0  ;;  %v17530_v31 = vadd.f32 %v17529_v24, %v17488_v46  ;;  %v17620_v60 = vpop.f32.mrb[55].mxu1  ;;  %v25723_v24 = vld [vmem:[%s32431_s4 + $0xc8] sm:$0xff]  }
0x18e5   : > { %v17492_v2 = vpop.f32.mrb[22].mxu0  ;;  %v17532_v8 = vadd.f32 %v17531_v52, %v17490_v22  ;;  %18152 = vmatprep.mubr.bf16.mxu0 %v17704_v51  ;;  %v25724_v52 = vld [vmem:[%s32431_s4 + $0x60] sm:$0xff]  }
0x18e6   : > { %v17493_v33 = vpop.f32.mrb[23].mxu0  ;;  %18153 = vmatmul.mubr.bf16.vlgmr.msra.gmra.mrb[32].mxu0 %v17703_v58 }
0x18e7   : > { %18203 = vmatpush1.bf16.msra.mxu0 %v25691_v34  ;;  %18234 = vmatprep.mubr.bf16.mxu0 %v25793_v53 }
0x18e8   : > { %18204 = vmatprep.subr.bf16.mxu0 %v25699_v11  ;;  %v18245_v11 = vld [vmem:[%s32434_s7] sm:$0x3] }
0x18e9   : > { %v17697_v18 = vpop.f32.mrb[56].mxu1 }
0x18ea   : > { %v17707_v43 = vpack.c.bf16 %v17697_v18, %v17697_v18  ;;  %v23160_v45 = vpop.f32.mrb[57].mxu1  ;;  %v18250_v18 = vrot.slane %v18245_v11, %v27760_v37 }
0x18eb   : > { %v17570_v35 = vpop.f32.mrb[24].mxu0  ;;  %18205 = vmatpush1.bf16.msra.mxu0 %v25697_v32  ;;  %v17700_v38 = vpop.f32.mrb[58].mxu1 }
0x18ec   : > { %v17571_v20 = vadd.f32 %v17570_v35, %v17530_v31  ;;  %v17572_v4 = vpop.f32.mrb[25].mxu0  ;;  %v23161_v41 = vpop.f32.mrb[59].mxu1  ;;  %18379 = vmatprep.subr.bf16.mxu0 %v25793_v53  ;;  %v18254_v35 = vrot.slane %v18245_v11, %v27769_v47  ;;  %v18263_v47 = vld [vmem:[%s32435_s8] sm:$0x1] }
0x18ed   : > { %v17573_v1 = vadd.f32 %v17572_v4, %v17532_v8  ;;  %v17574_v9 = vpop.f32.mrb[26].mxu0 }
0x18ee   : > { %v32255_v56 = vadd.f32 %v17571_v20, %v32016_v7  ;;  %v17575_v21 = vpop.f32.mrb[27].mxu0  ;;  %22130 = vmatmul.mubr.msk.bf16.vlgmr.msra.gmra.mrb[36].mxu0 %vm15654_vm6, %v17707_v43  ;;  %v25704_v7 = vld [vmem:[%s32431_s4 + $0x10] sm:$0xff]  }
0x18ef   : > { %v32259_v16 = vadd.f32 %v17573_v1, %v32019_v55  ;;  %18380 = vmatpush1.bf16.msra.mxu0 %v25700_v29  ;;  %v25701_v55 = vld [vmem:[%s32431_s4 + $0x70] sm:$0xff]  }
0x18f0   : > { %18381 = vmatprep.subr.bf16.mxu0 %v25793_v53 }
0x18f3   : > { %v17656_v6 = vpop.f32.mrb[28].mxu0  ;;  %18382 = vmatpush1.bf16.msra.mxu0 %v25702_v26 }
0x18f4   : > { %v17658_v25 = vpop.f32.mrb[29].mxu0  ;;  %18383 = vmatprep.subr.bf16.mxu0 %v25793_v53  ;;  %v17705_v59 = vpack.c.bf16 %v17656_v6, %v17656_v6 }
0x18f5   : > { %v17706_v3 = vpack.c.bf16 %v17658_v25, %v17658_v25  ;;  %v17660_v27 = vpop.f32.mrb[30].mxu0 }
0x18f6   : > { %v17661_v28 = vpop.f32.mrb[31].mxu0 }
0x18f7   : > { %18193 = vmatprep.mubr.bf16.mxu1 %v17706_v3  ;;  %18384 = vmatpush1.bf16.msra.mxu0 %v25704_v7 }
0x18f8   : > { %18194 = vmatmul.mubr.bf16.vlgmr.msra.gmra.mrb[60].mxu1 %v17705_v59  ;;  %18385 = vmatprep.subr.bf16.mxu0 %v25793_v53 }
0x18f9   : > { %18543 = vmatpush1.bf16.msra.mxu1 %v25701_v55 }
0x18fa   : > { %18544 = vmatprep.subr.bf16.mxu1 %v25793_v53 }
0x18fb   : > { %18386 = vmatpush1.bf16.msra.mxu0 %v25706_v48 }
0x18fc   : > { %18387 = vmatprep.subr.bf16.mxu0 %v25793_v53 }
0x18fd   : > { %18545 = vmatpush1.bf16.msra.mxu1 %v25703_v19 }
0x18fe   : > { %18546 = vmatprep.subr.bf16.mxu1 %v25793_v53 }
0x18ff   : > { %18388 = vmatpush1.bf16.msra.mxu0 %v25708_v36 }
0x1900   : > { %18389 = vmatprep.subr.bf16.mxu0 %v25793_v53 }
0x1901   : > { %18547 = vmatpush1.bf16.msra.mxu1 %v25705_v42 }
0x1902   : > { %18548 = vmatprep.subr.bf16.mxu1 %v25793_v53 }
0x1903   : > { %18390 = vmatpush1.bf16.msra.mxu0 %v25710_v63 }
0x1904   : > { %18391 = vmatprep.subr.bf16.mxu0 %v25793_v53 }
0x1905   : > { %18549 = vmatpush1.bf16.msra.mxu1 %v25707_v40 }
0x1906   : > { %18550 = vmatprep.subr.bf16.mxu1 %v25793_v53 }
0x1907   : > { %18392 = vmatpush1.bf16.msra.mxu0 %v25712_v30 }
0x1908   : > { %18393 = vmatprep.subr.bf16.mxu0 %v25793_v53 }
0x1909   : > { %18551 = vmatpush1.bf16.msra.mxu1 %v25709_v0 }
0x190a   : > { %18552 = vmatprep.subr.bf16.mxu1 %v25793_v53 }
0x190b   : > { %18394 = vmatpush1.bf16.msra.mxu0 %v25714_v10 }
0x190c   : > { %18395 = vmatprep.subr.bf16.mxu0 %v25793_v53 }
0x190d   : > { %18553 = vmatpush1.bf16.msra.mxu1 %v25711_v13 }
0x190e   : > { %18554 = vmatprep.subr.bf16.mxu1 %v25793_v53 }
0x190f   : > { %18396 = vmatpush1.bf16.msra.mxu0 %v25716_v49 }
0x1910   : > { %18397 = vmatprep.subr.bf16.mxu0 %v25793_v53 }
0x1911   : > { %18555 = vmatpush1.bf16.msra.mxu1 %v25713_v57 }
0x1912   : > { %18556 = vmatprep.subr.bf16.mxu1 %v25793_v53 }
0x1913   : > { %18398 = vmatpush1.bf16.msra.mxu0 %v25718_v44 }
0x1914   : > { %18399 = vmatprep.subr.bf16.mxu0 %v25793_v53 }
0x1915   : > { %18557 = vmatpush1.bf16.msra.mxu1 %v25715_v15 }
0x1916   : > { %18558 = vmatprep.subr.bf16.mxu1 %v25793_v53 }
0x1917   : > { %18400 = vmatpush1.bf16.msra.mxu0 %v25720_v39 }
0x1918   : > { %18401 = vmatprep.subr.bf16.mxu0 %v25793_v53 }
0x1919   : > { %18559 = vmatpush1.bf16.msra.mxu1 %v25717_v12 }
0x191a   : > { %18560 = vmatprep.subr.bf16.mxu1 %v25793_v53 }
0x191b   : > { %18402 = vmatpush1.bf16.msra.mxu0 %v25722_v5 }
0x191c   : > { %18403 = vmatprep.subr.bf16.mxu0 %v25793_v53 }
0x191d   : > { %18561 = vmatpush1.bf16.msra.mxu1 %v25719_v23 }
0x191e   : > { %18562 = vmatprep.subr.bf16.mxu1 %v25793_v53 }
0x191f   : > { %18404 = vmatpush1.bf16.msra.mxu0 %v25724_v52 }
0x1920   : > { %18405 = vmatprep.subr.bf16.mxu0 %v25793_v53 }
0x1921   : > { %18563 = vmatpush1.bf16.msra.mxu1 %v25721_v17 }
0x1922   : > { %18564 = vmatprep.subr.bf16.mxu1 %v25793_v53 }
0x1923   : > { %18406 = vmatpush1.bf16.msra.mxu0 %v25726_v50 }
0x1925   : > { %18565 = vmatpush1.bf16.msra.mxu1 %v25723_v24 }
0x1926   : > { %18566 = vmatprep.subr.bf16.mxu1 %v25793_v53 }
0x1929   : > { %18567 = vmatpush1.bf16.msra.mxu1 %v25725_v14 }
0x192a   : > { %18568 = vmatprep.subr.bf16.mxu1 %v25793_v53 }
0x192d   : > { %18569 = vmatpush1.bf16.msra.mxu1 %v25727_v61 }
0x19b9   : > { %v18154_v58 = vpop.f32.mrb[32].mxu0 }
0x19ba   : > { %v18156_v62 = vpop.f32.mrb[33].mxu0 }
0x19bb   : > { %v18158_v46 = vpop.f32.mrb[34].mxu0 }
0x19bc   : > { %v18159_v51 = vpop.f32.mrb[35].mxu0 }
0x19c1   : > { %v18236_v54 = vpop.f32.mrb[36].mxu0 }
0x19c2   : > { %v18238_v34 = vpop.f32.mrb[37].mxu0 }
0x19c3   : > { %v18240_v22 = vpop.f32.mrb[38].mxu0 }
0x19c4   : > { %v18241_v31 = vpop.f32.mrb[39].mxu0 }
0x19cb   : > { %v18195_v60 = vpop.f32.mrb[60].mxu1 }
0x19cc   : > { %v18196_v53 = vadd.f32 %v18195_v60, %v18154_v58  ;;  %v18197_v2 = vpop.f32.mrb[61].mxu1 }
0x19cd   : > { %v18198_v8 = vadd.f32 %v18197_v2, %v18156_v62  ;;  %v18199_v33 = vpop.f32.mrb[62].mxu1 }
0x19ce   : > { %v18237_v32 = vadd.f32 %v18236_v54, %v18196_v53  ;;  %v18200_v43 = vpop.f32.mrb[63].mxu1 }
0x19cf   : > { %v18239_v45 = vadd.f32 %v18238_v34, %v18198_v8 }
0x19d0   : > { %v18243_v38 = vadd.f32 %v18237_v32, %v32255_v56 }
0x19d1   : > { %v18244_v29 = vadd.f32 %v18239_v45, %v32259_v16 }
0x19d2   : > { %v18257_v20 = vadd.f32 %v18250_v18, %v18243_v38 }
0x19d3   : > { %v18258_v4 = vadd.f32 %v18254_v35, %v18244_v29 }
0x19d4   : > { %v18259_v41 = vmax.f32 %v18257_v20, 0.0 }
0x19d5   : > { %v18260_v1 = vmax.f32 %v18258_v4, 0.0 }
0x19d6   : > { %v18261_v9 = vpack.c.bf16 %v18259_v41, %v18259_v41 }
0x19d7   : > { %v18262_v21 = vpack.c.bf16 %v18260_v1, %v18260_v1 }
0x19d8   : > { %v18450_v37 = vshrl.u32 %v18261_v9, 16 }
0x19d9   : > { %22145 = vmatprep.mubr.msk.bf16.mxu0 %vm7965_vm5, %v18262_v21  ;;  %v18452_v26 = vshrl.u32 %v18262_v21, 16 }
0x19da   : > { %18412 = vmatmul.mubr.bf16.vlgmr.msra.gmra.mrb[40].mxu0 %v18261_v9 }
0x19db   : > { %22188 = vmatprep.mubr.msk.bf16.mxu1 %vm7965_vm5, %v18452_v26 }
0x19dc   : > { %18575 = vmatmul.mubr.bf16.vlgmr.msra.gmra.mrb[64].mxu1 %v18450_v37 }
0x1aad   : > { %v18413_v56 = vpop.f32.mrb[40].mxu0 }
0x1aae   : > { %v18419_v16 = vadd.f32 %v18413_v56, %v18263_v47  ;;  %v18415_v6 = vpop.f32.mrb[41].mxu0 }
0x1aaf   : > { %v18416_v7 = vpop.f32.mrb[42].mxu0  ;;  %v18576_v25 = vpop.f32.mrb[64].mxu1 }
0x1ab0   : > { %v18582_v3 = vadd.f32 %v18576_v25, %v18419_v16  ;;  %v18417_v27 = vpop.f32.mrb[43].mxu0  ;;  %v18578_v55 = vpop.f32.mrb[65].mxu1 }
0x1ab1   : > { %v18579_v59 = vpop.f32.mrb[66].mxu1 }
0x1ab2   : > { %18583 = vst [vmem:[%s324_s22] sm:$0x1] %v18582_v3  ;;  %v18580_v28 = vpop.f32.mrb[67].mxu1 }
0x1ab3   : > { %25741 = shalt.err (!%p25738_p3)
}
0x1ab4   : > { %s25742_s14 = scalar_lea.hbm %s32385_s26, 16  ;;  %s25746_s22 = scalar_lea.hbm %s32436_s9, 32 }
0x1ab5   : > { %p25743_p4 = scmp.ne.s32.totalorder %s32385_s26, %s25742_s14  ;;  %p25747_p9 = scmp.lt.u32.totalorder %s32385_s26, %s32436_s9 }
0x1ab6   : > { %p25748_p10 = scmp.lt.u32.totalorder %s25746_s22, %s25742_s14  ;;  %p25750_p12 = scmp.lt.u32.totalorder %s25742_s14, %s32385_s26 }
0x1ab7   : > { %p25744_p7 = pnand %p25743_p4, %p25885_p5 }
0x1ab8   : > { %p25749_p11 = por %p25748_p10, %p25747_p9 }
0x1ab9   : > { %p25745_p8 = pneg %p25744_p7 }
0x1aba   : > { %p25751_p13 = por %p25750_p12, %p25749_p11 }
0x1abc   : > { %p25752_p0 = pnand %p25751_p13, %p25745_p8 }
0x1abe   : > { %25755 = shalt.err (!%p25752_p0)
}
0x1abf   : > { %23292 = dma.vmem_to_hbm [thread:$0]  (%p25885_p5), %s32387_s23, 16, %s32385_s26, %s18585_s13  }
0x1ac0 PF: > { %p23298_p1 = scmp.ge.s32.totalorder %s25790_s12, 2  ;;  %s18609_s27 = sand.u32 1, %s25778_s30  }
0x1ac1   : > { %s18610_s28 = scalar_lea.sflag [#allocation3], %s18609_s27 }
0x1ac2   : > { %p23295_p2 = pnand %p23298_p1, %p25889_p6 }
0x1ac4   : > { %25773 = dma.done.wait (!%p23295_p2), %s18610_s28, 16  }
0x1ac5   : > { %25775 = vsyncadd (!%p23295_p2), %s18610_s28, 4294967280  ;;  %p19_p3 = scmp.ge.s32.totalorder %s25872_s15, 4   ;;  %s32439_s30 = smov %s25782_s10 }
0x1ac6   : > { %s32440_s10 = smov %s25786_s11  ;;  %s32441_s11 = smov %s25883_s18 }
0x1ac7   : > { %s32442_s12 = smov %s25872_s15  ;;  %21 = sbr.rel (!%p19_p3) target bundleno = 3 (0x3), region = 116 }
0x1ace   :  { %18614 = vsyncpa [#allocation3], 1 }
0x1acf   :  { %18616 = vsyncpa [#allocation3 + $0x1], 1 }

</bundles_post_ra>
